<compile_context>
chip_gen: v6e
topology: v6e:2x2x1
jax: 0.10.0
libtpu: 0.0.40
codegen_flags: <defaults>
</compile_context>

<pallas_src>
import functools

import numpy as np
import jax
import jax.numpy as jnp
from jax.experimental import pallas as pl
from jax.experimental.pallas import tpu as pltpu


# ------------------------------ Pallas kernel ------------------------------

def _synres_kernel(x_ref, w1_ref, b1_ref, w2s_ref, b2_ref, o_ref,
                   xpad_ref, hpad_ref, col_ref, *, negative_slope):
    """Fused SynResBlock on one (H, W, C) image tile, everything in VMEM.

    x_ref  : (1, H, W, Ci)   bf16   input image tile
    w1_ref : (9*Ci, Ci)      bf16   conv1 taps flattened (row = tap*Ci + cin)
    b1_ref : (1, Ci)         f32
    w2s_ref: (10*Ci, Co)     bf16   conv2 taps (rows 0..9*Ci) + 1x1 skip rows
    b2_ref : (1, Co)         f32    b2 + b_skip (pre-added at pack time)
    o_ref  : (1, H, W, Co)   f32
    xpad_ref / hpad_ref: (H+2, W+2, Ci) bf16 scratch (zero-padded x / h)
    col_ref: (H*W, 10*Ci)    bf16 scratch (im2col slab, reused for both convs)
    """
    _, H, W, Ci = x_ref.shape
    Co = o_ref.shape[3]
    M = H * W
    bf16 = jnp.bfloat16

    # ---- zero ONLY the 1-pixel border of the pad buffers (4 thin strips) ----
    zrow = jnp.zeros((1, W + 2, Ci), bf16)
    zcol = jnp.zeros((H + 2, 1, Ci), bf16)
    for pad in (xpad_ref, hpad_ref):
        pad[0:1, :, :] = zrow
        pad[H + 1:H + 2, :, :] = zrow
        pad[:, 0:1, :] = zcol
        pad[:, W + 1:W + 2, :] = zcol

    # ---- padded x interior (straight bf16 copy) ----
    xpad_ref[1:H + 1, 1:W + 1, :] = x_ref[0]

    # ---- conv1 im2col slab: 9 taps of xpad.  Tap 4 (center) == x itself,
    #      which is also the skip-path block kept in columns [9*Ci:10*Ci). ----
    x_flat = x_ref[0].reshape(M, Ci)
    col_ref[:, 4 * Ci:5 * Ci] = x_flat
    col_ref[:, 9 * Ci:10 * Ci] = x_flat
    for dy in range(3):
        for dx in range(3):
            tap = dy * 3 + dx
            if tap == 4:
                continue
            col_ref[:, tap * Ci:(tap + 1) * Ci] = (
                xpad_ref[dy:dy + H, dx:dx + W, :].reshape(M, Ci))

    # ---- conv1 = ONE (M, 9*Ci) x (9*Ci, Ci) matmul; MXU accumulates over K ----
    h = jnp.dot(col_ref[:, :9 * Ci], w1_ref[...],
                preferred_element_type=jnp.float32)
    h = h + b1_ref[...]
    h = jnp.where(h >= 0, h, h * negative_slope).astype(bf16)   # LeakyReLU(0.2)

    # ---- padded h interior; write conv2's center tap directly from h ----
    hpad_ref[1:H + 1, 1:W + 1, :] = h.reshape(H, W, Ci)
    col_ref[:, 4 * Ci:5 * Ci] = h

    # ---- conv2 im2col: overwrite tap blocks with shifted windows of hpad.
    #      The x block at [9*Ci:10*Ci) stays and carries the fused 1x1 skip. ----
    for dy in range(3):
        for dx in range(3):
            tap = dy * 3 + dx
            if tap == 4:
                continue
            col_ref[:, tap * Ci:(tap + 1) * Ci] = (
                hpad_ref[dy:dy + H, dx:dx + W, :].reshape(M, Ci))

    # ---- conv2 + skip = ONE (M, 10*Ci) x (10*Ci, Co) matmul + fused bias ----
    out = jnp.dot(col_ref[...], w2s_ref[...],
                  preferred_element_type=jnp.float32) + b2_ref[...]
    o_ref[...] = out.reshape(1, H, W, Co).astype(o_ref.dtype)


# ------------------------- parameter setup / packing -----------------------

def _round_up(x, m):
    return ((x + m - 1) // m) * m


def _spectral_normalize(w_oihw):
    # SpectralNorm divides the weight (reshaped to (out, -1)) by its top
    # singular value.  Done exactly via SVD at setup time (PyTorch's converged
    # power iteration yields the same sigma up to estimation error).
    cout = w_oihw.shape[0]
    wm = np.asarray(w_oihw).reshape(cout, -1)
    sigma = float(np.linalg.svd(wm, compute_uv=False)[0])
    return w_oihw / jnp.asarray(sigma, w_oihw.dtype)


def init_synresblock_params(key, in_channel, out_channel):
    """Mirrors SynResBlock.__init__ layer shapes (OIHW weights + biases)."""
    k1, k2, k3, k4, k5, k6 = jax.random.split(key, 6)
    w1 = _spectral_normalize(
        jax.random.normal(k1, (in_channel, in_channel, 3, 3), jnp.float32) * 0.1)
    b1 = jax.random.normal(k2, (in_channel,), jnp.float32) * 0.01
    w2 = _spectral_normalize(
        jax.random.normal(k3, (out_channel, in_channel, 3, 3), jnp.float32) * 0.1)
    b2 = jax.random.normal(k4, (out_channel,), jnp.float32) * 0.01
    ws = _spectral_normalize(
        jax.random.normal(k5, (out_channel, in_channel, 1, 1), jnp.float32) * 0.1)
    bs = jax.random.normal(k6, (out_channel,), jnp.float32) * 0.01
    return dict(w1=w1, b1=b1, w2=w2, b2=b2, ws=ws, bs=bs)


def _taps_3x3(w_oihw, ci_p, co_p):
    """OIHW 3x3 -> (9*ci_p, co_p) matrix; row index = (ky*3+kx)*ci_p + cin."""
    co, ci, kh, kw = w_oihw.shape
    taps = jnp.transpose(w_oihw, (2, 3, 1, 0)).reshape(kh * kw, ci, co)
    taps = jnp.pad(taps, ((0, 0), (0, ci_p - ci), (0, co_p - co)))
    return taps.reshape(kh * kw * ci_p, co_p)


def _mat_1x1(w_oihw, ci_p, co_p):
    co, ci = w_oihw.shape[:2]
    w = jnp.transpose(w_oihw[:, :, 0, 0], (1, 0))
    return jnp.pad(w, ((0, ci_p - ci), (0, co_p - co)))


def _pack_bias(b, c_p):
    return jnp.pad(b, (0, c_p - b.shape[0])).reshape(1, c_p).astype(jnp.float32)


# --------------------------------- forward ---------------------------------

def synres_block_forward(x_nchw, params, *, negative_slope=0.2):
    """SynResBlock forward.  x: (N, Cin, H, W) f32 -> (N, Cout, H, W) f32."""
    N, Cin, H, W = x_nchw.shape
    Cout = params['w2'].shape[0]
    Ci = _round_up(Cin, 128)          # lane-dense channels (no-op at 512 ch)
    Co = _round_up(Cout, 128)
    M = H * W

    x = jnp.transpose(x_nchw, (0, 2, 3, 1)).astype(jnp.bfloat16)  # NHWC bf16
    if Ci != Cin:
        x = jnp.pad(x, ((0, 0), (0, 0), (0, 0), (0, Ci - Cin)))

    # conv1 as a single (9*Ci, Ci) matrix; conv2 + fused 1x1 skip as (10*Ci, Co).
    w1 = _taps_3x3(params['w1'], Ci, Ci).astype(jnp.bfloat16)
    b1 = _pack_bias(params['b1'], Ci)
    w2s = jnp.concatenate(
        [_taps_3x3(params['w2'], Ci, Co), _mat_1x1(params['ws'], Ci, Co)],
        axis=0).astype(jnp.bfloat16)
    b2s = _pack_bias(params['b2'] + params['bs'], Co)   # bias + skip bias fused

    kernel = functools.partial(_synres_kernel, negative_slope=negative_slope)

    out = pl.pallas_call(
        kernel,
        grid=(N,),
        in_specs=[
            pl.BlockSpec((1, H, W, Ci), lambda n: (n, 0, 0, 0)),   # x
            pl.BlockSpec((9 * Ci, Ci), lambda n: (0, 0)),          # conv1 taps
            pl.BlockSpec((1, Ci), lambda n: (0, 0)),               # b1
            pl.BlockSpec((10 * Ci, Co), lambda n: (0, 0)),         # conv2 + skip
            pl.BlockSpec((1, Co), lambda n: (0, 0)),               # b2 + b_skip
        ],
        out_specs=pl.BlockSpec((1, H, W, Co), lambda n: (n, 0, 0, 0)),
        out_shape=jax.ShapeDtypeStruct((N, H, W, Co), jnp.float32),
        scratch_shapes=[
            pltpu.VMEM((H + 2, W + 2, Ci), jnp.bfloat16),   # zero-padded x
            pltpu.VMEM((H + 2, W + 2, Ci), jnp.bfloat16),   # zero-padded h
            pltpu.VMEM((M, 10 * Ci), jnp.bfloat16),         # im2col slab
        ],
        compiler_params=pltpu.CompilerParams(
            dimension_semantics=("parallel",),
            vmem_limit_bytes=48 * 1024 * 1024,   # headroom on v7x's 64 MiB VMEM
        ),
    )(x, w1, b1, w2s, b2s)

    out = out[..., :Cout]                      # drop lane padding (no-op if aligned)
    return jnp.transpose(out, (0, 3, 1, 2))    # NHWC -> NCHW


# ------------------------- pure-XLA reference check ------------------------

def synres_block_reference(x_nchw, params, *, negative_slope=0.2):
    """Reference mirroring the kernel's bf16-operand / f32-accumulate numerics."""
    def conv(x, w, b, pad):
        y = jax.lax.conv_general_dilated(
            x.astype(jnp.bfloat16), w.astype(jnp.bfloat16),
            window_strides=(1, 1), padding=[(pad, pad), (pad, pad)],
            dimension_numbers=("NCHW", "OIHW", "NCHW"),
            preferred_element_type=jnp.float32)
        return y + b.reshape(1, -1, 1, 1)

    h = conv(x_nchw, params["w1"], params["b1"], 1)
    h = jnp.where(h >= 0, h, h * negative_slope)
    out = conv(h, params["w2"], params["b2"], 1)
    skip = conv(x_nchw, params["ws"], params["bs"], 0)
    return out + skip


# ----------------------------------- main -----------------------------------

if __name__ == "__main__":
    N, Cin, Cout, H, W = 2, 32, 64, 16, 16

    key = jax.random.PRNGKey(0)
    pkey, xkey = jax.random.split(key)
    params = init_synresblock_params(pkey, Cin, Cout)
    x = jax.random.normal(xkey, (N, Cin, H, W), jnp.float32)

    out = jax.block_until_ready(jax.jit(synres_block_forward)(x, params))
    assert out.shape == (N, Cout, H, W), out.shape
    assert bool(jnp.all(jnp.isfinite(out)))

    ref = jax.block_until_ready(synres_block_reference(x, params))
    np.testing.assert_allclose(np.asarray(out), np.asarray(ref),
                               rtol=3e-2, atol=3e-2)

    print("KERNEL_OK")
</pallas_src>

<mosaic_0001>
module attributes {stable_mosaic.version = 11 : i64} {
  func.func @_synres_kernel(%arg0: i32, %arg1: memref<1x16x16x128xbf16, #tpu.memory_space<vmem>>, %arg2: memref<1152x128xbf16, #tpu.memory_space<vmem>>, %arg3: memref<1x128xf32, #tpu.memory_space<vmem>>, %arg4: memref<1280x128xbf16, #tpu.memory_space<vmem>>, %arg5: memref<1x128xf32, #tpu.memory_space<vmem>>, %arg6: memref<1x16x16x128xf32, #tpu.memory_space<vmem>>, %arg7: memref<18x18x128xbf16, #tpu.memory_space<vmem>>, %arg8: memref<18x18x128xbf16, #tpu.memory_space<vmem>>, %arg9: memref<256x1280xbf16, #tpu.memory_space<vmem>>) attributes {dimension_semantics = [#tpu.dimension_semantics<parallel>], iteration_bounds = array<i64: 2>, scalar_prefetch = 0 : i64, scratch_operands = 3 : i64, tpu.core_type = #tpu.core_type<tc>, window_params = [{transform_indices = @transform_0, window_bounds = array<i64: 1, 16, 16, 128>}, {pipeline_mode = #tpu.pipeline_mode<synchronous>, transform_indices = @transform_1, window_bounds = array<i64: 1152, 128>}, {pipeline_mode = #tpu.pipeline_mode<synchronous>, transform_indices = @transform_2, window_bounds = array<i64: 1, 128>}, {pipeline_mode = #tpu.pipeline_mode<synchronous>, transform_indices = @transform_3, window_bounds = array<i64: 1280, 128>}, {pipeline_mode = #tpu.pipeline_mode<synchronous>, transform_indices = @transform_4, window_bounds = array<i64: 1, 128>}, {transform_indices = @transform_5, window_bounds = array<i64: 1, 16, 16, 128>}]} {
    %cst = arith.constant 0.000000e+00 : bf16
    %0 = vector.broadcast %cst : bf16 to vector<1x18x128xbf16>
    %cst_0 = arith.constant 0.000000e+00 : bf16
    %1 = vector.broadcast %cst_0 : bf16 to vector<18x1x128xbf16>
    %c0 = arith.constant 0 : index
    %c0_1 = arith.constant 0 : index
    %c0_2 = arith.constant 0 : index
    %2 = vector.load %arg7[%c0, %c0_1, %c0_2] : memref<18x18x128xbf16, #tpu.memory_space<vmem>>, vector<1x18x128xbf16>
    tpu.vector_store %arg7[%c0, %c0_1, %c0_2], %0 {strides = array<i32>} : memref<18x18x128xbf16, #tpu.memory_space<vmem>>, vector<1x18x128xbf16>,
    %c17 = arith.constant 17 : index
    %c0_3 = arith.constant 0 : index
    %c0_4 = arith.constant 0 : index
    %3 = vector.load %arg7[%c17, %c0_3, %c0_4] : memref<18x18x128xbf16, #tpu.memory_space<vmem>>, vector<1x18x128xbf16>
    tpu.vector_store %arg7[%c17, %c0_3, %c0_4], %0 {strides = array<i32>} : memref<18x18x128xbf16, #tpu.memory_space<vmem>>, vector<1x18x128xbf16>,
    %c0_5 = arith.constant 0 : index
    %c0_6 = arith.constant 0 : index
    %c0_7 = arith.constant 0 : index
    %4 = vector.load %arg7[%c0_5, %c0_6, %c0_7] : memref<18x18x128xbf16, #tpu.memory_space<vmem>>, vector<18x1x128xbf16>
    tpu.vector_store %arg7[%c0_5, %c0_6, %c0_7], %1 {strides = array<i32>} : memref<18x18x128xbf16, #tpu.memory_space<vmem>>, vector<18x1x128xbf16>,
    %c0_8 = arith.constant 0 : index
    %c17_9 = arith.constant 17 : index
    %c0_10 = arith.constant 0 : index
    %5 = vector.load %arg7[%c0_8, %c17_9, %c0_10] : memref<18x18x128xbf16, #tpu.memory_space<vmem>>, vector<18x1x128xbf16>
    tpu.vector_store %arg7[%c0_8, %c17_9, %c0_10], %1 {strides = array<i32>} : memref<18x18x128xbf16, #tpu.memory_space<vmem>>, vector<18x1x128xbf16>,
    %c0_11 = arith.constant 0 : index
    %c0_12 = arith.constant 0 : index
    %c0_13 = arith.constant 0 : index
    %6 = vector.load %arg8[%c0_11, %c0_12, %c0_13] : memref<18x18x128xbf16, #tpu.memory_space<vmem>>, vector<1x18x128xbf16>
    tpu.vector_store %arg8[%c0_11, %c0_12, %c0_13], %0 {strides = array<i32>} : memref<18x18x128xbf16, #tpu.memory_space<vmem>>, vector<1x18x128xbf16>,
    %c17_14 = arith.constant 17 : index
    %c0_15 = arith.constant 0 : index
    %c0_16 = arith.constant 0 : index
    %7 = vector.load %arg8[%c17_14, %c0_15, %c0_16] : memref<18x18x128xbf16, #tpu.memory_space<vmem>>, vector<1x18x128xbf16>
    tpu.vector_store %arg8[%c17_14, %c0_15, %c0_16], %0 {strides = array<i32>} : memref<18x18x128xbf16, #tpu.memory_space<vmem>>, vector<1x18x128xbf16>,
    %c0_17 = arith.constant 0 : index
    %c0_18 = arith.constant 0 : index
    %c0_19 = arith.constant 0 : index
    %8 = vector.load %arg8[%c0_17, %c0_18, %c0_19] : memref<18x18x128xbf16, #tpu.memory_space<vmem>>, vector<18x1x128xbf16>
    tpu.vector_store %arg8[%c0_17, %c0_18, %c0_19], %1 {strides = array<i32>} : memref<18x18x128xbf16, #tpu.memory_space<vmem>>, vector<18x1x128xbf16>,
    %c0_20 = arith.constant 0 : index
    %c17_21 = arith.constant 17 : index
    %c0_22 = arith.constant 0 : index
    %9 = vector.load %arg8[%c0_20, %c17_21, %c0_22] : memref<18x18x128xbf16, #tpu.memory_space<vmem>>, vector<18x1x128xbf16>
    tpu.vector_store %arg8[%c0_20, %c17_21, %c0_22], %1 {strides = array<i32>} : memref<18x18x128xbf16, #tpu.memory_space<vmem>>, vector<18x1x128xbf16>,
    %c0_23 = arith.constant 0 : index
    %c0_24 = arith.constant 0 : index
    %c0_25 = arith.constant 0 : index
    %c0_26 = arith.constant 0 : index
    %10 = vector.load %arg1[%c0_23, %c0_24, %c0_25, %c0_26] : memref<1x16x16x128xbf16, #tpu.memory_space<vmem>>, vector<1x16x16x128xbf16>
    %11 = vector.shape_cast %10 : vector<1x16x16x128xbf16> to vector<16x16x128xbf16>
    %c1 = arith.constant 1 : index
    %c1_27 = arith.constant 1 : index
    %c0_28 = arith.constant 0 : index
    %12 = vector.load %arg7[%c1, %c1_27, %c0_28] : memref<18x18x128xbf16, #tpu.memory_space<vmem>>, vector<16x16x128xbf16>
    tpu.vector_store %arg7[%c1, %c1_27, %c0_28], %11 {strides = array<i32>} : memref<18x18x128xbf16, #tpu.memory_space<vmem>>, vector<16x16x128xbf16>,
    %c0_29 = arith.constant 0 : index
    %c0_30 = arith.constant 0 : index
    %c0_31 = arith.constant 0 : index
    %c0_32 = arith.constant 0 : index
    %13 = vector.load %arg1[%c0_29, %c0_30, %c0_31, %c0_32] : memref<1x16x16x128xbf16, #tpu.memory_space<vmem>>, vector<1x16x16x128xbf16>
    %14 = vector.shape_cast %13 : vector<1x16x16x128xbf16> to vector<16x16x128xbf16>
    %15 = vector.shape_cast %14 : vector<16x16x128xbf16> to vector<256x128xbf16>
    %c0_33 = arith.constant 0 : index
    %c512 = arith.constant 512 : index
    %16 = vector.load %arg9[%c0_33, %c512] : memref<256x1280xbf16, #tpu.memory_space<vmem>>, vector<256x128xbf16>
    tpu.vector_store %arg9[%c0_33, %c512], %15 {strides = array<i32>} : memref<256x1280xbf16, #tpu.memory_space<vmem>>, vector<256x128xbf16>,
    %c0_34 = arith.constant 0 : index
    %c1152 = arith.constant 1152 : index
    %17 = vector.load %arg9[%c0_34, %c1152] : memref<256x1280xbf16, #tpu.memory_space<vmem>>, vector<256x128xbf16>
    tpu.vector_store %arg9[%c0_34, %c1152], %15 {strides = array<i32>} : memref<256x1280xbf16, #tpu.memory_space<vmem>>, vector<256x128xbf16>,
    %c0_35 = arith.constant 0 : index
    %c0_36 = arith.constant 0 : index
    %c0_37 = arith.constant 0 : index
    %18 = vector.load %arg7[%c0_35, %c0_36, %c0_37] : memref<18x18x128xbf16, #tpu.memory_space<vmem>>, vector<16x16x128xbf16>
    %19 = vector.shape_cast %18 : vector<16x16x128xbf16> to vector<256x128xbf16>
    %c0_38 = arith.constant 0 : index
    %c0_39 = arith.constant 0 : index
    %20 = vector.load %arg9[%c0_38, %c0_39] : memref<256x1280xbf16, #tpu.memory_space<vmem>>, vector<256x128xbf16>
    tpu.vector_store %arg9[%c0_38, %c0_39], %19 {strides = array<i32>} : memref<256x1280xbf16, #tpu.memory_space<vmem>>, vector<256x128xbf16>,
    %c0_40 = arith.constant 0 : index
    %c1_41 = arith.constant 1 : index
    %c0_42 = arith.constant 0 : index
    %21 = vector.load %arg7[%c0_40, %c1_41, %c0_42] : memref<18x18x128xbf16, #tpu.memory_space<vmem>>, vector<16x16x128xbf16>
    %22 = vector.shape_cast %21 : vector<16x16x128xbf16> to vector<256x128xbf16>
    %c0_43 = arith.constant 0 : index
    %c128 = arith.constant 128 : index
    %23 = vector.load %arg9[%c0_43, %c128] : memref<256x1280xbf16, #tpu.memory_space<vmem>>, vector<256x128xbf16>
    tpu.vector_store %arg9[%c0_43, %c128], %22 {strides = array<i32>} : memref<256x1280xbf16, #tpu.memory_space<vmem>>, vector<256x128xbf16>,
    %c0_44 = arith.constant 0 : index
    %c2 = arith.constant 2 : index
    %c0_45 = arith.constant 0 : index
    %24 = vector.load %arg7[%c0_44, %c2, %c0_45] : memref<18x18x128xbf16, #tpu.memory_space<vmem>>, vector<16x16x128xbf16>
    %25 = vector.shape_cast %24 : vector<16x16x128xbf16> to vector<256x128xbf16>
    %c0_46 = arith.constant 0 : index
    %c256 = arith.constant 256 : index
    %26 = vector.load %arg9[%c0_46, %c256] : memref<256x1280xbf16, #tpu.memory_space<vmem>>, vector<256x128xbf16>
    tpu.vector_store %arg9[%c0_46, %c256], %25 {strides = array<i32>} : memref<256x1280xbf16, #tpu.memory_space<vmem>>, vector<256x128xbf16>,
    %c1_47 = arith.constant 1 : index
    %c0_48 = arith.constant 0 : index
    %c0_49 = arith.constant 0 : index
    %27 = vector.load %arg7[%c1_47, %c0_48, %c0_49] : memref<18x18x128xbf16, #tpu.memory_space<vmem>>, vector<16x16x128xbf16>
    %28 = vector.shape_cast %27 : vector<16x16x128xbf16> to vector<256x128xbf16>
    %c0_50 = arith.constant 0 : index
    %c384 = arith.constant 384 : index
    %29 = vector.load %arg9[%c0_50, %c384] : memref<256x1280xbf16, #tpu.memory_space<vmem>>, vector<256x128xbf16>
    tpu.vector_store %arg9[%c0_50, %c384], %28 {strides = array<i32>} : memref<256x1280xbf16, #tpu.memory_space<vmem>>, vector<256x128xbf16>,
    %c1_51 = arith.constant 1 : index
    %c2_52 = arith.constant 2 : index
    %c0_53 = arith.constant 0 : index
    %30 = vector.load %arg7[%c1_51, %c2_52, %c0_53] : memref<18x18x128xbf16, #tpu.memory_space<vmem>>, vector<16x16x128xbf16>
    %31 = vector.shape_cast %30 : vector<16x16x128xbf16> to vector<256x128xbf16>
    %c0_54 = arith.constant 0 : index
    %c640 = arith.constant 640 : index
    %32 = vector.load %arg9[%c0_54, %c640] : memref<256x1280xbf16, #tpu.memory_space<vmem>>, vector<256x128xbf16>
    tpu.vector_store %arg9[%c0_54, %c640], %31 {strides = array<i32>} : memref<256x1280xbf16, #tpu.memory_space<vmem>>, vector<256x128xbf16>,
    %c2_55 = arith.constant 2 : index
    %c0_56 = arith.constant 0 : index
    %c0_57 = arith.constant 0 : index
    %33 = vector.load %arg7[%c2_55, %c0_56, %c0_57] : memref<18x18x128xbf16, #tpu.memory_space<vmem>>, vector<16x16x128xbf16>
    %34 = vector.shape_cast %33 : vector<16x16x128xbf16> to vector<256x128xbf16>
    %c0_58 = arith.constant 0 : index
    %c768 = arith.constant 768 : index
    %35 = vector.load %arg9[%c0_58, %c768] : memref<256x1280xbf16, #tpu.memory_space<vmem>>, vector<256x128xbf16>
    tpu.vector_store %arg9[%c0_58, %c768], %34 {strides = array<i32>} : memref<256x1280xbf16, #tpu.memory_space<vmem>>, vector<256x128xbf16>,
    %c2_59 = arith.constant 2 : index
    %c1_60 = arith.constant 1 : index
    %c0_61 = arith.constant 0 : index
    %36 = vector.load %arg7[%c2_59, %c1_60, %c0_61] : memref<18x18x128xbf16, #tpu.memory_space<vmem>>, vector<16x16x128xbf16>
    %37 = vector.shape_cast %36 : vector<16x16x128xbf16> to vector<256x128xbf16>
    %c0_62 = arith.constant 0 : index
    %c896 = arith.constant 896 : index
    %38 = vector.load %arg9[%c0_62, %c896] : memref<256x1280xbf16, #tpu.memory_space<vmem>>, vector<256x128xbf16>
    tpu.vector_store %arg9[%c0_62, %c896], %37 {strides = array<i32>} : memref<256x1280xbf16, #tpu.memory_space<vmem>>, vector<256x128xbf16>,
    %c2_63 = arith.constant 2 : index
    %c2_64 = arith.constant 2 : index
    %c0_65 = arith.constant 0 : index
    %39 = vector.load %arg7[%c2_63, %c2_64, %c0_65] : memref<18x18x128xbf16, #tpu.memory_space<vmem>>, vector<16x16x128xbf16>
    %40 = vector.shape_cast %39 : vector<16x16x128xbf16> to vector<256x128xbf16>
    %c0_66 = arith.constant 0 : index
    %c1024 = arith.constant 1024 : index
    %41 = vector.load %arg9[%c0_66, %c1024] : memref<256x1280xbf16, #tpu.memory_space<vmem>>, vector<256x128xbf16>
    tpu.vector_store %arg9[%c0_66, %c1024], %40 {strides = array<i32>} : memref<256x1280xbf16, #tpu.memory_space<vmem>>, vector<256x128xbf16>,
    %c0_67 = arith.constant 0 : index
    %c0_68 = arith.constant 0 : index
    %42 = vector.load %arg9[%c0_67, %c0_68] : memref<256x1280xbf16, #tpu.memory_space<vmem>>, vector<256x1152xbf16>
    %c0_69 = arith.constant 0 : index
    %c0_70 = arith.constant 0 : index
    %43 = vector.load %arg2[%c0_69, %c0_70] : memref<1152x128xbf16, #tpu.memory_space<vmem>>, vector<1152x128xbf16>
    %cst_71 = arith.constant dense<0.000000e+00> : vector<256x128xf32>
    %44 = tpu.matmul %42, %43, %cst_71 {dimension_numbers = #tpu.dot_dimension_numbers<[1], [0], [0], [1], [0, 0, 1, 1], [], []>} : vector<256x1152xbf16>, vector<1152x128xbf16>, vector<256x128xf32> -> vector<256x128xf32>
    %c0_72 = arith.constant 0 : index
    %c0_73 = arith.constant 0 : index
    %45 = vector.load %arg3[%c0_72, %c0_73] : memref<1x128xf32, #tpu.memory_space<vmem>>, vector<1x128xf32>
    %46 = vector.broadcast %45 : vector<1x128xf32> to vector<256x128xf32>
    %47 = arith.addf %44, %46 : vector<256x128xf32>
    %cst_74 = arith.constant 0.000000e+00 : f32
    %48 = vector.broadcast %cst_74 : f32 to vector<256x128xf32>
    %49 = arith.cmpf oge, %47, %48 : vector<256x128xf32>
    %cst_75 = arith.constant 2.000000e-01 : f32
    %50 = vector.broadcast %cst_75 : f32 to vector<256x128xf32>
    %51 = arith.mulf %47, %50 : vector<256x128xf32>
    %52 = arith.select %49, %47, %51 : vector<256x128xi1>, vector<256x128xf32>
    %53 = arith.truncf %52 : vector<256x128xf32> to vector<256x128xbf16>
    %54 = vector.shape_cast %53 : vector<256x128xbf16> to vector<16x16x128xbf16>
    %c1_76 = arith.constant 1 : index
    %c1_77 = arith.constant 1 : index
    %c0_78 = arith.constant 0 : index
    %55 = vector.load %arg8[%c1_76, %c1_77, %c0_78] : memref<18x18x128xbf16, #tpu.memory_space<vmem>>, vector<16x16x128xbf16>
    tpu.vector_store %arg8[%c1_76, %c1_77, %c0_78], %54 {strides = array<i32>} : memref<18x18x128xbf16, #tpu.memory_space<vmem>>, vector<16x16x128xbf16>,
    %c0_79 = arith.constant 0 : index
    %c512_80 = arith.constant 512 : index
    %56 = vector.load %arg9[%c0_79, %c512_80] : memref<256x1280xbf16, #tpu.memory_space<vmem>>, vector<256x128xbf16>
    tpu.vector_store %arg9[%c0_79, %c512_80], %53 {strides = array<i32>} : memref<256x1280xbf16, #tpu.memory_space<vmem>>, vector<256x128xbf16>,
    %c0_81 = arith.constant 0 : index
    %c0_82 = arith.constant 0 : index
    %c0_83 = arith.constant 0 : index
    %57 = vector.load %arg8[%c0_81, %c0_82, %c0_83] : memref<18x18x128xbf16, #tpu.memory_space<vmem>>, vector<16x16x128xbf16>
    %58 = vector.shape_cast %57 : vector<16x16x128xbf16> to vector<256x128xbf16>
    %c0_84 = arith.constant 0 : index
    %c0_85 = arith.constant 0 : index
    %59 = vector.load %arg9[%c0_84, %c0_85] : memref<256x1280xbf16, #tpu.memory_space<vmem>>, vector<256x128xbf16>
    tpu.vector_store %arg9[%c0_84, %c0_85], %58 {strides = array<i32>} : memref<256x1280xbf16, #tpu.memory_space<vmem>>, vector<256x128xbf16>,
    %c0_86 = arith.constant 0 : index
    %c1_87 = arith.constant 1 : index
    %c0_88 = arith.constant 0 : index
    %60 = vector.load %arg8[%c0_86, %c1_87, %c0_88] : memref<18x18x128xbf16, #tpu.memory_space<vmem>>, vector<16x16x128xbf16>
    %61 = vector.shape_cast %60 : vector<16x16x128xbf16> to vector<256x128xbf16>
    %c0_89 = arith.constant 0 : index
    %c128_90 = arith.constant 128 : index
    %62 = vector.load %arg9[%c0_89, %c128_90] : memref<256x1280xbf16, #tpu.memory_space<vmem>>, vector<256x128xbf16>
    tpu.vector_store %arg9[%c0_89, %c128_90], %61 {strides = array<i32>} : memref<256x1280xbf16, #tpu.memory_space<vmem>>, vector<256x128xbf16>,
    %c0_91 = arith.constant 0 : index
    %c2_92 = arith.constant 2 : index
    %c0_93 = arith.constant 0 : index
    %63 = vector.load %arg8[%c0_91, %c2_92, %c0_93] : memref<18x18x128xbf16, #tpu.memory_space<vmem>>, vector<16x16x128xbf16>
    %64 = vector.shape_cast %63 : vector<16x16x128xbf16> to vector<256x128xbf16>
    %c0_94 = arith.constant 0 : index
    %c256_95 = arith.constant 256 : index
    %65 = vector.load %arg9[%c0_94, %c256_95] : memref<256x1280xbf16, #tpu.memory_space<vmem>>, vector<256x128xbf16>
    tpu.vector_store %arg9[%c0_94, %c256_95], %64 {strides = array<i32>} : memref<256x1280xbf16, #tpu.memory_space<vmem>>, vector<256x128xbf16>,
    %c1_96 = arith.constant 1 : index
    %c0_97 = arith.constant 0 : index
    %c0_98 = arith.constant 0 : index
    %66 = vector.load %arg8[%c1_96, %c0_97, %c0_98] : memref<18x18x128xbf16, #tpu.memory_space<vmem>>, vector<16x16x128xbf16>
    %67 = vector.shape_cast %66 : vector<16x16x128xbf16> to vector<256x128xbf16>
    %c0_99 = arith.constant 0 : index
    %c384_100 = arith.constant 384 : index
    %68 = vector.load %arg9[%c0_99, %c384_100] : memref<256x1280xbf16, #tpu.memory_space<vmem>>, vector<256x128xbf16>
    tpu.vector_store %arg9[%c0_99, %c384_100], %67 {strides = array<i32>} : memref<256x1280xbf16, #tpu.memory_space<vmem>>, vector<256x128xbf16>,
    %c1_101 = arith.constant 1 : index
    %c2_102 = arith.constant 2 : index
    %c0_103 = arith.constant 0 : index
    %69 = vector.load %arg8[%c1_101, %c2_102, %c0_103] : memref<18x18x128xbf16, #tpu.memory_space<vmem>>, vector<16x16x128xbf16>
    %70 = vector.shape_cast %69 : vector<16x16x128xbf16> to vector<256x128xbf16>
    %c0_104 = arith.constant 0 : index
    %c640_105 = arith.constant 640 : index
    %71 = vector.load %arg9[%c0_104, %c640_105] : memref<256x1280xbf16, #tpu.memory_space<vmem>>, vector<256x128xbf16>
    tpu.vector_store %arg9[%c0_104, %c640_105], %70 {strides = array<i32>} : memref<256x1280xbf16, #tpu.memory_space<vmem>>, vector<256x128xbf16>,
    %c2_106 = arith.constant 2 : index
    %c0_107 = arith.constant 0 : index
    %c0_108 = arith.constant 0 : index
    %72 = vector.load %arg8[%c2_106, %c0_107, %c0_108] : memref<18x18x128xbf16, #tpu.memory_space<vmem>>, vector<16x16x128xbf16>
    %73 = vector.shape_cast %72 : vector<16x16x128xbf16> to vector<256x128xbf16>
    %c0_109 = arith.constant 0 : index
    %c768_110 = arith.constant 768 : index
    %74 = vector.load %arg9[%c0_109, %c768_110] : memref<256x1280xbf16, #tpu.memory_space<vmem>>, vector<256x128xbf16>
    tpu.vector_store %arg9[%c0_109, %c768_110], %73 {strides = array<i32>} : memref<256x1280xbf16, #tpu.memory_space<vmem>>, vector<256x128xbf16>,
    %c2_111 = arith.constant 2 : index
    %c1_112 = arith.constant 1 : index
    %c0_113 = arith.constant 0 : index
    %75 = vector.load %arg8[%c2_111, %c1_112, %c0_113] : memref<18x18x128xbf16, #tpu.memory_space<vmem>>, vector<16x16x128xbf16>
    %76 = vector.shape_cast %75 : vector<16x16x128xbf16> to vector<256x128xbf16>
    %c0_114 = arith.constant 0 : index
    %c896_115 = arith.constant 896 : index
    %77 = vector.load %arg9[%c0_114, %c896_115] : memref<256x1280xbf16, #tpu.memory_space<vmem>>, vector<256x128xbf16>
    tpu.vector_store %arg9[%c0_114, %c896_115], %76 {strides = array<i32>} : memref<256x1280xbf16, #tpu.memory_space<vmem>>, vector<256x128xbf16>,
    %c2_116 = arith.constant 2 : index
    %c2_117 = arith.constant 2 : index
    %c0_118 = arith.constant 0 : index
    %78 = vector.load %arg8[%c2_116, %c2_117, %c0_118] : memref<18x18x128xbf16, #tpu.memory_space<vmem>>, vector<16x16x128xbf16>
    %79 = vector.shape_cast %78 : vector<16x16x128xbf16> to vector<256x128xbf16>
    %c0_119 = arith.constant 0 : index
    %c1024_120 = arith.constant 1024 : index
    %80 = vector.load %arg9[%c0_119, %c1024_120] : memref<256x1280xbf16, #tpu.memory_space<vmem>>, vector<256x128xbf16>
    tpu.vector_store %arg9[%c0_119, %c1024_120], %79 {strides = array<i32>} : memref<256x1280xbf16, #tpu.memory_space<vmem>>, vector<256x128xbf16>,
    %c0_121 = arith.constant 0 : index
    %c0_122 = arith.constant 0 : index
    %81 = vector.load %arg9[%c0_121, %c0_122] : memref<256x1280xbf16, #tpu.memory_space<vmem>>, vector<256x1280xbf16>
    %c0_123 = arith.constant 0 : index
    %c0_124 = arith.constant 0 : index
    %82 = vector.load %arg4[%c0_123, %c0_124] : memref<1280x128xbf16, #tpu.memory_space<vmem>>, vector<1280x128xbf16>
    %cst_125 = arith.constant dense<0.000000e+00> : vector<256x128xf32>
    %83 = tpu.matmul %81, %82, %cst_125 {dimension_numbers = #tpu.dot_dimension_numbers<[1], [0], [0], [1], [0, 0, 1, 1], [], []>} : vector<256x1280xbf16>, vector<1280x128xbf16>, vector<256x128xf32> -> vector<256x128xf32>
    %c0_126 = arith.constant 0 : index
    %c0_127 = arith.constant 0 : index
    %84 = vector.load %arg5[%c0_126, %c0_127] : memref<1x128xf32, #tpu.memory_space<vmem>>, vector<1x128xf32>
    %85 = vector.broadcast %84 : vector<1x128xf32> to vector<256x128xf32>
    %86 = arith.addf %83, %85 : vector<256x128xf32>
    %87 = vector.shape_cast %86 : vector<256x128xf32> to vector<1x16x16x128xf32>
    %c0_128 = arith.constant 0 : index
    %c0_129 = arith.constant 0 : index
    %c0_130 = arith.constant 0 : index
    %c0_131 = arith.constant 0 : index
    %88 = vector.load %arg6[%c0_128, %c0_129, %c0_130, %c0_131] : memref<1x16x16x128xf32, #tpu.memory_space<vmem>>, vector<1x16x16x128xf32>
    tpu.vector_store %arg6[%c0_128, %c0_129, %c0_130, %c0_131], %87 {strides = array<i32>} : memref<1x16x16x128xf32, #tpu.memory_space<vmem>>, vector<1x16x16x128xf32>,
    return
  }
  func.func @transform_0(%arg0: i32) -> (i32, i32, i32, i32) {
    %c0_i32 = arith.constant 0 : i32
    %c0_i32_0 = arith.constant 0 : i32
    %c0_i32_1 = arith.constant 0 : i32
    %c0_i32_2 = arith.constant 0 : i32
    return %arg0, %c0_i32, %c0_i32_0, %c0_i32_1 : i32, i32, i32, i32
  }
  func.func @transform_1(%arg0: i32) -> (i32, i32) {
    %c0_i32 = arith.constant 0 : i32
    %c0_i32_0 = arith.constant 0 : i32
    %c0_i32_1 = arith.constant 0 : i32
    return %c0_i32, %c0_i32_0 : i32, i32
  }
  func.func @transform_2(%arg0: i32) -> (i32, i32) {
    %c0_i32 = arith.constant 0 : i32
    %c0_i32_0 = arith.constant 0 : i32
    %c0_i32_1 = arith.constant 0 : i32
    return %c0_i32, %c0_i32_0 : i32, i32
  }
  func.func @transform_3(%arg0: i32) -> (i32, i32) {
    %c0_i32 = arith.constant 0 : i32
    %c0_i32_0 = arith.constant 0 : i32
    %c0_i32_1 = arith.constant 0 : i32
    return %c0_i32, %c0_i32_0 : i32, i32
  }
  func.func @transform_4(%arg0: i32) -> (i32, i32) {
    %c0_i32 = arith.constant 0 : i32
    %c0_i32_0 = arith.constant 0 : i32
    %c0_i32_1 = arith.constant 0 : i32
    return %c0_i32, %c0_i32_0 : i32, i32
  }
  func.func @transform_5(%arg0: i32) -> (i32, i32, i32, i32) {
    %c0_i32 = arith.constant 0 : i32
    %c0_i32_0 = arith.constant 0 : i32
    %c0_i32_1 = arith.constant 0 : i32
    %c0_i32_2 = arith.constant 0 : i32
    return %arg0, %c0_i32, %c0_i32_0, %c0_i32_1 : i32, i32, i32, i32
  }
}

</mosaic_0001>

<bundles_post_ra>
// kernel: synres_block_forward.1
= control target key start
LH: loop header
LB: loop body
LE: loop exit
PB: predicated region body
PF: predicated region fallthrough
CT: control target
= control target key end

     0   :  { %s12881_s18 = smov 0   ;;  %s15756_s0 = inlined_call_operand.vmem [shape: bf16[2,16,16,128], index: 0, kind: input, shape index: {}]   ;;  %s15757_s1 = inlined_call_operand.vmem [shape: bf16[1152,128], index: 1, kind: input, shape index: {}]   ;;  %s15758_s2 = inlined_call_operand.vmem [shape: f32[1,128], index: 2, kind: input, shape index: {}]   ;;  %s15759_s3 = inlined_call_operand.vmem [shape: bf16[1280,128], index: 3, kind: input, shape index: {}]   ;;  %s15760_s4 = inlined_call_operand.vmem [shape: f32[1,128], index: 4, kind: input, shape index: {}]   ;;  %s15761_s5 = inlined_call_operand.vmem [shape: f32[2,16,16,128], index: 5, kind: output, shape index: {}]  }
   0x1 LB: > { %s10506_s19 = sadd.s32 4294967295, %s12848_s18   ;;  %p10510_p0 = scmp.ge.s32.totalorder %s12848_s18, 1  ;;  %s12848_s18 = sphi %s12881_s18, %s15_s18  }
   0x2   : > { %p187_p1 = scmp.lt.s32.totalorder %s12848_s18, 3 }
   0x4   : > { %p188_p2 = pnand %p10510_p0, %p187_p1 }
   0x6   : > { %191 = sbr.rel (%p188_p2) target bundleno = 1441 (0x5a1), region = 40 }
   0xb   : > { %v12242_v0 = vld [vmem:[%s15757_s1 + $0x78] sm:$0xff]   ;;  %v12850_v2 = vmov 0   ;;  %v12244_v3 = vld [vmem:[%s15757_s1 + $0x70] sm:$0xff]   ;;  %v12246_v5 = vld [vmem:[%s15757_s1 + $0x68] sm:$0xff]   ;;  %p215_p3 = scmp.lt.s32.totalorder %s10506_s19, 1  ;;  %vm233_vm0 = vcmask 1040384  }
   0xc   : > { %v12243_v1 = vld [vmem:[%s15757_s1 + $0x38] sm:$0xff]   ;;  %226 = vst [vmem:[#allocation2] sm:$0xf] %v12850_v2  ;;  %227 = vst [vmem:[#allocation2 + $0x4] sm:$0xf] %v12850_v2  ;;  %11137 = vmatprep.subr.bf16.mxu0 %v12242_v0  ;;  %v12245_v4 = vld [vmem:[%s15757_s1 + $0x30] sm:$0xff]  }
   0xd   : > { %228 = vst [vmem:[#allocation2 + $0x8] sm:$0x1] %v12850_v2  ;;  %346 = vst [vmem:[#allocation3] sm:$0xf] %v12850_v2  ;;  %11138 = vmatpush3.bf16.msra.mxu0 %v12243_v1  ;;  %v12247_v6 = vld [vmem:[%s15757_s1 + $0x28] sm:$0xff]   ;;  %v12248_v7 = vld [vmem:[%s15757_s1 + $0x60] sm:$0xff]  }
   0xe   : > { %347 = vst [vmem:[#allocation3 + $0x4] sm:$0xf] %v12850_v2  ;;  %348 = vst [vmem:[#allocation3 + $0x8] sm:$0x1] %v12850_v2  ;;  %11139 = vmatprep.subr.bf16.mxu0 %v12244_v3  ;;  %v12249_v8 = vld [vmem:[%s15757_s1 + $0x20] sm:$0xff]   ;;  %v12250_v9 = vld [vmem:[%s15757_s1 + $0x58] sm:$0xff]  }
   0xf   : > { %230 = vst [vmem:[#allocation2 + $0xcc] sm:$0xf] %v12850_v2  ;;  %231 = vst [vmem:[#allocation2 + $0xd0] sm:$0xf] %v12850_v2  ;;  %s15901_s19 = smov (!%p215_p3, %s10506_s19), 1  ;;  %v12251_v10 = vld [vmem:[%s15757_s1 + $0x18] sm:$0xff]  }
  0x10   : > { %232 = vst [vmem:[#allocation2 + $0xd4] sm:$0x1] %v12850_v2  ;;  %350 = vst [vmem:[#allocation3 + $0xcc] sm:$0xf] %v12850_v2  ;;  %v12252_v11 = vld [vmem:[%s15757_s1 + $0x50] sm:$0xff]   ;;  %s11103_s21 = sshll.u32 %s15901_s19, 7 }
  0x11   : > { %351 = vst [vmem:[#allocation3 + $0xd0] sm:$0xf] %v12850_v2  ;;  %352 = vst [vmem:[#allocation3 + $0xd4] sm:$0x1] %v12850_v2  ;;  %11140 = vmatpush3.bf16.msra.mxu0 %v12245_v4  ;;  %vm234_vm1 = vsmask.f32 256  ;;  %s12974_s9 = scalar_lea.vmem %s15756_s0, %s11103_s21 }
  0x12   : > { %11141 = vmatprep.subr.bf16.mxu0 %v12246_v5  ;;  %vm290_vm2 = vsmask.f32 7938  ;;  %v12253_v13 = vld [vmem:[%s15757_s1 + $0x10] sm:$0xff]   ;;  %vm12932_vm3 = vmand %vm233_vm0, %vm234_vm1  ;;  %v12254_v17 = vld [vmem:[%s15757_s1 + $0x48] sm:$0xff]   ;;  %vm1138_vm5 = vsmask.f32 3328 }
  0x13   : > { %v236_v12 = vld [vmem:[#allocation2] sm:$0x1]  ;;  %vm12943_vm4 = vmand %vm233_vm0, %vm290_vm2  ;;  %v1027_v22 = vld [vmem:[#allocation2 + $0x4] sm:$0xf]  ;;  %vm1139_vm6 = vsmask.f32 7440 }
  0x14   : > { %v292_v15 = vld [vmem:[#allocation2 + $0x8] sm:$0x1]  ;;  %v353_v16 = vld [vmem:[#allocation3] sm:$0x1]  ;;  %v237_v18 = vsel %vm12932_vm3, 0, %v236_v12  ;;  %v12256_v32 = vld [vmem:[%s15757_s1 + $0x40] sm:$0xff]  }
  0x15   : > { %11142 = vmatpush3.bf16.msra.mxu0 %v12247_v6  ;;  %v354_v20 = vsel %vm12932_vm3, 0, %v353_v16  ;;  %v407_v21 = vld [vmem:[#allocation3 + $0x8] sm:$0x1]  ;;  %238 = vst [vmem:[#allocation2] sm:$0x1] %v237_v18  ;;  %v293_v23 = vsel %vm12943_vm4, 0, %v292_v15  ;;  %vm13004_vm8 = vmor %vm1138_vm5, %vm1139_vm6 }
  0x16   : > { %11143 = vmatprep.subr.bf16.mxu0 %v12248_v7  ;;  %355 = vst [vmem:[#allocation3] sm:$0x1] %v354_v20  ;;  %v408_v24 = vsel %vm12943_vm4, 0, %v407_v21  ;;  %1059 = vst [vmem:[#allocation4 + $0x28] sm:$0xf] %v1027_v22  ;;  %v12255_v29 = vld [vmem:[%s15757_s1 + $0x8] sm:$0xff]  }
  0x17   : > { %v1091_v25 = vld [vmem:[#allocation2 + $0x4] sm:$0xf]  ;;  %294 = vst [vmem:[#allocation2 + $0x8] sm:$0x1] %v293_v23  ;;  %409 = vst [vmem:[#allocation3 + $0x8] sm:$0x1] %v408_v24 }
  0x18   : > { %v1151_v26 = vshll.u32 %v1091_v25, 16  ;;  %v1155_v27 = vshrl.u32 %v1091_v25, 16  ;;  %v6071_v28 = vld [vmem:[#allocation3 + $0x4] sm:$0xf]  ;;  %v12982_v40 = vld [vmem:[%s15757_s1 + $0xf0] sm:$0xff]   ;;  %vm816_vm7 = vcmask 1043456  }
  0x19   : > { %11144 = vmatpush3.bf16.msra.mxu0 %v12249_v8  ;;  %v6128_v30 = vshll.u32 %v6071_v28, 16  ;;  %v6132_v31 = vshrl.u32 %v6071_v28, 16  ;;  %v12260_v35 = vld [vmem:[%s15757_s1 + $0xf8] sm:$0xff]   ;;  %v239_v41 = vld [vmem:[#allocation2 + $0xc] sm:$0x1]  ;;  %v12992_v46 = vld [vmem:[%s15757_s1 + $0xb0] sm:$0xff]  }
  0x1a   : > { %11145 = vmatprep.subr.bf16.mxu0 %v12250_v9  ;;  %v12959_v33 = vrot.slane %v1151_v26, 5  ;;  %v1157_v34 = vrot.slane %v1155_v27, 4  ;;  %v12967_v36 = vld [vmem:[%s15757_s1 + $0xb8] sm:$0xff]   ;;  %12217 = vmatprep.subr.bf16.mxu1 %v12260_v35  ;;  %v240_v43 = vsel %vm12932_vm3, 0, %v239_v41  ;;  %v295_v44 = vld [vmem:[#allocation2 + $0x14] sm:$0x1]  ;;  %vm13032_vm10 = vmand %vm816_vm7, %vm290_vm2 }
  0x1b   : > { %v12976_v37 = vrot.slane %v6128_v30, 5  ;;  %v6134_v38 = vrot.slane %v6132_v31, 4  ;;  %12225 = vmatpush3.bf16.msra.mxu1 %v12967_v36  ;;  %v461_v45 = vld [vmem:[%s12974_s9] sm:$0xf]  ;;  %241 = vst [vmem:[#allocation2 + $0xc] sm:$0x1] %v240_v43 }
  0x1c   : > { %v1158_v39 = vor.u32 %v1157_v34, %v12959_v33  ;;  %v1026_v47 = vld [vmem:[#allocation2] sm:$0xf]  ;;  %12218 = vmatprep.subr.bf16.mxu1 %v12982_v40  ;;  %v296_v49 = vsel %vm12943_vm4, 0, %v295_v44  ;;  %v15774_v59 = vmov 0  ;;  %v462_v0 = vld [vmem:[%s12974_s9 + $0x4] sm:$0xf] }
  0x1d   : > { %11146 = vmatpush3.bf16.msra.mxu0 %v12251_v10  ;;  %v6135_v42 = vor.u32 %v6134_v38, %v12976_v37  ;;  %v1090_v48 = vld [vmem:[#allocation2] sm:$0xf]  ;;  %1058 = vst [vmem:[#allocation4] sm:$0xf] %v1026_v47  ;;  %297 = vst [vmem:[#allocation2 + $0x14] sm:$0x1] %v296_v49 }
  0x1e   : > { %11147 = vmatprep.subr.bf16.mxu0 %v12252_v11  ;;  %v12257_v50 = vld [vmem:[%s15757_s1] sm:$0xff]   ;;  %v1092_v51 = vld [vmem:[#allocation2 + $0x8] sm:$0x1]  ;;  %v1142_v52 = vshrl.u32 %v1090_v48, 16  ;;  %v1145_v53 = vshll.u32 %v1090_v48, 16  ;;  %v1159_v54 = vrot.slane %v1158_v39, 4 }
  0x1f   : > { %v1161_v55 = vshll.u32 %v1092_v51, 16  ;;  %v6070_v56 = vld [vmem:[#allocation3] sm:$0xf]  ;;  %v6072_v57 = vld [vmem:[#allocation3 + $0x8] sm:$0x1]  ;;  %v13000_v58 = vrot.slane %v6135_v42, 4  ;;  %12226 = vmatpush3.bf16.msra.mxu1 %v12992_v46 }
  0x20   : > { %v15775_v59 = vsel %vm13004_vm8, 4294967295, %v15774_v59  ;;  %v1144_v60 = vrot.slane %v1142_v52, 4  ;;  %v1147_v61 = vrot.slane %v1145_v53, 5  ;;  %v6119_v62 = vshrl.u32 %v6070_v56, 16  ;;  %v13013_v4 = vld [vmem:[%s15757_s1 + $0xe8] sm:$0xff]   ;;  %v13028_v15 = vld [vmem:[%s15757_s1 + $0xe0] sm:$0xff]  }
  0x21   : > { %11148 = vmatpush3.bf16.msra.mxu0 %v12253_v13  ;;  %15776 = vst [vmem:[#allocation5_spill] sm:$0xff] %v15775_v59  ;;  %v6122_v63 = vshll.u32 %v6070_v56, 16  ;;  %v1163_v1 = vrot.slane %v1161_v55, 5  ;;  %v6138_v2 = vshll.u32 %v6072_v57, 16  ;;  %vm493_vm9 = vsmask.f32 4368  ;;  %12219 = vmatprep.subr.bf16.mxu1 %v13013_v4 }
  0x22   : > { %11149 = vmatprep.subr.bf16.mxu0 %v12254_v17  ;;  %v496_v3 = vshrl.u32 %v461_v45, 16  ;;  %v1148_v5 = vor.u32 %v1147_v61, %v1144_v60  ;;  %v6121_v6 = vrot.slane %v6119_v62, 4  ;;  %v499_v8 = vshll.u32 %v461_v45, 16  ;;  %v13018_v9 = vld [vmem:[%s15757_s1 + $0xa8] sm:$0xff]   ;;  %vm13039_vm11 = vmor %vm234_vm1, %vm493_vm9  ;;  %v13057_v34 = vld [vmem:[%s15757_s1 + $0xd8] sm:$0xff]   ;;  %s11104_s20 = sshll.u32 %s15901_s19, 8 }
  0x23   : > { %v6124_v7 = vrot.slane %v6122_v63, 5  ;;  %v1164_v10 = vsel %vm13004_vm8, %v1159_v54, %v1163_v1  ;;  %v13022_v11 = vrot.slane %v6138_v2, 5  ;;  %v504_v13 = vshrl.u32 %v462_v0, 16  ;;  %v818_v21 = vld [vmem:[#allocation2 + $0xc] sm:$0xf]  ;;  %12227 = vmatpush3.bf16.msra.mxu1 %v13018_v9  ;;  %v13081_v57 = vld [vmem:[%s15757_s1 + $0x98] sm:$0xff]   ;;  %s15611_s23 = scalar_lea.vmem %s15761_s5, %s11104_s20 }
  0x24   : > { %v498_v12 = vrot.slane %v496_v3, 7  ;;  %v1149_v16 = vrot.slane %v1148_v5, 4  ;;  %1558 = vst [vmem:[#allocation4 + $0x2c] sm:$0xf] %v1164_v10  ;;  %v507_v18 = vshll.u32 %v462_v0, 16  ;;  %v15777_v20 = vmov 0  ;;  %12220 = vmatprep.subr.bf16.mxu1 %v13028_v15 }
  0x25   : > { %11150 = vmatpush3.bf16.msra.mxu0 %v12255_v29  ;;  %v6125_v17 = vor.u32 %v6124_v7, %v6121_v6  ;;  %v15778_v20 = vsel %vm13032_vm10, 4294967295, %v15777_v20  ;;  %v15780_v22 = vmov 0  ;;  %v506_v25 = vrot.slane %v504_v13, 7  ;;  %v822_v26 = vld [vmem:[#allocation2 + $0x14] sm:$0x1]  ;;  %v13050_v29 = vld [vmem:[%s15757_s1 + $0xa0] sm:$0xff]  }
  0x26   : > { %11151 = vmatprep.subr.bf16.mxu0 %v12256_v32  ;;  %15779 = vst [vmem:[#allocation6_spill] sm:$0xff] %v15778_v20  ;;  %v15781_v22 = vsel %vm13039_vm11, 4294967295, %v15780_v22  ;;  %v501_v23 = vor.u32 %v499_v8, %v498_v12  ;;  %v502_v24 = vrot.slane %v498_v12, 4  ;;  %v1154_v27 = vsel %vm13004_vm8, %v1149_v16, %v12959_v33  ;;  %v242_v33 = vld [vmem:[#allocation2 + $0x18] sm:$0x1]  ;;  %v13097_v12 = vld [vmem:[%s15757_s1 + $0x90] sm:$0xff]  }
  0x27   : > { %15782 = vst [vmem:[#allocation7_spill] sm:$0xff] %v15781_v22  ;;  %v6126_v28 = vrot.slane %v6125_v17, 4  ;;  %1557 = vst [vmem:[#allocation4 + $0x4] sm:$0xf] %v1154_v27  ;;  %v509_v30 = vor.u32 %v507_v18, %v506_v25  ;;  %v511_v31 = vrot.slane %v506_v25, 4  ;;  %12228 = vmatpush3.bf16.msra.mxu1 %v13050_v29  ;;  %v243_v42 = vsel %vm12932_vm3, 0, %v242_v33 }
  0x28   : > { %v819_v32 = vsel %vm13032_vm10, %v501_v23, %v818_v21  ;;  %v463_v38 = vld [vmem:[%s12974_s9 + $0x8] sm:$0xf]  ;;  %v464_v44 = vld [vmem:[%s12974_s9 + $0xc] sm:$0xf]  ;;  %12221 = vmatprep.subr.bf16.mxu1 %v13057_v34  ;;  %v6006_v45 = vld [vmem:[#allocation3] sm:$0xf]  ;;  %v6141_v54 = vsel %vm13004_vm8, %v13000_v58, %v13022_v11 }
  0x29   : > { %11152 = vmatpush3.bf16.msra.mxu0 %v12257_v50  ;;  %820 = vst [vmem:[#allocation2 + $0xc] sm:$0xf] %v819_v32  ;;  %v510_v39 = vsel %vm13039_vm11, %v502_v24, %v509_v30  ;;  %v823_v41 = vsel %vm12932_vm3, %v511_v31, %v822_v26  ;;  %v6007_v47 = vld [vmem:[#allocation3 + $0x4] sm:$0xf]  ;;  %244 = vst [vmem:[#allocation2 + $0x18] sm:$0x1] %v243_v42  ;;  %v6131_v53 = vsel %vm13004_vm8, %v6126_v28, %v12976_v37 }
  0x2a   : > { %11249 = vmatprep.subr.bf16.mxu0 %v12260_v35  ;;  %v298_v35 = vld [vmem:[#allocation2 + $0x20] sm:$0x1]  ;;  %821 = vst [vmem:[#allocation2 + $0x10] sm:$0xf] %v510_v39  ;;  %824 = vst [vmem:[#allocation2 + $0x14] sm:$0x1] %v823_v41 }
  0x2b   : > { %v299_v43 = vsel %vm12943_vm4, 0, %v298_v35  ;;  %v513_v48 = vshrl.u32 %v463_v38, 16  ;;  %v521_v49 = vshrl.u32 %v464_v44, 16  ;;  %v524_v50 = vshll.u32 %v464_v44, 16  ;;  %v3038_v51 = vld [vmem:[#allocation4 + $0x28] sm:$0xff]  ;;  %v13086_v37 = vld [vmem:[%s15757_s1 + $0xd0] sm:$0xff]   ;;  %12229 = vmatpush3.bf16.msra.mxu1 %v13081_v57 }
  0x2c   : > { %300 = vst [vmem:[#allocation2 + $0x20] sm:$0x1] %v299_v43  ;;  %v516_v52 = vshll.u32 %v463_v38, 16  ;;  %6039 = vst [vmem:[#allocation4 + $0x28] sm:$0xf] %v6007_v47  ;;  %12222 = vmatprep.subr.bf16.mxu1 %v13086_v37  ;;  %vm1685_vm12 = vcmask 1042432  }
  0x2d   : > { %v515_v55 = vrot.slane %v513_v48, 7  ;;  %v523_v56 = vrot.slane %v521_v49, 7  ;;  %v245_v5 = vld [vmem:[#allocation2 + $0x24] sm:$0x1]  ;;  %v301_v11 = vld [vmem:[#allocation2 + $0x2c] sm:$0x1] }
  0x2e   : > { %v3033_v60 = vld [vmem:[#allocation4] sm:$0xff]  ;;  %v246_v10 = vsel %vm12932_vm3, 0, %v245_v5  ;;  %v302_v30 = vsel %vm12943_vm4, 0, %v301_v11  ;;  %v13114_v49 = vld [vmem:[%s15757_s1 + $0xc8] sm:$0xff]   ;;  %vm1686_vm13 = vcmask 1046532  }
  0x2f   : > { %v12258_v61 = vld [vmem:[#allocation4 + $0x4] ss:$40 sps:$4 sm:$0xff]   ;;  %v519_v62 = vrot.slane %v515_v55, 4  ;;  %v526_v63 = vor.u32 %v524_v50, %v523_v56  ;;  %v528_v0 = vrot.slane %v523_v56, 4  ;;  %6038 = vst [vmem:[#allocation4] sm:$0xf] %v6006_v45  ;;  %v10564_v58 = vcombine.low %v3033_v60, %v3038_v51  ;;  %12230 = vmatpush3.bf16.msra.mxu1 %v13097_v12  ;;  %vm13195_vm14 = vmor %vm1685_vm12, %vm1686_vm13 }
  0x30   : > { %6534 = vst [vmem:[#allocation4 + $0x4] sm:$0xf] %v6131_v53  ;;  %6535 = vst [vmem:[#allocation4 + $0x2c] sm:$0xf] %v6141_v54  ;;  %v1028_v1 = vld [vmem:[#allocation2 + $0xc] sm:$0xf]  ;;  %v518_v3 = vor.u32 %v516_v52, %v515_v55  ;;  %4544 = vmatprep.mubr.bf16.mxu0 %v12258_v61  ;;  %12223 = vmatprep.subr.bf16.mxu1 %v13114_v49 }
  0x31   : > { %v1093_v2 = vld [vmem:[#allocation2 + $0xc] sm:$0xf]  ;;  %1060 = vst [vmem:[#allocation4 + $0x50] sm:$0xf] %v1028_v1  ;;  %v527_v8 = vsel %vm13039_vm11, %v519_v62, %v526_v63  ;;  %4545 = vmatmul.mubr.bf16.vlgmr.msra.gmra.mxu0 %v10564_v58  ;;  %v1029_v13 = vld [vmem:[#allocation2 + $0x10] sm:$0xf] }
  0x32   : > { %v1166_v6 = vshrl.u32 %v1093_v2, 16  ;;  %v1169_v7 = vshll.u32 %v1093_v2, 16  ;;  %v1094_v16 = vld [vmem:[#allocation2 + $0x10] sm:$0xf]  ;;  %v1095_v17 = vld [vmem:[#allocation2 + $0x14] sm:$0x1]  ;;  %11250 = vmatpush3.bf16.msra.mxu0 %v12967_v36 }
  0x33   : > { %828 = vst [vmem:[#allocation2 + $0x1c] sm:$0xf] %v527_v8  ;;  %247 = vst [vmem:[#allocation2 + $0x24] sm:$0x1] %v246_v10  ;;  %v1175_v23 = vshll.u32 %v1094_v16, 16  ;;  %v1179_v24 = vshrl.u32 %v1094_v16, 16  ;;  %11251 = vmatprep.subr.bf16.mxu0 %v12982_v40 }
  0x34   : > { %1061 = vst [vmem:[#allocation4 + $0x78] sm:$0xf] %v1029_v13  ;;  %v1168_v18 = vrot.slane %v1166_v6, 4  ;;  %v1171_v21 = vrot.slane %v1169_v7, 5  ;;  %v825_v25 = vld [vmem:[#allocation2 + $0x18] sm:$0xf] }
  0x35   : > { %v1185_v26 = vshll.u32 %v1095_v17, 16  ;;  %v826_v27 = vsel %vm13032_vm10, %v518_v3, %v825_v25  ;;  %v829_v28 = vld [vmem:[#allocation2 + $0x20] sm:$0x1]  ;;  %v465_v31 = vld [vmem:[%s12974_s9 + $0x10] sm:$0xf]  ;;  %v1177_v32 = vrot.slane %v1175_v23, 5 }
  0x36   : > { %v1172_v36 = vor.u32 %v1171_v21, %v1168_v18  ;;  %v1181_v33 = vrot.slane %v1179_v24, 4  ;;  %827 = vst [vmem:[#allocation2 + $0x18] sm:$0xf] %v826_v27  ;;  %v830_v35 = vsel %vm12932_vm3, %v528_v0, %v829_v28  ;;  %303 = vst [vmem:[#allocation2 + $0x2c] sm:$0x1] %v302_v30  ;;  %v530_v41 = vshrl.u32 %v465_v31, 16  ;;  %11252 = vmatpush3.bf16.msra.mxu0 %v12992_v46 }
  0x37   : > { %v466_v38 = vld [vmem:[%s12974_s9 + $0x14] sm:$0xf]  ;;  %v1187_v39 = vrot.slane %v1185_v26, 5  ;;  %831 = vst [vmem:[#allocation2 + $0x20] sm:$0x1] %v830_v35  ;;  %v533_v42 = vshll.u32 %v465_v31, 16  ;;  %11253 = vmatprep.subr.bf16.mxu0 %v13013_v4 }
  0x38   : > { %v538_v40 = vshrl.u32 %v466_v38, 16  ;;  %v1173_v43 = vrot.slane %v1172_v36, 4  ;;  %v1182_v44 = vor.u32 %v1181_v33, %v1177_v32  ;;  %v541_v45 = vshll.u32 %v466_v38, 16  ;;  %v13119_v50 = vld [vmem:[%s15757_s1 + $0x88] sm:$0xff]   ;;  %v13127_v54 = vld [vmem:[%s15757_s1 + $0xc0] sm:$0xff]  }
  0x39   : > { %v532_v47 = vrot.slane %v530_v41, 7  ;;  %v13133_v4 = vld [vmem:[%s15757_s1 + $0x80] sm:$0xff]   ;;  %12231 = vmatpush3.bf16.msra.mxu1 %v13119_v50  ;;  %v248_v18 = vld [vmem:[#allocation2 + $0x30] sm:$0x1]  ;;  %v304_v24 = vld [vmem:[#allocation2 + $0x38] sm:$0x1] }
  0x3a   : > { %v540_v48 = vrot.slane %v538_v40, 7  ;;  %v1178_v51 = vsel %vm13004_vm8, %v1173_v43, %v1177_v32  ;;  %v1183_v52 = vrot.slane %v1182_v44, 4  ;;  %v1031_v46 = vld [vmem:[#allocation2 + $0x1c] sm:$0xf]  ;;  %v832_v62 = vld [vmem:[#allocation2 + $0x24] sm:$0xf]  ;;  %11254 = vmatpush3.bf16.msra.mxu0 %v13018_v9  ;;  %12224 = vmatprep.subr.bf16.mxu1 %v13127_v54 }
  0x3b   : > { %v1097_v53 = vld [vmem:[#allocation2 + $0x1c] sm:$0xf]  ;;  %1559 = vst [vmem:[#allocation4 + $0x54] sm:$0xf] %v1178_v51  ;;  %1063 = vst [vmem:[#allocation4 + $0xc8] sm:$0xf] %v1031_v46  ;;  %v535_v60 = vor.u32 %v533_v42, %v532_v47  ;;  %11255 = vmatprep.subr.bf16.mxu0 %v13028_v15 }
  0x3c   : > { %v1199_v55 = vshll.u32 %v1097_v53, 16  ;;  %v1203_v56 = vshrl.u32 %v1097_v53, 16  ;;  %v536_v61 = vrot.slane %v532_v47, 4  ;;  %v1188_v63 = vsel %vm13004_vm8, %v1183_v52, %v1187_v39  ;;  %v467_v28 = vld [vmem:[%s12974_s9 + $0x18] sm:$0xf] }
  0x3d   : > { %v543_v0 = vor.u32 %v541_v45, %v540_v48  ;;  %v545_v58 = vrot.slane %v540_v48, 4  ;;  %1560 = vst [vmem:[#allocation4 + $0x7c] sm:$0xf] %v1188_v63  ;;  %v1030_v1 = vld [vmem:[#allocation2 + $0x18] sm:$0xf]  ;;  %v833_v6 = vsel %vm13032_vm10, %v535_v60, %v832_v62  ;;  %v249_v23 = vsel %vm12932_vm3, 0, %v248_v18  ;;  %12232 = vmatpush3.bf16.msra.mxu1 %v13133_v4 }
  0x3e   : > { %v1096_v2 = vld [vmem:[#allocation2 + $0x18] sm:$0xf]  ;;  %v1201_v3 = vrot.slane %v1199_v55, 5  ;;  %v1205_v5 = vrot.slane %v1203_v56, 4  ;;  %1062 = vst [vmem:[#allocation4 + $0xa0] sm:$0xf] %v1030_v1  ;;  %11256 = vmatpush3.bf16.msra.mxu0 %v13050_v29 }
  0x3f   : > { %v1098_v7 = vld [vmem:[#allocation2 + $0x20] sm:$0x1]  ;;  %v1190_v8 = vshrl.u32 %v1096_v2, 16  ;;  %v1193_v10 = vshll.u32 %v1096_v2, 16  ;;  %v544_v11 = vsel %vm13039_vm11, %v536_v61, %v543_v0  ;;  %834 = vst [vmem:[#allocation2 + $0x24] sm:$0xf] %v833_v6  ;;  %11257 = vmatprep.subr.bf16.mxu0 %v13057_v34 }
  0x40   : > { %v836_v9 = vld [vmem:[#allocation2 + $0x2c] sm:$0x1]  ;;  %v1206_v13 = vor.u32 %v1205_v5, %v1201_v3  ;;  %v1209_v16 = vshll.u32 %v1098_v7, 16  ;;  %835 = vst [vmem:[#allocation2 + $0x28] sm:$0xf] %v544_v11  ;;  %v305_v27 = vsel %vm12943_vm4, 0, %v304_v24 }
  0x41   : > { %v837_v17 = vsel %vm12932_vm3, %v545_v58, %v836_v9  ;;  %v1192_v21 = vrot.slane %v1190_v8, 4  ;;  %v1195_v15 = vrot.slane %v1193_v10, 5  ;;  %250 = vst [vmem:[#allocation2 + $0x30] sm:$0x1] %v249_v23  ;;  %306 = vst [vmem:[#allocation2 + $0x38] sm:$0x1] %v305_v27 }
  0x42   : > { %838 = vst [vmem:[#allocation2 + $0x2c] sm:$0x1] %v837_v17  ;;  %v1207_v25 = vrot.slane %v1206_v13, 4  ;;  %v1211_v26 = vrot.slane %v1209_v16, 5  ;;  %v468_v31 = vld [vmem:[%s12974_s9 + $0x1c] sm:$0xf]  ;;  %11258 = vmatpush3.bf16.msra.mxu0 %v13081_v57 }
  0x43   : > { %v1196_v30 = vor.u32 %v1195_v15, %v1192_v21  ;;  %v547_v36 = vshrl.u32 %v467_v28, 16  ;;  %v550_v32 = vshll.u32 %v467_v28, 16  ;;  %v555_v35 = vshrl.u32 %v468_v31, 16  ;;  %v12266_v39 = vld [vmem:[#allocation4 + $0x50] ss:$40 sps:$4 sm:$0xff]   ;;  %11259 = vmatprep.subr.bf16.mxu0 %v13086_v37 }
  0x44   : > { %v1212_v33 = vsel %vm13004_vm8, %v1207_v25, %v1211_v26  ;;  %v558_v38 = vshll.u32 %v468_v31, 16  ;;  %v12263_v29 = vld [vmem:[#allocation4 + $0x54] ss:$40 sps:$4 sm:$0xff]   ;;  %v251_v7 = vld [vmem:[#allocation2 + $0x3c] sm:$0x1] }
  0x45   : > { %v1197_v41 = vrot.slane %v1196_v30, 4  ;;  %1562 = vst [vmem:[#allocation4 + $0xcc] sm:$0xf] %v1212_v33  ;;  %v549_v43 = vrot.slane %v547_v36, 7  ;;  %v557_v34 = vrot.slane %v555_v35, 7  ;;  %4552 = vmatprep.mubr.bf16.mxu0 %v12263_v29  ;;  %v252_v11 = vsel %vm12932_vm3, 0, %v251_v7 }
  0x46   : > { %v1032_v42 = vld [vmem:[#allocation2 + $0x24] sm:$0xf]  ;;  %4553 = vmatmul.mubr.bf16.gmra.mxu0 %v12266_v39  ;;  %v469_v8 = vld [vmem:[%s12974_s9 + $0x20] sm:$0xf]  ;;  %253 = vst [vmem:[#allocation2 + $0x3c] sm:$0x1] %v252_v11 }
  0x47   : > { %v1099_v40 = vld [vmem:[#allocation2 + $0x24] sm:$0xf]  ;;  %v1202_v44 = vsel %vm13004_vm8, %v1197_v41, %v1201_v3  ;;  %v1033_v45 = vld [vmem:[#allocation2 + $0x28] sm:$0xf]  ;;  %1064 = vst [vmem:[#allocation4 + $0xf0] sm:$0xf] %v1032_v42  ;;  %v552_v53 = vor.u32 %v550_v32, %v549_v43  ;;  %v560_v61 = vor.u32 %v558_v38, %v557_v34  ;;  %11260 = vmatpush3.bf16.msra.mxu0 %v13097_v12 }
  0x48   : > { %v1100_v47 = vld [vmem:[#allocation2 + $0x28] sm:$0xf]  ;;  %v1214_v48 = vshrl.u32 %v1099_v40, 16  ;;  %v1217_v51 = vshll.u32 %v1099_v40, 16  ;;  %1561 = vst [vmem:[#allocation4 + $0xa4] sm:$0xf] %v1202_v44  ;;  %11261 = vmatprep.subr.bf16.mxu0 %v13114_v49 }
  0x49   : > { %1065 = vst [vmem:[#allocation4 + $0x118] sm:$0xf] %v1033_v45  ;;  %v1101_v52 = vld [vmem:[#allocation2 + $0x2c] sm:$0x1]  ;;  %v1223_v57 = vshll.u32 %v1100_v47, 16  ;;  %v1227_v46 = vshrl.u32 %v1100_v47, 16 }
  0x4a   : > { %v553_v55 = vrot.slane %v549_v43, 4  ;;  %v1216_v56 = vrot.slane %v1214_v48, 4  ;;  %v1219_v60 = vrot.slane %v1217_v51, 5  ;;  %v1233_v37 = vshll.u32 %v1101_v52, 16  ;;  %v839_v62 = vld [vmem:[#allocation2 + $0x30] sm:$0xf] }
  0x4b   : > { %v1225_v63 = vrot.slane %v1223_v57, 5  ;;  %v1229_v0 = vrot.slane %v1227_v46, 4  ;;  %v562_v58 = vrot.slane %v557_v34, 4  ;;  %v840_v1 = vsel %vm13032_vm10, %v552_v53, %v839_v62  ;;  %v843_v2 = vld [vmem:[#allocation2 + $0x38] sm:$0x1]  ;;  %11262 = vmatpush3.bf16.msra.mxu0 %v13119_v50 }
  0x4c   : > { %v1220_v3 = vor.u32 %v1219_v60, %v1216_v56  ;;  %v1235_v5 = vrot.slane %v1233_v37, 5  ;;  %v561_v6 = vsel %vm13039_vm11, %v553_v55, %v560_v61  ;;  %841 = vst [vmem:[#allocation2 + $0x30] sm:$0xf] %v840_v1  ;;  %v470_v9 = vld [vmem:[%s12974_s9 + $0x24] sm:$0xf]  ;;  %v564_v13 = vshrl.u32 %v469_v8, 16  ;;  %11263 = vmatprep.subr.bf16.mxu0 %v13127_v54 }
  0x4d   : > { %v1230_v12 = vor.u32 %v1229_v0, %v1225_v63  ;;  %842 = vst [vmem:[#allocation2 + $0x34] sm:$0xf] %v561_v6  ;;  %v844_v10 = vsel %vm12932_vm3, %v562_v58, %v843_v2  ;;  %v567_v16 = vshll.u32 %v469_v8, 16  ;;  %v572_v17 = vshrl.u32 %v470_v9, 16  ;;  %v307_v21 = vld [vmem:[#allocation2 + $0x44] sm:$0x1] }
  0x4e   : > { %v1221_v49 = vrot.slane %v1220_v3, 4  ;;  %845 = vst [vmem:[#allocation2 + $0x38] sm:$0x1] %v844_v10  ;;  %v575_v18 = vshll.u32 %v470_v9, 16  ;;  %v566_v23 = vrot.slane %v564_v13, 7  ;;  %v308_v24 = vsel %vm12943_vm4, 0, %v307_v21 }
  0x4f   : > { %v1231_v15 = vrot.slane %v1230_v12, 4  ;;  %v254_v25 = vld [vmem:[#allocation2 + $0x48] sm:$0x1]  ;;  %v12270_v26 = vld [vmem:[#allocation4 + $0xa4] ss:$40 sps:$4 sm:$0xff]   ;;  %v574_v30 = vrot.slane %v572_v17, 7  ;;  %11264 = vmatpush3.bf16.msra.mxu0 %v13133_v4 }
  0x50   : > { %v12273_v27 = vld [vmem:[#allocation4 + $0xa0] ss:$40 sps:$4 sm:$0xff]   ;;  %v1226_v28 = vsel %vm13004_vm8, %v1221_v49, %v1225_v63  ;;  %309 = vst [vmem:[#allocation2 + $0x44] sm:$0x1] %v308_v24  ;;  %v569_v31 = vor.u32 %v567_v16, %v566_v23  ;;  %v570_v36 = vrot.slane %v566_v23, 4  ;;  %v255_v32 = vsel %vm12932_vm3, 0, %v254_v25  ;;  %4560 = vmatprep.mubr.bf16.mxu0 %v12270_v26 }
  0x51   : > { %v1236_v50 = vsel %vm13004_vm8, %v1231_v15, %v1235_v5  ;;  %1563 = vst [vmem:[#allocation4 + $0xf4] sm:$0xf] %v1226_v28  ;;  %v471_v33 = vld [vmem:[%s12974_s9 + $0x28] sm:$0xf]  ;;  %v577_v54 = vor.u32 %v575_v18, %v574_v30  ;;  %v579_v35 = vrot.slane %v574_v30, 4  ;;  %4561 = vmatmul.mubr.bf16.gmra.mxu0 %v12273_v27  ;;  %v15783_v60 = vmov 0 }
  0x52   : > { %1564 = vst [vmem:[#allocation4 + $0x11c] sm:$0xf] %v1236_v50  ;;  %256 = vst [vmem:[#allocation2 + $0x48] sm:$0x1] %v255_v32  ;;  %v581_v38 = vshrl.u32 %v471_v33, 16  ;;  %v584_v29 = vshll.u32 %v471_v33, 16 }
  0x53   : > { %v1034_v39 = vld [vmem:[#allocation2 + $0x30] sm:$0xf]  ;;  %v578_v45 = vsel %vm13039_vm11, %v570_v36, %v577_v54  ;;  %v846_v52 = vld [vmem:[#allocation2 + $0x3c] sm:$0xf]  ;;  %v13189_v4 = vld [vmem:[%s12974_s9 + $0x2c] sm:$0xf] }
  0x54   : > { %v1102_v41 = vld [vmem:[#allocation2 + $0x30] sm:$0xf]  ;;  %v1035_v40 = vld [vmem:[#allocation2 + $0x34] sm:$0xf]  ;;  %1066 = vst [vmem:[#allocation4 + $0x140] sm:$0xf] %v1034_v39  ;;  %v847_v55 = vsel %vm13032_vm10, %v569_v31, %v846_v52 }
  0x55   : > { %v1601_v42 = vld [vmem:[#allocation2 + $0x30] sm:$0xe]  ;;  %v1103_v43 = vld [vmem:[#allocation2 + $0x34] sm:$0xf]  ;;  %v1238_v34 = vshrl.u32 %v1102_v41, 16  ;;  %v1241_v44 = vshll.u32 %v1102_v41, 16 }
  0x56   : > { %1067 = vst [vmem:[#allocation4 + $0x168] sm:$0xf] %v1035_v40  ;;  %v1104_v47 = vld [vmem:[#allocation2 + $0x38] sm:$0x1]  ;;  %v1247_v48 = vshll.u32 %v1103_v43, 16  ;;  %v1251_v51 = vshrl.u32 %v1103_v43, 16 }
  0x57   : > { %849 = vst [vmem:[#allocation2 + $0x40] sm:$0xf] %v578_v45  ;;  %v1240_v57 = vrot.slane %v1238_v34, 4  ;;  %v1243_v46 = vrot.slane %v1241_v44, 5  ;;  %v1257_v53 = vshll.u32 %v1104_v47, 16  ;;  %v15784_v60 = vsel %vm13195_vm14, 4294967295, %v15783_v60 }
  0x58   : > { %v1602_v56 = vld [vmem:[#allocation2 + $0x34] sm:$0xf]  ;;  %15785 = vst [vmem:[#allocation8_spill] sm:$0xff] %v15784_v60  ;;  %v310_v37 = vld [vmem:[#allocation2 + $0x50] sm:$0x1]  ;;  %v1249_v61 = vrot.slane %v1247_v48, 5 }
  0x59   : > { %v1253_v62 = vrot.slane %v1251_v51, 4  ;;  %848 = vst [vmem:[#allocation2 + $0x3c] sm:$0xf] %v847_v55  ;;  %v1603_v63 = vld [vmem:[#allocation2 + $0x38] sm:$0x1]  ;;  %v10519_v0 = vrot.slane %v1601_v42, 9  ;;  %v1244_v1 = vor.u32 %v1243_v46, %v1240_v57 }
  0x5a   : > { %v1718_v58 = vrot.slane %v1602_v56, 5  ;;  %v1259_v2 = vrot.slane %v1257_v53, 5  ;;  %v1721_v3 = vrot.slane %v1603_v63, 5  ;;  %v850_v5 = vld [vmem:[#allocation2 + $0x44] sm:$0x1]  ;;  %v583_v6 = vrot.slane %v581_v38, 7 }
  0x5b   : > { %v12277_v7 = vld [vmem:[#allocation4 + $0xf4] ss:$40 sps:$4 sm:$0xff]   ;;  %v12280_v8 = vld [vmem:[#allocation4 + $0xf0] ss:$40 sps:$4 sm:$0xff]   ;;  %v1254_v12 = vor.u32 %v1253_v62, %v1249_v61  ;;  %v851_v9 = vsel %vm12932_vm3, %v579_v35, %v850_v5  ;;  %v1245_v13 = vrot.slane %v1244_v1, 4  ;;  %v589_v17 = vshrl.u32 %v13189_v4, 16 }
  0x5c   : > { %v1719_v10 = vsel %vm13195_vm14, %v10519_v0, %v1718_v58  ;;  %v1720_v11 = vrot.slane %v1718_v58, 4  ;;  %852 = vst [vmem:[#allocation2 + $0x44] sm:$0x1] %v851_v9  ;;  %v586_v49 = vor.u32 %v584_v29, %v583_v6  ;;  %v587_v16 = vrot.slane %v583_v6, 4  ;;  %v853_v18 = vld [vmem:[#allocation2 + $0x48] sm:$0xf]  ;;  %4568 = vmatprep.mubr.bf16.mxu0 %v12277_v7 }
  0x5d   : > { %1840 = vst [vmem:[#allocation4 + $0x148] sm:$0xf] %v1719_v10  ;;  %v1255_v21 = vrot.slane %v1254_v12, 4  ;;  %v592_v23 = vshll.u32 %v13189_v4, 16  ;;  %v311_v24 = vsel %vm12943_vm4, 0, %v310_v37  ;;  %4569 = vmatmul.mubr.bf16.gmra.mxu0 %v12280_v8  ;;  %v1250_v25 = vsel %vm13004_vm8, %v1245_v13, %v1249_v61 }
  0x5e   : > { %v1722_v15 = vsel %vm13195_vm14, %v1720_v11, %v1721_v3  ;;  %v1873_v26 = vld [vmem:[#allocation2 + $0x40] sm:$0xf]  ;;  %v854_v30 = vsel %vm13032_vm10, %v586_v49, %v853_v18  ;;  %312 = vst [vmem:[#allocation2 + $0x50] sm:$0x1] %v311_v24  ;;  %1565 = vst [vmem:[#allocation4 + $0x144] sm:$0xf] %v1250_v25 }
  0x5f   : > { %1841 = vst [vmem:[#allocation4 + $0x170] sm:$0xf] %v1722_v15  ;;  %v1037_v27 = vld [vmem:[#allocation2 + $0x40] sm:$0xf]  ;;  %v1260_v50 = vsel %vm13004_vm8, %v1255_v21, %v1259_v2  ;;  %1905 = vst [vmem:[#allocation4 + $0x174] sm:$0xf] %v1873_v26 }
  0x60   : > { %v1106_v28 = vld [vmem:[#allocation2 + $0x40] sm:$0xf]  ;;  %1069 = vst [vmem:[#allocation4 + $0x1b8] sm:$0xf] %v1037_v27  ;;  %v591_v32 = vrot.slane %v589_v17, 7 }
  0x61   : > { %v1271_v31 = vshll.u32 %v1106_v28, 16  ;;  %v1275_v36 = vshrl.u32 %v1106_v28, 16  ;;  %855 = vst [vmem:[#allocation2 + $0x48] sm:$0xf] %v854_v30  ;;  %v1605_v33 = vld [vmem:[#allocation2 + $0x40] sm:$0xf] }
  0x62   : > { %1566 = vst [vmem:[#allocation4 + $0x16c] sm:$0xf] %v1260_v50  ;;  %v1872_v54 = vld [vmem:[#allocation2 + $0x3c] sm:$0xf]  ;;  %v257_v29 = vld [vmem:[#allocation2 + $0x54] sm:$0x1]  ;;  %v594_v34 = vor.u32 %v592_v23, %v591_v32 }
  0x63   : > { %v1036_v35 = vld [vmem:[#allocation2 + $0x3c] sm:$0xf]  ;;  %1904 = vst [vmem:[#allocation4 + $0x14c] sm:$0xf] %v1872_v54  ;;  %v1273_v42 = vrot.slane %v1271_v31, 5  ;;  %v1277_v40 = vrot.slane %v1275_v36, 4 }
  0x64   : > { %v1105_v38 = vld [vmem:[#allocation2 + $0x3c] sm:$0xf]  ;;  %1068 = vst [vmem:[#allocation4 + $0x190] sm:$0xf] %v1036_v35  ;;  %v596_v44 = vrot.slane %v591_v32, 4  ;;  %v1725_v47 = vrot.slane %v1605_v33, 5  ;;  %v595_v55 = vsel %vm13039_vm11, %v587_v16, %v594_v34 }
  0x65   : > { %v1262_v39 = vshrl.u32 %v1105_v38, 16  ;;  %v1265_v41 = vshll.u32 %v1105_v38, 16  ;;  %v1604_v43 = vld [vmem:[#allocation2 + $0x3c] sm:$0xe]  ;;  %v473_v48 = vld [vmem:[%s12974_s9 + $0x30] sm:$0xf]  ;;  %v1278_v57 = vor.u32 %v1277_v40, %v1273_v42 }
  0x66   : > { %v10520_v45 = vrot.slane %v1604_v43, 9  ;;  %v1107_v51 = vld [vmem:[#allocation2 + $0x44] sm:$0x1]  ;;  %v1727_v37 = vrot.slane %v1725_v47, 4  ;;  %v474_v61 = vld [vmem:[%s12974_s9 + $0x34] sm:$0xf] }
  0x67   : > { %v1264_v52 = vrot.slane %v1262_v39, 4  ;;  %v1267_v4 = vrot.slane %v1265_v41, 5  ;;  %v1606_v46 = vld [vmem:[#allocation2 + $0x44] sm:$0x1]  ;;  %v1281_v53 = vshll.u32 %v1107_v51, 16  ;;  %v1279_v63 = vrot.slane %v1278_v57, 4 }
  0x68   : > { %v1726_v56 = vsel %vm13195_vm14, %v10520_v45, %v1725_v47  ;;  %856 = vst [vmem:[#allocation2 + $0x4c] sm:$0xf] %v595_v55  ;;  %v1728_v0 = vrot.slane %v1606_v46, 5  ;;  %v857_v58 = vld [vmem:[#allocation2 + $0x50] sm:$0x1]  ;;  %v258_v1 = vsel %vm12932_vm3, 0, %v257_v29 }
  0x69   : > { %v1268_v62 = vor.u32 %v1267_v4, %v1264_v52  ;;  %1842 = vst [vmem:[#allocation4 + $0x198] sm:$0xf] %v1726_v56  ;;  %v1283_v2 = vrot.slane %v1281_v53, 5  ;;  %v1874_v3 = vld [vmem:[#allocation2 + $0x48] sm:$0xf]  ;;  %v858_v5 = vsel %vm12932_vm3, %v596_v44, %v857_v58  ;;  %v598_v6 = vshrl.u32 %v473_v48, 16 }
  0x6a   : > { %259 = vst [vmem:[#allocation2 + $0x54] sm:$0x1] %v258_v1  ;;  %v313_v7 = vld [vmem:[#allocation2 + $0x5c] sm:$0x1]  ;;  %v12287_v12 = vld [vmem:[#allocation4 + $0x140] ss:$40 sps:$4 sm:$0xff]   ;;  %v1729_v11 = vsel %vm13195_vm14, %v1727_v37, %v1728_v0 }
  0x6b   : > { %v12284_v8 = vld [vmem:[#allocation4 + $0x144] ss:$40 sps:$4 sm:$0xff]   ;;  %v1269_v10 = vrot.slane %v1268_v62, 4  ;;  %1906 = vst [vmem:[#allocation4 + $0x19c] sm:$0xf] %v1874_v3  ;;  %v1284_v49 = vsel %vm13004_vm8, %v1279_v63, %v1283_v2  ;;  %v600_v16 = vrot.slane %v598_v6, 7 }
  0x6c   : > { %859 = vst [vmem:[#allocation2 + $0x50] sm:$0x1] %v858_v5  ;;  %v12288_v9 = vld [vmem:[#allocation4 + $0x14c] ss:$40 sps:$4 sm:$0xff]   ;;  %v12290_v13 = vld [vmem:[#allocation4 + $0x148] ss:$40 sps:$4 sm:$0xff]   ;;  %4576 = vmatprep.mubr.bf16.mxu0 %v12284_v8 }
  0x6d   : > { %1843 = vst [vmem:[#allocation4 + $0x1c0] sm:$0xf] %v1729_v11  ;;  %v1274_v17 = vsel %vm13004_vm8, %v1269_v10, %v1273_v42  ;;  %1568 = vst [vmem:[#allocation4 + $0x1bc] sm:$0xf] %v1284_v49  ;;  %v1038_v18 = vld [vmem:[#allocation2 + $0x48] sm:$0xf]  ;;  %4577 = vmatmul.mubr.bf16.gmra.mxu0 %v12287_v12  ;;  %4737 = vmatprep.mubr.bf16.mxu1 %v12288_v9 }
  0x6e   : > { %v1108_v21 = vld [vmem:[#allocation2 + $0x48] sm:$0xf]  ;;  %v601_v15 = vshll.u32 %v473_v48, 16  ;;  %v606_v23 = vshrl.u32 %v474_v61, 16  ;;  %1567 = vst [vmem:[#allocation4 + $0x194] sm:$0xf] %v1274_v17  ;;  %4738 = vmatmul.mubr.bf16.vlgmr.msra.gmra.mxu1 %v12290_v13 }
  0x6f   : > { %1070 = vst [vmem:[#allocation4 + $0x1e0] sm:$0xf] %v1038_v18  ;;  %v1286_v24 = vshrl.u32 %v1108_v21, 16  ;;  %v1289_v25 = vshll.u32 %v1108_v21, 16  ;;  %v604_v26 = vrot.slane %v600_v16, 4  ;;  %v609_v27 = vshll.u32 %v474_v61, 16 }
  0x70   : > { %v1607_v28 = vld [vmem:[#allocation2 + $0x48] sm:$0xe]  ;;  %v603_v30 = vor.u32 %v601_v15, %v600_v16  ;;  %v608_v50 = vrot.slane %v606_v23, 7  ;;  %v314_v36 = vsel %vm12943_vm4, 0, %v313_v7  ;;  %v260_v32 = vld [vmem:[#allocation2 + $0x60] sm:$0x1] }
  0x71   : > { %v10521_v31 = vrot.slane %v1607_v28, 9  ;;  %v1875_v33 = vld [vmem:[#allocation2 + $0x4c] sm:$0xf]  ;;  %315 = vst [vmem:[#allocation2 + $0x5c] sm:$0x1] %v314_v36  ;;  %v1288_v38 = vrot.slane %v1286_v24, 4 }
  0x72   : > { %v1039_v54 = vld [vmem:[#allocation2 + $0x4c] sm:$0xf]  ;;  %1907 = vst [vmem:[#allocation4 + $0x1c4] sm:$0xf] %v1875_v33  ;;  %v1291_v29 = vrot.slane %v1289_v25, 5  ;;  %v611_v43 = vor.u32 %v609_v27, %v608_v50  ;;  %v613_v34 = vrot.slane %v608_v50, 4 }
  0x73   : > { %v1109_v35 = vld [vmem:[#allocation2 + $0x4c] sm:$0xf]  ;;  %1071 = vst [vmem:[#allocation4 + $0x208] sm:$0xf] %v1039_v54  ;;  %v860_v42 = vld [vmem:[#allocation2 + $0x54] sm:$0xf] }
  0x74   : > { %v1295_v39 = vshll.u32 %v1109_v35, 16  ;;  %v1299_v41 = vshrl.u32 %v1109_v35, 16  ;;  %v1110_v40 = vld [vmem:[#allocation2 + $0x50] sm:$0x1]  ;;  %v861_v44 = vsel %vm13032_vm10, %v603_v30, %v860_v42  ;;  %v1608_v45 = vld [vmem:[#allocation2 + $0x4c] sm:$0xf]  ;;  %v1292_v47 = vor.u32 %v1291_v29, %v1288_v38 }
  0x75   : > { %v1305_v52 = vshll.u32 %v1110_v40, 16  ;;  %862 = vst [vmem:[#allocation2 + $0x54] sm:$0xf] %v861_v44  ;;  %v1609_v4 = vld [vmem:[#allocation2 + $0x50] sm:$0x1]  ;;  %v612_v57 = vsel %vm13039_vm11, %v604_v26, %v611_v43  ;;  %v1732_v46 = vrot.slane %v1608_v45, 5 }
  0x76   : > { %v1297_v48 = vrot.slane %v1295_v39, 5  ;;  %v1301_v51 = vrot.slane %v1299_v41, 4  ;;  %v1735_v53 = vrot.slane %v1609_v4, 5  ;;  %v261_v55 = vsel %vm12932_vm3, 0, %v260_v32  ;;  %v475_v56 = vld [vmem:[%s12974_s9 + $0x38] sm:$0xf] }
  0x77   : > { %v12291_v37 = vld [vmem:[#allocation4 + $0x194] ss:$40 sps:$4 sm:$0xff]   ;;  %v12293_v61 = vld [vmem:[#allocation4 + $0x190] ss:$40 sps:$4 sm:$0xff]   ;;  %v1293_v62 = vrot.slane %v1292_v47, 4  ;;  %v1307_v0 = vrot.slane %v1305_v52, 5  ;;  %v1733_v58 = vsel %vm13195_vm14, %v10521_v31, %v1732_v46 }
  0x78   : > { %v1302_v63 = vor.u32 %v1301_v51, %v1297_v48  ;;  %863 = vst [vmem:[#allocation2 + $0x58] sm:$0xf] %v612_v57  ;;  %262 = vst [vmem:[#allocation2 + $0x60] sm:$0x1] %v261_v55  ;;  %v1734_v1 = vrot.slane %v1732_v46, 4  ;;  %v615_v3 = vshrl.u32 %v475_v56, 16  ;;  %4584 = vmatprep.mubr.bf16.mxu0 %v12291_v37 }
  0x79   : > { %v476_v2 = vld [vmem:[%s12974_s9 + $0x3c] sm:$0xf]  ;;  %v1298_v6 = vsel %vm13004_vm8, %v1293_v62, %v1297_v48  ;;  %1844 = vst [vmem:[#allocation4 + $0x1e8] sm:$0xf] %v1733_v58  ;;  %v618_v12 = vshll.u32 %v475_v56, 16  ;;  %4585 = vmatmul.mubr.bf16.gmra.mxu0 %v12293_v61 }
  0x7a   : > { %v12359_v5 = vld [vmem:[%s15757_s1 + $0x178] sm:$0xff]   ;;  %v1303_v7 = vrot.slane %v1302_v63, 4  ;;  %v623_v10 = vshrl.u32 %v476_v2, 16  ;;  %v12294_v11 = vld [vmem:[#allocation4 + $0x19c] ss:$40 sps:$4 sm:$0xff]   ;;  %v1736_v13 = vsel %vm13195_vm14, %v1734_v1, %v1735_v53  ;;  %v617_v16 = vrot.slane %v615_v3, 7 }
  0x7b   : > { %v864_v8 = vld [vmem:[#allocation2 + $0x5c] sm:$0x1]  ;;  %v12296_v9 = vld [vmem:[#allocation4 + $0x198] ss:$40 sps:$4 sm:$0xff]   ;;  %1569 = vst [vmem:[#allocation4 + $0x1e4] sm:$0xf] %v1298_v6  ;;  %11361 = vmatprep.subr.bf16.mxu0 %v12359_v5  ;;  %4745 = vmatprep.mubr.bf16.mxu1 %v12294_v11 }
  0x7c   : > { %v865_v49 = vsel %vm12932_vm3, %v613_v34, %v864_v8  ;;  %v1308_v17 = vsel %vm13004_vm8, %v1303_v7, %v1307_v0  ;;  %1845 = vst [vmem:[#allocation4 + $0x210] sm:$0xf] %v1736_v13  ;;  %v13254_v18 = vrot.slane %v623_v10, 7  ;;  %v626_v21 = vshll.u32 %v476_v2, 16  ;;  %v1876_v15 = vld [vmem:[#allocation2 + $0x54] sm:$0xf]  ;;  %4746 = vmatmul.mubr.bf16.gmra.mxu1 %v12296_v9 }
  0x7d   : > { %866 = vst [vmem:[#allocation2 + $0x5c] sm:$0x1] %v865_v49  ;;  %1570 = vst [vmem:[#allocation4 + $0x20c] sm:$0xf] %v1308_v17  ;;  %v1040_v23 = vld [vmem:[#allocation2 + $0x54] sm:$0xf]  ;;  %v620_v25 = vor.u32 %v618_v12, %v617_v16 }
  0x7e   : > { %v1111_v24 = vld [vmem:[#allocation2 + $0x54] sm:$0xf]  ;;  %1908 = vst [vmem:[#allocation4 + $0x1ec] sm:$0xf] %v1876_v15  ;;  %1072 = vst [vmem:[#allocation4 + $0x230] sm:$0xf] %v1040_v23  ;;  %v628_v30 = vor.u32 %v626_v21, %v13254_v18 }
  0x7f   : > { %v1310_v26 = vshrl.u32 %v1111_v24, 16  ;;  %v1313_v27 = vshll.u32 %v1111_v24, 16  ;;  %v621_v28 = vrot.slane %v617_v16, 4  ;;  %v1610_v50 = vld [vmem:[#allocation2 + $0x54] sm:$0xe]  ;;  %v630_v40 = vrot.slane %v13254_v18, 4 }
  0x80   : > { %v316_v31 = vld [vmem:[#allocation2 + $0x68] sm:$0x1]  ;;  %v263_v36 = vld [vmem:[#allocation2 + $0x6c] sm:$0x1]  ;;  %v1877_v32 = vld [vmem:[#allocation2 + $0x58] sm:$0xf] }
  0x81   : > { %v1041_v33 = vld [vmem:[#allocation2 + $0x58] sm:$0xf]  ;;  %1909 = vst [vmem:[#allocation4 + $0x214] sm:$0xf] %v1877_v32  ;;  %v1312_v35 = vrot.slane %v1310_v26, 4  ;;  %v1315_v38 = vrot.slane %v1313_v27, 5  ;;  %v629_v42 = vsel %vm13039_vm11, %v621_v28, %v628_v30 }
  0x82   : > { %v1112_v54 = vld [vmem:[#allocation2 + $0x58] sm:$0xf]  ;;  %1073 = vst [vmem:[#allocation4 + $0x258] sm:$0xf] %v1041_v33  ;;  %v867_v41 = vld [vmem:[#allocation2 + $0x60] sm:$0xf] }
  0x83   : > { %v1319_v29 = vshll.u32 %v1112_v54, 16  ;;  %v1323_v39 = vshrl.u32 %v1112_v54, 16  ;;  %v868_v43 = vsel %vm13032_vm10, %v620_v25, %v867_v41  ;;  %v1611_v34 = vld [vmem:[#allocation2 + $0x58] sm:$0xf]  ;;  %v10522_v44 = vrot.slane %v1610_v50, 9 }
  0x84   : > { %v477_v45 = vld [vmem:[%s12974_s9 + $0x40] sm:$0xf]  ;;  %v1316_v47 = vor.u32 %v1315_v38, %v1312_v35  ;;  %869 = vst [vmem:[#allocation2 + $0x60] sm:$0xf] %v868_v43  ;;  %870 = vst [vmem:[#allocation2 + $0x64] sm:$0xf] %v629_v42 }
  0x85   : > { %v1321_v48 = vrot.slane %v1319_v29, 5  ;;  %v1325_v51 = vrot.slane %v1323_v39, 4  ;;  %v1739_v52 = vrot.slane %v1611_v34, 5  ;;  %v478_v4 = vld [vmem:[%s12974_s9 + $0x44] sm:$0xf]  ;;  %v317_v53 = vsel %vm12943_vm4, 0, %v316_v31 }
  0x86   : > { %v1113_v57 = vld [vmem:[#allocation2 + $0x5c] sm:$0x1]  ;;  %v264_v55 = vsel %vm12932_vm3, 0, %v263_v36  ;;  %v12299_v37 = vld [vmem:[#allocation4 + $0x1e0] ss:$40 sps:$4 sm:$0xff]   ;;  %v1317_v61 = vrot.slane %v1316_v47, 4 }
  0x87   : > { %v1612_v46 = vld [vmem:[#allocation2 + $0x5c] sm:$0x1]  ;;  %v1326_v62 = vor.u32 %v1325_v51, %v1321_v48  ;;  %v1740_v63 = vsel %vm13195_vm14, %v10522_v44, %v1739_v52  ;;  %318 = vst [vmem:[#allocation2 + $0x68] sm:$0x1] %v317_v53  ;;  %265 = vst [vmem:[#allocation2 + $0x6c] sm:$0x1] %v264_v55 }
  0x88   : > { %v12297_v56 = vld [vmem:[#allocation4 + $0x1e4] ss:$40 sps:$4 sm:$0xff]   ;;  %v1329_v0 = vshll.u32 %v1113_v57, 16  ;;  %v1741_v58 = vrot.slane %v1739_v52, 4  ;;  %v1742_v1 = vrot.slane %v1612_v46, 5  ;;  %v632_v2 = vshrl.u32 %v477_v45, 16 }
  0x89   : > { %1846 = vst [vmem:[#allocation4 + $0x238] sm:$0xf] %v1740_v63  ;;  %4592 = vmatprep.mubr.bf16.mxu0 %v12297_v56  ;;  %v1322_v3 = vsel %vm13004_vm8, %v1317_v61, %v1321_v48  ;;  %v1327_v5 = vrot.slane %v1326_v62, 4  ;;  %v635_v6 = vshll.u32 %v477_v45, 16  ;;  %v640_v7 = vshrl.u32 %v478_v4, 16  ;;  %v12361_v12 = vld [vmem:[%s15757_s1 + $0x1f8] sm:$0xff]  }
  0x8a   : > { %v319_v8 = vld [vmem:[#allocation2 + $0x74] sm:$0x1]  ;;  %4593 = vmatmul.mubr.bf16.gmra.mxu0 %v12299_v37  ;;  %v12300_v10 = vld [vmem:[#allocation4 + $0x1ec] ss:$40 sps:$4 sm:$0xff]   ;;  %v12302_v11 = vld [vmem:[#allocation4 + $0x1e8] ss:$40 sps:$4 sm:$0xff]   ;;  %v1743_v13 = vsel %vm13195_vm14, %v1741_v58, %v1742_v1  ;;  %11473 = vmatprep.subr.bf16.mxu1 %v12361_v12 }
  0x8b   : > { %v1331_v9 = vrot.slane %v1329_v0, 5  ;;  %1571 = vst [vmem:[#allocation4 + $0x234] sm:$0xf] %v1322_v3  ;;  %1847 = vst [vmem:[#allocation4 + $0x260] sm:$0xf] %v1743_v13  ;;  %v634_v49 = vrot.slane %v632_v2, 7  ;;  %4753 = vmatprep.mubr.bf16.mxu1 %v12300_v10 }
  0x8c   : > { %v13277_v16 = vrot.slane %v640_v7, 7  ;;  %v643_v17 = vshll.u32 %v478_v4, 16  ;;  %v320_v21 = vsel %vm12943_vm4, 0, %v319_v8  ;;  %v1878_v23 = vld [vmem:[#allocation2 + $0x60] sm:$0xf]  ;;  %4754 = vmatmul.mubr.bf16.gmra.mxu1 %v12302_v11  ;;  %v12363_v58 = vld [vmem:[%s15757_s1 + $0x1b8] sm:$0xff]  }
  0x8d   : > { %v1332_v15 = vsel %vm13004_vm8, %v1327_v5, %v1331_v9  ;;  %v1879_v24 = vld [vmem:[#allocation2 + $0x64] sm:$0xf]  ;;  %v1042_v25 = vld [vmem:[#allocation2 + $0x60] sm:$0xf]  ;;  %321 = vst [vmem:[#allocation2 + $0x74] sm:$0x1] %v320_v21  ;;  %v637_v30 = vor.u32 %v635_v6, %v634_v49  ;;  %11474 = vmatpush3.bf16.msra.mxu1 %v12363_v58 }
  0x8e   : > { %1572 = vst [vmem:[#allocation4 + $0x25c] sm:$0xf] %v1332_v15  ;;  %1910 = vst [vmem:[#allocation4 + $0x23c] sm:$0xf] %v1878_v23  ;;  %v1043_v26 = vld [vmem:[#allocation2 + $0x64] sm:$0xf]  ;;  %v645_v50 = vor.u32 %v643_v17, %v13277_v16 }
  0x8f   : > { %1911 = vst [vmem:[#allocation4 + $0x264] sm:$0xf] %v1879_v24  ;;  %1074 = vst [vmem:[#allocation4 + $0x280] sm:$0xf] %v1042_v25  ;;  %v1114_v27 = vld [vmem:[#allocation2 + $0x60] sm:$0xf] }
  0x90   : > { %v1115_v28 = vld [vmem:[#allocation2 + $0x64] sm:$0xf]  ;;  %v266_v31 = vld [vmem:[#allocation2 + $0x78] sm:$0x1]  ;;  %v871_v36 = vld [vmem:[#allocation2 + $0x68] sm:$0x1] }
  0x91   : > { %1075 = vst [vmem:[#allocation4 + $0x2a8] sm:$0xf] %v1043_v26  ;;  %v1334_v32 = vshrl.u32 %v1114_v27, 16  ;;  %v1337_v33 = vshll.u32 %v1114_v27, 16  ;;  %v1343_v54 = vshll.u32 %v1115_v28, 16  ;;  %v1347_v35 = vshrl.u32 %v1115_v28, 16 }
  0x92   : > { %v872_v38 = vsel %vm12932_vm3, %v630_v40, %v871_v36  ;;  %v638_v29 = vrot.slane %v634_v49, 4  ;;  %v647_v39 = vrot.slane %v13277_v16, 4  ;;  %v874_v41 = vld [vmem:[#allocation2 + $0x6c] sm:$0xf]  ;;  %v1613_v42 = vld [vmem:[#allocation2 + $0x60] sm:$0xe] }
  0x93   : > { %873 = vst [vmem:[#allocation2 + $0x68] sm:$0x1] %v872_v38  ;;  %v1336_v43 = vrot.slane %v1334_v32, 4  ;;  %v1339_v34 = vrot.slane %v1337_v33, 5  ;;  %v1345_v44 = vrot.slane %v1343_v54, 5  ;;  %v1349_v45 = vrot.slane %v1347_v35, 4 }
  0x94   : > { %v1614_v47 = vld [vmem:[#allocation2 + $0x64] sm:$0xf]  ;;  %v646_v48 = vsel %vm13039_vm11, %v638_v29, %v645_v50  ;;  %v875_v18 = vsel %vm13032_vm10, %v637_v30, %v874_v41  ;;  %v10523_v51 = vrot.slane %v1613_v42, 9  ;;  %v479_v52 = vld [vmem:[%s12974_s9 + $0x48] sm:$0xf]  ;;  %v267_v46 = vsel %vm12932_vm3, 0, %v266_v31 }
  0x95   : > { %v1746_v40 = vrot.slane %v1614_v47, 5  ;;  %v1340_v4 = vor.u32 %v1339_v34, %v1336_v43  ;;  %v1350_v57 = vor.u32 %v1349_v45, %v1345_v44  ;;  %876 = vst [vmem:[#allocation2 + $0x6c] sm:$0xf] %v875_v18  ;;  %877 = vst [vmem:[#allocation2 + $0x70] sm:$0xf] %v646_v48  ;;  %v649_v55 = vshrl.u32 %v479_v52, 16 }
  0x96   : > { %v480_v53 = vld [vmem:[%s12974_s9 + $0x4c] sm:$0xf]  ;;  %v322_v56 = vld [vmem:[#allocation2 + $0x80] sm:$0x1]  ;;  %v878_v62 = vld [vmem:[#allocation2 + $0x74] sm:$0x1] }
  0x97   : > { %v1747_v37 = vsel %vm13195_vm14, %v10523_v51, %v1746_v40  ;;  %v1748_v61 = vrot.slane %v1746_v40, 4  ;;  %268 = vst [vmem:[#allocation2 + $0x78] sm:$0x1] %v267_v46  ;;  %v652_v63 = vshll.u32 %v479_v52, 16  ;;  %v657_v0 = vshrl.u32 %v480_v53, 16  ;;  %v12365_v15 = vld [vmem:[%s15757_s1 + $0x1f0] sm:$0xff]  }
  0x98   : > { %v12303_v1 = vld [vmem:[#allocation4 + $0x234] ss:$40 sps:$4 sm:$0xff]   ;;  %v12305_v2 = vld [vmem:[#allocation4 + $0x230] ss:$40 sps:$4 sm:$0xff]   ;;  %v1341_v3 = vrot.slane %v1340_v4, 4  ;;  %v879_v5 = vsel %vm12932_vm3, %v647_v39, %v878_v62  ;;  %v1351_v7 = vrot.slane %v1350_v57, 4  ;;  %11475 = vmatprep.subr.bf16.mxu1 %v12365_v15 }
  0x99   : > { %1848 = vst [vmem:[#allocation4 + $0x288] sm:$0xf] %v1747_v37  ;;  %v12306_v6 = vld [vmem:[#allocation4 + $0x23c] ss:$40 sps:$4 sm:$0xff]   ;;  %880 = vst [vmem:[#allocation2 + $0x74] sm:$0x1] %v879_v5  ;;  %4600 = vmatprep.mubr.bf16.mxu0 %v12303_v1 }
  0x9a   : > { %v651_v8 = vrot.slane %v649_v55, 7  ;;  %v12308_v12 = vld [vmem:[#allocation4 + $0x238] ss:$40 sps:$4 sm:$0xff]   ;;  %v1346_v10 = vsel %vm13004_vm8, %v1341_v3, %v1345_v44  ;;  %v13306_v11 = vrot.slane %v657_v0, 7  ;;  %v660_v9 = vshll.u32 %v480_v53, 16  ;;  %4601 = vmatmul.mubr.bf16.gmra.mxu0 %v12305_v2  ;;  %4761 = vmatprep.mubr.bf16.mxu1 %v12306_v6 }
  0x9b   : > { %v323_v13 = vsel %vm12943_vm4, 0, %v322_v56  ;;  %v1116_v49 = vld [vmem:[#allocation2 + $0x68] sm:$0x1]  ;;  %1573 = vst [vmem:[#allocation4 + $0x284] sm:$0xf] %v1346_v10  ;;  %4762 = vmatmul.mubr.bf16.gmra.mxu1 %v12308_v12  ;;  %v12369_v3 = vld [vmem:[%s15757_s1 + $0x1b0] sm:$0xff]  }
  0x9c   : > { %v1615_v16 = vld [vmem:[#allocation2 + $0x68] sm:$0x1]  ;;  %v654_v17 = vor.u32 %v652_v63, %v651_v8  ;;  %v655_v21 = vrot.slane %v651_v8, 4  ;;  %324 = vst [vmem:[#allocation2 + $0x80] sm:$0x1] %v323_v13  ;;  %v1353_v23 = vshll.u32 %v1116_v49, 16  ;;  %v662_v25 = vor.u32 %v660_v9, %v13306_v11  ;;  %11476 = vmatpush3.bf16.msra.mxu1 %v12369_v3 }
  0x9d   : > { %v1749_v24 = vrot.slane %v1615_v16, 5  ;;  %v664_v26 = vrot.slane %v13306_v11, 4  ;;  %v269_v27 = vld [vmem:[#allocation2 + $0x84] sm:$0x1]  ;;  %v1880_v28 = vld [vmem:[#allocation2 + $0x6c] sm:$0xf] }
  0x9e   : > { %v1881_v30 = vld [vmem:[#allocation2 + $0x70] sm:$0xf]  ;;  %v1044_v50 = vld [vmem:[#allocation2 + $0x6c] sm:$0xf]  ;;  %v1355_v31 = vrot.slane %v1353_v23, 5  ;;  %v663_v54 = vsel %vm13039_vm11, %v655_v21, %v662_v25  ;;  %v270_v35 = vsel %vm12932_vm3, 0, %v269_v27 }
  0x9f   : > { %v1750_v36 = vsel %vm13195_vm14, %v1748_v61, %v1749_v24  ;;  %1912 = vst [vmem:[#allocation4 + $0x28c] sm:$0xf] %v1880_v28  ;;  %1913 = vst [vmem:[#allocation4 + $0x2b4] sm:$0xf] %v1881_v30  ;;  %v1045_v32 = vld [vmem:[#allocation2 + $0x70] sm:$0xf] }
  0xa0   : > { %1076 = vst [vmem:[#allocation4 + $0x2d0] sm:$0xf] %v1044_v50  ;;  %v1117_v33 = vld [vmem:[#allocation2 + $0x6c] sm:$0xf]  ;;  %1849 = vst [vmem:[#allocation4 + $0x2b0] sm:$0xf] %v1750_v36  ;;  %v1356_v42 = vsel %vm13004_vm8, %v1351_v7, %v1355_v31 }
  0xa1   : > { %1077 = vst [vmem:[#allocation4 + $0x2f8] sm:$0xf] %v1045_v32  ;;  %v1118_v38 = vld [vmem:[#allocation2 + $0x70] sm:$0xf]  ;;  %v1358_v29 = vshrl.u32 %v1117_v33, 16  ;;  %v1361_v39 = vshll.u32 %v1117_v33, 16 }
  0xa2   : > { %v881_v41 = vld [vmem:[#allocation2 + $0x78] sm:$0xf]  ;;  %884 = vst [vmem:[#allocation2 + $0x7c] sm:$0xf] %v663_v54  ;;  %271 = vst [vmem:[#allocation2 + $0x84] sm:$0x1] %v270_v35 }
  0xa3   : > { %v1119_v43 = vld [vmem:[#allocation2 + $0x74] sm:$0x1]  ;;  %v1367_v34 = vshll.u32 %v1118_v38, 16  ;;  %v1371_v44 = vshrl.u32 %v1118_v38, 16  ;;  %v882_v45 = vsel %vm13032_vm10, %v654_v17, %v881_v41  ;;  %v1616_v47 = vld [vmem:[#allocation2 + $0x6c] sm:$0xe] }
  0xa4   : > { %1574 = vst [vmem:[#allocation4 + $0x2ac] sm:$0xf] %v1356_v42  ;;  %v1360_v48 = vrot.slane %v1358_v29, 4  ;;  %v1363_v18 = vrot.slane %v1361_v39, 5  ;;  %v1377_v51 = vshll.u32 %v1119_v43, 16  ;;  %v10524_v52 = vrot.slane %v1616_v47, 9 }
  0xa5   : > { %883 = vst [vmem:[#allocation2 + $0x78] sm:$0xf] %v882_v45  ;;  %v1617_v40 = vld [vmem:[#allocation2 + $0x70] sm:$0xf]  ;;  %v1369_v4 = vrot.slane %v1367_v34, 5  ;;  %v1373_v57 = vrot.slane %v1371_v44, 4 }
  0xa6   : > { %v1618_v46 = vld [vmem:[#allocation2 + $0x74] sm:$0x1]  ;;  %v1753_v53 = vrot.slane %v1617_v40, 5  ;;  %v1364_v55 = vor.u32 %v1363_v18, %v1360_v48  ;;  %v1379_v56 = vrot.slane %v1377_v51, 5  ;;  %v885_v61 = vld [vmem:[#allocation2 + $0x80] sm:$0x1] }
  0xa7   : > { %v1756_v37 = vrot.slane %v1618_v46, 5  ;;  %v481_v62 = vld [vmem:[%s12974_s9 + $0x50] sm:$0xf]  ;;  %v1374_v63 = vor.u32 %v1373_v57, %v1369_v4  ;;  %v886_v1 = vsel %vm12932_vm3, %v664_v26, %v885_v61  ;;  %v482_v2 = vld [vmem:[%s12974_s9 + $0x54] sm:$0xf] }
  0xa8   : > { %v1754_v0 = vsel %vm13195_vm14, %v10524_v52, %v1753_v53  ;;  %v1755_v58 = vrot.slane %v1753_v53, 4  ;;  %v1365_v5 = vrot.slane %v1364_v55, 4  ;;  %887 = vst [vmem:[#allocation2 + $0x80] sm:$0x1] %v886_v1  ;;  %v666_v6 = vshrl.u32 %v481_v62, 16 }
  0xa9   : > { %1850 = vst [vmem:[#allocation4 + $0x2d8] sm:$0xf] %v1754_v0  ;;  %v669_v7 = vshll.u32 %v481_v62, 16  ;;  %v674_v8 = vshrl.u32 %v482_v2, 16  ;;  %v12312_v12 = vld [vmem:[#allocation4 + $0x28c] ss:$40 sps:$4 sm:$0xff]  }
  0xaa   : > { %v12314_v10 = vld [vmem:[#allocation4 + $0x288] ss:$40 sps:$4 sm:$0xff]   ;;  %v1375_v11 = vrot.slane %v1374_v63, 4  ;;  %v1757_v9 = vsel %vm13195_vm14, %v1755_v58, %v1756_v37  ;;  %v325_v13 = vld [vmem:[#allocation2 + $0x8c] sm:$0x1]  ;;  %v1370_v49 = vsel %vm13004_vm8, %v1365_v5, %v1369_v4  ;;  %4769 = vmatprep.mubr.bf16.mxu1 %v12312_v12  ;;  %v668_v33 = vrot.slane %v666_v6, 7 }
  0xab   : > { %1851 = vst [vmem:[#allocation4 + $0x300] sm:$0xf] %v1757_v9  ;;  %v1883_v16 = vld [vmem:[#allocation2 + $0x7c] sm:$0xf]  ;;  %v12311_v23 = vld [vmem:[#allocation4 + $0x280] ss:$40 sps:$4 sm:$0xff]   ;;  %4770 = vmatmul.mubr.bf16.gmra.mxu1 %v12314_v10 }
  0xac   : > { %v1047_v17 = vld [vmem:[#allocation2 + $0x7c] sm:$0xf]  ;;  %v1380_v24 = vsel %vm13004_vm8, %v1375_v11, %v1379_v56  ;;  %1575 = vst [vmem:[#allocation4 + $0x2d4] sm:$0xf] %v1370_v49  ;;  %1915 = vst [vmem:[#allocation4 + $0x304] sm:$0xf] %v1883_v16  ;;  %v671_v45 = vor.u32 %v669_v7, %v668_v33 }
  0xad   : > { %v1121_v21 = vld [vmem:[#allocation2 + $0x7c] sm:$0xf]  ;;  %1079 = vst [vmem:[#allocation4 + $0x348] sm:$0xf] %v1047_v17  ;;  %1576 = vst [vmem:[#allocation4 + $0x2fc] sm:$0xf] %v1380_v24 }
  0xae   : > { %v12309_v15 = vld [vmem:[#allocation4 + $0x284] ss:$40 sps:$4 sm:$0xff]   ;;  %v1391_v25 = vshll.u32 %v1121_v21, 16  ;;  %v1882_v26 = vld [vmem:[#allocation2 + $0x78] sm:$0xf]  ;;  %v1395_v36 = vshrl.u32 %v1121_v21, 16 }
  0xaf   : > { %v1046_v27 = vld [vmem:[#allocation2 + $0x78] sm:$0xf]  ;;  %4608 = vmatprep.mubr.bf16.mxu0 %v12309_v15  ;;  %1914 = vst [vmem:[#allocation4 + $0x2dc] sm:$0xf] %v1882_v26  ;;  %v888_v32 = vld [vmem:[#allocation2 + $0x84] sm:$0xf] }
  0xb0   : > { %v1120_v28 = vld [vmem:[#allocation2 + $0x78] sm:$0xf]  ;;  %1078 = vst [vmem:[#allocation4 + $0x320] sm:$0xf] %v1046_v27  ;;  %v1393_v31 = vrot.slane %v1391_v25, 5  ;;  %4609 = vmatmul.mubr.bf16.gmra.mxu0 %v12311_v23  ;;  %v676_v54 = vrot.slane %v674_v8, 7  ;;  %v889_v37 = vsel %vm13032_vm10, %v671_v45, %v888_v32 }
  0xb1   : > { %v1382_v30 = vshrl.u32 %v1120_v28, 16  ;;  %v1385_v50 = vshll.u32 %v1120_v28, 16  ;;  %v677_v35 = vshll.u32 %v482_v2, 16  ;;  %v1619_v38 = vld [vmem:[#allocation2 + $0x78] sm:$0xe]  ;;  %v326_v29 = vsel %vm12943_vm4, 0, %v325_v13 }
  0xb2   : > { %v1122_v39 = vld [vmem:[#allocation2 + $0x80] sm:$0x1]  ;;  %v1397_v43 = vrot.slane %v1395_v36, 4  ;;  %v10525_v34 = vrot.slane %v1619_v38, 9  ;;  %327 = vst [vmem:[#allocation2 + $0x8c] sm:$0x1] %v326_v29 }
  0xb3   : > { %v1384_v41 = vrot.slane %v1382_v30, 4  ;;  %v1387_v42 = vrot.slane %v1385_v50, 5  ;;  %v1401_v44 = vshll.u32 %v1122_v39, 16  ;;  %v672_v47 = vrot.slane %v668_v33, 4  ;;  %v1620_v18 = vld [vmem:[#allocation2 + $0x7c] sm:$0xf] }
  0xb4   : > { %v679_v48 = vor.u32 %v677_v35, %v676_v54  ;;  %v1621_v51 = vld [vmem:[#allocation2 + $0x80] sm:$0x1]  ;;  %v1398_v52 = vor.u32 %v1397_v43, %v1393_v31  ;;  %v681_v4 = vrot.slane %v676_v54, 4  ;;  %v1760_v57 = vrot.slane %v1620_v18, 5  ;;  %v272_v46 = vld [vmem:[#allocation2 + $0x90] sm:$0x1] }
  0xb5   : > { %v1388_v40 = vor.u32 %v1387_v42, %v1384_v41  ;;  %v483_v53 = vld [vmem:[%s12974_s9 + $0x58] sm:$0xf]  ;;  %v1403_v55 = vrot.slane %v1401_v44, 5  ;;  %v1763_v61 = vrot.slane %v1621_v51, 5  ;;  %v484_v62 = vld [vmem:[%s12974_s9 + $0x5c] sm:$0xf] }
  0xb6   : > { %v680_v56 = vsel %vm13039_vm11, %v672_v47, %v679_v48  ;;  %v12315_v63 = vld [vmem:[#allocation4 + $0x2d4] ss:$40 sps:$4 sm:$0xff]   ;;  %v12317_v0 = vld [vmem:[#allocation4 + $0x2d0] ss:$40 sps:$4 sm:$0xff]   ;;  %890 = vst [vmem:[#allocation2 + $0x84] sm:$0xf] %v889_v37  ;;  %v1761_v1 = vsel %vm13195_vm14, %v10525_v34, %v1760_v57 }
  0xb7   : > { %v1389_v58 = vrot.slane %v1388_v40, 4  ;;  %891 = vst [vmem:[#allocation2 + $0x88] sm:$0xf] %v680_v56  ;;  %v12318_v2 = vld [vmem:[#allocation4 + $0x2dc] ss:$40 sps:$4 sm:$0xff]   ;;  %v1399_v5 = vrot.slane %v1398_v52, 4  ;;  %4616 = vmatprep.mubr.bf16.mxu0 %v12315_v63 }
  0xb8   : > { %v12320_v3 = vld [vmem:[#allocation4 + $0x2d8] ss:$40 sps:$4 sm:$0xff]   ;;  %1852 = vst [vmem:[#allocation4 + $0x328] sm:$0xf] %v1761_v1  ;;  %v1762_v7 = vrot.slane %v1760_v57, 4  ;;  %v273_v8 = vsel %vm12932_vm3, 0, %v272_v46  ;;  %4617 = vmatmul.mubr.bf16.gmra.mxu0 %v12317_v0  ;;  %4777 = vmatprep.mubr.bf16.mxu1 %v12318_v2 }
  0xb9   : > { %v1394_v6 = vsel %vm13004_vm8, %v1389_v58, %v1393_v31  ;;  %v683_v12 = vshrl.u32 %v483_v53, 16  ;;  %v328_v10 = vld [vmem:[#allocation2 + $0x98] sm:$0x1]  ;;  %v12372_v11 = vld [vmem:[%s15757_s1 + $0x1e8] sm:$0xff]   ;;  %v1404_v9 = vsel %vm13004_vm8, %v1399_v5, %v1403_v55  ;;  %274 = vst [vmem:[#allocation2 + $0x90] sm:$0x1] %v273_v8  ;;  %4778 = vmatmul.mubr.bf16.gmra.mxu1 %v12320_v3 }
  0xba   : > { %1577 = vst [vmem:[#allocation4 + $0x324] sm:$0xf] %v1394_v6  ;;  %v892_v13 = vld [vmem:[#allocation2 + $0x8c] sm:$0x1]  ;;  %v686_v49 = vshll.u32 %v483_v53, 16  ;;  %v691_v16 = vshrl.u32 %v484_v62, 16  ;;  %v1764_v21 = vsel %vm13195_vm14, %v1762_v7, %v1763_v61  ;;  %11477 = vmatprep.subr.bf16.mxu1 %v12372_v11 }
  0xbb   : > { %v694_v17 = vshll.u32 %v484_v62, 16  ;;  %1578 = vst [vmem:[#allocation4 + $0x34c] sm:$0xf] %v1404_v9  ;;  %v893_v15 = vsel %vm12932_vm3, %v681_v4, %v892_v13  ;;  %v685_v23 = vrot.slane %v683_v12, 7  ;;  %v329_v24 = vsel %vm12943_vm4, 0, %v328_v10  ;;  %v12374_v54 = vld [vmem:[%s15757_s1 + $0x1a8] sm:$0xff]  }
  0xbc   : > { %v275_v25 = vld [vmem:[#allocation2 + $0x9c] sm:$0x1]  ;;  %v13366_v26 = vld [vmem:[%s12974_s9 + $0x60] sm:$0xf]  ;;  %1853 = vst [vmem:[#allocation4 + $0x350] sm:$0xf] %v1764_v21  ;;  %11478 = vmatpush3.bf16.msra.mxu1 %v12374_v54 }
  0xbd   : > { %894 = vst [vmem:[#allocation2 + $0x8c] sm:$0x1] %v893_v15  ;;  %v693_v27 = vrot.slane %v691_v16, 7  ;;  %330 = vst [vmem:[#allocation2 + $0x98] sm:$0x1] %v329_v24  ;;  %v276_v28 = vsel %vm12932_vm3, 0, %v275_v25  ;;  %v688_v39 = vor.u32 %v686_v49, %v685_v23 }
  0xbe   : > { %v13371_v30 = vld [vmem:[%s12974_s9 + $0x64] sm:$0xf]  ;;  %v700_v50 = vshrl.u32 %v13366_v26, 16  ;;  %v689_v31 = vrot.slane %v685_v23, 4  ;;  %277 = vst [vmem:[#allocation2 + $0x9c] sm:$0x1] %v276_v28 }
  0xbf   : > { %v703_v36 = vshll.u32 %v13366_v26, 16  ;;  %v708_v32 = vshrl.u32 %v13371_v30, 16  ;;  %v711_v33 = vshll.u32 %v13371_v30, 16  ;;  %v1884_v35 = vld [vmem:[#allocation2 + $0x84] sm:$0xf]  ;;  %v696_v41 = vor.u32 %v694_v17, %v693_v27 }
  0xc0   : > { %v1885_v38 = vld [vmem:[#allocation2 + $0x88] sm:$0xf]  ;;  %v1048_v29 = vld [vmem:[#allocation2 + $0x84] sm:$0xf]  ;;  %1916 = vst [vmem:[#allocation4 + $0x32c] sm:$0xf] %v1884_v35 }
  0xc1   : > { %1917 = vst [vmem:[#allocation4 + $0x354] sm:$0xf] %v1885_v38  ;;  %v1049_v42 = vld [vmem:[#allocation2 + $0x88] sm:$0xf]  ;;  %1080 = vst [vmem:[#allocation4 + $0x370] sm:$0xf] %v1048_v29  ;;  %v697_v51 = vsel %vm13039_vm11, %v689_v31, %v696_v41 }
  0xc2   : > { %v1123_v43 = vld [vmem:[#allocation2 + $0x84] sm:$0xf]  ;;  %v1124_v34 = vld [vmem:[#allocation2 + $0x88] sm:$0xf]  ;;  %1081 = vst [vmem:[#allocation4 + $0x398] sm:$0xf] %v1049_v42 }
  0xc3   : > { %v1406_v44 = vshrl.u32 %v1123_v43, 16  ;;  %v1409_v45 = vshll.u32 %v1123_v43, 16  ;;  %v1415_v47 = vshll.u32 %v1124_v34, 16  ;;  %v1419_v48 = vshrl.u32 %v1124_v34, 16  ;;  %v1622_v18 = vld [vmem:[#allocation2 + $0x84] sm:$0xe] }
  0xc4   : > { %v698_v40 = vrot.slane %v693_v27, 4  ;;  %v895_v52 = vld [vmem:[#allocation2 + $0x90] sm:$0xf]  ;;  %v1623_v4 = vld [vmem:[#allocation2 + $0x88] sm:$0xf]  ;;  %v10526_v63 = vrot.slane %v1622_v18, 9 }
  0xc5   : > { %v12321_v57 = vld [vmem:[#allocation4 + $0x324] ss:$40 sps:$4 sm:$0xff]   ;;  %v12323_v46 = vld [vmem:[#allocation4 + $0x320] ss:$40 sps:$4 sm:$0xff]   ;;  %v1408_v53 = vrot.slane %v1406_v44, 4  ;;  %v896_v55 = vsel %vm13032_vm10, %v688_v39, %v895_v52  ;;  %v1411_v37 = vrot.slane %v1409_v45, 5 }
  0xc6   : > { %898 = vst [vmem:[#allocation2 + $0x94] sm:$0xf] %v697_v51  ;;  %v1125_v56 = vld [vmem:[#allocation2 + $0x8c] sm:$0x1]  ;;  %v1417_v61 = vrot.slane %v1415_v47, 5  ;;  %v1421_v62 = vrot.slane %v1419_v48, 4  ;;  %4624 = vmatprep.mubr.bf16.mxu0 %v12321_v57 }
  0xc7   : > { %897 = vst [vmem:[#allocation2 + $0x90] sm:$0xf] %v896_v55  ;;  %v1425_v0 = vshll.u32 %v1125_v56, 16  ;;  %v1624_v58 = vld [vmem:[#allocation2 + $0x8c] sm:$0x1]  ;;  %v1767_v1 = vrot.slane %v1623_v4, 5  ;;  %4625 = vmatmul.mubr.bf16.gmra.mxu0 %v12323_v46  ;;  %v1412_v3 = vor.u32 %v1411_v37, %v1408_v53 }
  0xc8   : > { %v899_v2 = vld [vmem:[#allocation2 + $0x98] sm:$0x1]  ;;  %v1422_v5 = vor.u32 %v1421_v62, %v1417_v61  ;;  %v1770_v6 = vrot.slane %v1624_v58, 5  ;;  %v331_v8 = vld [vmem:[#allocation2 + $0xa4] sm:$0x1]  ;;  %v702_v21 = vrot.slane %v700_v50, 7 }
  0xc9   : > { %v900_v7 = vsel %vm12932_vm3, %v698_v40, %v899_v2  ;;  %v278_v12 = vld [vmem:[#allocation2 + $0xa8] sm:$0x1]  ;;  %v12324_v10 = vld [vmem:[#allocation4 + $0x32c] ss:$40 sps:$4 sm:$0xff]   ;;  %v1427_v11 = vrot.slane %v1425_v0, 5  ;;  %v1768_v9 = vsel %vm13195_vm14, %v10526_v63, %v1767_v1  ;;  %v1769_v13 = vrot.slane %v1767_v1, 4 }
  0xca   : > { %901 = vst [vmem:[#allocation2 + $0x98] sm:$0x1] %v900_v7  ;;  %v12326_v49 = vld [vmem:[#allocation4 + $0x328] ss:$40 sps:$4 sm:$0xff]   ;;  %v1413_v16 = vrot.slane %v1412_v3, 4  ;;  %v1423_v17 = vrot.slane %v1422_v5, 4  ;;  %4785 = vmatprep.mubr.bf16.mxu1 %v12324_v10  ;;  %v705_v35 = vor.u32 %v703_v36, %v702_v21 }
  0xcb   : > { %1854 = vst [vmem:[#allocation4 + $0x378] sm:$0xf] %v1768_v9  ;;  %v13388_v15 = vrot.slane %v708_v32, 7  ;;  %v1771_v23 = vsel %vm13195_vm14, %v1769_v13, %v1770_v6  ;;  %v902_v24 = vld [vmem:[#allocation2 + $0x9c] sm:$0xf]  ;;  %v332_v25 = vsel %vm12943_vm4, 0, %v331_v8  ;;  %4786 = vmatmul.mubr.bf16.gmra.mxu1 %v12326_v49 }
  0xcc   : > { %v279_v27 = vsel %vm12932_vm3, 0, %v278_v12  ;;  %v1418_v28 = vsel %vm13004_vm8, %v1413_v16, %v1417_v61  ;;  %v1428_v50 = vsel %vm13004_vm8, %v1423_v17, %v1427_v11  ;;  %1855 = vst [vmem:[#allocation4 + $0x3a0] sm:$0xf] %v1771_v23  ;;  %333 = vst [vmem:[#allocation2 + $0xa4] sm:$0x1] %v332_v25  ;;  %v706_v45 = vrot.slane %v702_v21, 4 }
  0xcd   : > { %v1887_v31 = vld [vmem:[#allocation2 + $0x94] sm:$0xf]  ;;  %280 = vst [vmem:[#allocation2 + $0xa8] sm:$0x1] %v279_v27  ;;  %v487_v38 = vld [vmem:[%s12974_s9 + $0x68] sm:$0xf]  ;;  %v713_v42 = vor.u32 %v711_v33, %v13388_v15  ;;  %v903_v48 = vsel %vm13032_vm10, %v705_v35, %v902_v24 }
  0xce   : > { %v1051_v32 = vld [vmem:[#allocation2 + $0x94] sm:$0xf]  ;;  %1579 = vst [vmem:[#allocation4 + $0x374] sm:$0xf] %v1418_v28  ;;  %1580 = vst [vmem:[#allocation4 + $0x39c] sm:$0xf] %v1428_v50 }
  0xcf   : > { %v1127_v54 = vld [vmem:[#allocation2 + $0x94] sm:$0xf]  ;;  %v1886_v29 = vld [vmem:[#allocation2 + $0x90] sm:$0xf]  ;;  %1919 = vst [vmem:[#allocation4 + $0x3a4] sm:$0xf] %v1887_v31  ;;  %v714_v53 = vsel %vm13039_vm11, %v706_v45, %v713_v42 }
  0xd0   : > { %v1050_v39 = vld [vmem:[#allocation2 + $0x90] sm:$0xf]  ;;  %1083 = vst [vmem:[#allocation4 + $0x3e8] sm:$0xf] %v1051_v32  ;;  %1918 = vst [vmem:[#allocation4 + $0x37c] sm:$0xf] %v1886_v29 }
  0xd1   : > { %v1126_v41 = vld [vmem:[#allocation2 + $0x90] sm:$0xf]  ;;  %1082 = vst [vmem:[#allocation4 + $0x3c0] sm:$0xf] %v1050_v39  ;;  %v1439_v26 = vshll.u32 %v1127_v54, 16  ;;  %v1443_v36 = vshrl.u32 %v1127_v54, 16 }
  0xd2   : > { %v1430_v43 = vshrl.u32 %v1126_v41, 16  ;;  %v1433_v34 = vshll.u32 %v1126_v41, 16  ;;  %v1625_v44 = vld [vmem:[#allocation2 + $0x90] sm:$0xe]  ;;  %v715_v47 = vrot.slane %v13388_v15, 4  ;;  %v12376_v30 = vld [vmem:[%s15757_s1 + $0x1e0] sm:$0xff]  }
  0xd3   : > { %v1626_v18 = vld [vmem:[#allocation2 + $0x94] sm:$0xf]  ;;  %v10527_v51 = vrot.slane %v1625_v44, 9  ;;  %v1128_v33 = vld [vmem:[#allocation2 + $0x98] sm:$0x1]  ;;  %v1441_v4 = vrot.slane %v1439_v26, 5  ;;  %11479 = vmatprep.subr.bf16.mxu1 %v12376_v30 }
  0xd4   : > { %v1432_v40 = vrot.slane %v1430_v43, 4  ;;  %v1435_v52 = vrot.slane %v1433_v34, 5  ;;  %v1445_v57 = vrot.slane %v1443_v36, 4  ;;  %904 = vst [vmem:[#allocation2 + $0x9c] sm:$0xf] %v903_v48  ;;  %v1449_v46 = vshll.u32 %v1128_v33, 16 }
  0xd5   : > { %v1627_v55 = vld [vmem:[#allocation2 + $0x98] sm:$0x1]  ;;  %v1774_v56 = vrot.slane %v1626_v18, 5  ;;  %v717_v37 = vshrl.u32 %v487_v38, 16  ;;  %905 = vst [vmem:[#allocation2 + $0xa0] sm:$0xf] %v714_v53 }
  0xd6   : > { %v1436_v61 = vor.u32 %v1435_v52, %v1432_v40  ;;  %v1446_v62 = vor.u32 %v1445_v57, %v1441_v4  ;;  %v1777_v63 = vrot.slane %v1627_v55, 5  ;;  %v488_v0 = vld [vmem:[%s12974_s9 + $0x6c] sm:$0xf]  ;;  %v720_v58 = vshll.u32 %v487_v38, 16  ;;  %v334_v1 = vld [vmem:[#allocation2 + $0xb0] sm:$0x1] }
  0xd7   : > { %v1451_v2 = vrot.slane %v1449_v46, 5  ;;  %v1775_v3 = vsel %vm13195_vm14, %v10527_v51, %v1774_v56  ;;  %v1776_v5 = vrot.slane %v1774_v56, 4  ;;  %v906_v6 = vld [vmem:[#allocation2 + $0xa4] sm:$0x1]  ;;  %v13417_v7 = vrot.slane %v717_v37, 7 }
  0xd8   : > { %v281_v8 = vld [vmem:[#allocation2 + $0xb4] sm:$0x1]  ;;  %v12380_v12 = vld [vmem:[%s15757_s1 + $0x1a0] sm:$0xff]   ;;  %v1437_v11 = vrot.slane %v1436_v61, 4  ;;  %v1447_v9 = vrot.slane %v1446_v62, 4  ;;  %v907_v13 = vsel %vm12932_vm3, %v715_v47, %v906_v6  ;;  %v725_v15 = vshrl.u32 %v488_v0, 16 }
  0xd9   : > { %v12327_v10 = vld [vmem:[#allocation4 + $0x374] ss:$40 sps:$4 sm:$0xff]   ;;  %1856 = vst [vmem:[#allocation4 + $0x3c8] sm:$0xf] %v1775_v3  ;;  %v12329_v49 = vld [vmem:[#allocation4 + $0x370] ss:$40 sps:$4 sm:$0xff]   ;;  %v1778_v16 = vsel %vm13195_vm14, %v1776_v5, %v1777_v63  ;;  %v722_v17 = vor.u32 %v720_v58, %v13417_v7  ;;  %11480 = vmatpush3.bf16.msra.mxu1 %v12380_v12 }
  0xda   : > { %908 = vst [vmem:[#allocation2 + $0xa4] sm:$0x1] %v907_v13  ;;  %v723_v21 = vrot.slane %v13417_v7, 4  ;;  %4632 = vmatprep.mubr.bf16.mxu0 %v12327_v10  ;;  %v12330_v23 = vld [vmem:[#allocation4 + $0x37c] ss:$40 sps:$4 sm:$0xff]   ;;  %v1442_v25 = vsel %vm13004_vm8, %v1437_v11, %v1441_v4  ;;  %v1452_v27 = vsel %vm13004_vm8, %v1447_v9, %v1451_v2  ;;  %v728_v28 = vshll.u32 %v488_v0, 16 }
  0xdb   : > { %v12332_v24 = vld [vmem:[#allocation4 + $0x378] ss:$40 sps:$4 sm:$0xff]   ;;  %1857 = vst [vmem:[#allocation4 + $0x3f0] sm:$0xf] %v1778_v16  ;;  %v335_v50 = vsel %vm12943_vm4, 0, %v334_v1  ;;  %4633 = vmatmul.mubr.bf16.gmra.mxu0 %v12329_v49  ;;  %4793 = vmatprep.mubr.bf16.mxu1 %v12330_v23  ;;  %v727_v29 = vrot.slane %v725_v15, 7 }
  0xdc   : > { %1581 = vst [vmem:[#allocation4 + $0x3c4] sm:$0xf] %v1442_v25  ;;  %1582 = vst [vmem:[#allocation4 + $0x3ec] sm:$0xf] %v1452_v27  ;;  %v1888_v31 = vld [vmem:[#allocation2 + $0x9c] sm:$0xf]  ;;  %4794 = vmatmul.mubr.bf16.gmra.mxu1 %v12332_v24 }
  0xdd   : > { %v1052_v32 = vld [vmem:[#allocation2 + $0x9c] sm:$0xf]  ;;  %336 = vst [vmem:[#allocation2 + $0xb0] sm:$0x1] %v335_v50  ;;  %1920 = vst [vmem:[#allocation4 + $0x3cc] sm:$0xf] %v1888_v31  ;;  %v730_v18 = vor.u32 %v728_v28, %v727_v29 }
  0xde   : > { %v1129_v54 = vld [vmem:[#allocation2 + $0x9c] sm:$0xf]  ;;  %1084 = vst [vmem:[#allocation4 + $0x410] sm:$0xf] %v1052_v32  ;;  %v909_v39 = vld [vmem:[#allocation2 + $0xa8] sm:$0xf] }
  0xdf   : > { %v1454_v35 = vshrl.u32 %v1129_v54, 16  ;;  %v1457_v38 = vshll.u32 %v1129_v54, 16  ;;  %v282_v41 = vsel %vm12932_vm3, 0, %v281_v8  ;;  %v1889_v42 = vld [vmem:[#allocation2 + $0xa0] sm:$0xf]  ;;  %v910_v26 = vsel %vm13032_vm10, %v722_v17, %v909_v39  ;;  %v12383_v13 = vld [vmem:[%s15757_s1 + $0x1d8] sm:$0xff]  }
  0xe0   : > { %v1053_v43 = vld [vmem:[#allocation2 + $0xa0] sm:$0xf]  ;;  %283 = vst [vmem:[#allocation2 + $0xb4] sm:$0x1] %v282_v41  ;;  %1921 = vst [vmem:[#allocation4 + $0x3f4] sm:$0xf] %v1889_v42  ;;  %v731_v56 = vsel %vm13039_vm11, %v723_v21, %v730_v18  ;;  %11481 = vmatprep.subr.bf16.mxu1 %v12383_v13 }
  0xe1   : > { %v1130_v34 = vld [vmem:[#allocation2 + $0xa0] sm:$0xf]  ;;  %1085 = vst [vmem:[#allocation4 + $0x438] sm:$0xf] %v1053_v43  ;;  %v1456_v36 = vrot.slane %v1454_v35, 4  ;;  %v1459_v44 = vrot.slane %v1457_v38, 5 }
  0xe2   : > { %v1463_v45 = vshll.u32 %v1130_v34, 16  ;;  %v1467_v47 = vshrl.u32 %v1130_v34, 16  ;;  %911 = vst [vmem:[#allocation2 + $0xa8] sm:$0xf] %v910_v26  ;;  %v1628_v48 = vld [vmem:[#allocation2 + $0x9c] sm:$0xe] }
  0xe3   : > { %v732_v51 = vrot.slane %v727_v29, 4  ;;  %v1629_v30 = vld [vmem:[#allocation2 + $0xa0] sm:$0xf]  ;;  %v10528_v33 = vrot.slane %v1628_v48, 9  ;;  %v489_v40 = vld [vmem:[%s12974_s9 + $0x70] sm:$0xf]  ;;  %v1460_v4 = vor.u32 %v1459_v44, %v1456_v36 }
  0xe4   : > { %v1131_v52 = vld [vmem:[#allocation2 + $0xa4] sm:$0x1]  ;;  %v1465_v57 = vrot.slane %v1463_v45, 5  ;;  %v1469_v46 = vrot.slane %v1467_v47, 4  ;;  %v1781_v37 = vrot.slane %v1629_v30, 5  ;;  %v734_v1 = vshrl.u32 %v489_v40, 16 }
  0xe5   : > { %v1630_v53 = vld [vmem:[#allocation2 + $0xa4] sm:$0x1]  ;;  %v1473_v55 = vshll.u32 %v1131_v52, 16  ;;  %v490_v62 = vld [vmem:[%s12974_s9 + $0x74] sm:$0xf]  ;;  %v1461_v0 = vrot.slane %v1460_v4, 4 }
  0xe6   : > { %v1784_v61 = vrot.slane %v1630_v53, 5  ;;  %v12333_v63 = vld [vmem:[#allocation4 + $0x3c4] ss:$40 sps:$4 sm:$0xff]   ;;  %v1470_v58 = vor.u32 %v1469_v46, %v1465_v57  ;;  %912 = vst [vmem:[#allocation2 + $0xac] sm:$0xf] %v731_v56  ;;  %v1782_v5 = vsel %vm13195_vm14, %v10528_v33, %v1781_v37  ;;  %v1783_v6 = vrot.slane %v1781_v37, 4 }
  0xe7   : > { %v12335_v2 = vld [vmem:[#allocation4 + $0x3c0] ss:$40 sps:$4 sm:$0xff]   ;;  %v1475_v3 = vrot.slane %v1473_v55, 5  ;;  %v737_v7 = vshll.u32 %v489_v40, 16  ;;  %4640 = vmatprep.mubr.bf16.mxu0 %v12333_v63  ;;  %v1466_v8 = vsel %vm13004_vm8, %v1461_v0, %v1465_v57  ;;  %1858 = vst [vmem:[#allocation4 + $0x418] sm:$0xf] %v1782_v5 }
  0xe8   : > { %v1471_v12 = vrot.slane %v1470_v58, 4  ;;  %v913_v10 = vld [vmem:[#allocation2 + $0xb0] sm:$0x1]  ;;  %v736_v11 = vrot.slane %v734_v1, 7  ;;  %v742_v9 = vshrl.u32 %v490_v62, 16  ;;  %4641 = vmatmul.mubr.bf16.gmra.mxu0 %v12335_v2  ;;  %v1785_v17 = vsel %vm13195_vm14, %v1783_v6, %v1784_v61 }
  0xe9   : > { %v12336_v49 = vld [vmem:[#allocation4 + $0x3cc] ss:$40 sps:$4 sm:$0xff]   ;;  %v12338_v16 = vld [vmem:[#allocation4 + $0x3c8] ss:$40 sps:$4 sm:$0xff]   ;;  %1583 = vst [vmem:[#allocation4 + $0x414] sm:$0xf] %v1466_v8  ;;  %v914_v21 = vsel %vm12932_vm3, %v732_v51, %v913_v10 }
  0xea   : > { %v745_v15 = vshll.u32 %v490_v62, 16  ;;  %v1476_v23 = vsel %vm13004_vm8, %v1471_v12, %v1475_v3  ;;  %1859 = vst [vmem:[#allocation4 + $0x440] sm:$0xf] %v1785_v17  ;;  %v1890_v24 = vld [vmem:[#allocation2 + $0xa8] sm:$0xf]  ;;  %v739_v28 = vor.u32 %v737_v7, %v736_v11  ;;  %4801 = vmatprep.mubr.bf16.mxu1 %v12336_v49  ;;  %v740_v32 = vrot.slane %v736_v11, 4 }
  0xeb   : > { %915 = vst [vmem:[#allocation2 + $0xb0] sm:$0x1] %v914_v21  ;;  %v1054_v25 = vld [vmem:[#allocation2 + $0xa8] sm:$0xf]  ;;  %1584 = vst [vmem:[#allocation4 + $0x43c] sm:$0xf] %v1476_v23  ;;  %4802 = vmatmul.mubr.bf16.gmra.mxu1 %v12338_v16 }
  0xec   : > { %v1132_v27 = vld [vmem:[#allocation2 + $0xa8] sm:$0xf]  ;;  %1922 = vst [vmem:[#allocation4 + $0x41c] sm:$0xf] %v1890_v24  ;;  %1086 = vst [vmem:[#allocation4 + $0x460] sm:$0xf] %v1054_v25 }
  0xed   : > { %v1478_v50 = vshrl.u32 %v1132_v27, 16  ;;  %v1481_v31 = vshll.u32 %v1132_v27, 16  ;;  %v13455_v54 = vrot.slane %v742_v9, 7  ;;  %v916_v35 = vld [vmem:[#allocation2 + $0xb4] sm:$0xf]  ;;  %v12385_v7 = vld [vmem:[%s15757_s1 + $0x198] sm:$0xff]  }
  0xee   : > { %v917_v38 = vsel %vm13032_vm10, %v739_v28, %v916_v35  ;;  %v1631_v29 = vld [vmem:[#allocation2 + $0xa8] sm:$0xe]  ;;  %v337_v39 = vld [vmem:[#allocation2 + $0xbc] sm:$0x1]  ;;  %v284_v41 = vld [vmem:[#allocation2 + $0xc0] sm:$0x1]  ;;  %11482 = vmatpush3.bf16.msra.mxu1 %v12385_v7 }
  0xef   : > { %v1891_v42 = vld [vmem:[#allocation2 + $0xac] sm:$0xf]  ;;  %v747_v26 = vor.u32 %v745_v15, %v13455_v54  ;;  %918 = vst [vmem:[#allocation2 + $0xb4] sm:$0xf] %v917_v38  ;;  %v1480_v36 = vrot.slane %v1478_v50, 4  ;;  %v1483_v44 = vrot.slane %v1481_v31, 5 }
  0xf0   : > { %v1055_v43 = vld [vmem:[#allocation2 + $0xac] sm:$0xf]  ;;  %1923 = vst [vmem:[#allocation4 + $0x444] sm:$0xf] %v1891_v42  ;;  %v749_v51 = vrot.slane %v13455_v54, 4  ;;  %v10529_v30 = vrot.slane %v1631_v29, 9 }
  0xf1   : > { %v1133_v34 = vld [vmem:[#allocation2 + $0xac] sm:$0xf]  ;;  %1087 = vst [vmem:[#allocation4 + $0x488] sm:$0xf] %v1055_v43  ;;  %v748_v18 = vsel %vm13039_vm11, %v740_v32, %v747_v26  ;;  %v491_v40 = vld [vmem:[%s12974_s9 + $0x78] sm:$0xf]  ;;  %v1484_v52 = vor.u32 %v1483_v44, %v1480_v36 }
  0xf2   : > { %v1487_v45 = vshll.u32 %v1133_v34, 16  ;;  %v1491_v47 = vshrl.u32 %v1133_v34, 16  ;;  %v1632_v48 = vld [vmem:[#allocation2 + $0xac] sm:$0xf]  ;;  %919 = vst [vmem:[#allocation2 + $0xb8] sm:$0xf] %v748_v18 }
  0xf3   : > { %v1788_v33 = vrot.slane %v1632_v48, 5  ;;  %v338_v46 = vsel %vm12943_vm4, 0, %v337_v39  ;;  %v492_v53 = vld [vmem:[%s12974_s9 + $0x7c] sm:$0xf]  ;;  %v1134_v55 = vld [vmem:[#allocation2 + $0xb0] sm:$0x1] }
  0xf4   : > { %v1489_v4 = vrot.slane %v1487_v45, 5  ;;  %v1493_v57 = vrot.slane %v1491_v47, 4  ;;  %v1633_v56 = vld [vmem:[#allocation2 + $0xb0] sm:$0x1]  ;;  %339 = vst [vmem:[#allocation2 + $0xbc] sm:$0x1] %v338_v46 }
  0xf5   : > { %v1789_v37 = vsel %vm13195_vm14, %v10529_v30, %v1788_v33  ;;  %v1790_v61 = vrot.slane %v1788_v33, 4  ;;  %v285_v62 = vsel %vm12932_vm3, 0, %v284_v41  ;;  %v12339_v63 = vld [vmem:[#allocation4 + $0x414] ss:$40 sps:$4 sm:$0xff]   ;;  %v12341_v0 = vld [vmem:[#allocation4 + $0x410] ss:$40 sps:$4 sm:$0xff]  }
  0xf6   : > { %v1485_v58 = vrot.slane %v1484_v52, 4  ;;  %v1494_v1 = vor.u32 %v1493_v57, %v1489_v4  ;;  %1860 = vst [vmem:[#allocation4 + $0x468] sm:$0xf] %v1789_v37  ;;  %286 = vst [vmem:[#allocation2 + $0xc0] sm:$0x1] %v285_v62  ;;  %v1497_v2 = vshll.u32 %v1134_v55, 16  ;;  %4648 = vmatprep.mubr.bf16.mxu0 %v12339_v63 }
  0xf7   : > { %v1791_v3 = vrot.slane %v1633_v56, 5  ;;  %v751_v5 = vshrl.u32 %v491_v40, 16  ;;  %v754_v6 = vshll.u32 %v491_v40, 16  ;;  %v1892_v10 = vld [vmem:[#allocation2 + $0xb4] sm:$0xf]  ;;  %v759_v9 = vshrl.u32 %v492_v53, 16  ;;  %4649 = vmatmul.mubr.bf16.gmra.mxu0 %v12341_v0 }
  0xf8   : > { %v1490_v8 = vsel %vm13004_vm8, %v1485_v58, %v1489_v4  ;;  %v1495_v12 = vrot.slane %v1494_v1, 4  ;;  %v1056_v11 = vld [vmem:[#allocation2 + $0xb4] sm:$0xf]  ;;  %v12344_v49 = vld [vmem:[#allocation4 + $0x418] ss:$40 sps:$4 sm:$0xff]   ;;  %v1499_v16 = vrot.slane %v1497_v2, 5 }
  0xf9   : > { %v12342_v13 = vld [vmem:[#allocation4 + $0x41c] ss:$40 sps:$4 sm:$0xff]   ;;  %1585 = vst [vmem:[#allocation4 + $0x464] sm:$0xf] %v1490_v8  ;;  %v1792_v17 = vsel %vm13195_vm14, %v1790_v61, %v1791_v3  ;;  %1924 = vst [vmem:[#allocation4 + $0x46c] sm:$0xf] %v1892_v10 }
  0xfa   : > { %1088 = vst [vmem:[#allocation4 + $0x4b0] sm:$0xf] %v1056_v11  ;;  %1861 = vst [vmem:[#allocation4 + $0x490] sm:$0xf] %v1792_v17  ;;  %v1135_v21 = vld [vmem:[#allocation2 + $0xb4] sm:$0xf]  ;;  %4809 = vmatprep.mubr.bf16.mxu1 %v12342_v13  ;;  %v1500_v25 = vsel %vm13004_vm8, %v1495_v12, %v1499_v16 }
  0xfb   : > { %v753_v15 = vrot.slane %v751_v5, 7  ;;  %v13478_v23 = vrot.slane %v759_v9, 7  ;;  %v762_v24 = vshll.u32 %v492_v53, 16  ;;  %v1893_v27 = vld [vmem:[#allocation2 + $0xb8] sm:$0xf]  ;;  %4810 = vmatmul.mubr.bf16.gmra.mxu1 %v12344_v49  ;;  %v1502_v32 = vshrl.u32 %v1135_v21, 16 }
  0xfc   : > { %v1057_v28 = vld [vmem:[#allocation2 + $0xb8] sm:$0xf]  ;;  %1586 = vst [vmem:[#allocation4 + $0x48c] sm:$0xf] %v1500_v25  ;;  %1925 = vst [vmem:[#allocation4 + $0x494] sm:$0xf] %v1893_v27 }
  0xfd   : > { %v1136_v50 = vld [vmem:[#allocation2 + $0xb8] sm:$0xf]  ;;  %v920_v31 = vld [vmem:[#allocation2 + $0xbc] sm:$0x1]  ;;  %1089 = vst [vmem:[#allocation4 + $0x4d8] sm:$0xf] %v1057_v28  ;;  %v756_v39 = vor.u32 %v754_v6, %v753_v15  ;;  %v764_v42 = vor.u32 %v762_v24, %v13478_v23 }
  0xfe   : > { %v1505_v54 = vshll.u32 %v1135_v21, 16  ;;  %v1511_v35 = vshll.u32 %v1136_v50, 16  ;;  %v1515_v38 = vshrl.u32 %v1136_v50, 16  ;;  %v921_v29 = vsel %vm12932_vm3, %v749_v51, %v920_v31  ;;  %v923_v43 = vld [vmem:[#allocation2 + $0xc0] sm:$0xf]  ;;  %v12387_v26 = vld [vmem:[%s15757_s1 + $0x1d0] sm:$0xff]  }
  0xff   : > { %v757_v41 = vrot.slane %v753_v15, 4  ;;  %v1634_v34 = vld [vmem:[#allocation2 + $0xb4] sm:$0xe]  ;;  %922 = vst [vmem:[#allocation2 + $0xbc] sm:$0x1] %v921_v29  ;;  %v1504_v36 = vrot.slane %v1502_v32, 4  ;;  %v924_v51 = vsel %vm13032_vm10, %v756_v39, %v923_v43  ;;  %11483 = vmatprep.subr.bf16.mxu1 %v12387_v26 }
 0x100   : > { %v1507_v44 = vrot.slane %v1505_v54, 5  ;;  %v1513_v45 = vrot.slane %v1511_v35, 5  ;;  %v1517_v47 = vrot.slane %v1515_v38, 4  ;;  %v1635_v48 = vld [vmem:[#allocation2 + $0xb8] sm:$0xf]  ;;  %v10530_v30 = vrot.slane %v1634_v34, 9 }
 0x101   : > { %v765_v18 = vsel %vm13039_vm11, %v757_v41, %v764_v42  ;;  %v1589_v33 = vld [vmem:[#allocation2] sm:$0xe]  ;;  %v1590_v40 = vld [vmem:[#allocation2 + $0x4] sm:$0xf]  ;;  %925 = vst [vmem:[#allocation2 + $0xc0] sm:$0xf] %v924_v51 }
 0x102   : > { %v1508_v52 = vor.u32 %v1507_v44, %v1504_v36  ;;  %v1518_v4 = vor.u32 %v1517_v47, %v1513_v45  ;;  %926 = vst [vmem:[#allocation2 + $0xc4] sm:$0xf] %v765_v18  ;;  %v1795_v57 = vrot.slane %v1635_v48, 5  ;;  %v1591_v46 = vld [vmem:[#allocation2 + $0x8] sm:$0x1]  ;;  %v10515_v53 = vrot.slane %v1589_v33, 9 }
 0x103   : > { %v1690_v55 = vrot.slane %v1590_v40, 5  ;;  %v1693_v56 = vrot.slane %v1591_v46, 5  ;;  %v1864_v37 = vld [vmem:[#allocation2 + $0xc] sm:$0xf]  ;;  %v1865_v61 = vld [vmem:[#allocation2 + $0x10] sm:$0xf] }
 0x104   : > { %v1509_v62 = vrot.slane %v1508_v52, 4  ;;  %v1519_v63 = vrot.slane %v1518_v4, 4  ;;  %v1796_v0 = vsel %vm13195_vm14, %v10530_v30, %v1795_v57  ;;  %1896 = vst [vmem:[#allocation4 + $0xc] sm:$0xf] %v1864_v37  ;;  %1897 = vst [vmem:[#allocation4 + $0x34] sm:$0xf] %v1865_v61 }
 0x105   : > { %v6566_v58 = vld [vmem:[#allocation3] sm:$0xe]  ;;  %v12345_v1 = vld [vmem:[#allocation4 + $0x464] ss:$40 sps:$4 sm:$0xff]   ;;  %1862 = vst [vmem:[#allocation4 + $0x4b8] sm:$0xf] %v1796_v0  ;;  %v1691_v3 = vsel %vm13195_vm14, %v10515_v53, %v1690_v55 }
 0x106   : > { %v12347_v2 = vld [vmem:[#allocation4 + $0x460] ss:$40 sps:$4 sm:$0xff]   ;;  %v1692_v5 = vrot.slane %v1690_v55, 4  ;;  %v12348_v6 = vld [vmem:[#allocation4 + $0x46c] ss:$40 sps:$4 sm:$0xff]   ;;  %v1514_v8 = vsel %vm13004_vm8, %v1509_v62, %v1513_v45  ;;  %v1797_v12 = vrot.slane %v1795_v57, 4  ;;  %4656 = vmatprep.mubr.bf16.mxu0 %v12345_v1 }
 0x107   : > { %v12350_v7 = vld [vmem:[#allocation4 + $0x468] ss:$40 sps:$4 sm:$0xff]   ;;  %1832 = vst [vmem:[#allocation4 + $0x8] sm:$0xf] %v1691_v3  ;;  %v1137_v10 = vld [vmem:[#allocation2 + $0xbc] sm:$0x1]  ;;  %4657 = vmatmul.mubr.bf16.gmra.mxu0 %v12347_v2  ;;  %4817 = vmatprep.mubr.bf16.mxu1 %v12348_v6  ;;  %v11153_v6 = vpop.f32.mrf.mxu0 }
 0x108   : > { %1587 = vst [vmem:[#allocation4 + $0x4b4] sm:$0xf] %v1514_v8  ;;  %v1636_v11 = vld [vmem:[#allocation2 + $0xbc] sm:$0x1]  ;;  %v1694_v9 = vsel %vm13195_vm14, %v1692_v5, %v1693_v56  ;;  %v1521_v49 = vshll.u32 %v1137_v10, 16  ;;  %v12391_v15 = vld [vmem:[%s15757_s1 + $0x190] sm:$0xff]   ;;  %4818 = vmatmul.mubr.bf16.gmra.mxu1 %v12350_v7 }
 0x109   : > { %v6567_v13 = vld [vmem:[#allocation3 + $0x4] sm:$0xf]  ;;  %v1798_v16 = vrot.slane %v1636_v11, 5  ;;  %1833 = vst [vmem:[#allocation4 + $0x30] sm:$0xf] %v1694_v9  ;;  %v10812_v27 = vrot.slane %v6566_v58, 9  ;;  %11484 = vmatpush3.bf16.msra.mxu1 %v12391_v15  ;;  %v11154_v10 = vpop.f32.mrf.mxu0 }
 0x10a   : > { %v6568_v17 = vld [vmem:[#allocation3 + $0x8] sm:$0x1]  ;;  %v6664_v21 = vrot.slane %v6567_v13, 5  ;;  %v1895_v25 = vld [vmem:[#allocation2 + $0xc4] sm:$0xf]  ;;  %v1523_v50 = vrot.slane %v1521_v49, 5  ;;  %v13537_v11 = vadd.f32 %v11154_v10, %v11153_v6 }
 0x10b   : > { %v1894_v24 = vld [vmem:[#allocation2 + $0xc0] sm:$0xf]  ;;  %v6667_v28 = vrot.slane %v6568_v17, 5  ;;  %v1799_v31 = vsel %vm13195_vm14, %v1797_v12, %v1798_v16  ;;  %1927 = vst [vmem:[#allocation4 + $0x4e4] sm:$0xf] %v1895_v25  ;;  %v12394_v26 = vld [vmem:[%s15757_s1 + $0x1c8] sm:$0xff]  }
 0x10c   : > { %1926 = vst [vmem:[#allocation4 + $0x4bc] sm:$0xf] %v1894_v24  ;;  %v6666_v32 = vrot.slane %v6664_v21, 4  ;;  %1863 = vst [vmem:[#allocation4 + $0x4e0] sm:$0xf] %v1799_v31  ;;  %v1524_v54 = vsel %vm13004_vm8, %v1519_v63, %v1523_v50  ;;  %v6665_v35 = vsel %vm13195_vm14, %v10812_v27, %v6664_v21  ;;  %11485 = vmatprep.subr.bf16.mxu1 %v12394_v26  ;;  %v12396_v61 = vld [vmem:[%s15757_s1 + $0x188] sm:$0xff]  }
 0x10d   : > { %1588 = vst [vmem:[#allocation4 + $0x4dc] sm:$0xf] %v1524_v54  ;;  %v12357_v29 = vld [vmem:[#allocation4 + $0xc] ss:$40 sps:$4 sm:$0xff]   ;;  %6806 = vst [vmem:[#allocation4 + $0x8] sm:$0xf] %v6665_v35  ;;  %11486 = vmatpush3.bf16.msra.mxu1 %v12396_v61 }
 0x10e   : > { %v6668_v38 = vsel %vm13195_vm14, %v6666_v32, %v6667_v28  ;;  %v1592_v39 = vld [vmem:[#allocation2 + $0xc] sm:$0xe]  ;;  %v1593_v41 = vld [vmem:[#allocation2 + $0x10] sm:$0xf]  ;;  %v1594_v42 = vld [vmem:[#allocation2 + $0x14] sm:$0x1] }
 0x10f   : > { %6807 = vst [vmem:[#allocation4 + $0x30] sm:$0xf] %v6668_v38  ;;  %v10516_v43 = vrot.slane %v1592_v39, 9  ;;  %v1697_v34 = vrot.slane %v1593_v41, 5  ;;  %v1700_v45 = vrot.slane %v1594_v42, 5  ;;  %v12360_v62 = vld [vmem:[%s15757_s1 + $0x138] sm:$0xff]   ;;  %v13558_v41 = vpop.f32.mrf.mxu0 }
 0x110   : > { %v1866_v18 = vld [vmem:[#allocation2 + $0x18] sm:$0xf]  ;;  %v1867_v51 = vld [vmem:[#allocation2 + $0x1c] sm:$0xf]  ;;  %v12353_v33 = vld [vmem:[#allocation4 + $0x4b0] ss:$40 sps:$4 sm:$0xff]  }
 0x111   : > { %v1698_v47 = vsel %vm13195_vm14, %v10516_v43, %v1697_v34  ;;  %v1699_v48 = vrot.slane %v1697_v34, 4  ;;  %1898 = vst [vmem:[#allocation4 + $0x5c] sm:$0xf] %v1866_v18  ;;  %1899 = vst [vmem:[#allocation4 + $0x84] sm:$0xf] %v1867_v51  ;;  %v12362_v1 = vld [vmem:[%s15757_s1 + $0x170] sm:$0xff]  }
 0x112   : > { %1834 = vst [vmem:[#allocation4 + $0x58] sm:$0xf] %v1698_v47  ;;  %v1595_v57 = vld [vmem:[#allocation2 + $0x18] sm:$0xe]  ;;  %v1596_v46 = vld [vmem:[#allocation2 + $0x1c] sm:$0xf]  ;;  %v13568_v47 = vpop.f32.mrf.mxu0 }
 0x113   : > { %v12354_v36 = vld [vmem:[#allocation4 + $0x4bc] ss:$40 sps:$4 sm:$0xff]   ;;  %v12356_v44 = vld [vmem:[#allocation4 + $0x4b8] ss:$40 sps:$4 sm:$0xff]   ;;  %v1701_v40 = vsel %vm13195_vm14, %v1699_v48, %v1700_v45  ;;  %v1597_v55 = vld [vmem:[#allocation2 + $0x20] sm:$0x1] }
 0x114   : > { %v12351_v30 = vld [vmem:[#allocation4 + $0x4b4] ss:$40 sps:$4 sm:$0xff]   ;;  %4825 = vmatprep.mubr.bf16.mxu1 %v12354_v36  ;;  %v3034_v52 = vld [vmem:[#allocation4 + $0x8] sm:$0xff]  ;;  %1835 = vst [vmem:[#allocation4 + $0x80] sm:$0xf] %v1701_v40  ;;  %v10517_v56 = vrot.slane %v1595_v57, 9 }
 0x115   : > { %4826 = vmatmul.mubr.bf16.gmra.mxu1 %v12356_v44  ;;  %4664 = vmatprep.mubr.bf16.mxu0 %v12351_v30  ;;  %v1704_v37 = vrot.slane %v1596_v46, 5  ;;  %v1707_v63 = vrot.slane %v1597_v55, 5  ;;  %v1868_v0 = vld [vmem:[#allocation2 + $0x24] sm:$0xf]  ;;  %v1869_v58 = vld [vmem:[#allocation2 + $0x28] sm:$0xf]  ;;  %v11159_v55 = vpop.f32.mrf.mxu0 }
 0x116   : > { %v3039_v4 = vld [vmem:[#allocation4 + $0x30] sm:$0xff]  ;;  %4665 = vmatmul.mubr.bf16.gmra.mxu0 %v12353_v33  ;;  %1900 = vst [vmem:[#allocation4 + $0xac] sm:$0xf] %v1868_v0  ;;  %1901 = vst [vmem:[#allocation4 + $0xd4] sm:$0xf] %v1869_v58  ;;  %v12364_v7 = vld [vmem:[%s15757_s1 + $0x130] sm:$0xff]  }
 0x117   : > { %4705 = vmatprep.mubr.bf16.mxu0 %v12357_v29  ;;  %v10566_v53 = vcombine.low %v3034_v52, %v3039_v4  ;;  %v1705_v3 = vsel %vm13195_vm14, %v10517_v56, %v1704_v37  ;;  %v1706_v5 = vrot.slane %v1704_v37, 4  ;;  %v12368_v8 = vld [vmem:[%s15757_s1 + $0x168] sm:$0xff]   ;;  %v12373_v49 = vld [vmem:[%s15757_s1 + $0x160] sm:$0xff]   ;;  %v1870_v25 = vld [vmem:[#allocation2 + $0x30] sm:$0xf] }
 0x118   : > { %v12366_v2 = vld [vmem:[#allocation4 + $0x5c] ss:$40 sps:$4 sm:$0xff]   ;;  %1836 = vst [vmem:[#allocation4 + $0xa8] sm:$0xf] %v1705_v3  ;;  %v1598_v16 = vld [vmem:[#allocation2 + $0x24] sm:$0xe] }
 0x119   : > { %v1708_v12 = vsel %vm13195_vm14, %v1706_v5, %v1707_v63  ;;  %v12371_v13 = vld [vmem:[%s15757_s1 + $0x128] sm:$0xff]   ;;  %v10518_v15 = vrot.slane %v1598_v16, 9  ;;  %v1871_v28 = vld [vmem:[#allocation2 + $0x34] sm:$0xf]  ;;  %1902 = vst [vmem:[#allocation4 + $0xfc] sm:$0xf] %v1870_v25  ;;  %v11160_v5 = vpop.f32.mrf.mxu0 }
 0x11a   : > { %1837 = vst [vmem:[#allocation4 + $0xd0] sm:$0xf] %v1708_v12  ;;  %v1599_v17 = vld [vmem:[#allocation2 + $0x28] sm:$0xf]  ;;  %v1600_v21 = vld [vmem:[#allocation2 + $0x2c] sm:$0x1]  ;;  %v13591_v10 = vadd.f32 %v11160_v5, %v11159_v55 }
 0x11b   : > { %v12370_v9 = vld [vmem:[#allocation4 + $0x58] ss:$40 sps:$4 sm:$0xff]   ;;  %v1711_v24 = vrot.slane %v1599_v17, 5  ;;  %v1714_v27 = vrot.slane %v1600_v21, 5  ;;  %v12375_v50 = vld [vmem:[%s15757_s1 + $0x120] sm:$0xff]   ;;  %v12379_v38 = vld [vmem:[%s15757_s1 + $0x158] sm:$0xff]   ;;  %v13593_v21 = vpop.f32.mrf.mxu0 }
 0x11c   : > { %1903 = vst [vmem:[#allocation4 + $0x124] sm:$0xf] %v1871_v28  ;;  %v12398_v54 = vld [vmem:[%s15757_s1 + $0x1c0] sm:$0xff]   ;;  %v12382_v42 = vld [vmem:[%s15757_s1 + $0x118] sm:$0xff]   ;;  %v12384_v43 = vld [vmem:[%s15757_s1 + $0x150] sm:$0xff]  }
 0x11d   : > { %v1712_v31 = vsel %vm13195_vm14, %v10518_v15, %v1711_v24  ;;  %v1713_v32 = vrot.slane %v1711_v24, 4  ;;  %v12377_v35 = vld [vmem:[#allocation4 + $0xac] ss:$40 sps:$4 sm:$0xff]   ;;  %11487 = vmatprep.subr.bf16.mxu1 %v12398_v54  ;;  %v930_v34 = vld [vmem:[%s12974_s9] sm:$0xf]  ;;  %v12386_v48 = vld [vmem:[%s15757_s1 + $0x110] sm:$0xff]  }
 0x11e   : > { %4706 = vmatmul.mubr.bf16.vlgmr.msra.gmra.mxu0 %v10566_v53  ;;  %1838 = vst [vmem:[#allocation4 + $0xf8] sm:$0xf] %v1712_v31  ;;  %v931_v26 = vld [vmem:[%s12974_s9 + $0x4] sm:$0xf]  ;;  %962 = vst [vmem:[#allocation4 + $0x10] sm:$0xf] %v930_v34 }
 0x11f   : > { %11362 = vmatpush3.bf16.msra.mxu0 %v12360_v62  ;;  %4713 = vmatprep.mubr.bf16.mxu0 %v12366_v2  ;;  %v1715_v29 = vsel %vm13195_vm14, %v1713_v32, %v1714_v27  ;;  %963 = vst [vmem:[#allocation4 + $0x38] sm:$0xf] %v931_v26  ;;  %v1928_v36 = vld [vmem:[#allocation2 + $0xc] sm:$0xe]  ;;  %v1929_v44 = vld [vmem:[#allocation2 + $0x10] sm:$0xf] }
 0x120   : > { %11363 = vmatprep.subr.bf16.mxu0 %v12362_v1  ;;  %1839 = vst [vmem:[#allocation4 + $0x120] sm:$0xf] %v1715_v29  ;;  %v1930_v45 = vld [vmem:[#allocation2 + $0x14] sm:$0x1]  ;;  %994 = vst [vmem:[#allocation4 + $0x24] sm:$0xf] %v930_v34  ;;  %v13598_v29 = vpop.f32.mrf.mxu0 }
 0x121   : > { %v12381_v39 = vld [vmem:[#allocation4 + $0xa8] ss:$40 sps:$4 sm:$0xff]   ;;  %995 = vst [vmem:[#allocation4 + $0x4c] sm:$0xf] %v931_v26  ;;  %v10531_v18 = vrot.slane %v1928_v36, 9  ;;  %v2026_v51 = vrot.slane %v1929_v44, 5 }
 0x122   : > { %v2029_v30 = vrot.slane %v1930_v45, 5  ;;  %v12401_v33 = vld [vmem:[%s15757_s1 + $0x180] sm:$0xff]   ;;  %v12390_v52 = vld [vmem:[%s15757_s1 + $0x148] sm:$0xff]   ;;  %v2201_v53 = vld [vmem:[#allocation2 + $0x18] sm:$0xf] }
 0x123   : > { %11364 = vmatpush3.bf16.msra.mxu0 %v12364_v7  ;;  %v12388_v40 = vld [vmem:[#allocation4 + $0xfc] ss:$40 sps:$4 sm:$0xff]   ;;  %v2027_v4 = vsel %vm13195_vm14, %v10531_v18, %v2026_v51  ;;  %v2028_v57 = vrot.slane %v2026_v51, 4  ;;  %11488 = vmatpush3.bf16.msra.mxu1 %v12401_v33  ;;  %v2202_v61 = vld [vmem:[#allocation2 + $0x1c] sm:$0xf]  ;;  %v12395_v6 = vld [vmem:[%s15757_s1 + $0x140] sm:$0xff]  }
 0x124   : > { %11365 = vmatprep.subr.bf16.mxu0 %v12368_v8  ;;  %2168 = vst [vmem:[#allocation4 + $0x14] sm:$0xf] %v2027_v4  ;;  %v12393_v56 = vld [vmem:[%s15757_s1 + $0x108] sm:$0xff]   ;;  %2233 = vst [vmem:[#allocation4 + $0x18] sm:$0xf] %v2201_v53  ;;  %v12397_v15 = vld [vmem:[%s15757_s1 + $0x100] sm:$0xff]   ;;  %v11165_v53 = vpop.f32.mrf.mxu0 }
 0x125   : > { %v2030_v37 = vsel %vm13195_vm14, %v2028_v57, %v2029_v30  ;;  %v2265_v62 = vld [vmem:[#allocation2 + $0x18] sm:$0xf]  ;;  %v2266_v63 = vld [vmem:[#allocation2 + $0x1c] sm:$0xf]  ;;  %2234 = vst [vmem:[#allocation4 + $0x40] sm:$0xf] %v2202_v61 }
 0x126   : > { %4714 = vmatmul.mubr.bf16.gmra.mxu0 %v12370_v9  ;;  %2169 = vst [vmem:[#allocation4 + $0x3c] sm:$0xf] %v2030_v37  ;;  %v2267_v0 = vld [vmem:[#allocation2 + $0x20] sm:$0x1]  ;;  %v2314_v58 = vshrl.u32 %v2265_v62, 16  ;;  %v2317_v1 = vshll.u32 %v2265_v62, 16 }
 0x127   : > { %11366 = vmatpush3.bf16.msra.mxu0 %v12371_v13  ;;  %4721 = vmatprep.mubr.bf16.mxu0 %v12377_v35  ;;  %v12392_v46 = vld [vmem:[#allocation4 + $0xf8] ss:$40 sps:$4 sm:$0xff]   ;;  %v2323_v2 = vshll.u32 %v2266_v63, 16  ;;  %v2327_v3 = vshrl.u32 %v2266_v63, 16  ;;  %v2333_v7 = vshll.u32 %v2267_v0, 16 }
 0x128   : > { %11367 = vmatprep.subr.bf16.mxu0 %v12373_v49  ;;  %v932_v8 = vld [vmem:[%s12974_s9 + $0x8] sm:$0xf]  ;;  %v933_v12 = vld [vmem:[%s12974_s9 + $0xc] sm:$0xf]  ;;  %v2316_v9 = vrot.slane %v2314_v58, 4  ;;  %v2319_v13 = vrot.slane %v2317_v1, 5 }
 0x129   : > { %v2325_v49 = vrot.slane %v2323_v2, 5  ;;  %v2329_v16 = vrot.slane %v2327_v3, 4  ;;  %964 = vst [vmem:[#allocation4 + $0x60] sm:$0xf] %v932_v8  ;;  %965 = vst [vmem:[#allocation4 + $0x88] sm:$0xf] %v933_v12  ;;  %v11166_v2 = vpop.f32.mrf.mxu0 }
 0x12a   : > { %v1931_v17 = vld [vmem:[#allocation2 + $0x18] sm:$0xe]  ;;  %996 = vst [vmem:[#allocation4 + $0x74] sm:$0xf] %v932_v8  ;;  %997 = vst [vmem:[#allocation4 + $0x9c] sm:$0xf] %v933_v12 }
 0x12b   : > { %11368 = vmatpush3.bf16.msra.mxu0 %v12375_v50  ;;  %v2335_v24 = vrot.slane %v2333_v7, 5  ;;  %v1932_v25 = vld [vmem:[#allocation2 + $0x1c] sm:$0xf]  ;;  %v1933_v27 = vld [vmem:[#allocation2 + $0x20] sm:$0x1]  ;;  %v10532_v28 = vrot.slane %v1931_v17, 9  ;;  %v2320_v50 = vor.u32 %v2319_v13, %v2316_v9  ;;  %v2330_v31 = vor.u32 %v2329_v16, %v2325_v49 }
 0x12c   : > { %11369 = vmatprep.subr.bf16.mxu0 %v12379_v38  ;;  %v2033_v32 = vrot.slane %v1932_v25, 5  ;;  %v2036_v54 = vrot.slane %v1933_v27, 5  ;;  %v2203_v35 = vld [vmem:[#allocation2 + $0x24] sm:$0xf]  ;;  %v2204_v38 = vld [vmem:[#allocation2 + $0x28] sm:$0xf]  ;;  %v13623_v13 = vadd.f32 %v11166_v2, %v11165_v53 }
 0x12d   : > { %2235 = vst [vmem:[#allocation4 + $0x68] sm:$0xf] %v2203_v35  ;;  %2236 = vst [vmem:[#allocation4 + $0x90] sm:$0xf] %v2204_v38  ;;  %v2321_v34 = vrot.slane %v2320_v50, 4  ;;  %v2331_v26 = vrot.slane %v2330_v31, 4 }
 0x12e   : > { %4722 = vmatmul.mubr.bf16.gmra.mxu0 %v12381_v39  ;;  %v2268_v39 = vld [vmem:[#allocation2 + $0x24] sm:$0xf]  ;;  %v2034_v36 = vsel %vm13195_vm14, %v10532_v28, %v2033_v32  ;;  %v2035_v44 = vrot.slane %v2033_v32, 4  ;;  %v2270_v45 = vld [vmem:[#allocation2 + $0x2c] sm:$0x1] }
 0x12f   : > { %11370 = vmatpush3.bf16.msra.mxu0 %v12382_v42  ;;  %4729 = vmatprep.mubr.bf16.mxu0 %v12388_v40  ;;  %v2269_v42 = vld [vmem:[#allocation2 + $0x28] sm:$0xf]  ;;  %2170 = vst [vmem:[#allocation4 + $0x64] sm:$0xf] %v2034_v36  ;;  %v2338_v51 = vshrl.u32 %v2268_v39, 16  ;;  %v2326_v30 = vsel %vm13004_vm8, %v2321_v34, %v2325_v49  ;;  %v2336_v33 = vsel %vm13004_vm8, %v2331_v26, %v2335_v24  ;;  %v2357_v61 = vshll.u32 %v2270_v45, 16  ;;  %v13625_v49 = vpop.f32.mrf.mxu0 }
 0x130   : > { %11371 = vmatprep.subr.bf16.mxu0 %v12384_v43  ;;  %v12402_v43 = vld [vmem:[%s15757_s1 + $0x238] sm:$0xff]   ;;  %v12403_v18 = vld [vmem:[#allocation4 + $0x10] ss:$40 sps:$4 sm:$0xff]   ;;  %v2037_v40 = vsel %vm13195_vm14, %v2035_v44, %v2036_v54  ;;  %v934_v4 = vld [vmem:[%s12974_s9 + $0x10] sm:$0xf]  ;;  %v2351_v37 = vshrl.u32 %v2269_v42, 16 }
 0x131   : > { %v935_v57 = vld [vmem:[%s12974_s9 + $0x14] sm:$0xf]  ;;  %2729 = vst [vmem:[#allocation4 + $0x1c] sm:$0xf] %v2326_v30  ;;  %2730 = vst [vmem:[#allocation4 + $0x44] sm:$0xf] %v2336_v33  ;;  %v13630_v32 = vpop.f32.mrf.mxu0 }
 0x132   : > { %2171 = vst [vmem:[#allocation4 + $0x8c] sm:$0xf] %v2037_v40  ;;  %v2340_v55 = vrot.slane %v2338_v51, 4  ;;  %966 = vst [vmem:[#allocation4 + $0xb0] sm:$0xf] %v934_v4  ;;  %v2353_v5 = vrot.slane %v2351_v37, 4 }
 0x133   : > { %11372 = vmatpush3.bf16.msra.mxu0 %v12386_v48  ;;  %v12399_v48 = vld [vmem:[#allocation4 + $0x14] ss:$40 sps:$4 sm:$0xff]   ;;  %967 = vst [vmem:[#allocation4 + $0xd8] sm:$0xf] %v935_v57  ;;  %998 = vst [vmem:[#allocation4 + $0xc4] sm:$0xf] %v934_v4  ;;  %v11171_v30 = vpop.f32.mrf.mxu0 }
 0x134   : > { %11373 = vmatprep.subr.bf16.mxu0 %v12390_v52  ;;  %v2341_v52 = vshll.u32 %v2268_v39, 16  ;;  %v1934_v62 = vld [vmem:[#allocation2 + $0x24] sm:$0xe]  ;;  %999 = vst [vmem:[#allocation4 + $0xec] sm:$0xf] %v935_v57  ;;  %v13621_v9 = vld [vmem:[%s15757_s1 + $0x228] sm:$0xff]  }
 0x135   : > { %v1935_v0 = vld [vmem:[#allocation2 + $0x28] sm:$0xf]  ;;  %v1936_v58 = vld [vmem:[#allocation2 + $0x2c] sm:$0x1]  ;;  %v10533_v1 = vrot.slane %v1934_v62, 9  ;;  %v2359_v17 = vrot.slane %v2357_v61, 5  ;;  %v11172_v37 = vpop.f32.mrf.mxu0 }
 0x136   : > { %4730 = vmatmul.mubr.bf16.gmra.mxu0 %v12392_v46  ;;  %v13616_v46 = vld [vmem:[%s15757_s1 + $0x230] sm:$0xff]   ;;  %v2343_v63 = vrot.slane %v2341_v52, 5  ;;  %v2043_v8 = vrot.slane %v1936_v58, 5  ;;  %v2273_v31 = vld [vmem:[#allocation2 + $0x38] sm:$0x1]  ;;  %v13640_v44 = vld [vmem:[%s15757_s1 + $0x220] sm:$0xff]  }
 0x137   : > { %11374 = vmatpush3.bf16.msra.mxu0 %v12393_v56  ;;  %4866 = vmatprep.mubr.bf16.mxu0 %v12399_v48  ;;  %v2347_v56 = vshll.u32 %v2269_v42, 16  ;;  %v2205_v12 = vld [vmem:[#allocation2 + $0x30] sm:$0xf]  ;;  %v2206_v25 = vld [vmem:[#allocation2 + $0x34] sm:$0xf]  ;;  %v2381_v57 = vshll.u32 %v2273_v31, 16 }
 0x138   : > { %11375 = vmatprep.subr.bf16.mxu0 %v12395_v6  ;;  %v2040_v6 = vrot.slane %v1935_v0, 5  ;;  %v2344_v7 = vor.u32 %v2343_v63, %v2340_v55  ;;  %2237 = vst [vmem:[#allocation4 + $0xb8] sm:$0xf] %v2205_v12  ;;  %v2271_v27 = vld [vmem:[#allocation2 + $0x30] sm:$0xf] }
 0x139   : > { %v2349_v3 = vrot.slane %v2347_v56, 5  ;;  %2238 = vst [vmem:[#allocation4 + $0xe0] sm:$0xf] %v2206_v25  ;;  %v2272_v50 = vld [vmem:[#allocation2 + $0x34] sm:$0xf]  ;;  %v2362_v38 = vshrl.u32 %v2271_v27, 16 }
 0x13a   : > { %v2042_v24 = vrot.slane %v2040_v6, 4  ;;  %v2345_v28 = vrot.slane %v2344_v7, 4  ;;  %v2365_v39 = vshll.u32 %v2271_v27, 16  ;;  %v936_v42 = vld [vmem:[%s12974_s9 + $0x18] sm:$0xf]  ;;  %v2371_v26 = vshll.u32 %v2272_v50, 16 }
 0x13b   : > { %11376 = vmatpush3.bf16.msra.mxu0 %v12397_v15  ;;  %v2354_v16 = vor.u32 %v2353_v5, %v2349_v3  ;;  %v2041_v15 = vsel %vm13195_vm14, %v10533_v1, %v2040_v6  ;;  %v2375_v36 = vshrl.u32 %v2272_v50, 16  ;;  %968 = vst [vmem:[#allocation4 + $0x100] sm:$0xf] %v936_v42  ;;  %1000 = vst [vmem:[#allocation4 + $0x114] sm:$0xf] %v936_v42  ;;  %v2364_v51 = vrot.slane %v2362_v38, 4  ;;  %v13650_v6 = vpop.f32.mrf.mxu0 }
 0x13c   : > { %12169 = vmatprep.subr.bf16.mxu0 %v12402_v43  ;;  %2172 = vst [vmem:[#allocation4 + $0xb4] sm:$0xf] %v2041_v15  ;;  %v2044_v35 = vsel %vm13195_vm14, %v2042_v24, %v2043_v8  ;;  %v2350_v34 = vsel %vm13004_vm8, %v2345_v28, %v2349_v3  ;;  %v12406_v45 = vld [vmem:[#allocation4 + $0x18] ss:$40 sps:$4 sm:$0xff]   ;;  %v12407_v48 = vld [vmem:[#allocation4 + $0x64] ss:$40 sps:$4 sm:$0xff]   ;;  %v13648_v5 = vadd.f32 %v11172_v37, %v11171_v30 }
 0x13d   : > { %v2355_v54 = vrot.slane %v2354_v16, 4  ;;  %2173 = vst [vmem:[#allocation4 + $0xdc] sm:$0xf] %v2044_v35  ;;  %2731 = vst [vmem:[#allocation4 + $0x6c] sm:$0xf] %v2350_v34  ;;  %v2367_v40 = vrot.slane %v2365_v39, 5  ;;  %v13670_v34 = vpop.f32.mrf.mxu0 }
 0x13e   : > { %4867 = vmatmul.mubr.bf16.vlgmr.msra.gmra.mxu0 %v12403_v18  ;;  %v12409_v33 = vld [vmem:[#allocation4 + $0x60] ss:$40 sps:$4 sm:$0xff]   ;;  %v2373_v52 = vrot.slane %v2371_v26, 5  ;;  %v2377_v4 = vrot.slane %v2375_v36, 4  ;;  %v937_v53 = vld [vmem:[%s12974_s9 + $0x1c] sm:$0xf] }
 0x13f   : > { %12170 = vmatpush3.bf16.msra.mxu0 %v12402_v43  ;;  %v12404_v43 = vld [vmem:[#allocation4 + $0x1c] ss:$40 sps:$4 sm:$0xff]   ;;  %v2360_v18 = vsel %vm13004_vm8, %v2355_v54, %v2359_v17  ;;  %4874 = vmatprep.mubr.bf16.mxu0 %v12407_v48  ;;  %v1937_v55 = vld [vmem:[#allocation2 + $0x30] sm:$0xe]  ;;  %v2368_v61 = vor.u32 %v2367_v40, %v2364_v51  ;;  %v2383_v62 = vrot.slane %v2381_v57, 5  ;;  %v12454_v7 = vld [vmem:[%s15757_s1 + $0x218] sm:$0xff]  }
 0x140   : > { %12171 = vmatprep.subr.bf16.mxu0 %v13616_v46  ;;  %5027 = vmatprep.mubr.bf16.mxu1 %v12404_v43  ;;  %2732 = vst [vmem:[#allocation4 + $0x94] sm:$0xf] %v2360_v18  ;;  %v1938_v56 = vld [vmem:[#allocation2 + $0x34] sm:$0xf]  ;;  %969 = vst [vmem:[#allocation4 + $0x128] sm:$0xf] %v937_v53 }
 0x141   : > { %5028 = vmatmul.mubr.bf16.vlgmr.msra.gmra.mxu1 %v12406_v45  ;;  %v1939_v63 = vld [vmem:[#allocation2 + $0x38] sm:$0x1]  ;;  %v10534_v0 = vrot.slane %v1937_v55, 9  ;;  %1001 = vst [vmem:[#allocation4 + $0x13c] sm:$0xf] %v937_v53  ;;  %v2047_v1 = vrot.slane %v1938_v56, 5  ;;  %v11177_v56 = vpop.f32.mrf.mxu0 }
 0x142   : > { %v2207_v58 = vld [vmem:[#allocation2 + $0x3c] sm:$0xf]  ;;  %v2050_v2 = vrot.slane %v1939_v63, 5  ;;  %v2208_v3 = vld [vmem:[#allocation2 + $0x40] sm:$0xf]  ;;  %v2369_v8 = vrot.slane %v2368_v61, 4 }
 0x143   : > { %12172 = vmatpush3.bf16.msra.mxu0 %v13616_v46  ;;  %v2378_v46 = vor.u32 %v2377_v4, %v2373_v52  ;;  %2239 = vst [vmem:[#allocation4 + $0x108] sm:$0xf] %v2207_v58  ;;  %2240 = vst [vmem:[#allocation4 + $0x130] sm:$0xf] %v2208_v3  ;;  %v2274_v16 = vld [vmem:[#allocation2 + $0x3c] sm:$0xf] }
 0x144   : > { %12173 = vmatprep.subr.bf16.mxu0 %v13621_v9  ;;  %v2275_v17 = vld [vmem:[#allocation2 + $0x40] sm:$0xf]  ;;  %v12413_v15 = vld [vmem:[#allocation4 + $0xb4] ss:$40 sps:$4 sm:$0xff]   ;;  %v2049_v25 = vrot.slane %v2047_v1, 4  ;;  %v2374_v27 = vsel %vm13004_vm8, %v2369_v8, %v2373_v52  ;;  %v2386_v31 = vshrl.u32 %v2274_v16, 16  ;;  %v11178_v8 = vpop.f32.mrf.mxu0 }
 0x145   : > { %v2379_v12 = vrot.slane %v2378_v46, 4  ;;  %v12416_v24 = vld [vmem:[#allocation4 + $0xb0] ss:$40 sps:$4 sm:$0xff]   ;;  %v2276_v50 = vld [vmem:[#allocation2 + $0x44] sm:$0x1]  ;;  %v2389_v54 = vshll.u32 %v2274_v16, 16 }
 0x146   : > { %4875 = vmatmul.mubr.bf16.gmra.mxu0 %v12409_v33  ;;  %v13665_v35 = vld [vmem:[%s15757_s1 + $0x210] sm:$0xff]   ;;  %v12412_v39 = vld [vmem:[#allocation4 + $0x68] ss:$40 sps:$4 sm:$0xff]   ;;  %2733 = vst [vmem:[#allocation4 + $0xbc] sm:$0xf] %v2374_v27  ;;  %v2051_v42 = vsel %vm13195_vm14, %v2049_v25, %v2050_v2  ;;  %v2395_v43 = vshll.u32 %v2275_v17, 16 }
 0x147   : > { %12174 = vmatpush3.bf16.msra.mxu0 %v13621_v9  ;;  %v2048_v9 = vsel %vm13195_vm14, %v10534_v0, %v2047_v1  ;;  %v2384_v28 = vsel %vm13004_vm8, %v2379_v12, %v2383_v62  ;;  %v12410_v38 = vld [vmem:[#allocation4 + $0x6c] ss:$40 sps:$4 sm:$0xff]   ;;  %4882 = vmatprep.mubr.bf16.mxu0 %v12413_v15  ;;  %2175 = vst [vmem:[#allocation4 + $0x12c] sm:$0xf] %v2051_v42  ;;  %v2388_v26 = vrot.slane %v2386_v31, 4  ;;  %v2391_v36 = vrot.slane %v2389_v54, 5  ;;  %v11289_v0 = vpop.f32.mrf.mxu1  ;;  %v11180_v31 = vpop.f32.mrf.mxu0 }
 0x148   : > { %12175 = vmatprep.subr.bf16.mxu0 %v13640_v44  ;;  %2174 = vst [vmem:[#allocation4 + $0x104] sm:$0xf] %v2048_v9  ;;  %2734 = vst [vmem:[#allocation4 + $0xe4] sm:$0xf] %v2384_v28  ;;  %v2399_v45 = vshrl.u32 %v2275_v17, 16  ;;  %v2405_v48 = vshll.u32 %v2276_v50, 16  ;;  %5035 = vmatprep.mubr.bf16.mxu1 %v12410_v38  ;;  %v13682_v15 = vadd.f32 %v11178_v8, %v11177_v56 }
 0x149   : > { %v938_v18 = vld [vmem:[%s12974_s9 + $0x20] sm:$0xf]  ;;  %v2397_v51 = vrot.slane %v2395_v43, 5  ;;  %v939_v30 = vld [vmem:[%s12974_s9 + $0x24] sm:$0xf]  ;;  %5036 = vmatmul.mubr.bf16.gmra.mxu1 %v12412_v39  ;;  %v2392_v40 = vor.u32 %v2391_v36, %v2388_v26  ;;  %v12480_v37 = vld [vmem:[%s15757_s1 + $0x208] sm:$0xff]  }
 0x14a   : > { %970 = vst [vmem:[#allocation4 + $0x150] sm:$0xf] %v938_v18  ;;  %v1940_v33 = vld [vmem:[#allocation2 + $0x3c] sm:$0xe]  ;;  %1002 = vst [vmem:[#allocation4 + $0x164] sm:$0xf] %v938_v18 }
 0x14b   : > { %12176 = vmatpush3.bf16.msra.mxu0 %v13640_v44  ;;  %v2401_v52 = vrot.slane %v2399_v45, 4  ;;  %971 = vst [vmem:[#allocation4 + $0x178] sm:$0xf] %v939_v30  ;;  %v1941_v44 = vld [vmem:[#allocation2 + $0x40] sm:$0xf]  ;;  %v10535_v57 = vrot.slane %v1940_v33, 9 }
 0x14c   : > { %12177 = vmatprep.subr.bf16.mxu0 %v12454_v7  ;;  %v1942_v4 = vld [vmem:[#allocation2 + $0x44] sm:$0x1]  ;;  %1003 = vst [vmem:[#allocation4 + $0x18c] sm:$0xf] %v939_v30  ;;  %v2054_v53 = vrot.slane %v1941_v44, 5  ;;  %v2393_v61 = vrot.slane %v2392_v40, 4 }
 0x14d   : > { %v2057_v55 = vrot.slane %v1942_v4, 5  ;;  %v2402_v46 = vor.u32 %v2401_v52, %v2397_v51  ;;  %v2407_v62 = vrot.slane %v2405_v48, 5  ;;  %v2209_v63 = vld [vmem:[#allocation2 + $0x48] sm:$0xf]  ;;  %v2210_v2 = vld [vmem:[#allocation2 + $0x4c] sm:$0xf] }
 0x14e   : > { %4883 = vmatmul.mubr.bf16.gmra.mxu0 %v12416_v24  ;;  %v2055_v58 = vsel %vm13195_vm14, %v10535_v57, %v2054_v53  ;;  %v2056_v1 = vrot.slane %v2054_v53, 4  ;;  %2241 = vst [vmem:[#allocation4 + $0x158] sm:$0xf] %v2209_v63  ;;  %v2277_v3 = vld [vmem:[#allocation2 + $0x48] sm:$0xf]  ;;  %v2398_v12 = vsel %vm13004_vm8, %v2393_v61, %v2397_v51  ;;  %v11290_v24 = vpop.f32.mrf.mxu1  ;;  %v13687_v9 = vld [vmem:[%s15757_s1 + $0x200] sm:$0xff]   ;;  %v11181_v51 = vpop.f32.mrf.mxu0 }
 0x14f   : > { %12178 = vmatpush3.bf16.msra.mxu0 %v12454_v7  ;;  %v12417_v7 = vld [vmem:[#allocation4 + $0xbc] ss:$40 sps:$4 sm:$0xff]   ;;  %v2403_v16 = vrot.slane %v2402_v46, 4  ;;  %2176 = vst [vmem:[#allocation4 + $0x154] sm:$0xf] %v2055_v58  ;;  %v2410_v17 = vshrl.u32 %v2277_v3, 16  ;;  %v13691_v54 = vadd.f32 %v11290_v24, %v11289_v0 }
 0x150   : > { %12179 = vmatprep.subr.bf16.mxu0 %v13665_v35  ;;  %2242 = vst [vmem:[#allocation4 + $0x180] sm:$0xf] %v2210_v2  ;;  %v12419_v25 = vld [vmem:[#allocation4 + $0xb8] ss:$40 sps:$4 sm:$0xff]   ;;  %v12420_v27 = vld [vmem:[#allocation4 + $0x104] ss:$40 sps:$4 sm:$0xff]   ;;  %v2058_v28 = vsel %vm13195_vm14, %v2056_v1, %v2057_v55  ;;  %5043 = vmatprep.mubr.bf16.mxu1 %v12417_v7  ;;  %v11292_v26 = vpop.f32.mrf.mxu1  ;;  %v11183_v2 = vpop.f32.mrf.mxu0 }
 0x151   : > { %2735 = vst [vmem:[#allocation4 + $0x10c] sm:$0xf] %v2398_v12  ;;  %v2413_v50 = vshll.u32 %v2277_v3, 16  ;;  %v12422_v38 = vld [vmem:[#allocation4 + $0x100] ss:$40 sps:$4 sm:$0xff]   ;;  %v2408_v39 = vsel %vm13004_vm8, %v2403_v16, %v2407_v62  ;;  %4890 = vmatprep.mubr.bf16.mxu0 %v12420_v27  ;;  %v2412_v36 = vrot.slane %v2410_v17, 4  ;;  %5044 = vmatmul.mubr.bf16.gmra.mxu1 %v12419_v25  ;;  %v11182_v27 = vadd.f32 %v11181_v51, %v11180_v31 }
 0x152   : > { %2177 = vst [vmem:[#allocation4 + $0x17c] sm:$0xf] %v2058_v28  ;;  %v2278_v42 = vld [vmem:[#allocation2 + $0x4c] sm:$0xf]  ;;  %v2279_v43 = vld [vmem:[#allocation2 + $0x50] sm:$0x1]  ;;  %v11293_v46 = vpop.f32.mrf.mxu1  ;;  %v11184_v28 = vpop.f32.mrf.mxu0 }
 0x153   : > { %12180 = vmatpush3.bf16.msra.mxu0 %v13665_v35  ;;  %2736 = vst [vmem:[#allocation4 + $0x134] sm:$0xf] %v2408_v39  ;;  %v2415_v45 = vrot.slane %v2413_v50, 5  ;;  %v2419_v48 = vshll.u32 %v2278_v42, 16  ;;  %v2423_v18 = vshrl.u32 %v2278_v42, 16  ;;  %v2429_v35 = vshll.u32 %v2279_v43, 16 }
 0x154   : > { %12181 = vmatprep.subr.bf16.mxu0 %v12480_v37  ;;  %v940_v30 = vld [vmem:[%s12974_s9 + $0x28] sm:$0xf]  ;;  %v941_v33 = vld [vmem:[%s12974_s9 + $0x2c] sm:$0xf]  ;;  %v13701_v53 = vld [vmem:[%s15758_s2] ss:$0 sm:$0xff]  ;;  %v11294_v43 = vadd.f32 %v11293_v46, %v11292_v26 }
 0x155   : > { %v2416_v40 = vor.u32 %v2415_v45, %v2412_v36  ;;  %v2421_v52 = vrot.slane %v2419_v48, 5  ;;  %v2425_v44 = vrot.slane %v2423_v18, 4  ;;  %972 = vst [vmem:[#allocation4 + $0x1a0] sm:$0xf] %v940_v30  ;;  %973 = vst [vmem:[#allocation4 + $0x1c8] sm:$0xf] %v941_v33  ;;  %v4579_v25 = vadd.f32 %v13682_v15, %v13701_v53  ;;  %v11295_v45 = vpop.f32.mrf.mxu1 }
 0x156   : > { %4891 = vmatmul.mubr.bf16.gmra.mxu0 %v12422_v38  ;;  %v1943_v4 = vld [vmem:[#allocation2 + $0x48] sm:$0xe]  ;;  %v1944_v57 = vld [vmem:[#allocation2 + $0x4c] sm:$0xf]  ;;  %1004 = vst [vmem:[#allocation4 + $0x1b4] sm:$0xf] %v940_v30  ;;  %v11185_v36 = vadd.f32 %v11184_v28, %v11183_v2  ;;  %v4582_v51 = vadd.f32 %v11182_v27, %v13701_v53 }
 0x157   : > { %1005 = vst [vmem:[#allocation4 + $0x1dc] sm:$0xf] %v941_v33  ;;  %12182 = vmatpush3.bf16.msra.mxu0 %v12480_v37  ;;  %v1945_v55 = vld [vmem:[#allocation2 + $0x50] sm:$0x1]  ;;  %v10536_v56 = vrot.slane %v1943_v4, 9  ;;  %v2061_v61 = vrot.slane %v1944_v57, 5  ;;  %v2426_v63 = vor.u32 %v2425_v44, %v2421_v52  ;;  %v13716_v18 = vadd.f32 %v13691_v54, %v4579_v25  ;;  %v11296_v44 = vpop.f32.mrf.mxu1 }
 0x158   : > { %12183 = vmatprep.subr.bf16.mxu0 %v13687_v9  ;;  %v2417_v62 = vrot.slane %v2416_v40, 4  ;;  %v2431_v0 = vrot.slane %v2429_v35, 5  ;;  %v2064_v58 = vrot.slane %v1945_v55, 5  ;;  %v2211_v1 = vld [vmem:[#allocation2 + $0x54] sm:$0xf]  ;;  %v11186_v35 = vpop.f32.mrf.mxu0  ;;  %v13721_v54 = vadd.f32 %v11294_v43, %v4582_v51 }
 0x159   : > { %v2062_v37 = vsel %vm13195_vm14, %v10536_v56, %v2061_v61  ;;  %v2063_v3 = vrot.slane %v2061_v61, 4  ;;  %v2212_v8 = vld [vmem:[#allocation2 + $0x58] sm:$0xf]  ;;  %2243 = vst [vmem:[#allocation4 + $0x1a8] sm:$0xf] %v2211_v1  ;;  %v2427_v24 = vrot.slane %v2426_v63, 4  ;;  %v4587_v56 = vadd.f32 %v11185_v36, %v13701_v53  ;;  %v11298_v2 = vpop.f32.mrf.mxu1 }
 0x15a   : > { %v2280_v7 = vld [vmem:[#allocation2 + $0x54] sm:$0xf]  ;;  %v12426_v12 = vld [vmem:[#allocation4 + $0x154] ss:$40 sps:$4 sm:$0xff]   ;;  %v12429_v16 = vld [vmem:[#allocation4 + $0x150] ss:$40 sps:$4 sm:$0xff]   ;;  %v2422_v17 = vsel %vm13004_vm8, %v2417_v62, %v2421_v52  ;;  %v11297_v61 = vadd.f32 %v11296_v44, %v11295_v45  ;;  %v11187_v46 = vpop.f32.mrf.mxu0 }
 0x15b   : > { %2178 = vst [vmem:[#allocation4 + $0x1a4] sm:$0xf] %v2062_v37  ;;  %2244 = vst [vmem:[#allocation4 + $0x1d0] sm:$0xf] %v2212_v8  ;;  %12184 = vmatpush3.bf16.msra.mxu0 %v13687_v9  ;;  %v12423_v50 = vld [vmem:[#allocation4 + $0x10c] ss:$40 sps:$4 sm:$0xff]   ;;  %v2065_v39 = vsel %vm13195_vm14, %v2063_v3, %v2064_v58  ;;  %4898 = vmatprep.mubr.bf16.mxu0 %v12426_v12  ;;  %v2432_v48 = vsel %vm13004_vm8, %v2427_v24, %v2431_v0  ;;  %v11299_v25 = vpop.f32.mrf.mxu1 }
 0x15c   : > { %v12425_v38 = vld [vmem:[#allocation4 + $0x108] ss:$40 sps:$4 sm:$0xff]   ;;  %2737 = vst [vmem:[#allocation4 + $0x15c] sm:$0xf] %v2422_v17  ;;  %v2434_v42 = vshrl.u32 %v2280_v7, 16  ;;  %v2437_v9 = vshll.u32 %v2280_v7, 16  ;;  %5051 = vmatprep.mubr.bf16.mxu1 %v12423_v50  ;;  %v13724_v7 = vadd.f32 %v11297_v61, %v4587_v56  ;;  %v11188_v12 = vadd.f32 %v11187_v46, %v11186_v35  ;;  %v11189_v51 = vpop.f32.mrf.mxu0 }
 0x15d   : > { %2179 = vst [vmem:[#allocation4 + $0x1cc] sm:$0xf] %v2065_v39  ;;  %v2281_v15 = vld [vmem:[#allocation2 + $0x58] sm:$0xf]  ;;  %v2282_v31 = vld [vmem:[#allocation2 + $0x5c] sm:$0x1]  ;;  %5052 = vmatmul.mubr.bf16.gmra.mxu1 %v12425_v38  ;;  %v11300_v45 = vadd.f32 %v11299_v25, %v11298_v2 }
 0x15e   : > { %4899 = vmatmul.mubr.bf16.gmra.mxu0 %v12429_v16  ;;  %2738 = vst [vmem:[#allocation4 + $0x184] sm:$0xf] %v2432_v48  ;;  %v2436_v26 = vrot.slane %v2434_v42, 4  ;;  %v2443_v30 = vshll.u32 %v2281_v15, 16  ;;  %v2447_v33 = vshrl.u32 %v2281_v15, 16  ;;  %v2453_v40 = vshll.u32 %v2282_v31, 16  ;;  %v11190_v56 = vpop.f32.mrf.mxu0 }
 0x15f   : > { %v942_v52 = vld [vmem:[%s12974_s9 + $0x30] sm:$0xf]  ;;  %v2439_v4 = vrot.slane %v2437_v9, 5  ;;  %v943_v57 = vld [vmem:[%s12974_s9 + $0x34] sm:$0xf]  ;;  %v4590_v39 = vadd.f32 %v11188_v12, %v13701_v53 }
 0x160   : > { %974 = vst [vmem:[#allocation4 + $0x1f0] sm:$0xf] %v942_v52  ;;  %v1946_v55 = vld [vmem:[#allocation2 + $0x54] sm:$0xe]  ;;  %1006 = vst [vmem:[#allocation4 + $0x204] sm:$0xf] %v942_v52 }
 0x161   : > { %v2445_v62 = vrot.slane %v2443_v30, 5  ;;  %v2449_v63 = vrot.slane %v2447_v33, 4  ;;  %v2455_v0 = vrot.slane %v2453_v40, 5  ;;  %975 = vst [vmem:[#allocation4 + $0x218] sm:$0xf] %v943_v57  ;;  %v10537_v1 = vrot.slane %v1946_v55, 9 }
 0x162   : > { %v1947_v58 = vld [vmem:[#allocation2 + $0x58] sm:$0xf]  ;;  %1007 = vst [vmem:[#allocation4 + $0x22c] sm:$0xf] %v943_v57  ;;  %v2440_v37 = vor.u32 %v2439_v4, %v2436_v26  ;;  %v1948_v3 = vld [vmem:[#allocation2 + $0x5c] sm:$0x1]  ;;  %v13735_v40 = vadd.f32 %v11300_v45, %v4590_v39 }
 0x163   : > { %v2068_v8 = vrot.slane %v1947_v58, 5  ;;  %v2450_v16 = vor.u32 %v2449_v63, %v2445_v62  ;;  %v2071_v17 = vrot.slane %v1948_v3, 5  ;;  %v2213_v24 = vld [vmem:[#allocation2 + $0x60] sm:$0xf]  ;;  %v2214_v38 = vld [vmem:[#allocation2 + $0x64] sm:$0xf]  ;;  %v11191_v63 = vadd.f32 %v11190_v56, %v11189_v51 }
 0x164   : > { %v2441_v27 = vrot.slane %v2440_v37, 4  ;;  %2245 = vst [vmem:[#allocation4 + $0x1f8] sm:$0xf] %v2213_v24  ;;  %v12433_v42 = vld [vmem:[#allocation4 + $0x1a4] ss:$40 sps:$4 sm:$0xff]  }
 0x165   : > { %v2069_v28 = vsel %vm13195_vm14, %v10537_v1, %v2068_v8  ;;  %v2070_v50 = vrot.slane %v2068_v8, 4  ;;  %v12435_v43 = vld [vmem:[#allocation4 + $0x1a0] ss:$40 sps:$4 sm:$0xff]   ;;  %v2451_v36 = vrot.slane %v2450_v16, 4  ;;  %2246 = vst [vmem:[#allocation4 + $0x220] sm:$0xf] %v2214_v38  ;;  %4906 = vmatprep.mubr.bf16.mxu0 %v12433_v42  ;;  %v11192_v8 = vpop.f32.mrf.mxu0  ;;  %v4595_v25 = vadd.f32 %v11191_v63, %v13701_v53 }
 0x166   : > { %2180 = vst [vmem:[#allocation4 + $0x1f4] sm:$0xf] %v2069_v28  ;;  %v12430_v48 = vld [vmem:[#allocation4 + $0x15c] ss:$40 sps:$4 sm:$0xff]   ;;  %v12432_v15 = vld [vmem:[#allocation4 + $0x158] ss:$40 sps:$4 sm:$0xff]   ;;  %v2446_v31 = vsel %vm13004_vm8, %v2441_v27, %v2445_v62  ;;  %4907 = vmatmul.mubr.bf16.gmra.mxu0 %v12435_v43 }
 0x167   : > { %v2072_v9 = vsel %vm13195_vm14, %v2070_v50, %v2071_v17  ;;  %v2456_v35 = vsel %vm13004_vm8, %v2451_v36, %v2455_v0  ;;  %2739 = vst [vmem:[#allocation4 + $0x1ac] sm:$0xf] %v2446_v31  ;;  %v2283_v26 = vld [vmem:[#allocation2 + $0x60] sm:$0xf]  ;;  %v2284_v30 = vld [vmem:[#allocation2 + $0x64] sm:$0xf]  ;;  %5059 = vmatprep.mubr.bf16.mxu1 %v12430_v48  ;;  %v11301_v0 = vpop.f32.mrf.mxu1  ;;  %v11193_v36 = vpop.f32.mrf.mxu0 }
 0x168   : > { %2181 = vst [vmem:[#allocation4 + $0x21c] sm:$0xf] %v2072_v9  ;;  %v2285_v33 = vld [vmem:[#allocation2 + $0x68] sm:$0x1]  ;;  %2740 = vst [vmem:[#allocation4 + $0x1d4] sm:$0xf] %v2456_v35  ;;  %5060 = vmatmul.mubr.bf16.gmra.mxu1 %v12432_v15  ;;  %v11194_v9 = vadd.f32 %v11193_v36, %v11192_v8 }
 0x169   : > { %v2458_v52 = vshrl.u32 %v2283_v26, 16  ;;  %v2461_v44 = vshll.u32 %v2283_v26, 16  ;;  %v2467_v4 = vshll.u32 %v2284_v30, 16  ;;  %v2471_v57 = vshrl.u32 %v2284_v30, 16  ;;  %v944_v55 = vld [vmem:[%s12974_s9 + $0x38] sm:$0xf]  ;;  %v11302_v27 = vpop.f32.mrf.mxu1 }
 0x16a   : > { %v2477_v61 = vshll.u32 %v2285_v33, 16  ;;  %v945_v46 = vld [vmem:[%s12974_s9 + $0x3c] sm:$0xf]  ;;  %976 = vst [vmem:[#allocation4 + $0x240] sm:$0xf] %v944_v55  ;;  %v11303_v43 = vadd.f32 %v11302_v27, %v11301_v0 }
 0x16b   : > { %v1949_v62 = vld [vmem:[#allocation2 + $0x60] sm:$0xe]  ;;  %1008 = vst [vmem:[#allocation4 + $0x254] sm:$0xf] %v944_v55  ;;  %v2460_v58 = vrot.slane %v2458_v52, 4  ;;  %v2463_v1 = vrot.slane %v2461_v44, 5  ;;  %v11304_v51 = vpop.f32.mrf.mxu1  ;;  %v4598_v55 = vadd.f32 %v11194_v9, %v13701_v53 }
 0x16c   : > { %v2469_v2 = vrot.slane %v2467_v4, 5  ;;  %v2473_v37 = vrot.slane %v2471_v57, 4  ;;  %977 = vst [vmem:[#allocation4 + $0x268] sm:$0xf] %v945_v46  ;;  %v1950_v3 = vld [vmem:[#allocation2 + $0x64] sm:$0xf]  ;;  %v13742_v33 = vadd.f32 %v11303_v43, %v4595_v25 }
 0x16d   : > { %1009 = vst [vmem:[#allocation4 + $0x27c] sm:$0xf] %v945_v46  ;;  %v2479_v12 = vrot.slane %v2477_v61, 5  ;;  %v1951_v16 = vld [vmem:[#allocation2 + $0x68] sm:$0x1]  ;;  %v10538_v17 = vrot.slane %v1949_v62, 9  ;;  %v2464_v28 = vor.u32 %v2463_v1, %v2460_v58  ;;  %v11305_v56 = vpop.f32.mrf.mxu1 }
 0x16e   : > { %v2075_v24 = vrot.slane %v1950_v3, 5  ;;  %v2474_v50 = vor.u32 %v2473_v37, %v2469_v2  ;;  %v2078_v38 = vrot.slane %v1951_v16, 5  ;;  %v2215_v39 = vld [vmem:[#allocation2 + $0x6c] sm:$0xf]  ;;  %v2216_v42 = vld [vmem:[#allocation2 + $0x70] sm:$0xf]  ;;  %v11306_v16 = vadd.f32 %v11305_v56, %v11304_v51 }
 0x16f   : > { %2247 = vst [vmem:[#allocation4 + $0x248] sm:$0xf] %v2215_v39  ;;  %2248 = vst [vmem:[#allocation4 + $0x270] sm:$0xf] %v2216_v42  ;;  %v2286_v15 = vld [vmem:[#allocation2 + $0x6c] sm:$0xf] }
 0x170   : > { %v2076_v45 = vsel %vm13195_vm14, %v10538_v17, %v2075_v24  ;;  %v2077_v48 = vrot.slane %v2075_v24, 4  ;;  %v2287_v31 = vld [vmem:[#allocation2 + $0x70] sm:$0xf]  ;;  %v12439_v35 = vld [vmem:[#allocation4 + $0x1f4] ss:$40 sps:$4 sm:$0xff]   ;;  %v2465_v26 = vrot.slane %v2464_v28, 4 }
 0x171   : > { %v2475_v30 = vrot.slane %v2474_v50, 4  ;;  %2182 = vst [vmem:[#allocation4 + $0x244] sm:$0xf] %v2076_v45  ;;  %v12436_v52 = vld [vmem:[#allocation4 + $0x1ac] ss:$40 sps:$4 sm:$0xff]   ;;  %v2482_v57 = vshrl.u32 %v2286_v15, 16  ;;  %4914 = vmatprep.mubr.bf16.mxu0 %v12439_v35  ;;  %v11195_v50 = vpop.f32.mrf.mxu0  ;;  %v11307_v45 = vpop.f32.mrf.mxu1 }
 0x172   : > { %v12438_v44 = vld [vmem:[#allocation4 + $0x1a8] ss:$40 sps:$4 sm:$0xff]   ;;  %v2079_v4 = vsel %vm13195_vm14, %v2077_v48, %v2078_v38  ;;  %v2470_v46 = vsel %vm13004_vm8, %v2465_v26, %v2469_v2  ;;  %v2288_v63 = vld [vmem:[#allocation2 + $0x74] sm:$0x1]  ;;  %v2485_v0 = vshll.u32 %v2286_v15, 16  ;;  %v2491_v58 = vshll.u32 %v2287_v31, 16  ;;  %5067 = vmatprep.mubr.bf16.mxu1 %v12436_v52 }
 0x173   : > { %v12442_v61 = vld [vmem:[#allocation4 + $0x1f0] ss:$40 sps:$4 sm:$0xff]   ;;  %v2480_v62 = vsel %vm13004_vm8, %v2475_v30, %v2479_v12  ;;  %2183 = vst [vmem:[#allocation4 + $0x26c] sm:$0xf] %v2079_v4  ;;  %2741 = vst [vmem:[#allocation4 + $0x1fc] sm:$0xf] %v2470_v46  ;;  %5068 = vmatmul.mubr.bf16.gmra.mxu1 %v12438_v44  ;;  %v13753_v38 = vadd.f32 %v11306_v16, %v4598_v55  ;;  %v11196_v9 = vpop.f32.mrf.mxu0  ;;  %v11308_v4 = vpop.f32.mrf.mxu1 }
 0x174   : > { %2742 = vst [vmem:[#allocation4 + $0x224] sm:$0xf] %v2480_v62  ;;  %v2484_v1 = vrot.slane %v2482_v57, 4  ;;  %v2495_v37 = vshrl.u32 %v2287_v31, 16  ;;  %v2501_v3 = vshll.u32 %v2288_v63, 16  ;;  %4915 = vmatmul.mubr.bf16.gmra.mxu0 %v12442_v61  ;;  %v2487_v17 = vrot.slane %v2485_v0, 5 }
 0x175   : > { %v946_v8 = vld [vmem:[%s12974_s9 + $0x40] sm:$0xf]  ;;  %v2493_v2 = vrot.slane %v2491_v58, 5  ;;  %v947_v24 = vld [vmem:[%s12974_s9 + $0x44] sm:$0xf]  ;;  %v11197_v44 = vadd.f32 %v11196_v9, %v11195_v50  ;;  %v11198_v61 = vpop.f32.mrf.mxu0  ;;  %v11309_v46 = vadd.f32 %v11308_v4, %v11307_v45 }
 0x176   : > { %978 = vst [vmem:[#allocation4 + $0x290] sm:$0xf] %v946_v8  ;;  %v1952_v12 = vld [vmem:[#allocation2 + $0x6c] sm:$0xe]  ;;  %1010 = vst [vmem:[#allocation4 + $0x2a4] sm:$0xf] %v946_v8  ;;  %v2488_v39 = vor.u32 %v2487_v17, %v2484_v1 }
 0x177   : > { %v2497_v25 = vrot.slane %v2495_v37, 4  ;;  %979 = vst [vmem:[#allocation4 + $0x2b8] sm:$0xf] %v947_v24  ;;  %v1953_v27 = vld [vmem:[#allocation2 + $0x70] sm:$0xf]  ;;  %v10539_v42 = vrot.slane %v1952_v12, 9  ;;  %v11310_v37 = vpop.f32.mrf.mxu1 }
 0x178   : > { %v1954_v28 = vld [vmem:[#allocation2 + $0x74] sm:$0x1]  ;;  %1011 = vst [vmem:[#allocation4 + $0x2cc] sm:$0xf] %v947_v24  ;;  %v2082_v43 = vrot.slane %v1953_v27, 5  ;;  %v2503_v15 = vrot.slane %v2501_v3, 5  ;;  %v4603_v24 = vadd.f32 %v11197_v44, %v13701_v53 }
 0x179   : > { %v2085_v36 = vrot.slane %v1954_v28, 5  ;;  %v2498_v48 = vor.u32 %v2497_v25, %v2493_v2  ;;  %v2217_v31 = vld [vmem:[#allocation2 + $0x78] sm:$0xf]  ;;  %v2489_v51 = vrot.slane %v2488_v39, 4  ;;  %v2218_v30 = vld [vmem:[#allocation2 + $0x7c] sm:$0xf]  ;;  %v11311_v39 = vpop.f32.mrf.mxu1 }
 0x17a   : > { %v2083_v35 = vsel %vm13195_vm14, %v10539_v42, %v2082_v43  ;;  %v2084_v26 = vrot.slane %v2082_v43, 4  ;;  %2249 = vst [vmem:[#allocation4 + $0x298] sm:$0xf] %v2217_v31  ;;  %v2289_v52 = vld [vmem:[#allocation2 + $0x78] sm:$0xf]  ;;  %v13766_v45 = vadd.f32 %v11309_v46, %v4603_v24 }
 0x17b   : > { %v12446_v57 = vld [vmem:[#allocation4 + $0x244] ss:$40 sps:$4 sm:$0xff]   ;;  %v12448_v55 = vld [vmem:[#allocation4 + $0x240] ss:$40 sps:$4 sm:$0xff]   ;;  %v2499_v56 = vrot.slane %v2498_v48, 4  ;;  %v2494_v63 = vsel %vm13004_vm8, %v2489_v51, %v2493_v2  ;;  %v2506_v58 = vshrl.u32 %v2289_v52, 16  ;;  %v11199_v2 = vpop.f32.mrf.mxu0 }
 0x17c   : > { %2184 = vst [vmem:[#allocation4 + $0x294] sm:$0xf] %v2083_v35  ;;  %2250 = vst [vmem:[#allocation4 + $0x2c0] sm:$0xf] %v2218_v30  ;;  %v12443_v62 = vld [vmem:[#allocation4 + $0x1fc] ss:$40 sps:$4 sm:$0xff]   ;;  %v2086_v0 = vsel %vm13195_vm14, %v2084_v26, %v2085_v36  ;;  %4922 = vmatprep.mubr.bf16.mxu0 %v12446_v57  ;;  %v11200_v48 = vadd.f32 %v11199_v2, %v11198_v61  ;;  %v11312_v26 = vadd.f32 %v11311_v39, %v11310_v37 }
 0x17d   : > { %v2509_v1 = vshll.u32 %v2289_v52, 16  ;;  %v12445_v3 = vld [vmem:[#allocation4 + $0x1f8] ss:$40 sps:$4 sm:$0xff]   ;;  %v2504_v8 = vsel %vm13004_vm8, %v2499_v56, %v2503_v15  ;;  %2743 = vst [vmem:[#allocation4 + $0x24c] sm:$0xf] %v2494_v63  ;;  %5075 = vmatprep.mubr.bf16.mxu1 %v12443_v62  ;;  %4923 = vmatmul.mubr.bf16.gmra.mxu0 %v12448_v55  ;;  %v2508_v12 = vrot.slane %v2506_v58, 4 }
 0x17e   : > { %2185 = vst [vmem:[#allocation4 + $0x2bc] sm:$0xf] %v2086_v0  ;;  %v2290_v16 = vld [vmem:[#allocation2 + $0x7c] sm:$0xf]  ;;  %v2291_v17 = vld [vmem:[#allocation2 + $0x80] sm:$0x1]  ;;  %5076 = vmatmul.mubr.bf16.gmra.mxu1 %v12445_v3  ;;  %v4606_v61 = vadd.f32 %v11200_v48, %v13701_v53 }
 0x17f   : > { %2744 = vst [vmem:[#allocation4 + $0x274] sm:$0xf] %v2504_v8  ;;  %v2511_v25 = vrot.slane %v2509_v1, 5  ;;  %v2515_v27 = vshll.u32 %v2290_v16, 16  ;;  %v2519_v28 = vshrl.u32 %v2290_v16, 16  ;;  %v2525_v42 = vshll.u32 %v2291_v17, 16 }
 0x180   : > { %v948_v50 = vld [vmem:[%s12974_s9 + $0x48] sm:$0xf]  ;;  %v949_v43 = vld [vmem:[%s12974_s9 + $0x4c] sm:$0xf]  ;;  %v1955_v36 = vld [vmem:[#allocation2 + $0x78] sm:$0xe]  ;;  %v13773_v24 = vadd.f32 %v11312_v26, %v4606_v61 }
 0x181   : > { %980 = vst [vmem:[#allocation4 + $0x2e0] sm:$0xf] %v948_v50  ;;  %1012 = vst [vmem:[#allocation4 + $0x2f4] sm:$0xf] %v948_v50  ;;  %v2512_v15 = vor.u32 %v2511_v25, %v2508_v12  ;;  %v2517_v31 = vrot.slane %v2515_v27, 5  ;;  %v2521_v9 = vrot.slane %v2519_v28, 4  ;;  %v11313_v28 = vpop.f32.mrf.mxu1 }
 0x182   : > { %981 = vst [vmem:[#allocation4 + $0x308] sm:$0xf] %v949_v43  ;;  %v1956_v51 = vld [vmem:[#allocation2 + $0x7c] sm:$0xf]  ;;  %v1957_v35 = vld [vmem:[#allocation2 + $0x80] sm:$0x1] }
 0x183   : > { %1013 = vst [vmem:[#allocation4 + $0x31c] sm:$0xf] %v949_v43  ;;  %v2527_v30 = vrot.slane %v2525_v42, 5  ;;  %v10540_v52 = vrot.slane %v1955_v36, 9  ;;  %v2089_v44 = vrot.slane %v1956_v51, 5  ;;  %v2092_v4 = vrot.slane %v1957_v35, 5  ;;  %v11314_v51 = vpop.f32.mrf.mxu1 }
 0x184   : > { %v2219_v57 = vld [vmem:[#allocation2 + $0x84] sm:$0xf]  ;;  %v2513_v55 = vrot.slane %v2512_v15, 4  ;;  %v2522_v56 = vor.u32 %v2521_v9, %v2517_v31  ;;  %v2220_v62 = vld [vmem:[#allocation2 + $0x88] sm:$0xf]  ;;  %v11201_v9 = vpop.f32.mrf.mxu0 }
 0x185   : > { %2251 = vst [vmem:[#allocation4 + $0x2e8] sm:$0xf] %v2219_v57  ;;  %v2292_v46 = vld [vmem:[#allocation2 + $0x84] sm:$0xf]  ;;  %v2090_v63 = vsel %vm13195_vm14, %v10540_v52, %v2089_v44  ;;  %v2091_v0 = vrot.slane %v2089_v44, 4  ;;  %v11316_v61 = vpop.f32.mrf.mxu1 }
 0x186   : > { %2252 = vst [vmem:[#allocation4 + $0x310] sm:$0xf] %v2220_v62  ;;  %v2293_v58 = vld [vmem:[#allocation2 + $0x88] sm:$0xf]  ;;  %v2294_v1 = vld [vmem:[#allocation2 + $0x8c] sm:$0x1]  ;;  %v2518_v8 = vsel %vm13004_vm8, %v2513_v55, %v2517_v31 }
 0x187   : > { %v2530_v37 = vshrl.u32 %v2292_v46, 16  ;;  %v12452_v3 = vld [vmem:[#allocation4 + $0x294] ss:$40 sps:$4 sm:$0xff]   ;;  %v2523_v16 = vrot.slane %v2522_v56, 4  ;;  %2186 = vst [vmem:[#allocation4 + $0x2e4] sm:$0xf] %v2090_v63  ;;  %v2093_v25 = vsel %vm13195_vm14, %v2091_v0, %v2092_v4  ;;  %v11315_v4 = vadd.f32 %v11314_v51, %v11313_v28 }
 0x188   : > { %v2533_v17 = vshll.u32 %v2292_v46, 16  ;;  %v12449_v2 = vld [vmem:[#allocation4 + $0x24c] ss:$40 sps:$4 sm:$0xff]   ;;  %v12451_v12 = vld [vmem:[#allocation4 + $0x248] ss:$40 sps:$4 sm:$0xff]   ;;  %4930 = vmatprep.mubr.bf16.mxu0 %v12452_v3  ;;  %v2539_v43 = vshll.u32 %v2293_v58, 16  ;;  %v11202_v46 = vpop.f32.mrf.mxu0 }
 0x189   : > { %2745 = vst [vmem:[#allocation4 + $0x29c] sm:$0xf] %v2518_v8  ;;  %v2532_v27 = vrot.slane %v2530_v37, 4  ;;  %v12455_v50 = vld [vmem:[#allocation4 + $0x290] ss:$40 sps:$4 sm:$0xff]   ;;  %v2528_v39 = vsel %vm13004_vm8, %v2523_v16, %v2527_v30  ;;  %v2543_v36 = vshrl.u32 %v2293_v58, 16  ;;  %5083 = vmatprep.mubr.bf16.mxu1 %v12449_v2 }
 0x18a   : > { %2187 = vst [vmem:[#allocation4 + $0x30c] sm:$0xf] %v2093_v25  ;;  %v2535_v42 = vrot.slane %v2533_v17, 5  ;;  %2746 = vst [vmem:[#allocation4 + $0x2c4] sm:$0xf] %v2528_v39  ;;  %v2549_v48 = vshll.u32 %v2294_v1, 16  ;;  %5084 = vmatmul.mubr.bf16.gmra.mxu1 %v12451_v12  ;;  %4931 = vmatmul.mubr.bf16.gmra.mxu0 %v12455_v50  ;;  %v11203_v1 = vadd.f32 %v11202_v46, %v11201_v9  ;;  %v11204_v17 = vpop.f32.mrf.mxu0  ;;  %v11317_v50 = vpop.f32.mrf.mxu1 }
 0x18b   : > { %v950_v15 = vld [vmem:[%s12974_s9 + $0x50] sm:$0xf]  ;;  %v951_v31 = vld [vmem:[%s12974_s9 + $0x54] sm:$0xf]  ;;  %v2541_v26 = vrot.slane %v2539_v43, 5  ;;  %v2545_v52 = vrot.slane %v2543_v36, 4 }
 0x18c   : > { %v2536_v35 = vor.u32 %v2535_v42, %v2532_v27  ;;  %982 = vst [vmem:[#allocation4 + $0x330] sm:$0xf] %v950_v15  ;;  %983 = vst [vmem:[#allocation4 + $0x358] sm:$0xf] %v951_v31  ;;  %v1958_v44 = vld [vmem:[#allocation2 + $0x84] sm:$0xe]  ;;  %v4611_v28 = vadd.f32 %v11203_v1, %v13701_v53  ;;  %v11319_v1 = vpop.f32.mrf.mxu1 }
 0x18d   : > { %v1959_v30 = vld [vmem:[#allocation2 + $0x88] sm:$0xf]  ;;  %1014 = vst [vmem:[#allocation4 + $0x344] sm:$0xf] %v950_v15  ;;  %1015 = vst [vmem:[#allocation4 + $0x36c] sm:$0xf] %v951_v31  ;;  %v2546_v0 = vor.u32 %v2545_v52, %v2541_v26 }
 0x18e   : > { %v2551_v57 = vrot.slane %v2549_v48, 5  ;;  %v1960_v55 = vld [vmem:[#allocation2 + $0x8c] sm:$0x1]  ;;  %v10541_v56 = vrot.slane %v1958_v44, 9  ;;  %v2096_v62 = vrot.slane %v1959_v30, 5  ;;  %v2537_v63 = vrot.slane %v2536_v35, 4  ;;  %v11205_v48 = vpop.f32.mrf.mxu0 }
 0x18f   : > { %v2099_v58 = vrot.slane %v1960_v55, 5  ;;  %v2221_v8 = vld [vmem:[#allocation2 + $0x90] sm:$0xf]  ;;  %v2222_v16 = vld [vmem:[#allocation2 + $0x94] sm:$0xf]  ;;  %v2547_v12 = vrot.slane %v2546_v0, 4  ;;  %v13790_v35 = vadd.f32 %v11315_v4, %v4611_v28 }
 0x190   : > { %v2097_v37 = vsel %vm13195_vm14, %v10541_v56, %v2096_v62  ;;  %v2098_v3 = vrot.slane %v2096_v62, 4  ;;  %v2542_v2 = vsel %vm13004_vm8, %v2537_v63, %v2541_v26  ;;  %2253 = vst [vmem:[#allocation4 + $0x338] sm:$0xf] %v2221_v8  ;;  %2254 = vst [vmem:[#allocation4 + $0x360] sm:$0xf] %v2222_v16  ;;  %v11206_v26 = vadd.f32 %v11205_v48, %v11204_v17  ;;  %v11207_v56 = vpop.f32.mrf.mxu0 }
 0x191   : > { %2188 = vst [vmem:[#allocation4 + $0x334] sm:$0xf] %v2097_v37  ;;  %v2295_v25 = vld [vmem:[#allocation2 + $0x90] sm:$0xf]  ;;  %v2296_v27 = vld [vmem:[#allocation2 + $0x94] sm:$0xf]  ;;  %v2552_v9 = vsel %vm13004_vm8, %v2547_v12, %v2551_v57  ;;  %v11318_v62 = vadd.f32 %v11317_v50, %v11316_v61 }
 0x192   : > { %v12459_v39 = vld [vmem:[#allocation4 + $0x2e4] ss:$40 sps:$4 sm:$0xff]   ;;  %v12461_v42 = vld [vmem:[#allocation4 + $0x2e0] ss:$40 sps:$4 sm:$0xff]   ;;  %2747 = vst [vmem:[#allocation4 + $0x2ec] sm:$0xf] %v2542_v2  ;;  %v2100_v43 = vsel %vm13195_vm14, %v2098_v3, %v2099_v58  ;;  %v4614_v58 = vadd.f32 %v11206_v26, %v13701_v53  ;;  %v11208_v16 = vpop.f32.mrf.mxu0 }
 0x193   : > { %v2554_v36 = vshrl.u32 %v2295_v25, 16  ;;  %v12456_v15 = vld [vmem:[#allocation4 + $0x29c] ss:$40 sps:$4 sm:$0xff]   ;;  %v12458_v31 = vld [vmem:[#allocation4 + $0x298] ss:$40 sps:$4 sm:$0xff]   ;;  %v2557_v51 = vshll.u32 %v2295_v25, 16  ;;  %4938 = vmatprep.mubr.bf16.mxu0 %v12459_v39 }
 0x194   : > { %2189 = vst [vmem:[#allocation4 + $0x35c] sm:$0xf] %v2100_v43  ;;  %2748 = vst [vmem:[#allocation4 + $0x314] sm:$0xf] %v2552_v9  ;;  %v2297_v52 = vld [vmem:[#allocation2 + $0x98] sm:$0x1]  ;;  %5091 = vmatprep.mubr.bf16.mxu1 %v12456_v15  ;;  %4939 = vmatmul.mubr.bf16.gmra.mxu0 %v12461_v42  ;;  %v13795_v43 = vadd.f32 %v11318_v62, %v4614_v58  ;;  %v11210_v48 = vpop.f32.mrf.mxu0 }
 0x195   : > { %v2556_v44 = vrot.slane %v2554_v36, 4  ;;  %v2563_v30 = vshll.u32 %v2296_v27, 16  ;;  %v2567_v55 = vshrl.u32 %v2296_v27, 16  ;;  %v2559_v46 = vrot.slane %v2557_v51, 5  ;;  %v952_v57 = vld [vmem:[%s12974_s9 + $0x58] sm:$0xf]  ;;  %5092 = vmatmul.mubr.bf16.gmra.mxu1 %v12458_v31  ;;  %v11320_v27 = vpop.f32.mrf.mxu1 }
 0x196   : > { %v2573_v63 = vshll.u32 %v2297_v52, 16  ;;  %v953_v0 = vld [vmem:[%s12974_s9 + $0x5c] sm:$0xf]  ;;  %984 = vst [vmem:[#allocation4 + $0x380] sm:$0xf] %v952_v57  ;;  %v11209_v36 = vadd.f32 %v11208_v16, %v11207_v56  ;;  %v11321_v26 = vadd.f32 %v11320_v27, %v11319_v1  ;;  %v11211_v62 = vpop.f32.mrf.mxu0 }
 0x197   : > { %v2565_v4 = vrot.slane %v2563_v30, 5  ;;  %v2569_v37 = vrot.slane %v2567_v55, 4  ;;  %985 = vst [vmem:[#allocation4 + $0x3a8] sm:$0xf] %v953_v0  ;;  %v1961_v3 = vld [vmem:[#allocation2 + $0x90] sm:$0xe]  ;;  %v2560_v61 = vor.u32 %v2559_v46, %v2556_v44  ;;  %v11322_v52 = vpop.f32.mrf.mxu1 }
 0x198   : > { %v1962_v8 = vld [vmem:[#allocation2 + $0x94] sm:$0xf]  ;;  %1016 = vst [vmem:[#allocation4 + $0x394] sm:$0xf] %v952_v57  ;;  %1017 = vst [vmem:[#allocation4 + $0x3bc] sm:$0xf] %v953_v0  ;;  %v4619_v46 = vadd.f32 %v11209_v36, %v13701_v53 }
 0x199   : > { %v2575_v17 = vrot.slane %v2573_v63, 5  ;;  %v1963_v2 = vld [vmem:[#allocation2 + $0x98] sm:$0x1]  ;;  %v10542_v12 = vrot.slane %v1961_v3, 9  ;;  %v2103_v25 = vrot.slane %v1962_v8, 5  ;;  %v2570_v28 = vor.u32 %v2569_v37, %v2565_v4  ;;  %v11323_v3 = vpop.f32.mrf.mxu1 }
 0x19a   : > { %v2106_v50 = vrot.slane %v1963_v2, 5  ;;  %v2223_v39 = vld [vmem:[#allocation2 + $0x9c] sm:$0xf]  ;;  %v2224_v42 = vld [vmem:[#allocation2 + $0xa0] sm:$0xf]  ;;  %v2561_v15 = vrot.slane %v2560_v61, 4  ;;  %v11212_v37 = vadd.f32 %v11211_v62, %v11210_v48  ;;  %v13806_v2 = vadd.f32 %v11321_v26, %v4619_v46 }
 0x19b   : > { %v2104_v31 = vsel %vm13195_vm14, %v10542_v12, %v2103_v25  ;;  %v2105_v9 = vrot.slane %v2103_v25, 4  ;;  %2255 = vst [vmem:[#allocation4 + $0x388] sm:$0xf] %v2223_v39  ;;  %2256 = vst [vmem:[#allocation4 + $0x3b0] sm:$0xf] %v2224_v42  ;;  %v2571_v55 = vrot.slane %v2570_v28, 4 }
 0x19c   : > { %v2298_v51 = vld [vmem:[#allocation2 + $0x9c] sm:$0xf]  ;;  %v12465_v44 = vld [vmem:[#allocation4 + $0x334] ss:$40 sps:$4 sm:$0xff]   ;;  %v12468_v30 = vld [vmem:[#allocation4 + $0x330] ss:$40 sps:$4 sm:$0xff]   ;;  %v2566_v57 = vsel %vm13004_vm8, %v2561_v15, %v2565_v4  ;;  %v11324_v4 = vadd.f32 %v11323_v3, %v11322_v52  ;;  %v4622_v36 = vadd.f32 %v11212_v37, %v13701_v53 }
 0x19d   : > { %2190 = vst [vmem:[#allocation4 + $0x384] sm:$0xf] %v2104_v31  ;;  %v12462_v63 = vld [vmem:[#allocation4 + $0x2ec] ss:$40 sps:$4 sm:$0xff]   ;;  %v12464_v56 = vld [vmem:[#allocation4 + $0x2e8] ss:$40 sps:$4 sm:$0xff]   ;;  %v2107_v0 = vsel %vm13195_vm14, %v2105_v9, %v2106_v50  ;;  %4946 = vmatprep.mubr.bf16.mxu0 %v12465_v44  ;;  %v2576_v1 = vsel %vm13004_vm8, %v2571_v55, %v2575_v17 }
 0x19e   : > { %v2578_v58 = vshrl.u32 %v2298_v51, 16  ;;  %2749 = vst [vmem:[#allocation4 + $0x33c] sm:$0xf] %v2566_v57  ;;  %2191 = vst [vmem:[#allocation4 + $0x3ac] sm:$0xf] %v2107_v0  ;;  %v2581_v61 = vshll.u32 %v2298_v51, 16  ;;  %5099 = vmatprep.mubr.bf16.mxu1 %v12462_v63  ;;  %4947 = vmatmul.mubr.bf16.gmra.mxu0 %v12468_v30  ;;  %v11213_v51 = vpop.f32.mrf.mxu0  ;;  %v13811_v55 = vadd.f32 %v11324_v4, %v4622_v36 }
 0x19f   : > { %v2299_v8 = vld [vmem:[#allocation2 + $0xa0] sm:$0xf]  ;;  %v2300_v16 = vld [vmem:[#allocation2 + $0xa4] sm:$0x1]  ;;  %2750 = vst [vmem:[#allocation4 + $0x364] sm:$0xf] %v2576_v1  ;;  %5100 = vmatmul.mubr.bf16.gmra.mxu1 %v12464_v56 }
 0x1a0   : > { %v2580_v12 = vrot.slane %v2578_v58, 4  ;;  %v2587_v25 = vshll.u32 %v2299_v8, 16  ;;  %v2591_v27 = vshrl.u32 %v2299_v8, 16  ;;  %v2597_v28 = vshll.u32 %v2300_v16, 16  ;;  %v954_v50 = vld [vmem:[%s12974_s9 + $0x60] sm:$0xf]  ;;  %v11214_v56 = vpop.f32.mrf.mxu0 }
 0x1a1   : > { %v2583_v39 = vrot.slane %v2581_v61, 5  ;;  %v955_v17 = vld [vmem:[%s12974_s9 + $0x64] sm:$0xf]  ;;  %986 = vst [vmem:[#allocation4 + $0x3d0] sm:$0xf] %v954_v50  ;;  %v11215_v3 = vadd.f32 %v11214_v56, %v11213_v51  ;;  %v11325_v61 = vpop.f32.mrf.mxu1 }
 0x1a2   : > { %v1964_v42 = vld [vmem:[#allocation2 + $0x9c] sm:$0xe]  ;;  %1018 = vst [vmem:[#allocation4 + $0x3e4] sm:$0xf] %v954_v50  ;;  %v2589_v48 = vrot.slane %v2587_v25, 5  ;;  %v2593_v15 = vrot.slane %v2591_v27, 4  ;;  %v11216_v4 = vpop.f32.mrf.mxu0 }
 0x1a3   : > { %987 = vst [vmem:[#allocation4 + $0x3f8] sm:$0xf] %v955_v17  ;;  %v1965_v31 = vld [vmem:[#allocation2 + $0xa0] sm:$0xf]  ;;  %v10543_v9 = vrot.slane %v1964_v42, 9  ;;  %v2584_v26 = vor.u32 %v2583_v39, %v2580_v12  ;;  %v2599_v52 = vrot.slane %v2597_v28, 5 }
 0x1a4   : > { %1019 = vst [vmem:[#allocation4 + $0x40c] sm:$0xf] %v955_v17  ;;  %v1966_v44 = vld [vmem:[#allocation2 + $0xa4] sm:$0x1]  ;;  %v2110_v30 = vrot.slane %v1965_v31, 5  ;;  %v2594_v46 = vor.u32 %v2593_v15, %v2589_v48  ;;  %v11326_v31 = vpop.f32.mrf.mxu1 }
 0x1a5   : > { %v2113_v62 = vrot.slane %v1966_v44, 5  ;;  %v2225_v63 = vld [vmem:[#allocation2 + $0xa8] sm:$0xf]  ;;  %v2585_v57 = vrot.slane %v2584_v26, 4  ;;  %v2226_v58 = vld [vmem:[#allocation2 + $0xac] sm:$0xf]  ;;  %v11327_v56 = vadd.f32 %v11326_v31, %v11325_v61 }
 0x1a6   : > { %v2111_v53 = vsel %vm13195_vm14, %v10543_v9, %v2110_v30  ;;  %v2112_v0 = vrot.slane %v2110_v30, 4  ;;  %2257 = vst [vmem:[#allocation4 + $0x3d8] sm:$0xf] %v2225_v63  ;;  %v2301_v37 = vld [vmem:[#allocation2 + $0xa8] sm:$0xf]  ;;  %v2595_v8 = vrot.slane %v2594_v46, 4  ;;  %v11217_v9 = vpop.f32.mrf.mxu0 }
 0x1a7   : > { %v12472_v1 = vld [vmem:[#allocation4 + $0x384] ss:$40 sps:$4 sm:$0xff]   ;;  %2192 = vst [vmem:[#allocation4 + $0x3d4] sm:$0xf] %v2111_v53  ;;  %2258 = vst [vmem:[#allocation4 + $0x400] sm:$0xf] %v2226_v58  ;;  %v2590_v27 = vsel %vm13004_vm8, %v2585_v57, %v2589_v48  ;;  %v11218_v57 = vadd.f32 %v11217_v9, %v11216_v4  ;;  %v11328_v53 = vpop.f32.mrf.mxu1 }
 0x1a8   : > { %v2602_v16 = vshrl.u32 %v2301_v37, 16  ;;  %v12469_v12 = vld [vmem:[#allocation4 + $0x33c] ss:$40 sps:$4 sm:$0xff]   ;;  %v12471_v25 = vld [vmem:[#allocation4 + $0x338] ss:$40 sps:$4 sm:$0xff]   ;;  %v2114_v28 = vsel %vm13195_vm14, %v2112_v0, %v2113_v62  ;;  %v2605_v50 = vshll.u32 %v2301_v37, 16  ;;  %4954 = vmatprep.mubr.bf16.mxu0 %v12472_v1  ;;  %v2600_v17 = vsel %vm13004_vm8, %v2595_v8, %v2599_v52 }
 0x1a9   : > { %v12474_v39 = vld [vmem:[#allocation4 + $0x380] ss:$40 sps:$4 sm:$0xff]   ;;  %2751 = vst [vmem:[#allocation4 + $0x38c] sm:$0xf] %v2590_v27  ;;  %2193 = vst [vmem:[#allocation4 + $0x3fc] sm:$0xf] %v2114_v28  ;;  %5107 = vmatprep.mubr.bf16.mxu1 %v12469_v12  ;;  %v11329_v28 = vpop.f32.mrf.mxu1 }
 0x1aa   : > { %v2302_v42 = vld [vmem:[#allocation2 + $0xac] sm:$0xf]  ;;  %v2303_v36 = vld [vmem:[#allocation2 + $0xb0] sm:$0x1]  ;;  %v13824_v15 = vld [vmem:[%s15758_s2] ss:$0 sm:$0xff]  ;;  %5108 = vmatmul.mubr.bf16.gmra.mxu1 %v12471_v25  ;;  %4955 = vmatmul.mubr.bf16.gmra.mxu0 %v12474_v39 }
 0x1ab   : > { %v4627_v48 = vadd.f32 %v13824_v15, %v11215_v3  ;;  %2752 = vst [vmem:[#allocation4 + $0x3b4] sm:$0xf] %v2600_v17  ;;  %v2604_v51 = vrot.slane %v2602_v16, 4  ;;  %v2607_v26 = vrot.slane %v2605_v50, 5  ;;  %v2611_v44 = vshll.u32 %v2302_v42, 16 }
 0x1ac   : > { %v2615_v52 = vshrl.u32 %v2302_v42, 16  ;;  %v956_v30 = vld [vmem:[%s12974_s9 + $0x68] sm:$0xf]  ;;  %v2621_v46 = vshll.u32 %v2303_v36, 16  ;;  %v957_v62 = vld [vmem:[%s12974_s9 + $0x6c] sm:$0xf]  ;;  %v4630_v42 = vadd.f32 %v13824_v15, %v11218_v57 }
 0x1ad   : > { %988 = vst [vmem:[#allocation4 + $0x420] sm:$0xf] %v956_v30  ;;  %v1967_v63 = vld [vmem:[#allocation2 + $0xa8] sm:$0xe]  ;;  %1020 = vst [vmem:[#allocation4 + $0x434] sm:$0xf] %v956_v30  ;;  %v2608_v0 = vor.u32 %v2607_v26, %v2604_v51  ;;  %v13829_v4 = vadd.f32 %v11327_v56, %v4627_v48 }
 0x1ae   : > { %v2613_v58 = vrot.slane %v2611_v44, 5  ;;  %v2617_v37 = vrot.slane %v2615_v52, 4  ;;  %989 = vst [vmem:[#allocation4 + $0x448] sm:$0xf] %v957_v62  ;;  %v1968_v3 = vld [vmem:[#allocation2 + $0xac] sm:$0xf]  ;;  %v11330_v44 = vadd.f32 %v11329_v28, %v11328_v53 }
 0x1af   : > { %v1969_v1 = vld [vmem:[#allocation2 + $0xb0] sm:$0x1]  ;;  %1021 = vst [vmem:[#allocation4 + $0x45c] sm:$0xf] %v957_v62  ;;  %v2623_v8 = vrot.slane %v2621_v46, 5  ;;  %v10544_v16 = vrot.slane %v1967_v63, 9 }
 0x1b0   : > { %v2117_v12 = vrot.slane %v1968_v3, 5  ;;  %v2120_v25 = vrot.slane %v1969_v1, 5  ;;  %v2227_v27 = vld [vmem:[#allocation2 + $0xb4] sm:$0xf]  ;;  %v2609_v50 = vrot.slane %v2608_v0, 4  ;;  %v2618_v39 = vor.u32 %v2617_v37, %v2613_v58  ;;  %15786 = vst [vmem:[#allocation9_spill] sm:$0xff] %v13829_v4 }
 0x1b1   : > { %v2228_v17 = vld [vmem:[#allocation2 + $0xb8] sm:$0xf]  ;;  %2259 = vst [vmem:[#allocation4 + $0x428] sm:$0xf] %v2227_v27  ;;  %v2304_v61 = vld [vmem:[#allocation2 + $0xb4] sm:$0xf]  ;;  %v13838_v0 = vadd.f32 %v11330_v44, %v4630_v42  ;;  %v11331_v42 = vpop.f32.mrf.mxu1 }
 0x1b2   : > { %v2118_v36 = vsel %vm13195_vm14, %v10544_v16, %v2117_v12  ;;  %v2119_v31 = vrot.slane %v2117_v12, 4  ;;  %2260 = vst [vmem:[#allocation4 + $0x450] sm:$0xf] %v2228_v17  ;;  %v2305_v9 = vld [vmem:[#allocation2 + $0xb8] sm:$0xf]  ;;  %v2626_v26 = vshrl.u32 %v2304_v61, 16  ;;  %v2614_v30 = vsel %vm13004_vm8, %v2609_v50, %v2613_v58  ;;  %v11219_v16 = vpop.f32.mrf.mxu0 }
 0x1b3   : > { %v2306_v51 = vld [vmem:[#allocation2 + $0xbc] sm:$0x1]  ;;  %v12478_v52 = vld [vmem:[#allocation4 + $0x3d4] ss:$40 sps:$4 sm:$0xff]   ;;  %v2619_v46 = vrot.slane %v2618_v39, 4  ;;  %v2629_v62 = vshll.u32 %v2304_v61, 16 }
 0x1b4   : > { %2194 = vst [vmem:[#allocation4 + $0x424] sm:$0xf] %v2118_v36  ;;  %v12475_v48 = vld [vmem:[#allocation4 + $0x38c] ss:$40 sps:$4 sm:$0xff]   ;;  %v12477_v63 = vld [vmem:[#allocation4 + $0x388] ss:$40 sps:$4 sm:$0xff]   ;;  %v2121_v56 = vsel %vm13195_vm14, %v2119_v31, %v2120_v25  ;;  %4962 = vmatprep.mubr.bf16.mxu0 %v12478_v52 }
 0x1b5   : > { %2753 = vst [vmem:[#allocation4 + $0x3dc] sm:$0xf] %v2614_v30  ;;  %v2628_v57 = vrot.slane %v2626_v26, 4  ;;  %15787 = vst [vmem:[#allocation10_spill] sm:$0xff] %v13838_v0  ;;  %v12481_v53 = vld [vmem:[#allocation4 + $0x3d0] ss:$40 sps:$4 sm:$0xff]   ;;  %v2624_v37 = vsel %vm13004_vm8, %v2619_v46, %v2623_v8  ;;  %5115 = vmatprep.mubr.bf16.mxu1 %v12475_v48  ;;  %v11220_v8 = vpop.f32.mrf.mxu0 }
 0x1b6   : > { %2195 = vst [vmem:[#allocation4 + $0x44c] sm:$0xf] %v2121_v56  ;;  %v2631_v58 = vrot.slane %v2629_v62, 5  ;;  %v2635_v3 = vshll.u32 %v2305_v9, 16  ;;  %v2639_v1 = vshrl.u32 %v2305_v9, 16  ;;  %v2645_v12 = vshll.u32 %v2306_v51, 16  ;;  %5116 = vmatmul.mubr.bf16.gmra.mxu1 %v12477_v63  ;;  %4963 = vmatmul.mubr.bf16.gmra.mxu0 %v12481_v53  ;;  %v11332_v62 = vpop.f32.mrf.mxu1 }
 0x1b7   : > { %2754 = vst [vmem:[#allocation4 + $0x404] sm:$0xf] %v2624_v37  ;;  %v958_v27 = vld [vmem:[%s12974_s9 + $0x70] sm:$0xf]  ;;  %v959_v28 = vld [vmem:[%s12974_s9 + $0x74] sm:$0xf]  ;;  %v11221_v51 = vadd.f32 %v11220_v8, %v11219_v16  ;;  %v11222_v46 = vpop.f32.mrf.mxu0  ;;  %v11333_v37 = vadd.f32 %v11332_v62, %v11331_v42 }
 0x1b8   : > { %v2632_v25 = vor.u32 %v2631_v58, %v2628_v57  ;;  %v2637_v50 = vrot.slane %v2635_v3, 5  ;;  %v2641_v39 = vrot.slane %v2639_v1, 4  ;;  %990 = vst [vmem:[#allocation4 + $0x470] sm:$0xf] %v958_v27  ;;  %991 = vst [vmem:[#allocation4 + $0x498] sm:$0xf] %v959_v28 }
 0x1b9   : > { %v1970_v17 = vld [vmem:[#allocation2 + $0xb4] sm:$0xe]  ;;  %v1971_v61 = vld [vmem:[#allocation2 + $0xb8] sm:$0xf]  ;;  %1022 = vst [vmem:[#allocation4 + $0x484] sm:$0xf] %v958_v27  ;;  %v4635_v53 = vadd.f32 %v13824_v15, %v11221_v51  ;;  %v11334_v27 = vpop.f32.mrf.mxu1 }
 0x1ba   : > { %1023 = vst [vmem:[#allocation4 + $0x4ac] sm:$0xf] %v959_v28  ;;  %v2647_v36 = vrot.slane %v2645_v12, 5  ;;  %v1972_v31 = vld [vmem:[#allocation2 + $0xbc] sm:$0x1]  ;;  %v10545_v9 = vrot.slane %v1970_v17, 9  ;;  %v2642_v52 = vor.u32 %v2641_v39, %v2637_v50  ;;  %v11223_v12 = vpop.f32.mrf.mxu0 }
 0x1bb   : > { %v2124_v26 = vrot.slane %v1971_v61, 5  ;;  %v2633_v44 = vrot.slane %v2632_v25, 4  ;;  %v2127_v30 = vrot.slane %v1972_v31, 5  ;;  %v340_v56 = vld [vmem:[#allocation2 + $0xc8] sm:$0x1]  ;;  %v13853_v17 = vadd.f32 %v11333_v37, %v4635_v53 }
 0x1bc   : > { %v2229_v57 = vld [vmem:[#allocation2 + $0xc0] sm:$0xf]  ;;  %v2643_v3 = vrot.slane %v2642_v52, 4  ;;  %v341_v1 = vsel %vm12943_vm4, 0, %v340_v56  ;;  %v2230_v16 = vld [vmem:[#allocation2 + $0xc4] sm:$0xf] }
 0x1bd   : > { %v2125_v48 = vsel %vm13195_vm14, %v10545_v9, %v2124_v26  ;;  %v2126_v63 = vrot.slane %v2124_v26, 4  ;;  %v2638_v58 = vsel %vm13004_vm8, %v2633_v44, %v2637_v50  ;;  %2261 = vst [vmem:[#allocation4 + $0x478] sm:$0xf] %v2229_v57  ;;  %v12485_v28 = vld [vmem:[#allocation4 + $0x424] ss:$40 sps:$4 sm:$0xff]   ;;  %15788 = vst [vmem:[#allocation11_spill] sm:$0xff] %v13853_v17  ;;  %v11224_v50 = vadd.f32 %v11223_v12, %v11222_v46  ;;  %v11335_v9 = vpop.f32.mrf.mxu1 }
 0x1be   : > { %2196 = vst [vmem:[#allocation4 + $0x474] sm:$0xf] %v2125_v48  ;;  %v12487_v25 = vld [vmem:[#allocation4 + $0x420] ss:$40 sps:$4 sm:$0xff]   ;;  %2755 = vst [vmem:[#allocation4 + $0x42c] sm:$0xf] %v2638_v58  ;;  %v2648_v31 = vsel %vm13004_vm8, %v2643_v3, %v2647_v36  ;;  %4970 = vmatprep.mubr.bf16.mxu0 %v12485_v28  ;;  %v11225_v36 = vpop.f32.mrf.mxu0 }
 0x1bf   : > { %v2128_v39 = vsel %vm13195_vm14, %v2126_v63, %v2127_v30  ;;  %342 = vst [vmem:[#allocation2 + $0xc8] sm:$0x1] %v341_v1  ;;  %2262 = vst [vmem:[#allocation4 + $0x4a0] sm:$0xf] %v2230_v16  ;;  %v766_v61 = vrot.slane %v13478_v23, 4  ;;  %v4638_v52 = vadd.f32 %v13824_v15, %v11224_v50  ;;  %v11336_v30 = vadd.f32 %v11335_v9, %v11334_v27 }
 0x1c0   : > { %v12482_v8 = vld [vmem:[#allocation4 + $0x3dc] ss:$40 sps:$4 sm:$0xff]   ;;  %v12484_v42 = vld [vmem:[#allocation4 + $0x3d8] ss:$40 sps:$4 sm:$0xff]   ;;  %2197 = vst [vmem:[#allocation4 + $0x49c] sm:$0xf] %v2128_v39  ;;  %4971 = vmatmul.mubr.bf16.gmra.mxu0 %v12487_v25  ;;  %v11226_v27 = vpop.f32.mrf.mxu0 }
 0x1c1   : > { %2756 = vst [vmem:[#allocation4 + $0x454] sm:$0xf] %v2648_v31  ;;  %v2307_v26 = vld [vmem:[#allocation2 + $0xc0] sm:$0xf]  ;;  %v2308_v51 = vld [vmem:[#allocation2 + $0xc4] sm:$0xf]  ;;  %5123 = vmatprep.mubr.bf16.mxu1 %v12482_v8  ;;  %v13861_v37 = vadd.f32 %v11336_v30, %v4638_v52  ;;  %v11337_v8 = vpop.f32.mrf.mxu1 }
 0x1c2   : > { %v960_v44 = vld [vmem:[%s12974_s9 + $0x78] sm:$0xf]  ;;  %v2650_v46 = vshrl.u32 %v2307_v26, 16  ;;  %v2653_v23 = vshll.u32 %v2307_v26, 16  ;;  %v2659_v62 = vshll.u32 %v2308_v51, 16  ;;  %v2663_v48 = vshrl.u32 %v2308_v51, 16  ;;  %5124 = vmatmul.mubr.bf16.gmra.mxu1 %v12484_v42 }
 0x1c3   : > { %v961_v63 = vld [vmem:[%s12974_s9 + $0x7c] sm:$0xf]  ;;  %992 = vst [vmem:[#allocation4 + $0x4c0] sm:$0xf] %v960_v44  ;;  %1024 = vst [vmem:[#allocation4 + $0x4d4] sm:$0xf] %v960_v44  ;;  %v11227_v51 = vadd.f32 %v11226_v27, %v11225_v36  ;;  %v11228_v44 = vpop.f32.mrf.mxu0 }
 0x1c4   : > { %993 = vst [vmem:[#allocation4 + $0x4e8] sm:$0xf] %v961_v63  ;;  %v1973_v56 = vld [vmem:[#allocation2 + $0xc0] sm:$0xe]  ;;  %v1974_v57 = vld [vmem:[#allocation2 + $0xc4] sm:$0xf] }
 0x1c5   : > { %1025 = vst [vmem:[#allocation4 + $0x4fc] sm:$0xf] %v961_v63  ;;  %v287_v53 = vld [vmem:[#allocation2 + $0xcc] sm:$0x1]  ;;  %15789 = vst [vmem:[#allocation12_spill] sm:$0xff] %v13861_v37  ;;  %v2652_v58 = vrot.slane %v2650_v46, 4 }
 0x1c6   : > { %v2655_v3 = vrot.slane %v2653_v23, 5  ;;  %v2661_v1 = vrot.slane %v2659_v62, 5  ;;  %v2665_v16 = vrot.slane %v2663_v48, 4  ;;  %v343_v12 = vld [vmem:[#allocation2 + $0xd4] sm:$0x1]  ;;  %v10546_v28 = vrot.slane %v1973_v56, 9  ;;  %v11338_v62 = vpop.f32.mrf.mxu1 }
 0x1c7   : > { %v2131_v25 = vrot.slane %v1974_v57, 5  ;;  %v288_v39 = vsel %vm12932_vm3, 0, %v287_v53  ;;  %v344_v50 = vsel %vm12943_vm4, 0, %v343_v12  ;;  %v12519_v42 = vld [vmem:[%s15759_s3 + $0x78] sm:$0xff]   ;;  %v927_v31 = vld [vmem:[#allocation2 + $0xc8] sm:$0x1]  ;;  %v4643_v53 = vadd.f32 %v13824_v15, %v11227_v51 }
 0x1c8   : > { %v2656_v9 = vor.u32 %v2655_v3, %v2652_v58  ;;  %289 = vst [vmem:[#allocation2 + $0xcc] sm:$0x1] %v288_v39  ;;  %345 = vst [vmem:[#allocation2 + $0xd4] sm:$0x1] %v344_v50  ;;  %v404_v26 = vld [vmem:[#allocation3 + $0xcc] sm:$0x1]  ;;  %v928_v46 = vsel %vm12932_vm3, %v766_v61, %v927_v31  ;;  %11609 = vmatprep.subr.bf16.mxu1 %v12519_v42  ;;  %v2666_v57 = vor.u32 %v2665_v16, %v2661_v1  ;;  %v11229_v58 = vpop.f32.mrf.mxu0 }
 0x1c9   : > { %v12491_v52 = vld [vmem:[#allocation4 + $0x474] ss:$40 sps:$4 sm:$0xff]   ;;  %v12494_v30 = vld [vmem:[#allocation4 + $0x470] ss:$40 sps:$4 sm:$0xff]   ;;  %v2132_v23 = vsel %vm13195_vm14, %v10546_v28, %v2131_v25  ;;  %929 = vst [vmem:[#allocation2 + $0xc8] sm:$0x1] %v928_v46  ;;  %v11339_v36 = vadd.f32 %v11338_v62, %v11337_v8  ;;  %v11230_v27 = vadd.f32 %v11229_v58, %v11228_v44  ;;  %v11340_v28 = vpop.f32.mrf.mxu1 }
 0x1ca   : > { %v12488_v48 = vld [vmem:[#allocation4 + $0x42c] ss:$40 sps:$4 sm:$0xff]   ;;  %v12490_v63 = vld [vmem:[#allocation4 + $0x428] ss:$40 sps:$4 sm:$0xff]   ;;  %v2657_v56 = vrot.slane %v2656_v9, 4  ;;  %4978 = vmatprep.mubr.bf16.mxu0 %v12491_v52  ;;  %v405_v3 = vsel %vm12932_vm3, 0, %v404_v26  ;;  %v11231_v58 = vpop.f32.mrf.mxu0 }
 0x1cb   : > { %2198 = vst [vmem:[#allocation4 + $0x4c4] sm:$0xf] %v2132_v23  ;;  %v458_v61 = vld [vmem:[#allocation3 + $0xd4] sm:$0x1]  ;;  %v2232_v12 = vld [vmem:[#allocation2 + $0xd0] sm:$0xf]  ;;  %5131 = vmatprep.mubr.bf16.mxu1 %v12488_v48  ;;  %4979 = vmatmul.mubr.bf16.gmra.mxu0 %v12494_v30  ;;  %v13881_v8 = vadd.f32 %v11339_v36, %v4643_v53  ;;  %v11341_v44 = vpop.f32.mrf.mxu1 }
 0x1cc   : > { %v2662_v39 = vsel %vm13004_vm8, %v2657_v56, %v2661_v1  ;;  %406 = vst [vmem:[#allocation3 + $0xcc] sm:$0x1] %v405_v3  ;;  %v459_v16 = vsel %vm12943_vm4, 0, %v458_v61  ;;  %2264 = vst [vmem:[#allocation4 + $0x4f0] sm:$0xf] %v2232_v12  ;;  %v12520_v42 = vld [vmem:[%s15759_s3 + $0x38] sm:$0xff]   ;;  %5132 = vmatmul.mubr.bf16.gmra.mxu1 %v12490_v63  ;;  %v4646_v1 = vadd.f32 %v13824_v15, %v11230_v27 }
 0x1cd   : > { %v2311_v50 = vld [vmem:[#allocation2 + $0xd0] sm:$0xf]  ;;  %15790 = vst [vmem:[#allocation13_spill] sm:$0xff] %v13881_v8  ;;  %2757 = vst [vmem:[#allocation4 + $0x47c] sm:$0xf] %v2662_v39  ;;  %v2133_v31 = vrot.slane %v2131_v25, 4  ;;  %v11342_v23 = vadd.f32 %v11341_v44, %v11340_v28  ;;  %11610 = vmatpush3.bf16.msra.mxu1 %v12520_v42  ;;  %v11232_v42 = vpop.f32.mrf.mxu0 }
 0x1ce   : > { %460 = vst [vmem:[#allocation3 + $0xd4] sm:$0x1] %v459_v16  ;;  %v2683_v9 = vshll.u32 %v2311_v50, 16  ;;  %v2687_v26 = vshrl.u32 %v2311_v50, 16  ;;  %v7285_v51 = vld [vmem:[#allocation3 + $0xd0] sm:$0xf]  ;;  %v13893_v20 = vadd.f32 %v11232_v42, %v11231_v58 }
 0x1cf   : > { %v2667_v52 = vrot.slane %v2666_v57, 4  ;;  %v7657_v30 = vshll.u32 %v7285_v51, 16  ;;  %v7661_v46 = vshrl.u32 %v7285_v51, 16  ;;  %v2231_v62 = vld [vmem:[#allocation2 + $0xcc] sm:$0xf]  ;;  %v13887_v39 = vadd.f32 %v11342_v23, %v4646_v1  ;;  %v13899_v8 = vpop.f32.mrf.mxu0 }
 0x1d0   : > { %v2310_v48 = vld [vmem:[#allocation2 + $0xcc] sm:$0xf]  ;;  %v2312_v56 = vld [vmem:[#allocation2 + $0xd4] sm:$0x1]  ;;  %2263 = vst [vmem:[#allocation4 + $0x4c8] sm:$0xf] %v2231_v62 }
 0x1d1   : > { %v2674_v53 = vshrl.u32 %v2310_v48, 16  ;;  %v2677_v63 = vshll.u32 %v2310_v48, 16  ;;  %v2685_v36 = vrot.slane %v2683_v9, 5  ;;  %v2689_v25 = vrot.slane %v2687_v26, 4  ;;  %v2309_v3 = vld [vmem:[#allocation2 + $0xc8] sm:$0x1] }
 0x1d2   : > { %v1975_v61 = vld [vmem:[#allocation2 + $0xc8] sm:$0x1]  ;;  %v2693_v12 = vshll.u32 %v2312_v56, 16  ;;  %15791 = vst [vmem:[#allocation14_spill] sm:$0xff] %v13887_v39  ;;  %v2669_v27 = vshll.u32 %v2309_v3, 16  ;;  %v13889_v62 = vrot.slane %v7657_v30, 5  ;;  %v13895_v56 = vpop.f32.mrf.mxu1 }
 0x1d3   : > { %v2134_v57 = vrot.slane %v1975_v61, 5  ;;  %v2676_v16 = vrot.slane %v2674_v53, 4  ;;  %v2679_v50 = vrot.slane %v2677_v63, 5  ;;  %v2761_v28 = vld [vmem:[#allocation2 + $0x18] sm:$0xe]  ;;  %v2690_v51 = vor.u32 %v2689_v25, %v2685_v36 }
 0x1d4   : > { %v2695_v44 = vrot.slane %v2693_v12, 5  ;;  %v7284_v22 = vld [vmem:[#allocation3 + $0xcc] sm:$0xf]  ;;  %v2762_v48 = vld [vmem:[#allocation2 + $0x1c] sm:$0xf]  ;;  %v2671_v1 = vrot.slane %v2669_v27, 5  ;;  %v13901_v37 = vpop.f32.mrf.mxu1 }
 0x1d5   : > { %v13891_v9 = vld [vmem:[#allocation2 + $0x20] sm:$0x1]  ;;  %v2764_v26 = vld [vmem:[#allocation2 + $0x24] sm:$0xe]  ;;  %v2135_v23 = vsel %vm13195_vm14, %v2133_v31, %v2134_v57  ;;  %v2680_v53 = vor.u32 %v2679_v50, %v2676_v16  ;;  %v7286_v63 = vld [vmem:[#allocation3 + $0xd4] sm:$0x1]  ;;  %v11345_v59 = vadd.f32 %v13901_v37, %v13895_v56 }
 0x1d6   : > { %v7648_v3 = vshrl.u32 %v7284_v22, 16  ;;  %2199 = vst [vmem:[#allocation4 + $0x4ec] sm:$0xf] %v2135_v23  ;;  %v2691_v25 = vrot.slane %v2690_v51, 4  ;;  %v7651_v61 = vshll.u32 %v7284_v22, 16  ;;  %v7663_v30 = vrot.slane %v7661_v46, 4  ;;  %v11346_v23 = vpop.f32.mrf.mxu1 }
 0x1d7   : > { %v7667_v12 = vshll.u32 %v7286_v63, 16  ;;  %v2765_v39 = vld [vmem:[#allocation2 + $0x28] sm:$0xf]  ;;  %v2672_v58 = vsel %vm13004_vm8, %v2667_v52, %v2671_v1  ;;  %v2681_v27 = vrot.slane %v2680_v53, 4  ;;  %v10547_v17 = vrot.slane %v2761_v28, 9 }
 0x1d8   : > { %v7650_v42 = vrot.slane %v7648_v3, 4  ;;  %v2766_v31 = vld [vmem:[#allocation2 + $0x2c] sm:$0x1]  ;;  %2758 = vst [vmem:[#allocation4 + $0x4a4] sm:$0xf] %v2672_v58  ;;  %v2696_v57 = vsel %vm13004_vm8, %v2691_v25, %v2695_v44  ;;  %v7653_v16 = vrot.slane %v7651_v61, 5  ;;  %v7664_v22 = vor.u32 %v7663_v30, %v13889_v62 }
 0x1d9   : > { %v13908_v46 = vrot.slane %v7667_v12, 5  ;;  %v2767_v50 = vld [vmem:[#allocation2 + $0x30] sm:$0xe]  ;;  %v2768_v51 = vld [vmem:[#allocation2 + $0x34] sm:$0xf]  ;;  %v2686_v63 = vsel %vm13004_vm8, %v2681_v27, %v2685_v36  ;;  %v2859_v52 = vrot.slane %v2762_v48, 5  ;;  %v11235_v36 = vpop.f32.mrf.mxu0 }
 0x1da   : > { %2760 = vst [vmem:[#allocation4 + $0x4f4] sm:$0xf] %v2696_v57  ;;  %v2862_v28 = vrot.slane %v13891_v9, 5  ;;  %v10548_v1 = vrot.slane %v2764_v26, 9  ;;  %v2769_v53 = vld [vmem:[#allocation2 + $0x38] sm:$0x1]  ;;  %v7654_v25 = vor.u32 %v7653_v16, %v7650_v42 }
 0x1db   : > { %v13913_v3 = vld [vmem:[#allocation2 + $0x3c] sm:$0xe]  ;;  %v12521_v44 = vld [vmem:[%s15759_s3 + $0x70] sm:$0xff]   ;;  %2759 = vst [vmem:[#allocation4 + $0x4cc] sm:$0xf] %v2686_v63  ;;  %v13918_v61 = vrot.slane %v7664_v22, 4  ;;  %v2860_v9 = vsel %vm13195_vm14, %v10547_v17, %v2859_v52  ;;  %v11347_v63 = vpop.f32.mrf.mxu1 }
 0x1dc   : > { %v2866_v30 = vrot.slane %v2765_v39, 5  ;;  %v2869_v12 = vrot.slane %v2766_v31, 5  ;;  %v2771_v58 = vld [vmem:[#allocation2 + $0x40] sm:$0xf]  ;;  %v12522_v48 = vld [vmem:[%s15759_s3 + $0x30] sm:$0xff]   ;;  %v2861_v26 = vrot.slane %v2859_v52, 4  ;;  %11611 = vmatprep.subr.bf16.mxu1 %v12521_v44 }
 0x1dd   : > { %v10549_v27 = vrot.slane %v2767_v50, 9  ;;  %v2873_v57 = vrot.slane %v2768_v51, 5  ;;  %v13925_v0 = vld [vmem:[#allocation2 + $0x44] sm:$0x1]  ;;  %v7655_v42 = vrot.slane %v7654_v25, 4  ;;  %v7670_v39 = vsel %vm13004_vm8, %v13918_v61, %v13908_v46  ;;  %11612 = vmatpush3.bf16.msra.mxu1 %v12522_v48 }
 0x1de   : > { %3001 = vst [vmem:[#allocation4 + $0x20] sm:$0xf] %v2860_v9  ;;  %v2867_v31 = vsel %vm13195_vm14, %v10548_v1, %v2866_v30  ;;  %v2868_v16 = vrot.slane %v2866_v30, 4  ;;  %v2773_v22 = vld [vmem:[#allocation2 + $0x48] sm:$0xe]  ;;  %v2863_v44 = vsel %vm13195_vm14, %v2861_v26, %v2862_v28  ;;  %v4651_v61 = vadd.f32 %v13824_v15, %v13893_v20  ;;  %v11237_v26 = vpop.f32.mrf.mxu0 }
 0x1df   : > { %v2774_v17 = vld [vmem:[#allocation2 + $0x4c] sm:$0xf]  ;;  %v12498_v50 = vld [vmem:[#allocation4 + $0x4c4] ss:$40 sps:$4 sm:$0xff]   ;;  %v12500_v51 = vld [vmem:[#allocation4 + $0x4c0] ss:$40 sps:$4 sm:$0xff]   ;;  %v2874_v25 = vsel %vm13195_vm14, %v10549_v27, %v2873_v57  ;;  %v7660_v1 = vsel %vm13004_vm8, %v7655_v42, %v13889_v62  ;;  %v11236_v62 = vadd.f32 %v11235_v36, %v13899_v8  ;;  %v11348_v42 = vadd.f32 %v11347_v63, %v11346_v23 }
 0x1e0   : > { %v7205_v52 = vld [vmem:[#allocation3 + $0xcc] sm:$0xf]  ;;  %v7206_v4 = vld [vmem:[#allocation3 + $0xd0] sm:$0xf]  ;;  %3003 = vst [vmem:[#allocation4 + $0x70] sm:$0xf] %v2867_v31  ;;  %v2870_v30 = vsel %vm13195_vm14, %v2868_v16, %v2869_v12  ;;  %4986 = vmatprep.mubr.bf16.mxu0 %v12498_v50  ;;  %v13957_v23 = vadd.f32 %v11345_v59, %v4651_v61 }
 0x1e1   : > { %v2875_v46 = vrot.slane %v2873_v57, 4  ;;  %3002 = vst [vmem:[#allocation4 + $0x48] sm:$0xf] %v2863_v44  ;;  %v2876_v48 = vrot.slane %v2769_v53, 5  ;;  %3005 = vst [vmem:[#allocation4 + $0xc0] sm:$0xf] %v2874_v25  ;;  %v11349_v44 = vpop.f32.mrf.mxu1  ;;  %4987 = vmatmul.mubr.bf16.gmra.mxu0 %v12500_v51  ;;  %v4654_v36 = vadd.f32 %v13824_v15, %v11236_v62 }
 0x1e2   : > { %v10550_v28 = vrot.slane %v13913_v3, 9  ;;  %v2775_v9 = vld [vmem:[#allocation2 + $0x50] sm:$0x1]  ;;  %v2776_v31 = vld [vmem:[#allocation2 + $0x54] sm:$0xe]  ;;  %v2880_v20 = vrot.slane %v2771_v58, 5 }
 0x1e3   : > { %v12495_v27 = vld [vmem:[#allocation4 + $0x47c] ss:$40 sps:$4 sm:$0xff]   ;;  %v12497_v57 = vld [vmem:[#allocation4 + $0x478] ss:$40 sps:$4 sm:$0xff]   ;;  %3004 = vst [vmem:[#allocation4 + $0x98] sm:$0xf] %v2870_v30  ;;  %v2877_v3 = vsel %vm13195_vm14, %v2875_v46, %v2876_v48  ;;  %v11238_v30 = vpop.f32.mrf.mxu0  ;;  %v11350_v51 = vpop.f32.mrf.mxu1  ;;  %v13964_v61 = vadd.f32 %v11348_v42, %v4654_v36 }
 0x1e4   : > { %v13948_v53 = vld [vmem:[#allocation4 + $0x4f0] sm:$0xff]  ;;  %v2883_v12 = vrot.slane %v13925_v0, 5  ;;  %v10551_v16 = vrot.slane %v2773_v22, 9  ;;  %v2887_v25 = vrot.slane %v2774_v17, 5  ;;  %v2777_v50 = vld [vmem:[#allocation2 + $0x58] sm:$0xf]  ;;  %5139 = vmatprep.mubr.bf16.mxu1 %v12495_v27  ;;  %v2881_v8 = vsel %vm13195_vm14, %v10550_v28, %v2880_v20 }
 0x1e5   : > { %v13953_v58 = vld [vmem:[#allocation4 + $0x4c8] sm:$0xff]  ;;  %3006 = vst [vmem:[#allocation4 + $0xe8] sm:$0xf] %v2877_v3  ;;  %v2882_v56 = vrot.slane %v2880_v20, 4  ;;  %5140 = vmatmul.mubr.bf16.gmra.mxu1 %v12497_v57  ;;  %7238 = vst [vmem:[#allocation4 + $0x4f0] sm:$0xf] %v7206_v4  ;;  %v11240_v46 = vpop.f32.mrf.mxu0  ;;  %v11351_v20 = vadd.f32 %v11350_v51, %v11349_v44 }
 0x1e6   : > { %v12501_v37 = vld [vmem:[#allocation4 + $0x4cc] ss:$40 sps:$4 sm:$0xff]   ;;  %7237 = vst [vmem:[#allocation4 + $0x4c8] sm:$0xf] %v7205_v52  ;;  %3007 = vst [vmem:[#allocation4 + $0x110] sm:$0xf] %v2881_v8  ;;  %v2888_v0 = vsel %vm13195_vm14, %v10551_v16, %v2887_v25  ;;  %v10705_v16 = vcombine.low %v13953_v58, %v13948_v53 }
 0x1e7   : > { %v2778_v63 = vld [vmem:[#allocation2 + $0x5c] sm:$0x1]  ;;  %7733 = vst [vmem:[#allocation4 + $0x4cc] sm:$0xf] %v7660_v1  ;;  %7734 = vst [vmem:[#allocation4 + $0x4f4] sm:$0xf] %v7670_v39  ;;  %5147 = vmatprep.mubr.bf16.mxu1 %v12501_v37  ;;  %v2884_v59 = vsel %vm13195_vm14, %v2882_v56, %v2883_v12  ;;  %v11352_v1 = vpop.f32.mrf.mxu1  ;;  %v11241_v62 = vpop.f32.mrf.mxu0 }
 0x1e8   : > { %v2889_v22 = vrot.slane %v2887_v25, 4  ;;  %v2890_v17 = vrot.slane %v2775_v9, 5  ;;  %v2779_v48 = vld [vmem:[#allocation2 + $0x60] sm:$0xe]  ;;  %v2780_v28 = vld [vmem:[#allocation2 + $0x64] sm:$0xf]  ;;  %v11239_v9 = vadd.f32 %v11238_v30, %v11237_v26  ;;  %v11242_v42 = vadd.f32 %v11241_v62, %v11240_v46 }
 0x1e9   : > { %3009 = vst [vmem:[#allocation4 + $0x160] sm:$0xf] %v2888_v0  ;;  %v10552_v52 = vrot.slane %v2776_v31, 9  ;;  %v2894_v4 = vrot.slane %v2777_v50, 5  ;;  %v2781_v39 = vld [vmem:[#allocation2 + $0x68] sm:$0x1]  ;;  %v11353_v25 = vpop.f32.mrf.mxu1 }
 0x1ea   : > { %3008 = vst [vmem:[#allocation4 + $0x138] sm:$0xf] %v2884_v59  ;;  %v2891_v27 = vsel %vm13195_vm14, %v2889_v22, %v2890_v17  ;;  %v2897_v57 = vrot.slane %v2778_v63, 5  ;;  %v2782_v3 = vld [vmem:[#allocation2 + $0x6c] sm:$0xe]  ;;  %v4659_v8 = vadd.f32 %v13824_v15, %v11239_v9  ;;  %v10553_v56 = vrot.slane %v2779_v48, 9 }
 0x1eb   : > { %v12503_v12 = vld [vmem:[#allocation4 + $0x20] ss:$40 sps:$4 sm:$0xff]   ;;  %3010 = vst [vmem:[#allocation4 + $0x188] sm:$0xf] %v2891_v27  ;;  %v2895_v31 = vsel %vm13195_vm14, %v10552_v52, %v2894_v4  ;;  %v12504_v50 = vld [vmem:[#allocation4 + $0x70] ss:$40 sps:$4 sm:$0xff]   ;;  %v11354_v26 = vadd.f32 %v11353_v25, %v11352_v1  ;;  %v4662_v44 = vadd.f32 %v13824_v15, %v11242_v42  ;;  %v11243_v42 = vpop.f32.mrf.mxu0 }
 0x1ec   : > { %v2896_v37 = vrot.slane %v2894_v4, 4  ;;  %3011 = vst [vmem:[#allocation4 + $0x1b0] sm:$0xf] %v2895_v31  ;;  %12185 = vmatprep.mubr.bf16.mxu0 %v12503_v12  ;;  %v2901_v30 = vrot.slane %v2780_v28, 5  ;;  %v2904_v36 = vrot.slane %v2781_v39, 5  ;;  %v13976_v0 = vadd.f32 %v11351_v20, %v4659_v8  ;;  %v11355_v20 = vpop.f32.mrf.mxu1 }
 0x1ed   : > { %v2783_v53 = vld [vmem:[#allocation2 + $0x70] sm:$0xf]  ;;  %v2784_v58 = vld [vmem:[#allocation2 + $0x74] sm:$0x1]  ;;  %12186 = vmatmul.mubr.bf16.vlgmr.msra.gmra.mxu0 %v12504_v50  ;;  %v10554_v22 = vrot.slane %v2782_v3, 9  ;;  %v13980_v59 = vadd.f32 %v11354_v26, %v4662_v44  ;;  %5148 = vmatmul.mubr.bf16.gmra.mxu1 %v10705_v16 }
 0x1ee   : > { %v12505_v63 = vld [vmem:[#allocation4 + $0xc0] ss:$40 sps:$4 sm:$0xff]   ;;  %v2898_v51 = vsel %vm13195_vm14, %v2896_v37, %v2897_v57  ;;  %v2908_v17 = vrot.slane %v2783_v53, 5  ;;  %v2902_v46 = vsel %vm13195_vm14, %v10553_v56, %v2901_v30  ;;  %v2903_v48 = vrot.slane %v2901_v30, 4  ;;  %v2786_v39 = vld [vmem:[#allocation2 + $0x7c] sm:$0xf]  ;;  %v11356_v25 = vpop.f32.mrf.mxu1  ;;  %v11244_v53 = vpop.f32.mrf.mxu0 }
 0x1ef   : > { %3012 = vst [vmem:[#allocation4 + $0x1d8] sm:$0xf] %v2898_v51  ;;  %v2911_v28 = vrot.slane %v2784_v58, 5  ;;  %v2785_v52 = vld [vmem:[#allocation2 + $0x78] sm:$0xe]  ;;  %12189 = vmatprep.mubr.bf16.mxu0 %v12505_v63  ;;  %v2915_v12 = vrot.slane %v2786_v39, 5  ;;  %v11357_v8 = vadd.f32 %v11356_v25, %v11355_v20 }
 0x1f0   : > { %3013 = vst [vmem:[#allocation4 + $0x200] sm:$0xf] %v2902_v46  ;;  %v2909_v4 = vsel %vm13195_vm14, %v10554_v22, %v2908_v17  ;;  %v2910_v1 = vrot.slane %v2908_v17, 4  ;;  %v10555_v27 = vrot.slane %v2785_v52, 9  ;;  %v2905_v9 = vsel %vm13195_vm14, %v2903_v48, %v2904_v36  ;;  %v2787_v62 = vld [vmem:[#allocation2 + $0x80] sm:$0x1]  ;;  %v11358_v58 = vpop.f32.mrf.mxu1 }
 0x1f1   : > { %v12506_v57 = vld [vmem:[#allocation4 + $0x110] ss:$40 sps:$4 sm:$0xff]   ;;  %3015 = vst [vmem:[#allocation4 + $0x250] sm:$0xf] %v2909_v4  ;;  %3014 = vst [vmem:[#allocation4 + $0x228] sm:$0xf] %v2905_v9  ;;  %v11245_v46 = vadd.f32 %v11244_v53, %v11243_v42  ;;  %v11246_v4 = vpop.f32.mrf.mxu0 }
 0x1f2   : > { %v12507_v3 = vld [vmem:[#allocation4 + $0x160] ss:$40 sps:$4 sm:$0xff]   ;;  %v2912_v16 = vsel %vm13195_vm14, %v2910_v1, %v2911_v28  ;;  %v2918_v31 = vrot.slane %v2787_v62, 5  ;;  %v2788_v50 = vld [vmem:[#allocation2 + $0x84] sm:$0xe]  ;;  %v2916_v56 = vsel %vm13195_vm14, %v10555_v27, %v2915_v12  ;;  %v2917_v26 = vrot.slane %v2915_v12, 4  ;;  %v11359_v1 = vpop.f32.mrf.mxu1 }
 0x1f3   : > { %3016 = vst [vmem:[#allocation4 + $0x278] sm:$0xf] %v2912_v16  ;;  %v2789_v37 = vld [vmem:[#allocation2 + $0x88] sm:$0xf]  ;;  %v2790_v44 = vld [vmem:[#allocation2 + $0x8c] sm:$0x1]  ;;  %v4667_v62 = vadd.f32 %v13824_v15, %v11245_v46  ;;  %v11247_v42 = vpop.f32.mrf.mxu0  ;;  %v11360_v25 = vadd.f32 %v11359_v1, %v11358_v58 }
 0x1f4   : > { %v10556_v30 = vrot.slane %v2788_v50, 9  ;;  %v2791_v36 = vld [vmem:[#allocation2 + $0x90] sm:$0xe]  ;;  %3017 = vst [vmem:[#allocation4 + $0x2a0] sm:$0xf] %v2916_v56  ;;  %v2922_v63 = vrot.slane %v2789_v37, 5  ;;  %v2919_v48 = vsel %vm13195_vm14, %v2917_v26, %v2918_v31 }
 0x1f5   : > { %v2925_v51 = vrot.slane %v2790_v44, 5  ;;  %v2792_v22 = vld [vmem:[#allocation2 + $0x94] sm:$0xf]  ;;  %v2793_v17 = vld [vmem:[#allocation2 + $0x98] sm:$0x1]  ;;  %12190 = vmatmul.mubr.bf16.gmra.mxu0 %v12506_v57  ;;  %v10557_v28 = vrot.slane %v2791_v36, 9  ;;  %v14002_v26 = vadd.f32 %v11357_v8, %v4667_v62  ;;  %v11248_v44 = vadd.f32 %v11247_v42, %v11246_v4  ;;  %v11265_v58 = vpop.f32.mrf.mxu0 }
 0x1f6   : > { %v2929_v52 = vrot.slane %v2792_v22, 5  ;;  %12193 = vmatprep.mubr.bf16.mxu0 %v12507_v3  ;;  %3018 = vst [vmem:[#allocation4 + $0x2c8] sm:$0xf] %v2919_v48  ;;  %v2923_v39 = vsel %vm13195_vm14, %v10556_v30, %v2922_v63  ;;  %v2924_v27 = vrot.slane %v2922_v63, 4  ;;  %v2932_v9 = vrot.slane %v2793_v17, 5  ;;  %v12523_v3 = vld [vmem:[%s15759_s3 + $0x68] sm:$0xff]  }
 0x1f7   : > { %v2794_v20 = vld [vmem:[#allocation2 + $0x9c] sm:$0xe]  ;;  %3019 = vst [vmem:[#allocation4 + $0x2f0] sm:$0xf] %v2923_v39  ;;  %v2795_v12 = vld [vmem:[#allocation2 + $0xa0] sm:$0xf]  ;;  %11613 = vmatprep.subr.bf16.mxu1 %v12523_v3  ;;  %v11158_v8 = vadd.f32 %v13568_v47, %v13558_v41  ;;  %v4670_v46 = vadd.f32 %v13824_v15, %v11248_v44  ;;  %v4547_v4 = vadd.f32 %v13824_v15, %v13537_v11  ;;  %v11266_v1 = vpop.f32.mrf.mxu0 }
 0x1f8   : > { %v2930_v57 = vsel %vm13195_vm14, %v10557_v28, %v2929_v52  ;;  %v2931_v16 = vrot.slane %v2929_v52, 4  ;;  %v12508_v31 = vld [vmem:[#allocation4 + $0x1b0] ss:$40 sps:$4 sm:$0xff]   ;;  %v2926_v50 = vsel %vm13195_vm14, %v2924_v27, %v2925_v51  ;;  %v2796_v37 = vld [vmem:[#allocation2 + $0xa4] sm:$0x1]  ;;  %15792 = vst [vmem:[#allocation15_spill] sm:$0xff] %v14002_v26  ;;  %v11267_v41 = vadd.f32 %v11266_v1, %v11265_v58 }
 0x1f9   : > { %3021 = vst [vmem:[#allocation4 + $0x340] sm:$0xf] %v2930_v57  ;;  %v12509_v56 = vld [vmem:[#allocation4 + $0x200] ss:$40 sps:$4 sm:$0xff]   ;;  %3020 = vst [vmem:[#allocation4 + $0x318] sm:$0xf] %v2926_v50  ;;  %v14016_v57 = vadd.f32 %v11360_v25, %v4670_v46 }
 0x1fa   : > { %v2933_v30 = vsel %vm13195_vm14, %v2931_v16, %v2932_v9  ;;  %v10558_v36 = vrot.slane %v2794_v20, 9  ;;  %v12524_v53 = vld [vmem:[%s15759_s3 + $0x28] sm:$0xff]   ;;  %v2936_v63 = vrot.slane %v2795_v12, 5  ;;  %v2939_v51 = vrot.slane %v2796_v37, 5  ;;  %v2799_v48 = vld [vmem:[#allocation2 + $0xb0] sm:$0x1]  ;;  %v11268_v12 = vpop.f32.mrf.mxu0 }
 0x1fb   : > { %3022 = vst [vmem:[#allocation4 + $0x368] sm:$0xf] %v2933_v30  ;;  %v2797_v22 = vld [vmem:[#allocation2 + $0xa8] sm:$0xe]  ;;  %v2798_v17 = vld [vmem:[#allocation2 + $0xac] sm:$0xf]  ;;  %11614 = vmatpush3.bf16.msra.mxu1 %v12524_v53  ;;  %v14022_v50 = vadd.f32 %v11267_v41, %v4547_v4 }
 0x1fc   : > { %v10559_v28 = vrot.slane %v2797_v22, 9  ;;  %v2943_v52 = vrot.slane %v2798_v17, 5  ;;  %v2937_v39 = vsel %vm13195_vm14, %v10558_v36, %v2936_v63  ;;  %v2938_v27 = vrot.slane %v2936_v63, 4  ;;  %v2800_v20 = vld [vmem:[#allocation2 + $0xb4] sm:$0xe]  ;;  %15793 = vst [vmem:[#allocation16_spill] sm:$0xff] %v14016_v57  ;;  %v11269_v30 = vpop.f32.mrf.mxu0 }
 0x1fd   : > { %v2946_v9 = vrot.slane %v2799_v48, 5  ;;  %v2801_v62 = vld [vmem:[#allocation2 + $0xb8] sm:$0xf]  ;;  %12194 = vmatmul.mubr.bf16.gmra.mxu0 %v12508_v31  ;;  %3023 = vst [vmem:[#allocation4 + $0x390] sm:$0xf] %v2937_v39  ;;  %v10560_v3 = vrot.slane %v2800_v20, 9  ;;  %v11270_v22 = vadd.f32 %v11269_v30, %v11268_v12 }
 0x1fe   : > { %v2944_v47 = vsel %vm13195_vm14, %v10559_v28, %v2943_v52  ;;  %v2945_v16 = vrot.slane %v2943_v52, 4  ;;  %12197 = vmatprep.mubr.bf16.mxu0 %v12509_v56  ;;  %v2940_v11 = vsel %vm13195_vm14, %v2938_v27, %v2939_v51  ;;  %v2802_v15 = vld [vmem:[#allocation2 + $0xbc] sm:$0x1]  ;;  %v2950_v42 = vrot.slane %v2801_v62, 5  ;;  %v2803_v37 = vld [vmem:[#allocation2 + $0xc0] sm:$0xe]  ;;  %v11271_v46 = vpop.f32.mrf.mxu0 }
 0x1ff   : > { %3025 = vst [vmem:[#allocation4 + $0x3e0] sm:$0xf] %v2944_v47  ;;  %3024 = vst [vmem:[#allocation4 + $0x3b8] sm:$0xf] %v2940_v11  ;;  %v2953_v25 = vrot.slane %v2802_v15, 5  ;;  %v10561_v53 = vrot.slane %v2803_v37, 9 }
 0x200   : > { %v2947_v31 = vsel %vm13195_vm14, %v2945_v16, %v2946_v9  ;;  %v12510_v44 = vld [vmem:[#allocation4 + $0x250] ss:$40 sps:$4 sm:$0xff]   ;;  %v2951_v56 = vsel %vm13195_vm14, %v10560_v3, %v2950_v42  ;;  %v2952_v36 = vrot.slane %v2950_v42, 4  ;;  %v12511_v51 = vld [vmem:[#allocation4 + $0x2a0] ss:$40 sps:$4 sm:$0xff]   ;;  %v11272_v62 = vpop.f32.mrf.mxu0  ;;  %v11164_v3 = vadd.f32 %v13598_v29, %v13593_v21 }
 0x201   : > { %3026 = vst [vmem:[#allocation4 + $0x408] sm:$0xf] %v2947_v31  ;;  %v14031_v58 = vld [vmem:[%s15758_s2] ss:$0 sm:$0xff]  ;;  %3027 = vst [vmem:[#allocation4 + $0x430] sm:$0xf] %v2951_v56  ;;  %v11273_v42 = vadd.f32 %v11272_v62, %v11271_v46 }
 0x202   : > { %v4550_v63 = vadd.f32 %v14031_v58, %v11158_v8  ;;  %v2804_v17 = vld [vmem:[#allocation2 + $0xc4] sm:$0xf]  ;;  %v2954_v48 = vsel %vm13195_vm14, %v2952_v36, %v2953_v25  ;;  %v2805_v28 = vld [vmem:[#allocation2 + $0xc8] sm:$0x1]  ;;  %v2806_v4 = vld [vmem:[#allocation2 + $0xcc] sm:$0xe]  ;;  %v4555_v15 = vadd.f32 %v14031_v58, %v13591_v10  ;;  %v11274_v25 = vpop.f32.mrf.mxu0 }
 0x203   : > { %v2957_v52 = vrot.slane %v2804_v17, 5  ;;  %v12525_v1 = vld [vmem:[%s15759_s3 + $0x60] sm:$0xff]   ;;  %3028 = vst [vmem:[#allocation4 + $0x458] sm:$0xf] %v2954_v48  ;;  %v2960_v27 = vrot.slane %v2805_v28, 5  ;;  %v10562_v20 = vrot.slane %v2806_v4, 9 }
 0x204   : > { %v14039_v39 = vadd.f32 %v11270_v22, %v4550_v63  ;;  %v2807_v8 = vld [vmem:[#allocation2 + $0xd0] sm:$0xf]  ;;  %v2808_v9 = vld [vmem:[#allocation2 + $0xd4] sm:$0x1]  ;;  %11615 = vmatprep.subr.bf16.mxu1 %v12525_v1  ;;  %v12526_v11 = vld [vmem:[%s15759_s3 + $0x20] sm:$0xff]   ;;  %v4558_v22 = vadd.f32 %v14031_v58, %v11164_v3 }
 0x205   : > { %v2958_v41 = vsel %vm13195_vm14, %v10561_v53, %v2957_v52  ;;  %v2959_v47 = vrot.slane %v2957_v52, 4  ;;  %v2964_v16 = vrot.slane %v2807_v8, 5  ;;  %v2967_v12 = vrot.slane %v2808_v9, 5  ;;  %12198 = vmatmul.mubr.bf16.gmra.mxu0 %v12510_v44  ;;  %v7781_v31 = vld [vmem:[#allocation3 + $0xd0] sm:$0xf]  ;;  %11616 = vmatpush3.bf16.msra.mxu1 %v12526_v11  ;;  %v11275_v44 = vpop.f32.mrf.mxu0 }
 0x206   : > { %3029 = vst [vmem:[#allocation4 + $0x480] sm:$0xf] %v2958_v41  ;;  %12201 = vmatprep.mubr.bf16.mxu0 %v12511_v51  ;;  %v12512_v36 = vld [vmem:[#allocation4 + $0x2f0] ss:$40 sps:$4 sm:$0xff]   ;;  %v14054_v53 = vadd.f32 %v11273_v42, %v4555_v15  ;;  %v7780_v10 = vld [vmem:[#allocation3 + $0xcc] sm:$0xe]  ;;  %v11276_v17 = vadd.f32 %v11275_v44, %v11274_v25  ;;  %v11170_v8 = vadd.f32 %v13630_v32, %v13625_v49 }
 0x207   : > { %v2961_v37 = vsel %vm13195_vm14, %v2959_v47, %v2960_v27  ;;  %v2965_v30 = vsel %vm13195_vm14, %v10562_v20, %v2964_v16  ;;  %v2966_v56 = vrot.slane %v2964_v16, 4  ;;  %v7782_v21 = vld [vmem:[#allocation3 + $0xd4] sm:$0x1]  ;;  %v12513_v29 = vld [vmem:[#allocation4 + $0x340] ss:$40 sps:$4 sm:$0xff]   ;;  %v7938_v51 = vrot.slane %v7781_v31, 5  ;;  %v11277_v46 = vpop.f32.mrf.mxu0 }
 0x208   : > { %3030 = vst [vmem:[#allocation4 + $0x4a8] sm:$0xf] %v2961_v37  ;;  %3031 = vst [vmem:[#allocation4 + $0x4d0] sm:$0xf] %v2965_v30  ;;  %v10859_v48 = vrot.slane %v7780_v10, 9  ;;  %v7941_v52 = vrot.slane %v7782_v21, 5  ;;  %v14059_v4 = vadd.f32 %v11276_v17, %v4558_v22  ;;  %v4563_v27 = vadd.f32 %v14031_v58, %v13623_v13 }
 0x209   : > { %v2968_v63 = vsel %vm13195_vm14, %v2966_v56, %v2967_v12  ;;  %v7940_v28 = vrot.slane %v7938_v51, 4  ;;  %v11278_v1 = vpop.f32.mrf.mxu0  ;;  %v12514_v47 = vld [vmem:[#allocation4 + $0x390] ss:$40 sps:$4 sm:$0xff]   ;;  %v12515_v12 = vld [vmem:[#allocation4 + $0x3e0] ss:$40 sps:$4 sm:$0xff]   ;;  %v4566_v13 = vadd.f32 %v14031_v58, %v11170_v8  ;;  %v4571_v37 = vadd.f32 %v14031_v58, %v13648_v5 }
 0x20a   : > { %3032 = vst [vmem:[#allocation4 + $0x4f8] sm:$0xf] %v2968_v63  ;;  %v11279_v9 = vadd.f32 %v11278_v1, %v11277_v46  ;;  %v7939_v62 = vsel %vm13195_vm14, %v10859_v48, %v7938_v51  ;;  %v12527_v32 = vld [vmem:[%s15759_s3 + $0x58] sm:$0xff]   ;;  %v11176_v30 = vadd.f32 %v13670_v34, %v13650_v6  ;;  %v12516_v10 = vld [vmem:[#allocation4 + $0x430] ss:$40 sps:$4 sm:$0xff]  }
 0x20b   : > { %v11280_v20 = vpop.f32.mrf.mxu0  ;;  %v7942_v41 = vsel %vm13195_vm14, %v7940_v28, %v7941_v52  ;;  %v12528_v42 = vld [vmem:[%s15759_s3 + $0x18] sm:$0xff]   ;;  %11617 = vmatprep.subr.bf16.mxu1 %v12527_v32  ;;  %v14084_v28 = vpop.f32.mrf.mxu1  ;;  %v431_v57 = vld [vmem:[#allocation3 + $0x68] sm:$0x1] }
 0x20c   : > { %v4724_v16 = vadd.f32 %v11279_v9, %v4563_v27  ;;  %11618 = vmatpush3.bf16.msra.mxu1 %v12528_v42  ;;  %v4574_v63 = vadd.f32 %v14031_v58, %v11176_v30 }
 0x20d   : > { %12202 = vmatmul.mubr.bf16.gmra.mxu0 %v12512_v36  ;;  %v11281_v11 = vpop.f32.mrf.mxu0  ;;  %v14086_v27 = vpop.f32.mrf.mxu1 }
 0x20e   : > { %12205 = vmatprep.mubr.bf16.mxu0 %v12513_v29  ;;  %v11282_v3 = vadd.f32 %v11281_v11, %v11280_v20 }
 0x20f   : > { %v11283_v49 = vpop.f32.mrf.mxu0  ;;  %v12517_v29 = vld [vmem:[#allocation4 + $0x480] ss:$40 sps:$4 sm:$0xff]   ;;  %v14091_v9 = vpop.f32.mrf.mxu1 }
 0x210   : > { %v4727_v31 = vadd.f32 %v11282_v3, %v4566_v13 }
 0x211   : > { %v12518_v15 = vld [vmem:[#allocation4 + $0x4d0] ss:$40 sps:$4 sm:$0xff]   ;;  %v11284_v25 = vpop.f32.mrf.mxu0 }
 0x212   : > { %8005 = vst [vmem:[#allocation4 + $0x4d0] sm:$0xf] %v7939_v62  ;;  %8006 = vst [vmem:[#allocation4 + $0x4f8] sm:$0xf] %v7942_v41  ;;  %v11285_v56 = vadd.f32 %v11284_v25, %v11283_v49  ;;  %v14093_v41 = vpop.f32.mrf.mxu1  ;;  %v12530_v25 = vld [vmem:[%s15759_s3 + $0x10] sm:$0xff]  }
 0x213   : > { %v11286_v36 = vpop.f32.mrf.mxu0 }
 0x214   : > { %v4732_v21 = vadd.f32 %v11285_v56, %v4571_v37  ;;  %v14098_v11 = vpop.f32.mrf.mxu1 }
 0x215   : > { %12206 = vmatmul.mubr.bf16.gmra.mxu0 %v12514_v47  ;;  %v11287_v44 = vpop.f32.mrf.mxu0 }
 0x216   : > { %12209 = vmatprep.mubr.bf16.mxu0 %v12515_v12  ;;  %v11288_v51 = vadd.f32 %v11287_v44, %v11286_v36 }
 0x217   : > { %v11377_v22 = vpop.f32.mrf.mxu0 }
 0x218   : > { %v4735_v17 = vadd.f32 %v11288_v51, %v4574_v63 }
 0x219   : > { %v11378_v46 = vpop.f32.mrf.mxu0 }
 0x21a   : > { %v11379_v5 = vadd.f32 %v11378_v46, %v11377_v22 }
 0x21b   : > { %v11380_v48 = vpop.f32.mrf.mxu0 }
 0x21c   : > { %v14082_v6 = vadd.f32 %v11379_v5, %v14022_v50 }
 0x21d   : > { %12210 = vmatmul.mubr.bf16.gmra.mxu0 %v12516_v10  ;;  %v11381_v34 = vpop.f32.mrf.mxu0 }
 0x21e   : > { %12213 = vmatprep.mubr.bf16.mxu0 %v12517_v29  ;;  %v11382_v52 = vadd.f32 %v11381_v34, %v11380_v48 }
 0x21f   : > { %v11383_v1 = vpop.f32.mrf.mxu0 }
 0x220   : > { %v14089_v58 = vadd.f32 %v11382_v52, %v14039_v39  ;;  %v14103_v39 = vpop.f32.mrf.mxu1 }
 0x221   : > { %v11384_v8 = vpop.f32.mrf.mxu0 }
 0x222   : > { %v11385_v20 = vadd.f32 %v11384_v8, %v11383_v1  ;;  %v14105_v32 = vpop.f32.mrf.mxu1  ;;  %v12532_v8 = vld [vmem:[%s15759_s3 + $0xf8] sm:$0xff]  }
 0x223   : > { %v11386_v62 = vpop.f32.mrf.mxu0  ;;  %11721 = vmatprep.subr.bf16.mxu0 %v12532_v8 }
 0x224   : > { %v14096_v50 = vadd.f32 %v11385_v20, %v14054_v53  ;;  %v12529_v53 = vld [vmem:[%s15759_s3 + $0x50] sm:$0xff]   ;;  %v14115_v30 = vpop.f32.mrf.mxu1 }
 0x225   : > { %12214 = vmatmul.mubr.bf16.gmra.mxu0 %v12518_v15  ;;  %v11387_v47 = vpop.f32.mrf.mxu0  ;;  %11619 = vmatprep.subr.bf16.mxu1 %v12529_v53 }
 0x226   : > { %v11388_v12 = vadd.f32 %v11387_v47, %v11386_v62  ;;  %11620 = vmatpush3.bf16.msra.mxu1 %v12530_v25  ;;  %v14117_v36 = vpop.f32.mrf.mxu1  ;;  %v356_v47 = vld [vmem:[#allocation3 + $0xc] sm:$0x1]  ;;  %v12535_v25 = vld [vmem:[%s15759_s3 + $0xf0] sm:$0xff]  }
 0x227   : > { %v11389_v13 = vpop.f32.mrf.mxu0 }
 0x228   : > { %v14101_v3 = vadd.f32 %v11388_v12, %v14059_v4  ;;  %v14121_v44 = vpop.f32.mrf.mxu1 }
 0x229   : > { %v11390_v15 = vpop.f32.mrf.mxu0 }
 0x22a   : > { %v11391_v49 = vadd.f32 %v11390_v15, %v11389_v13  ;;  %v14123_v22 = vpop.f32.mrf.mxu1  ;;  %v357_v13 = vsel %vm12932_vm3, 0, %v356_v47  ;;  %v362_v47 = vld [vmem:[#allocation3 + $0x24] sm:$0x1] }
 0x22b   : > { %v11392_v42 = vpop.f32.mrf.mxu0  ;;  %358 = vst [vmem:[#allocation3 + $0xc] sm:$0x1] %v357_v13  ;;  %v363_v13 = vsel %vm12932_vm3, 0, %v362_v47  ;;  %v371_v47 = vld [vmem:[#allocation3 + $0x48] sm:$0x1] }
 0x22c   : > { %v14113_v37 = vadd.f32 %v11391_v49, %v4724_v16  ;;  %v359_v16 = vld [vmem:[#allocation3 + $0x18] sm:$0x1]  ;;  %v14129_v34 = vpop.f32.mrf.mxu1  ;;  %364 = vst [vmem:[#allocation3 + $0x24] sm:$0x1] %v363_v13 }
 0x22d   : > { %v11393_v4 = vpop.f32.mrf.mxu0  ;;  %v360_v48 = vsel %vm12932_vm3, 0, %v359_v16 }
 0x22e   : > { %v11394_v56 = vadd.f32 %v11393_v4, %v11392_v42  ;;  %361 = vst [vmem:[#allocation3 + $0x18] sm:$0x1] %v360_v48  ;;  %v14134_v20 = vpop.f32.mrf.mxu1  ;;  %v413_v42 = vld [vmem:[#allocation3 + $0x20] sm:$0x1] }
 0x22f   : > { %v11395_v10 = vpop.f32.mrf.mxu0 }
 0x230   : > { %v14119_v29 = vadd.f32 %v11394_v56, %v4727_v31  ;;  %v14143_v15 = vpop.f32.mrf.mxu1 }
 0x231   : > { %v11396_v63 = vpop.f32.mrf.mxu0 }
 0x232   : > { %v11397_v51 = vadd.f32 %v11396_v63, %v11395_v10  ;;  %v14150_v4 = vpop.f32.mrf.mxu1  ;;  %v410_v10 = vld [vmem:[#allocation3 + $0x14] sm:$0x1]  ;;  %v12536_v63 = vld [vmem:[%s15759_s3 + $0xb0] sm:$0xff]  }
 0x233   : > { %v11398_v46 = vpop.f32.mrf.mxu0 }
 0x234   : > { %v14125_v5 = vadd.f32 %v11397_v51, %v4732_v21  ;;  %v12534_v21 = vld [vmem:[%s15759_s3 + $0xb8] sm:$0xff]   ;;  %v14160_v16 = vpop.f32.mrf.mxu1 }
 0x235   : > { %v11399_v52 = vpop.f32.mrf.mxu0  ;;  %11722 = vmatpush3.bf16.msra.mxu0 %v12534_v21  ;;  %v12538_v21 = vld [vmem:[%s15759_s3 + $0xa8] sm:$0xff]  }
 0x236   : > { %v11400_v1 = vadd.f32 %v11399_v52, %v11398_v46  ;;  %v411_v46 = vsel %vm12943_vm4, 0, %v410_v10  ;;  %11723 = vmatprep.subr.bf16.mxu0 %v12535_v25  ;;  %v365_v52 = vld [vmem:[#allocation3 + $0x30] sm:$0x1] }
 0x237   : > { %v11401_v31 = vpop.f32.mrf.mxu0  ;;  %412 = vst [vmem:[#allocation3 + $0x14] sm:$0x1] %v411_v46  ;;  %v12533_v25 = vld [vmem:[%s15759_s3 + $0x8] sm:$0xff]   ;;  %v12539_v46 = vld [vmem:[%s15759_s3 + $0xe0] sm:$0xff]  }
 0x238   : > { %v14136_v62 = vadd.f32 %v11400_v1, %v4735_v17  ;;  %v414_v17 = vsel %vm12943_vm4, 0, %v413_v42  ;;  %v12537_v1 = vld [vmem:[%s15759_s3 + $0xe8] sm:$0xff]   ;;  %v419_v42 = vld [vmem:[#allocation3 + $0x38] sm:$0x1] }
 0x239   : > { %v11402_v12 = vpop.f32.mrf.mxu0  ;;  %415 = vst [vmem:[#allocation3 + $0x20] sm:$0x1] %v414_v17  ;;  %11724 = vmatpush3.bf16.msra.mxu0 %v12536_v63  ;;  %v12531_v17 = vld [vmem:[%s15759_s3 + $0x48] sm:$0xff]   ;;  %v420_v10 = vsel %vm12943_vm4, 0, %v419_v42  ;;  %v368_v42 = vld [vmem:[#allocation3 + $0x3c] sm:$0x1] }
 0x23a   : > { %v11403_v49 = vadd.f32 %v11402_v12, %v11401_v31  ;;  %v14173_v12 = vpop.f32.mrf.mxu1  ;;  %11725 = vmatprep.subr.bf16.mxu0 %v12537_v1  ;;  %421 = vst [vmem:[#allocation3 + $0x38] sm:$0x1] %v420_v10  ;;  %11621 = vmatprep.subr.bf16.mxu1 %v12531_v17  ;;  %v425_v10 = vld [vmem:[#allocation3 + $0x50] sm:$0x1] }
 0x23b   : > { %v11404_v53 = vpop.f32.mrf.mxu0  ;;  %11622 = vmatpush3.bf16.msra.mxu1 %v12533_v25 }
 0x23c   : > { %v14153_v56 = vadd.f32 %v11403_v49, %v13716_v18  ;;  %v366_v18 = vsel %vm12932_vm3, 0, %v365_v52 }
 0x23d   : > { %v11405_v51 = vpop.f32.mrf.mxu0  ;;  %367 = vst [vmem:[#allocation3 + $0x30] sm:$0x1] %v366_v18  ;;  %11726 = vmatpush3.bf16.msra.mxu0 %v12538_v21 }
 0x23e   : > { %15794 = vst [vmem:[#allocation17_spill] sm:$0xff] %v14153_v56  ;;  %v11406_v48 = vadd.f32 %v11405_v51, %v11404_v53  ;;  %v14177_v53 = vpop.f32.mrf.mxu1  ;;  %v416_v51 = vld [vmem:[#allocation3 + $0x2c] sm:$0x1]  ;;  %11727 = vmatprep.subr.bf16.mxu0 %v12539_v46  ;;  %v389_v56 = vld [vmem:[#allocation3 + $0x90] sm:$0x1] }
 0x23f   : > { %v11407_v8 = vpop.f32.mrf.mxu0  ;;  %v417_v1 = vsel %vm12943_vm4, 0, %v416_v51  ;;  %v12542_v51 = vld [vmem:[%s15759_s3 + $0xd8] sm:$0xff]  }
 0x240   : > { %v14168_v31 = vadd.f32 %v11406_v48, %v13721_v54  ;;  %v12540_v48 = vld [vmem:[%s15759_s3 + $0xa0] sm:$0xff]   ;;  %v14193_v52 = vpop.f32.mrf.mxu1  ;;  %418 = vst [vmem:[#allocation3 + $0x2c] sm:$0x1] %v417_v1  ;;  %v12544_v1 = vld [vmem:[%s15759_s3 + $0x98] sm:$0xff]  }
 0x241   : > { %v11408_v49 = vpop.f32.mrf.mxu0  ;;  %11728 = vmatpush3.bf16.msra.mxu0 %v12540_v48 }
 0x242   : > { %15795 = vst [vmem:[#allocation18_spill] sm:$0xff] %v14168_v31  ;;  %v11409_v54 = vadd.f32 %v11408_v49, %v11407_v8  ;;  %v14200_v21 = vpop.f32.mrf.mxu1  ;;  %v372_v49 = vsel %vm12932_vm3, 0, %v371_v47  ;;  %11729 = vmatprep.subr.bf16.mxu0 %v12542_v51  ;;  %v12546_v51 = vld [vmem:[%s15759_s3 + $0x90] sm:$0xff]  }
 0x243   : > { %v11410_v63 = vpop.f32.mrf.mxu0  ;;  %373 = vst [vmem:[#allocation3 + $0x48] sm:$0x1] %v372_v49  ;;  %v383_v31 = vld [vmem:[#allocation3 + $0x78] sm:$0x1] }
 0x244   : > { %v14196_v18 = vadd.f32 %v11409_v54, %v13724_v7  ;;  %v369_v54 = vsel %vm12932_vm3, 0, %v368_v42  ;;  %v14209_v17 = vpop.f32.mrf.mxu1 }
 0x245   : > { %v11411_v8 = vpop.f32.mrf.mxu0  ;;  %370 = vst [vmem:[#allocation3 + $0x3c] sm:$0x1] %v369_v54  ;;  %11730 = vmatpush3.bf16.msra.mxu0 %v12544_v1  ;;  %v377_v54 = vld [vmem:[#allocation3 + $0x60] sm:$0x1]  ;;  %v12541_v1 = vld [vmem:[%s15759_s3 + $0x40] sm:$0xff]  }
 0x246   : > { %15796 = vst [vmem:[#allocation19_spill] sm:$0xff] %v14196_v18  ;;  %v11412_v13 = vadd.f32 %v11411_v8, %v11410_v63  ;;  %v426_v63 = vsel %vm12943_vm4, 0, %v425_v10  ;;  %v14216_v46 = vpop.f32.mrf.mxu1  ;;  %v12545_v10 = vld [vmem:[%s15759_s3 + $0xd0] sm:$0xff]   ;;  %11623 = vmatprep.subr.bf16.mxu1 %v12541_v1 }
 0x247   : > { %v11413_v25 = vpop.f32.mrf.mxu0  ;;  %427 = vst [vmem:[#allocation3 + $0x50] sm:$0x1] %v426_v63  ;;  %11731 = vmatprep.subr.bf16.mxu0 %v12545_v10  ;;  %v12547_v10 = vld [vmem:[%s15759_s3 + $0xc8] sm:$0xff]  }
 0x248   : > { %v14205_v7 = vadd.f32 %v11412_v13, %v13735_v40  ;;  %v422_v40 = vld [vmem:[#allocation3 + $0x44] sm:$0x1]  ;;  %v14223_v13 = vpop.f32.mrf.mxu1 }
 0x249   : > { %v11414_v48 = vpop.f32.mrf.mxu0  ;;  %v423_v47 = vsel %vm12943_vm4, 0, %v422_v40  ;;  %11732 = vmatpush3.bf16.msra.mxu0 %v12546_v51 }
 0x24a   : > { %15797 = vst [vmem:[#allocation20_spill] sm:$0xff] %v14205_v7  ;;  %v11415_v8 = vadd.f32 %v11414_v48, %v11413_v25  ;;  %424 = vst [vmem:[#allocation3 + $0x44] sm:$0x1] %v423_v47  ;;  %v14231_v63 = vpop.f32.mrf.mxu1  ;;  %v378_v48 = vsel %vm12932_vm3, 0, %v377_v54  ;;  %v12543_v54 = vld [vmem:[%s15759_s3] sm:$0xff]   ;;  %11733 = vmatprep.subr.bf16.mxu0 %v12547_v10 }
 0x24b   : > { %v11416_v49 = vpop.f32.mrf.mxu0  ;;  %379 = vst [vmem:[#allocation3 + $0x60] sm:$0x1] %v378_v48  ;;  %11624 = vmatpush3.bf16.msra.mxu1 %v12543_v54  ;;  %v428_v54 = vld [vmem:[#allocation3 + $0x5c] sm:$0x1]  ;;  %v12549_v10 = vld [vmem:[#allocation4] ss:$40 sps:$4 sm:$0xff]  }
 0x24c   : > { %v14226_v42 = vadd.f32 %v11415_v8, %v13742_v33  ;;  %v14241_v8 = vpop.f32.mrf.mxu1 }
 0x24d   : > { %v11417_v25 = vpop.f32.mrf.mxu0 }
 0x24e   : > { %15798 = vst [vmem:[#allocation21_spill] sm:$0xff] %v14226_v42  ;;  %v11418_v40 = vadd.f32 %v11417_v25, %v11416_v49  ;;  %v374_v49 = vld [vmem:[#allocation3 + $0x54] sm:$0x1]  ;;  %v14252_v25 = vpop.f32.mrf.mxu1 }
 0x24f   : > { %v11419_v33 = vpop.f32.mrf.mxu0  ;;  %v375_v51 = vsel %vm12932_vm3, 0, %v374_v49  ;;  %v12551_v49 = vld [vmem:[#allocation4 + $0x4] ss:$40 sps:$4 sm:$0xff]  }
 0x250   : > { %v14244_v47 = vadd.f32 %v11418_v40, %v13753_v38  ;;  %v12548_v38 = vld [vmem:[%s15759_s3 + $0x88] sm:$0xff]   ;;  %376 = vst [vmem:[#allocation3 + $0x54] sm:$0x1] %v375_v51  ;;  %v14259_v1 = vpop.f32.mrf.mxu1  ;;  %v429_v51 = vsel %vm12943_vm4, 0, %v428_v54  ;;  %9646 = vmatprep.mubr.bf16.mxu1 %v12551_v49 }
 0x251   : > { %v11420_v60 = vpop.f32.mrf.mxu0  ;;  %11734 = vmatpush3.bf16.msra.mxu0 %v12548_v38  ;;  %430 = vst [vmem:[#allocation3 + $0x5c] sm:$0x1] %v429_v51  ;;  %9647 = vmatmul.mubr.bf16.vlgmr.msra.gmra.mxu1 %v12549_v10 }
 0x252   : > { %15799 = vst [vmem:[#allocation22_spill] sm:$0xff] %v14244_v47  ;;  %v11421_v48 = vadd.f32 %v11420_v60, %v11419_v33  ;;  %v432_v60 = vsel %vm12943_vm4, 0, %v431_v57  ;;  %v14266_v26 = vpop.f32.mrf.mxu1  ;;  %v384_v57 = vsel %vm12932_vm3, 0, %v383_v31 }
 0x253   : > { %v11422_v40 = vpop.f32.mrf.mxu0  ;;  %433 = vst [vmem:[#allocation3 + $0x68] sm:$0x1] %v432_v60  ;;  %385 = vst [vmem:[#allocation3 + $0x78] sm:$0x1] %v384_v57  ;;  %v380_v60 = vld [vmem:[#allocation3 + $0x6c] sm:$0x1] }
 0x254   : > { %v14262_v47 = vadd.f32 %v11421_v48, %v13766_v45  ;;  %v14275_v48 = vpop.f32.mrf.mxu1  ;;  %v381_v31 = vsel %vm12932_vm3, 0, %v380_v60  ;;  %v437_v57 = vld [vmem:[#allocation3 + $0x80] sm:$0x1] }
 0x255   : > { %v11423_v33 = vpop.f32.mrf.mxu0  ;;  %382 = vst [vmem:[#allocation3 + $0x6c] sm:$0x1] %v381_v31  ;;  %v438_v7 = vsel %vm12943_vm4, 0, %v437_v57 }
 0x256   : > { %15800 = vst [vmem:[#allocation23_spill] sm:$0xff] %v14262_v47  ;;  %v11424_v42 = vadd.f32 %v11423_v33, %v11422_v40  ;;  %v12552_v40 = vld [vmem:[%s15759_s3 + $0xc0] sm:$0xff]   ;;  %v14283_v54 = vpop.f32.mrf.mxu1  ;;  %439 = vst [vmem:[#allocation3 + $0x80] sm:$0x1] %v438_v7 }
 0x257   : > { %v11425_v38 = vpop.f32.mrf.mxu0  ;;  %v12553_v33 = vld [vmem:[%s15759_s3 + $0x80] sm:$0xff]   ;;  %11735 = vmatprep.subr.bf16.mxu0 %v12552_v40 }
 0x258   : > { %v14271_v45 = vadd.f32 %v11424_v42, %v13773_v24  ;;  %11736 = vmatpush3.bf16.msra.mxu0 %v12553_v33  ;;  %v14287_v49 = vpop.f32.mrf.mxu1  ;;  %v434_v33 = vld [vmem:[#allocation3 + $0x74] sm:$0x1] }
 0x259   : > { %v11426_v24 = vpop.f32.mrf.mxu0 }
 0x25a   : > { %15801 = vst [vmem:[#allocation24_spill] sm:$0xff] %v14271_v45  ;;  %v11427_v42 = vadd.f32 %v11426_v24, %v11425_v38  ;;  %v14292_v45 = vpop.f32.mrf.mxu1 }
 0x25b   : > { %v11428_v51 = vpop.f32.mrf.mxu0 }
 0x25c   : > { %v14290_v10 = vadd.f32 %v11427_v42, %v13790_v35  ;;  %v14296_v40 = vpop.f32.mrf.mxu1  ;;  %v435_v35 = vsel %vm12943_vm4, 0, %v434_v33 }
 0x25d   : > { %v11429_v47 = vpop.f32.mrf.mxu0  ;;  %436 = vst [vmem:[#allocation3 + $0x74] sm:$0x1] %v435_v35  ;;  %v443_v35 = vld [vmem:[#allocation3 + $0x98] sm:$0x1] }
 0x25e   : > { %15802 = vst [vmem:[#allocation25_spill] sm:$0xff] %v14290_v10  ;;  %v11430_v18 = vadd.f32 %v11429_v47, %v11428_v51  ;;  %v14303_v31 = vpop.f32.mrf.mxu1  ;;  %v386_v47 = vld [vmem:[#allocation3 + $0x84] sm:$0x1] }
 0x25f   : > { %v11431_v60 = vpop.f32.mrf.mxu0  ;;  %15804 = vst [vmem:[#allocation27_spill] sm:$0xff] %v14303_v31 }
 0x260   : > { %v14299_v38 = vadd.f32 %v11430_v18, %v13795_v43  ;;  %v14305_v57 = vpop.f32.mrf.mxu1  ;;  %v390_v43 = vsel %vm12932_vm3, 0, %v389_v56  ;;  %v444_v56 = vsel %vm12943_vm4, 0, %v443_v35 }
 0x261   : > { %v11432_v24 = vpop.f32.mrf.mxu0  ;;  %15805 = vst [vmem:[#allocation28_spill] sm:$0xff] %v14305_v57  ;;  %391 = vst [vmem:[#allocation3 + $0x90] sm:$0x1] %v390_v43  ;;  %v15820_v57 = vld [vmem:[#allocation11_spill] sm:$0xff] }
 0x262   : > { %15803 = vst [vmem:[#allocation26_spill] sm:$0xff] %v14299_v38  ;;  %v11433_v42 = vadd.f32 %v11432_v24, %v11431_v60  ;;  %v14312_v51 = vpop.f32.mrf.mxu1  ;;  %v387_v60 = vsel %vm12932_vm3, 0, %v386_v47  ;;  %445 = vst [vmem:[#allocation3 + $0x98] sm:$0x1] %v444_v56  ;;  %v15812_v47 = vld [vmem:[#allocation9_spill] sm:$0xff] }
 0x263   : > { %v11434_v10 = vpop.f32.mrf.mxu0  ;;  %15807 = vst [vmem:[#allocation30_spill] sm:$0xff] %v14312_v51  ;;  %388 = vst [vmem:[#allocation3 + $0x84] sm:$0x1] %v387_v60 }
 0x264   : > { %v14308_v7 = vadd.f32 %v11433_v42, %v13806_v2  ;;  %v14316_v38 = vpop.f32.mrf.mxu1 }
 0x265   : > { %v11435_v18 = vpop.f32.mrf.mxu0  ;;  %15808 = vst [vmem:[#allocation31_spill] sm:$0xff] %v14316_v38 }
 0x266   : > { %15806 = vst [vmem:[#allocation29_spill] sm:$0xff] %v14308_v7  ;;  %v11436_v33 = vadd.f32 %v11435_v18, %v11434_v10  ;;  %v14323_v43 = vpop.f32.mrf.mxu1 }
 0x267   : > { %v11437_v24 = vpop.f32.mrf.mxu0  ;;  %15810 = vst [vmem:[#allocation33_spill] sm:$0xff] %v14323_v43 }
 0x268   : > { %v14319_v2 = vadd.f32 %v11436_v33, %v13811_v55  ;;  %v14325_v18 = vpop.f32.mrf.mxu1  ;;  %v12557_v55 = vld [vmem:[%s15759_s3 + $0x178] sm:$0xff]  }
 0x269   : > { %v11438_v42 = vpop.f32.mrf.mxu0  ;;  %15811 = vst [vmem:[#allocation34_spill] sm:$0xff] %v14325_v18  ;;  %v12558_v33 = vld [vmem:[%s15759_s3 + $0x138] sm:$0xff]   ;;  %11833 = vmatprep.subr.bf16.mxu1 %v12557_v55  ;;  %v440_v55 = vld [vmem:[#allocation3 + $0x8c] sm:$0x1] }
 0x26a   : > { %15809 = vst [vmem:[#allocation32_spill] sm:$0xff] %v14319_v2  ;;  %v11439_v7 = vadd.f32 %v11438_v42, %v11437_v24  ;;  %v14336_v35 = vpop.f32.mrf.mxu1  ;;  %v15815_v24 = vld [vmem:[#allocation10_spill] sm:$0xff]  ;;  %11834 = vmatpush3.bf16.msra.mxu1 %v12558_v33  ;;  %v441_v33 = vsel %vm12943_vm4, 0, %v440_v55  ;;  %v15827_v55 = vld [vmem:[#allocation13_spill] sm:$0xff] }
 0x26b   : > { %v11440_v10 = vpop.f32.mrf.mxu0  ;;  %15814 = vst [vmem:[#allocation35_spill] sm:$0xff] %v14336_v35  ;;  %442 = vst [vmem:[#allocation3 + $0x8c] sm:$0x1] %v441_v33 }
 0x26c   : > { %v14328_v51 = vadd.f32 %v11439_v7, %v15812_v47  ;;  %v14341_v2 = vpop.f32.mrf.mxu1 }
 0x26d   : > { %v11441_v60 = vpop.f32.mrf.mxu0  ;;  %15817 = vst [vmem:[#allocation36_spill] sm:$0xff] %v14341_v2 }
 0x26e   : > { %15813 = vst [vmem:[#allocation9_spill] sm:$0xff] %v14328_v51  ;;  %v11442_v56 = vadd.f32 %v11441_v60, %v11440_v10  ;;  %v14343_v47 = vpop.f32.mrf.mxu1 }
 0x26f   : > { %v11443_v7 = vpop.f32.mrf.mxu0  ;;  %15818 = vst [vmem:[#allocation37_spill] sm:$0xff] %v14343_v47 }
 0x270   : > { %v14339_v42 = vadd.f32 %v11442_v56, %v15815_v24  ;;  %v14345_v43 = vpop.f32.mrf.mxu1  ;;  %v15824_v24 = vld [vmem:[#allocation12_spill] sm:$0xff] }
 0x271   : > { %v11444_v51 = vpop.f32.mrf.mxu0  ;;  %15819 = vst [vmem:[#allocation38_spill] sm:$0xff] %v14345_v43 }
 0x272   : > { %15816 = vst [vmem:[#allocation10_spill] sm:$0xff] %v14339_v42  ;;  %v11445_v18 = vadd.f32 %v11444_v51, %v11443_v7  ;;  %v14350_v35 = vpop.f32.mrf.mxu1  ;;  %v395_v7 = vld [vmem:[#allocation3 + $0xa8] sm:$0x1] }
 0x273   : > { %v11446_v38 = vpop.f32.mrf.mxu0  ;;  %15822 = vst [vmem:[#allocation39_spill] sm:$0xff] %v14350_v35 }
 0x274   : > { %v14348_v31 = vadd.f32 %v11445_v18, %v15820_v57  ;;  %v396_v18 = vsel %vm12932_vm3, 0, %v395_v7  ;;  %v392_v7 = vld [vmem:[#allocation3 + $0x9c] sm:$0x1] }
 0x275   : > { %v11447_v10 = vpop.f32.mrf.mxu0  ;;  %397 = vst [vmem:[#allocation3 + $0xa8] sm:$0x1] %v396_v18  ;;  %v393_v18 = vsel %vm12932_vm3, 0, %v392_v7 }
 0x276   : > { %15821 = vst [vmem:[#allocation11_spill] sm:$0xff] %v14348_v31  ;;  %v11448_v60 = vadd.f32 %v11447_v10, %v11446_v38  ;;  %v14354_v56 = vpop.f32.mrf.mxu1  ;;  %394 = vst [vmem:[#allocation3 + $0x9c] sm:$0x1] %v393_v18  ;;  %v449_v18 = vld [vmem:[#allocation3 + $0xb0] sm:$0x1] }
 0x277   : > { %15823 = vst [vmem:[#allocation40_spill] sm:$0xff] %v14354_v56  ;;  %v11449_v51 = vpop.f32.mrf.mxu0 }
 0x278   : > { %v14357_v42 = vadd.f32 %v11448_v60, %v15824_v24  ;;  %v14359_v43 = vpop.f32.mrf.mxu1 }
 0x279   : > { %15826 = vst [vmem:[#allocation41_spill] sm:$0xff] %v14359_v43  ;;  %v11450_v57 = vpop.f32.mrf.mxu0  ;;  %v15830_v43 = vld [vmem:[#allocation14_spill] sm:$0xff] }
 0x27a   : > { %15825 = vst [vmem:[#allocation12_spill] sm:$0xff] %v14357_v42  ;;  %v11451_v31 = vadd.f32 %v11450_v57, %v11449_v51  ;;  %v14363_v38 = vpop.f32.mrf.mxu1 }
 0x27b   : > { %v11452_v10 = vpop.f32.mrf.mxu0 }
 0x27c   : > { %v14366_v35 = vadd.f32 %v11451_v31, %v15827_v55  ;;  %v14368_v56 = vpop.f32.mrf.mxu1 }
 0x27d   : > { %v11453_v60 = vpop.f32.mrf.mxu0 }
 0x27e   : > { %15828 = vst [vmem:[#allocation13_spill] sm:$0xff] %v14366_v35  ;;  %v11454_v24 = vadd.f32 %v11453_v60, %v11452_v10 }
 0x280   : > { %v11455_v33 = vpop.f32.mrf.mxu0  ;;  %v14373_v47 = vadd.f32 %v11454_v24, %v15830_v43 }
 0x282   : > { %v14370_v42 = vpop.f32.mrf.mxu1  ;;  %15831 = vst [vmem:[#allocation14_spill] sm:$0xff] %v14373_v47  ;;  %v11456_v2 = vpop.f32.mrf.mxu0 }
 0x283   : > { %15829 = vst [vmem:[#allocation42_spill] sm:$0xff] %v14370_v42  ;;  %v11457_v57 = vadd.f32 %v11456_v2, %v11455_v33 }
 0x284   : > { %v14375_v51 = vpop.f32.mrf.mxu1  ;;  %v11458_v31 = vpop.f32.mrf.mxu0 }
 0x285   : > { %15832 = vst [vmem:[#allocation43_spill] sm:$0xff] %v14375_v51  ;;  %v14382_v10 = vadd.f32 %v11457_v57, %v13957_v23  ;;  %v401_v23 = vld [vmem:[#allocation3 + $0xc0] sm:$0x1] }
 0x286   : > { %v14379_v55 = vpop.f32.mrf.mxu1  ;;  %v11459_v60 = vpop.f32.mrf.mxu0 }
 0x287   : > { %15833 = vst [vmem:[#allocation44_spill] sm:$0xff] %v14379_v55  ;;  %v11460_v35 = vadd.f32 %v11459_v60, %v11458_v31  ;;  %v446_v55 = vld [vmem:[#allocation3 + $0xa4] sm:$0x1]  ;;  %v450_v31 = vsel %vm12943_vm4, 0, %v449_v18  ;;  %v11491_v18 = vadd.f32 %v14086_v27, %v14084_v28  ;;  %v11509_v28 = vadd.f32 %v14143_v15, %v14134_v20 }
 0x288   : > { %v14384_v43 = vpop.f32.mrf.mxu1  ;;  %v447_v60 = vsel %vm12943_vm4, 0, %v446_v55  ;;  %451 = vst [vmem:[#allocation3 + $0xb0] sm:$0x1] %v450_v31  ;;  %v11497_v31 = vadd.f32 %v14103_v39, %v14098_v11  ;;  %v11512_v27 = vadd.f32 %v14160_v16, %v14150_v4  ;;  %v11533_v15 = vadd.f32 %v14283_v54, %v14275_v48  ;;  %v15834_v16 = vld [vmem:[#allocation27_spill] sm:$0xff]  ;;  %v15839_v54 = vld [vmem:[#allocation20_spill] sm:$0xff] }
 0x289   : > { %v14387_v24 = vadd.f32 %v11460_v35, %v13964_v61  ;;  %v402_v61 = vsel %vm12932_vm3, 0, %v401_v23  ;;  %448 = vst [vmem:[#allocation3 + $0xa4] sm:$0x1] %v447_v60  ;;  %v11503_v60 = vadd.f32 %v14121_v44, %v14117_v36  ;;  %v14434_v11 = vadd.f32 %v11491_v18, %v14082_v6  ;;  %v15844_v18 = vld [vmem:[#allocation34_spill] sm:$0xff] }
 0x28a   : > { %403 = vst [vmem:[#allocation3 + $0xc0] sm:$0x1] %v402_v61  ;;  %v11506_v61 = vadd.f32 %v14129_v34, %v14123_v22  ;;  %v5038_v39 = vadd.f32 %v11497_v31, %v14096_v50  ;;  %v11518_v44 = vadd.f32 %v14200_v21, %v14193_v52  ;;  %v11521_v22 = vadd.f32 %v14216_v46, %v14209_v17  ;;  %v15835_v52 = vld [vmem:[#allocation17_spill] sm:$0xff]  ;;  %v455_v21 = vld [vmem:[#allocation3 + $0xc8] sm:$0x1]  ;;  %v15836_v17 = vld [vmem:[#allocation28_spill] sm:$0xff] }
 0x28b   : > { %v11461_v42 = vpop.f32.mrf.mxu0  ;;  %v14444_v36 = vadd.f32 %v11503_v60, %v14113_v37  ;;  %v11524_v6 = vadd.f32 %v14231_v63, %v14223_v13  ;;  %v11527_v50 = vadd.f32 %v14252_v25, %v14241_v8  ;;  %v14457_v34 = vadd.f32 %v11509_v28, %v14125_v5  ;;  %v15837_v46 = vld [vmem:[#allocation30_spill] sm:$0xff] }
 0x28c   : > { %v14389_v51 = vpop.f32.mrf.mxu1  ;;  %v14460_v37 = vadd.f32 %v11512_v27, %v14136_v62  ;;  %v14463_v20 = vadd.f32 %v11506_v61, %v14119_v29  ;;  %v11536_v4 = vadd.f32 %v14292_v45, %v14287_v49  ;;  %v452_v62 = vld [vmem:[#allocation3 + $0xbc] sm:$0x1]  ;;  %v11542_v29 = vadd.f32 %v15837_v46, %v15836_v17  ;;  %v15838_v45 = vld [vmem:[#allocation19_spill] sm:$0xff]  ;;  %v15847_v61 = vld [vmem:[#allocation22_spill] sm:$0xff] }
 0x28d   : > { %v11462_v47 = vpop.f32.mrf.mxu0  ;;  %v456_v63 = vsel %vm12943_vm4, 0, %v455_v21  ;;  %v453_v8 = vsel %vm12943_vm4, 0, %v452_v62  ;;  %v14481_v48 = vadd.f32 %v11521_v22, %v15838_v45  ;;  %v14484_v49 = vadd.f32 %v11524_v6, %v15839_v54  ;;  %v15848_v27 = vld [vmem:[#allocation36_spill] sm:$0xff]  ;;  %v15850_v22 = vld [vmem:[#allocation38_spill] sm:$0xff]  ;;  %v15851_v6 = vld [vmem:[#allocation39_spill] sm:$0xff] }
 0x28e   : > { %v11463_v2 = vadd.f32 %v11462_v47, %v11461_v42  ;;  %v12575_v42 = vld [vmem:[%s15759_s3 + $0x130] sm:$0xff]   ;;  %v398_v47 = vld [vmem:[#allocation3 + $0xb4] sm:$0x1]  ;;  %457 = vst [vmem:[#allocation3 + $0xc8] sm:$0x1] %v456_v63  ;;  %v15857_v45 = vld [vmem:[#allocation26_spill] sm:$0xff] }
 0x28f   : > { %v11464_v33 = vpop.f32.mrf.mxu0  ;;  %454 = vst [vmem:[#allocation3 + $0xbc] sm:$0x1] %v453_v8  ;;  %v15853_v21 = vld [vmem:[#allocation24_spill] sm:$0xff]  ;;  %v15855_v46 = vld [vmem:[#allocation41_spill] sm:$0xff]  ;;  %v14516_v54 = vadd.f32 %v11542_v29, %v15857_v45 }
 0x290   : > { %v14392_v7 = vadd.f32 %v11463_v2, %v13976_v0  ;;  %v12571_v0 = vld [vmem:[%s15759_s3 + $0x170] sm:$0xff]   ;;  %v14406_v2 = vpop.f32.mrf.mxu1  ;;  %v14508_v62 = vadd.f32 %v11536_v4, %v15853_v21  ;;  %v15854_v17 = vld [vmem:[#allocation40_spill] sm:$0xff] }
 0x291   : > { %v11465_v57 = vpop.f32.mrf.mxu0  ;;  %11835 = vmatprep.subr.bf16.mxu1 %v12571_v0  ;;  %v15841_v0 = vld [vmem:[#allocation21_spill] sm:$0xff] }
 0x292   : > { %v11466_v35 = vadd.f32 %v11465_v57, %v11464_v33  ;;  %v399_v33 = vsel %vm12932_vm3, 0, %v398_v47  ;;  %11836 = vmatpush3.bf16.msra.mxu1 %v12575_v42  ;;  %v14415_v23 = vpop.f32.mrf.mxu1  ;;  %v11494_v57 = vadd.f32 %v14093_v41, %v14091_v9  ;;  %v11515_v9 = vadd.f32 %v14177_v53, %v14173_v12  ;;  %v15842_v47 = vld [vmem:[#allocation31_spill] sm:$0xff] }
 0x293   : > { %400 = vst [vmem:[#allocation3 + $0xb4] sm:$0x1] %v399_v33  ;;  %v11539_v12 = vadd.f32 %v15834_v16, %v14296_v40  ;;  %v15840_v40 = vld [vmem:[#allocation18_spill] sm:$0xff]  ;;  %v14490_v42 = vadd.f32 %v11527_v50, %v15841_v0  ;;  %v15843_v33 = vld [vmem:[#allocation33_spill] sm:$0xff]  ;;  %v11554_v50 = vadd.f32 %v15851_v6, %v15850_v22 }
 0x294   : > { %v14409_v55 = vadd.f32 %v11466_v35, %v13980_v59  ;;  %v11500_v59 = vadd.f32 %v14115_v30, %v14105_v32  ;;  %v11571_v41 = vpop.f32.mrf.mxu1  ;;  %v14441_v30 = vadd.f32 %v11494_v57, %v14089_v58  ;;  %v11530_v58 = vadd.f32 %v14266_v26, %v14259_v1  ;;  %v15845_v57 = vld [vmem:[#allocation35_spill] sm:$0xff]  ;;  %v15858_v0 = vld [vmem:[#allocation42_spill] sm:$0xff] }
 0x295   : > { %v14472_v5 = vadd.f32 %v11515_v9, %v15835_v52  ;;  %v14487_v35 = vadd.f32 %v11518_v44, %v15840_v40  ;;  %v11545_v19 = vadd.f32 %v15843_v33, %v15842_v47  ;;  %v11548_v31 = vadd.f32 %v15845_v57, %v15844_v18  ;;  %v15849_v9 = vld [vmem:[#allocation37_spill] sm:$0xff]  ;;  %v15859_v47 = vld [vmem:[#allocation43_spill] sm:$0xff]  ;;  %v15860_v33 = vld [vmem:[#allocation44_spill] sm:$0xff] }
 0x296   : > { %v14438_v32 = vadd.f32 %v11500_v59, %v14101_v3  ;;  %v15846_v59 = vld [vmem:[#allocation15_spill] sm:$0xff]  ;;  %v14498_v28 = vadd.f32 %v11530_v58, %v15847_v61  ;;  %v11551_v44 = vadd.f32 %v15849_v9, %v15848_v27  ;;  %v15856_v58 = vld [vmem:[#allocation25_spill] sm:$0xff]  ;;  %v11560_v40 = vadd.f32 %v14368_v56, %v14363_v38  ;;  %v15863_v9 = vld [vmem:[#allocation32_spill] sm:$0xff] }
 0x297   : > { %v14513_v8 = vadd.f32 %v11539_v12, %v15856_v58  ;;  %v11566_v4 = vadd.f32 %v14384_v43, %v15860_v33  ;;  %v11569_v18 = vadd.f32 %v14406_v2, %v14389_v51  ;;  %v15862_v27 = vld [vmem:[#allocation29_spill] sm:$0xff]  ;;  %v14531_v22 = vadd.f32 %v11548_v31, %v15863_v9  ;;  %v15865_v51 = vld [vmem:[#allocation10_spill] sm:$0xff] }
 0x298   : > { %v14528_v29 = vadd.f32 %v11545_v19, %v15862_v27  ;;  %v11572_v56 = vadd.f32 %v11571_v41, %v14415_v23  ;;  %v15864_v43 = vld [vmem:[#allocation9_spill] sm:$0xff]  ;;  %v14538_v2 = vadd.f32 %v11554_v50, %v15865_v51  ;;  %v15866_v19 = vld [vmem:[#allocation11_spill] sm:$0xff] }
 0x299   : > { %v14548_v41 = vadd.f32 %v11569_v18, %v14382_v10 }
 0x29a   : > { %v14561_v33 = vadd.f32 %v11572_v56, %v14387_v24 }
 0x2a1   : > { %v11467_v3 = vpop.f32.mrf.mxu0 }
 0x2a3   : > { %v11468_v26 = vpop.f32.mrf.mxu0 }
 0x2a4   : > { %v11469_v13 = vadd.f32 %v11468_v26, %v11467_v3  ;;  %v15852_v26 = vld [vmem:[#allocation23_spill] sm:$0xff] }
 0x2a5   : > { %v11573_v53 = vpop.f32.mrf.mxu1  ;;  %v11470_v1 = vpop.f32.mrf.mxu0  ;;  %v14505_v52 = vadd.f32 %v11533_v15, %v15852_v26  ;;  %v11563_v15 = vadd.f32 %v15859_v47, %v15858_v0  ;;  %v14535_v26 = vadd.f32 %v11551_v44, %v15864_v43  ;;  %v15869_v44 = vld [vmem:[#allocation14_spill] sm:$0xff]  ;;  %v5837_v43 = vld [vmem:[#allocation3 + $0x18] sm:$0xf] }
 0x2a6   : > { %v4989_v60 = vadd.f32 %v11469_v13, %v15846_v59  ;;  %v11557_v13 = vadd.f32 %v15855_v46, %v15854_v17  ;;  %v15861_v59 = vld [vmem:[#allocation16_spill] sm:$0xff]  ;;  %v14554_v50 = vadd.f32 %v11566_v4, %v15869_v44 }
 0x2a7   : > { %v11574_v25 = vpop.f32.mrf.mxu1  ;;  %v11471_v16 = vpop.f32.mrf.mxu0  ;;  %v12589_v4 = vld [vmem:[%s15759_s3 + $0x128] sm:$0xff]  }
 0x2a8   : > { %v11472_v63 = vadd.f32 %v11471_v16, %v11470_v1  ;;  %v11575_v38 = vadd.f32 %v11574_v25, %v11573_v53  ;;  %v14542_v17 = vadd.f32 %v11557_v13, %v15866_v19  ;;  %v15868_v53 = vld [vmem:[#allocation13_spill] sm:$0xff]  ;;  %v12585_v13 = vld [vmem:[%s15759_s3 + $0x168] sm:$0xff]  }
 0x2a9   : > { %v11576_v3 = vpop.f32.mrf.mxu1  ;;  %v14551_v25 = vadd.f32 %v11563_v15, %v15868_v53  ;;  %11837 = vmatprep.subr.bf16.mxu1 %v12585_v13  ;;  %v12684_v13 = vld [vmem:[%s15759_s3 + $0x180] sm:$0xff]  }
 0x2aa   : > { %v4992_v12 = vadd.f32 %v11472_v63, %v15861_v59  ;;  %v15867_v63 = vld [vmem:[#allocation12_spill] sm:$0xff]  ;;  %v14564_v15 = vadd.f32 %v11575_v38, %v14392_v7  ;;  %11838 = vmatpush3.bf16.msra.mxu1 %v12589_v4 }
 0x2ab   : > { %v11577_v57 = vpop.f32.mrf.mxu1  ;;  %v14545_v23 = vadd.f32 %v11560_v40, %v15867_v63 }
 0x2ac   : > { %v14569_v18 = vadd.f32 %v11577_v57, %v11576_v3 }
 0x2ad   : > { %v12187_v1 = vpop.f32.mrf.mxu0  ;;  %v11579_v6 = vpop.f32.mrf.mxu1 }
 0x2ae   : > { %v5199_v61 = vadd.f32 %v12187_v1, %v5038_v39 }
 0x2af   : > { %v5190_v16 = vpop.f32.mrf.mxu0  ;;  %v11580_v31 = vpop.f32.mrf.mxu1 }
 0x2b0   : > { %vm5319_vm15 = vcmp.ge.f32.partialorder %v5199_v61, 0.0  ;;  %v5351_v21 = vmul.f32 0.2, %v5199_v61  ;;  %v5191_v39 = vadd.f32 %v5190_v16, %v14434_v11  ;;  %v11581_v58 = vadd.f32 %v11580_v31, %v11579_v6 }
 0x2b1   : > { %v12188_v46 = vpop.f32.mrf.mxu0  ;;  %v11582_v0 = vpop.f32.mrf.mxu1 }
 0x2b2   : > { %v5383_v45 = vsel %vm5319_vm15, %v5199_v61, %v5351_v21  ;;  %vm5317_vm0 = vcmp.ge.f32.partialorder %v5191_v39, 0.0  ;;  %v5349_v11 = vmul.f32 0.2, %v5191_v39  ;;  %v5202_v47 = vadd.f32 %v12188_v46, %v14438_v32 }
 0x2b3   : > { %v11107_v40 = vpack.c.bf16 %v5383_v45, %v5383_v45  ;;  %v5193_v10 = vpop.f32.mrf.mxu0  ;;  %v14572_v61 = vadd.f32 %v11581_v58, %v4989_v60  ;;  %v11583_v32 = vpop.f32.mrf.mxu1  ;;  %v5830_v58 = vld [vmem:[#allocation3 + $0xc] sm:$0xf] }
 0x2b4   : > { %v5381_v1 = vsel %vm5317_vm0, %v5191_v39, %v5349_v11  ;;  %v5194_v59 = vadd.f32 %v5193_v10, %v14441_v30  ;;  %vm5320_vm1 = vcmp.ge.f32.partialorder %v5202_v47, 0.0  ;;  %v11584_v56 = vadd.f32 %v11583_v32, %v11582_v0 }
 0x2b5   : > { %v5527_v27 = vshrl.u32 %v11107_v40, 16  ;;  %v5530_v9 = vshll.u32 %v11107_v40, 16  ;;  %5976 = vst [vmem:[#allocation4 + $0x60] sm:$0xf] %v11107_v40  ;;  %v11105_v24 = vpack.c.bf16 %v5381_v1, %v5381_v1  ;;  %v12191_v7 = vpop.f32.mrf.mxu0  ;;  %v5352_v38 = vmul.f32 0.2, %v5202_v47 }
 0x2b6   : > { %vm5318_vm2 = vcmp.ge.f32.partialorder %v5194_v59, 0.0  ;;  %v5350_v6 = vmul.f32 0.2, %v5194_v59  ;;  %v5215_v30 = vadd.f32 %v12191_v7, %v14457_v34  ;;  %v14576_v19 = vadd.f32 %v11584_v56, %v4992_v12  ;;  %v5841_v7 = vld [vmem:[#allocation3 + $0x20] sm:$0x1] }
 0x2b7   : > { %v5529_v3 = vrot.slane %v5527_v27, 7  ;;  %v5510_v57 = vshrl.u32 %v11105_v24, 16  ;;  %v5513_v16 = vshll.u32 %v11105_v24, 16  ;;  %5974 = vst [vmem:[#allocation4 + $0x10] sm:$0xf] %v11105_v24  ;;  %v5206_v60 = vpop.f32.mrf.mxu0  ;;  %v5384_v51 = vsel %vm5320_vm1, %v5202_v47, %v5352_v38 }
 0x2b8   : > { %v5382_v21 = vsel %vm5318_vm2, %v5194_v59, %v5350_v6  ;;  %v5207_v39 = vadd.f32 %v5206_v60, %v14444_v36  ;;  %v11108_v53 = vpack.c.bf16 %v5384_v51, %v5384_v51  ;;  %vm5323_vm4 = vcmp.ge.f32.partialorder %v5215_v30, 0.0  ;;  %v5834_v60 = vld [vmem:[#allocation3 + $0x14] sm:$0x1] }
 0x2b9   : > { %v5532_v31 = vor.u32 %v5530_v9, %v5529_v3  ;;  %v5533_v46 = vrot.slane %v5529_v3, 4  ;;  %v5512_v63 = vrot.slane %v5510_v57, 7  ;;  %v12192_v44 = vpop.f32.mrf.mxu0  ;;  %v11106_v45 = vpack.c.bf16 %v5382_v21, %v5382_v21  ;;  %v12599_v21 = vld [vmem:[%s15759_s3 + $0x160] sm:$0xff]  }
 0x2ba   : > { %v5355_v11 = vmul.f32 0.2, %v5215_v30  ;;  %vm5321_vm5 = vcmp.ge.f32.partialorder %v5207_v39, 0.0  ;;  %v5535_v47 = vshrl.u32 %v11108_v53, 16  ;;  %5977 = vst [vmem:[#allocation4 + $0x88] sm:$0xf] %v11108_v53  ;;  %v5218_v38 = vadd.f32 %v12192_v44, %v14460_v37  ;;  %11839 = vmatprep.subr.bf16.mxu1 %v12599_v21 }
 0x2bb   : > { %v5838_v34 = vsel %vm13032_vm10, %v5532_v31, %v5837_v43  ;;  %v5515_v0 = vor.u32 %v5513_v16, %v5512_v63  ;;  %v5516_v40 = vrot.slane %v5512_v63, 4  ;;  %v5209_v36 = vpop.f32.mrf.mxu0  ;;  %v5538_v12 = vshll.u32 %v11108_v53, 16  ;;  %5975 = vst [vmem:[#allocation4 + $0x38] sm:$0xf] %v11106_v45 }
 0x2bc   : > { %5839 = vst [vmem:[#allocation3 + $0x18] sm:$0xf] %v5838_v34  ;;  %v5518_v10 = vshrl.u32 %v11106_v45, 16  ;;  %v5521_v4 = vshll.u32 %v11106_v45, 16  ;;  %v5387_v1 = vsel %vm5323_vm4, %v5215_v30, %v5355_v11  ;;  %v5537_v32 = vrot.slane %v5535_v47, 7 }
 0x2bd   : > { %v5831_v59 = vsel %vm13032_vm10, %v5515_v0, %v5830_v58  ;;  %v11111_v27 = vpack.c.bf16 %v5387_v1, %v5387_v1  ;;  %v5353_v9 = vmul.f32 0.2, %v5207_v39  ;;  %v12195_v24 = vpop.f32.mrf.mxu0  ;;  %v5210_v6 = vadd.f32 %v5209_v36, %v14463_v20  ;;  %v5851_v34 = vld [vmem:[#allocation3 + $0x30] sm:$0xf] }
 0x2be   : > { %5832 = vst [vmem:[#allocation3 + $0xc] sm:$0xf] %v5831_v59  ;;  %v5520_v56 = vrot.slane %v5518_v10, 7  ;;  %v5231_v3 = vadd.f32 %v12195_v24, %v14481_v48  ;;  %v5540_v57 = vor.u32 %v5538_v12, %v5537_v32  ;;  %v5542_v16 = vrot.slane %v5537_v32, 4  ;;  %v12603_v32 = vld [vmem:[%s15759_s3 + $0x120] sm:$0xff]  }
 0x2bf   : > { %v5561_v30 = vshrl.u32 %v11111_v27, 16  ;;  %v5564_v43 = vshll.u32 %v11111_v27, 16  ;;  %5980 = vst [vmem:[#allocation4 + $0x100] sm:$0xf] %v11111_v27  ;;  %v5222_v51 = vpop.f32.mrf.mxu0  ;;  %v5385_v53 = vsel %vm5321_vm5, %v5207_v39, %v5353_v9  ;;  %vm5324_vm6 = vcmp.ge.f32.partialorder %v5218_v38, 0.0  ;;  %11840 = vmatpush3.bf16.msra.mxu1 %v12603_v32 }
 0x2c0   : > { %v5523_v31 = vor.u32 %v5521_v4, %v5520_v56  ;;  %v5525_v63 = vrot.slane %v5520_v56, 4  ;;  %v5541_v20 = vsel %vm13039_vm11, %v5533_v46, %v5540_v57  ;;  %v5842_v48 = vsel %vm12932_vm3, %v5542_v16, %v5841_v7 }
 0x2c1   : > { %v14593_v44 = vrot.slane %v5561_v30, 7  ;;  %v11109_v58 = vpack.c.bf16 %v5385_v53, %v5385_v53  ;;  %v12196_v45 = vpop.f32.mrf.mxu0  ;;  %5840 = vst [vmem:[#allocation3 + $0x1c] sm:$0xf] %v5541_v20  ;;  %5843 = vst [vmem:[#allocation3 + $0x20] sm:$0x1] %v5842_v48  ;;  %vm5322_vm7 = vcmp.ge.f32.partialorder %v5210_v6, 0.0  ;;  %v5223_v7 = vadd.f32 %v5222_v51, %v14472_v5 }
 0x2c2   : > { %v5524_v11 = vsel %vm13039_vm11, %v5516_v40, %v5523_v31  ;;  %v5835_v39 = vsel %vm12932_vm3, %v5525_v63, %v5834_v60  ;;  %v5356_v0 = vmul.f32 0.2, %v5218_v38  ;;  %v5354_v40 = vmul.f32 0.2, %v5210_v6 }
 0x2c3   : > { %5833 = vst [vmem:[#allocation3 + $0x10] sm:$0xf] %v5524_v11  ;;  %5836 = vst [vmem:[#allocation3 + $0x14] sm:$0x1] %v5835_v39  ;;  %v5566_v46 = vor.u32 %v5564_v43, %v14593_v44  ;;  %v5567_v47 = vrot.slane %v14593_v44, 4  ;;  %v5544_v36 = vshrl.u32 %v11109_v58, 16  ;;  %v5225_v10 = vpop.f32.mrf.mxu0  ;;  %v5234_v30 = vadd.f32 %v12196_v45, %v14484_v49 }
 0x2c4   : > { %v5547_v12 = vshll.u32 %v11109_v58, 16  ;;  %5978 = vst [vmem:[#allocation4 + $0xb0] sm:$0xf] %v11109_v58  ;;  %v6840_v4 = vld [vmem:[#allocation3 + $0x18] sm:$0xf]  ;;  %v5388_v1 = vsel %vm5324_vm6, %v5218_v38, %v5356_v0  ;;  %vm5327_vm9 = vcmp.ge.f32.partialorder %v5231_v3, 0.0  ;;  %v5386_v16 = vsel %vm5322_vm7, %v5210_v6, %v5354_v40 }
 0x2c5   : > { %v5359_v59 = vmul.f32 0.2, %v5231_v3  ;;  %6872 = vst [vmem:[#allocation4 + $0x5c] sm:$0xf] %v6840_v4  ;;  %v5852_v27 = vsel %vm13032_vm10, %v5566_v46, %v5851_v34  ;;  %v14607_v9 = vrot.slane %v5544_v36, 7  ;;  %v11112_v24 = vpack.c.bf16 %v5388_v1, %v5388_v1  ;;  %v14610_v56 = vpop.f32.mrf.mxu0 }
 0x2c6   : > { %v6838_v57 = vld [vmem:[#allocation3 + $0xc] sm:$0xf]  ;;  %5853 = vst [vmem:[#allocation3 + $0x30] sm:$0xf] %v5852_v27  ;;  %v5844_v38 = vld [vmem:[#allocation3 + $0x24] sm:$0xf]  ;;  %v14615_v43 = vadd.f32 %v5225_v10, %v14487_v35  ;;  %v11110_v20 = vpack.c.bf16 %v5386_v16, %v5386_v16 }
 0x2c7   : > { %v5391_v60 = vsel %vm5327_vm9, %v5231_v3, %v5359_v59  ;;  %6870 = vst [vmem:[#allocation4 + $0xc] sm:$0xf] %v6838_v57  ;;  %v6008_v21 = vld [vmem:[#allocation3 + $0xc] sm:$0xf]  ;;  %v5549_v31 = vor.u32 %v5547_v12, %v14607_v9  ;;  %v5550_v5 = vrot.slane %v14607_v9, 4  ;;  %v5569_v51 = vshrl.u32 %v11112_v24, 16  ;;  %v14619_v53 = vpop.f32.mrf.mxu0 }
 0x2c8   : > { %v5572_v63 = vshll.u32 %v11112_v24, 16  ;;  %5981 = vst [vmem:[#allocation4 + $0x128] sm:$0xf] %v11112_v24  ;;  %6040 = vst [vmem:[#allocation4 + $0x50] sm:$0xf] %v6008_v21  ;;  %v11115_v49 = vpack.c.bf16 %v5391_v60, %v5391_v60  ;;  %vm5325_vm12 = vcmp.ge.f32.partialorder %v5223_v7, 0.0 }
 0x2c9   : > { %v6010_v6 = vld [vmem:[#allocation3 + $0x18] sm:$0xf]  ;;  %v5357_v35 = vmul.f32 0.2, %v5223_v7  ;;  %v5845_v48 = vsel %vm13032_vm10, %v5549_v31, %v5844_v38  ;;  %v5571_v58 = vrot.slane %v5569_v51, 7  ;;  %vm5328_vm13 = vcmp.ge.f32.partialorder %v5234_v30, 0.0  ;;  %v12200_v11 = vpop.f32.mrf.mxu0 }
 0x2ca   : > { %v5855_v3 = vld [vmem:[#allocation3 + $0x38] sm:$0x1]  ;;  %6042 = vst [vmem:[#allocation4 + $0xa0] sm:$0xf] %v6010_v6  ;;  %v5360_v45 = vmul.f32 0.2, %v5234_v30 }
 0x2cb   : > { %v6841_v39 = vld [vmem:[#allocation3 + $0x1c] sm:$0xf]  ;;  %5846 = vst [vmem:[#allocation3 + $0x24] sm:$0xf] %v5845_v48  ;;  %v5552_v34 = vshrl.u32 %v11110_v20, 16  ;;  %v5555_v0 = vshll.u32 %v11110_v20, 16  ;;  %v5574_v10 = vor.u32 %v5572_v63, %v5571_v58  ;;  %v5389_v1 = vsel %vm5325_vm12, %v5223_v7, %v5357_v35  ;;  %v5241_v59 = vpop.f32.mrf.mxu0 }
 0x2cc   : > { %5979 = vst [vmem:[#allocation4 + $0xd8] sm:$0xf] %v11110_v20  ;;  %v5595_v46 = vshrl.u32 %v11115_v49, 16  ;;  %v5598_v36 = vshll.u32 %v11115_v49, 16  ;;  %5984 = vst [vmem:[#allocation4 + $0x1a0] sm:$0xf] %v11115_v49  ;;  %v5392_v40 = vsel %vm5328_vm13, %v5234_v30, %v5360_v45  ;;  %v11113_v24 = vpack.c.bf16 %v5389_v1, %v5389_v1 }
 0x2cd   : > { %v6839_v12 = vld [vmem:[#allocation3 + $0x10] sm:$0xf]  ;;  %6873 = vst [vmem:[#allocation4 + $0x84] sm:$0xf] %v6841_v39  ;;  %v5576_v4 = vrot.slane %v5571_v58, 4  ;;  %v5554_v32 = vrot.slane %v5552_v34, 7  ;;  %v11116_v57 = vpack.c.bf16 %v5392_v40, %v5392_v40  ;;  %v5575_v16 = vsel %vm13039_vm11, %v5567_v47, %v5574_v10  ;;  %v12203_v21 = vpop.f32.mrf.mxu0 }
 0x2ce   : > { %6871 = vst [vmem:[#allocation4 + $0x34] sm:$0xf] %v6839_v12  ;;  %v5848_v27 = vld [vmem:[#allocation3 + $0x2c] sm:$0x1]  ;;  %v14625_v9 = vrot.slane %v5595_v46, 7  ;;  %vm5326_vm15 = vcmp.ge.f32.partialorder %v14615_v43, 0.0  ;;  %v5247_v10 = vadd.f32 %v14610_v56, %v14505_v52  ;;  %v5239_v1 = vadd.f32 %v14619_v53, %v14490_v42 }
 0x2cf   : > { %v6009_v38 = vld [vmem:[#allocation3 + $0x10] sm:$0xf]  ;;  %v5856_v60 = vsel %vm12932_vm3, %v5576_v4, %v5855_v3  ;;  %v5865_v7 = vld [vmem:[#allocation3 + $0x48] sm:$0xf]  ;;  %v5358_v30 = vmul.f32 0.2, %v14615_v43  ;;  %v5557_v31 = vor.u32 %v5555_v0, %v5554_v32  ;;  %v14637_v49 = vpop.f32.mrf.mxu0  ;;  %v5242_v40 = vadd.f32 %v5241_v59, %v14498_v28 }
 0x2d0   : > { %6041 = vst [vmem:[#allocation4 + $0x78] sm:$0xf] %v6009_v38  ;;  %5854 = vst [vmem:[#allocation3 + $0x34] sm:$0xf] %v5575_v16  ;;  %v5559_v51 = vrot.slane %v5554_v32, 4  ;;  %v5600_v63 = vor.u32 %v5598_v36, %v14625_v9  ;;  %v5601_v44 = vrot.slane %v14625_v9, 4  ;;  %v14657_v32 = vadd.f32 %v12203_v21, %v14528_v29 }
 0x2d1   : > { %5857 = vst [vmem:[#allocation3 + $0x38] sm:$0x1] %v5856_v60  ;;  %5982 = vst [vmem:[#allocation4 + $0x150] sm:$0xf] %v11113_v24  ;;  %v5578_v47 = vshrl.u32 %v11113_v24, 16  ;;  %v5581_v6 = vshll.u32 %v11113_v24, 16  ;;  %v5558_v48 = vsel %vm13039_vm11, %v5550_v5, %v5557_v31  ;;  %v5390_v34 = vsel %vm5326_vm15, %v14615_v43, %v5358_v30 }
 0x2d2   : > { %5985 = vst [vmem:[#allocation4 + $0x1c8] sm:$0xf] %v11116_v57  ;;  %v5603_v3 = vshrl.u32 %v11116_v57, 16  ;;  %v5606_v20 = vshll.u32 %v11116_v57, 16  ;;  %v6011_v35 = vld [vmem:[#allocation3 + $0x1c] sm:$0xf]  ;;  %v5849_v58 = vsel %vm12932_vm3, %v5559_v51, %v5848_v27  ;;  %v5866_v45 = vsel %vm13032_vm10, %v5600_v63, %v5865_v7  ;;  %v14659_v27 = vpop.f32.mrf.mxu0 }
 0x2d3   : > { %v5858_v39 = vld [vmem:[#allocation3 + $0x3c] sm:$0xf]  ;;  %6043 = vst [vmem:[#allocation4 + $0xc8] sm:$0xf] %v6011_v35  ;;  %v6844_v0 = vld [vmem:[#allocation3 + $0x30] sm:$0xf]  ;;  %v11114_v12 = vpack.c.bf16 %v5390_v34, %v5390_v34  ;;  %v5250_v43 = vadd.f32 %v12200_v11, %v14508_v62 }
 0x2d4   : > { %5847 = vst [vmem:[#allocation3 + $0x28] sm:$0xf] %v5558_v48  ;;  %5850 = vst [vmem:[#allocation3 + $0x2c] sm:$0x1] %v5849_v58  ;;  %v14648_v46 = vrot.slane %v5578_v47, 7  ;;  %v5605_v36 = vrot.slane %v5603_v3, 7  ;;  %v14676_v63 = vpop.f32.mrf.mxu0 }
 0x2d5   : > { %5867 = vst [vmem:[#allocation3 + $0x48] sm:$0xf] %v5866_v45  ;;  %v5869_v5 = vld [vmem:[#allocation3 + $0x50] sm:$0x1]  ;;  %v6842_v4 = vld [vmem:[#allocation3 + $0x24] sm:$0xf] }
 0x2d6   : > { %6876 = vst [vmem:[#allocation4 + $0xfc] sm:$0xf] %v6844_v0  ;;  %v12554_v9 = vld [vmem:[#allocation4 + $0x8] ss:$40 sps:$4 sm:$0xff]   ;;  %v12556_v24 = vld [vmem:[#allocation4 + $0xc] ss:$40 sps:$4 sm:$0xff]   ;;  %v5583_v57 = vor.u32 %v5581_v6, %v14648_v46  ;;  %v5608_v56 = vor.u32 %v5606_v20, %v5605_v36 }
 0x2d7   : > { %6874 = vst [vmem:[#allocation4 + $0xac] sm:$0xf] %v6842_v4  ;;  %v5584_v52 = vrot.slane %v14648_v46, 4  ;;  %v5610_v38 = vrot.slane %v5605_v36, 4  ;;  %5983 = vst [vmem:[#allocation4 + $0x178] sm:$0xf] %v11114_v12  ;;  %9807 = vmatprep.mubr.bf16.mxu0 %v12556_v24  ;;  %v14686_v4 = vpop.f32.mrf.mxu0 }
 0x2d8   : > { %v6012_v42 = vld [vmem:[#allocation3 + $0x24] sm:$0xf]  ;;  %v5586_v53 = vshrl.u32 %v11114_v12, 16  ;;  %v5589_v62 = vshll.u32 %v11114_v12, 16  ;;  %vm5331_vm0 = vcmp.ge.f32.partialorder %v5247_v10, 0.0  ;;  %v5859_v11 = vsel %vm13032_vm10, %v5583_v57, %v5858_v39  ;;  %9808 = vmatmul.mubr.bf16.vlgmr.msra.gmra.mxu0 %v12554_v9 }
 0x2d9   : > { %v5363_v28 = vmul.f32 0.2, %v5247_v10  ;;  %6044 = vst [vmem:[#allocation4 + $0xf0] sm:$0xf] %v6012_v42  ;;  %v12613_v29 = vld [vmem:[%s15759_s3 + $0x158] sm:$0xff]   ;;  %v5609_v59 = vsel %vm13039_vm11, %v5601_v44, %v5608_v56  ;;  %v5870_v16 = vsel %vm12932_vm3, %v5610_v38, %v5869_v5  ;;  %vm5329_vm1 = vcmp.ge.f32.partialorder %v5239_v1, 0.0 }
 0x2da   : > { %v6845_v60 = vld [vmem:[#allocation3 + $0x34] sm:$0xf]  ;;  %v12617_v7 = vld [vmem:[%s15759_s3 + $0x118] sm:$0xff]   ;;  %5860 = vst [vmem:[#allocation3 + $0x3c] sm:$0xf] %v5859_v11  ;;  %v5588_v30 = vrot.slane %v5586_v53, 7  ;;  %11841 = vmatprep.subr.bf16.mxu1 %v12613_v29  ;;  %v5255_v42 = vadd.f32 %v14637_v49, %v14513_v8  ;;  %v5270_v49 = vpop.f32.mrf.mxu0 }
 0x2db   : > { %5868 = vst [vmem:[#allocation3 + $0x4c] sm:$0xf] %v5609_v59  ;;  %5871 = vst [vmem:[#allocation3 + $0x50] sm:$0x1] %v5870_v16  ;;  %v5862_v21 = vld [vmem:[#allocation3 + $0x44] sm:$0x1]  ;;  %v5395_v31 = vsel %vm5331_vm0, %v5247_v10, %v5363_v28  ;;  %11842 = vmatpush3.bf16.msra.mxu1 %v12617_v7 }
 0x2dc   : > { %v5361_v51 = vmul.f32 0.2, %v5239_v1  ;;  %vm5332_vm2 = vcmp.ge.f32.partialorder %v5250_v43, 0.0  ;;  %6877 = vst [vmem:[#allocation4 + $0x124] sm:$0xf] %v6845_v60  ;;  %v11119_v44 = vpack.c.bf16 %v5395_v31, %v5395_v31  ;;  %vm5330_vm4 = vcmp.ge.f32.partialorder %v5242_v40, 0.0 }
 0x2dd   : > { %v5364_v47 = vmul.f32 0.2, %v5250_v43  ;;  %v5362_v6 = vmul.f32 0.2, %v5242_v40  ;;  %v5591_v3 = vor.u32 %v5589_v62, %v5588_v30  ;;  %v5593_v20 = vrot.slane %v5588_v30, 4  ;;  %v12627_v59 = vld [vmem:[%s15759_s3 + $0x150] sm:$0xff]  }
 0x2de   : > { %v5393_v35 = vsel %vm5329_vm1, %v5239_v1, %v5361_v51  ;;  %vm5335_vm5 = vcmp.ge.f32.partialorder %v14657_v32, 0.0  ;;  %v6843_v48 = vld [vmem:[#allocation3 + $0x28] sm:$0xf]  ;;  %v5629_v58 = vshrl.u32 %v11119_v44, 16  ;;  %v5632_v45 = vshll.u32 %v11119_v44, 16  ;;  %11843 = vmatprep.subr.bf16.mxu1 %v12627_v59 }
 0x2df   : > { %5988 = vst [vmem:[#allocation4 + $0x240] sm:$0xf] %v11119_v44  ;;  %v11117_v39 = vpack.c.bf16 %v5393_v35, %v5393_v35  ;;  %v5396_v34 = vsel %vm5332_vm2, %v5250_v43, %v5364_v47  ;;  %6875 = vst [vmem:[#allocation4 + $0xd4] sm:$0xf] %v6843_v48  ;;  %v6013_v0 = vld [vmem:[#allocation3 + $0x28] sm:$0xf]  ;;  %v5592_v46 = vsel %vm13039_vm11, %v5584_v52, %v5591_v3 }
 0x2e0   : > { %v5863_v36 = vsel %vm12932_vm3, %v5593_v20, %v5862_v21  ;;  %v5879_v5 = vld [vmem:[#allocation3 + $0x60] sm:$0xf]  ;;  %v11120_v12 = vpack.c.bf16 %v5396_v34, %v5396_v34  ;;  %v5394_v10 = vsel %vm5330_vm4, %v5242_v40, %v5362_v6  ;;  %6045 = vst [vmem:[#allocation4 + $0x118] sm:$0xf] %v6013_v0  ;;  %5861 = vst [vmem:[#allocation3 + $0x40] sm:$0xf] %v5592_v46 }
 0x2e1   : > { %5864 = vst [vmem:[#allocation3 + $0x44] sm:$0x1] %v5863_v36  ;;  %v5631_v1 = vrot.slane %v5629_v58, 7  ;;  %v5612_v9 = vshrl.u32 %v11117_v39, 16  ;;  %v5615_v43 = vshll.u32 %v11117_v39, 16  ;;  %v11118_v24 = vpack.c.bf16 %v5394_v10, %v5394_v10 }
 0x2e2   : > { %5986 = vst [vmem:[#allocation4 + $0x1f0] sm:$0xf] %v11117_v39  ;;  %v6014_v57 = vld [vmem:[#allocation3 + $0x30] sm:$0xf]  ;;  %v5637_v56 = vshrl.u32 %v11120_v12, 16  ;;  %v5640_v52 = vshll.u32 %v11120_v12, 16 }
 0x2e3   : > { %5989 = vst [vmem:[#allocation4 + $0x268] sm:$0xf] %v11120_v12  ;;  %v5367_v38 = vmul.f32 0.2, %v14657_v32  ;;  %v6015_v40 = vld [vmem:[#allocation3 + $0x34] sm:$0xf]  ;;  %v5634_v53 = vor.u32 %v5632_v45, %v5631_v1  ;;  %v5266_v45 = vadd.f32 %v14659_v27, %v14531_v22  ;;  %v12208_v12 = vpop.f32.mrf.mxu0 }
 0x2e4   : > { %6046 = vst [vmem:[#allocation4 + $0x140] sm:$0xf] %v6014_v57  ;;  %v5635_v62 = vrot.slane %v5631_v1, 4  ;;  %v5614_v28 = vrot.slane %v5612_v9, 7  ;;  %v5620_v29 = vshrl.u32 %v11118_v24, 16  ;;  %v5639_v60 = vrot.slane %v5637_v56, 7 }
 0x2e5   : > { %5987 = vst [vmem:[#allocation4 + $0x218] sm:$0xf] %v11118_v24  ;;  %v6846_v11 = vld [vmem:[#allocation3 + $0x3c] sm:$0xf]  ;;  %6047 = vst [vmem:[#allocation4 + $0x168] sm:$0xf] %v6015_v40  ;;  %v5399_v8 = vsel %vm5335_vm5, %v14657_v32, %v5367_v38  ;;  %v5880_v30 = vsel %vm13032_vm10, %v5634_v53, %v5879_v5 }
 0x2e6   : > { %v5872_v16 = vld [vmem:[#allocation3 + $0x54] sm:$0xf]  ;;  %v5623_v7 = vshll.u32 %v11118_v24, 16  ;;  %vm5333_vm6 = vcmp.ge.f32.partialorder %v5255_v42, 0.0  ;;  %6878 = vst [vmem:[#allocation4 + $0x14c] sm:$0xf] %v6846_v11  ;;  %v5617_v21 = vor.u32 %v5615_v43, %v5614_v28  ;;  %v5642_v47 = vor.u32 %v5640_v52, %v5639_v60 }
 0x2e7   : > { %v5618_v31 = vrot.slane %v5614_v28, 4  ;;  %v5883_v51 = vld [vmem:[#allocation3 + $0x68] sm:$0x1]  ;;  %v5622_v44 = vrot.slane %v5620_v29, 7  ;;  %5881 = vst [vmem:[#allocation3 + $0x60] sm:$0xf] %v5880_v30  ;;  %v11123_v20 = vpack.c.bf16 %v5399_v8, %v5399_v8  ;;  %v5258_v52 = vadd.f32 %v14676_v63, %v14516_v54 }
 0x2e8   : > { %v5644_v6 = vrot.slane %v5639_v60, 4  ;;  %v5876_v3 = vld [vmem:[#allocation3 + $0x5c] sm:$0x1]  ;;  %v5365_v35 = vmul.f32 0.2, %v5255_v42  ;;  %v5873_v32 = vsel %vm13032_vm10, %v5617_v21, %v5872_v16  ;;  %v5643_v0 = vsel %vm13039_vm11, %v5635_v62, %v5642_v47 }
 0x2e9   : > { %v5625_v48 = vor.u32 %v5623_v7, %v5622_v44  ;;  %v5627_v58 = vrot.slane %v5622_v44, 4  ;;  %v6848_v39 = vld [vmem:[#allocation3 + $0x48] sm:$0xf]  ;;  %v6849_v34 = vld [vmem:[#allocation3 + $0x4c] sm:$0xf]  ;;  %v5663_v36 = vshrl.u32 %v11123_v20, 16  ;;  %v5271_v62 = vadd.f32 %v5270_v49, %v14535_v26 }
 0x2ea   : > { %5874 = vst [vmem:[#allocation3 + $0x54] sm:$0xf] %v5873_v32  ;;  %v5884_v46 = vsel %vm12932_vm3, %v5644_v6, %v5883_v51  ;;  %v5666_v5 = vshll.u32 %v11123_v20, 16  ;;  %5992 = vst [vmem:[#allocation4 + $0x2e0] sm:$0xf] %v11123_v20  ;;  %v5397_v9 = vsel %vm5333_vm6, %v5255_v42, %v5365_v35  ;;  %vm5336_vm7 = vcmp.ge.f32.partialorder %v5266_v45, 0.0  ;;  %v14738_v32 = vpop.f32.mrf.mxu0 }
 0x2eb   : > { %v14707_v10 = vld [vmem:[#allocation3 + $0xc] sm:$0xe]  ;;  %v6847_v1 = vld [vmem:[#allocation3 + $0x40] sm:$0xf]  ;;  %6880 = vst [vmem:[#allocation4 + $0x19c] sm:$0xf] %v6848_v39  ;;  %v5626_v22 = vsel %vm13039_vm11, %v5618_v31, %v5625_v48  ;;  %v5877_v27 = vsel %vm12932_vm3, %v5627_v58, %v5876_v3  ;;  %v11121_v57 = vpack.c.bf16 %v5397_v9, %v5397_v9  ;;  %v5279_v42 = vadd.f32 %v14686_v4, %v14542_v17 }
 0x2ec   : > { %6881 = vst [vmem:[#allocation4 + $0x1c4] sm:$0xf] %v6849_v34  ;;  %5882 = vst [vmem:[#allocation3 + $0x64] sm:$0xf] %v5643_v0  ;;  %v6016_v43 = vld [vmem:[#allocation3 + $0x3c] sm:$0xf]  ;;  %v5282_v28 = vadd.f32 %v12208_v12, %v14545_v23 }
 0x2ed   : > { %5885 = vst [vmem:[#allocation3 + $0x68] sm:$0x1] %v5884_v46  ;;  %6879 = vst [vmem:[#allocation4 + $0x174] sm:$0xf] %v6847_v1  ;;  %v14714_v24 = vrot.slane %v5663_v36, 7  ;;  %v12631_v40 = vld [vmem:[%s15759_s3 + $0x110] sm:$0xff]  }
 0x2ee   : > { %5875 = vst [vmem:[#allocation3 + $0x58] sm:$0xf] %v5626_v22  ;;  %5878 = vst [vmem:[#allocation3 + $0x5c] sm:$0x1] %v5877_v27  ;;  %v5368_v56 = vmul.f32 0.2, %v5266_v45  ;;  %11844 = vmatpush3.bf16.msra.mxu1 %v12631_v40 }
 0x2ef   : > { %v6017_v38 = vld [vmem:[#allocation3 + $0x40] sm:$0xf]  ;;  %6048 = vst [vmem:[#allocation4 + $0x190] sm:$0xf] %v6016_v43  ;;  %v5893_v53 = vld [vmem:[#allocation3 + $0x78] sm:$0xf]  ;;  %v5668_v11 = vor.u32 %v5666_v5, %v14714_v24 }
 0x2f0   : > { %v10813_v29 = vrot.slane %v14707_v10, 9  ;;  %6049 = vst [vmem:[#allocation4 + $0x1b8] sm:$0xf] %v6017_v38  ;;  %v5669_v54 = vrot.slane %v14714_v24, 4  ;;  %v5646_v63 = vshrl.u32 %v11121_v57, 16  ;;  %v5649_v59 = vshll.u32 %v11121_v57, 16 }
 0x2f1   : > { %5990 = vst [vmem:[#allocation4 + $0x290] sm:$0xf] %v11121_v57  ;;  %v5400_v16 = vsel %vm5336_vm7, %v5266_v45, %v5368_v56  ;;  %vm5334_vm9 = vcmp.ge.f32.partialorder %v5258_v52, 0.0  ;;  %v5366_v60 = vmul.f32 0.2, %v5258_v52  ;;  %vm5339_vm12 = vcmp.ge.f32.partialorder %v5279_v42, 0.0 }
 0x2f2   : > { %v5894_v26 = vsel %vm13032_vm10, %v5668_v11, %v5893_v53  ;;  %v14731_v17 = vrot.slane %v5646_v63, 7  ;;  %v5886_v23 = vld [vmem:[#allocation3 + $0x6c] sm:$0xf]  ;;  %v11124_v4 = vpack.c.bf16 %v5400_v16, %v5400_v16  ;;  %v5371_v7 = vmul.f32 0.2, %v5279_v42  ;;  %v12641_v27 = vld [vmem:[%s15759_s3 + $0x148] sm:$0xff]   ;;  %v12211_v11 = vpop.f32.mrf.mxu0 }
 0x2f3   : > { %5895 = vst [vmem:[#allocation3 + $0x78] sm:$0xf] %v5894_v26  ;;  %v5398_v8 = vsel %vm5334_vm9, %v5258_v52, %v5366_v60  ;;  %vm5337_vm13 = vcmp.ge.f32.partialorder %v5271_v62, 0.0  ;;  %v5369_v49 = vmul.f32 0.2, %v5271_v62  ;;  %vm5340_vm15 = vcmp.ge.f32.partialorder %v5282_v28, 0.0  ;;  %11845 = vmatprep.subr.bf16.mxu1 %v12641_v27 }
 0x2f4   : > { %v14733_v30 = vld [vmem:[#allocation3 + $0x10] sm:$0xf]  ;;  %v5651_v21 = vor.u32 %v5649_v59, %v14731_v17  ;;  %v5652_v31 = vrot.slane %v14731_v17, 4  ;;  %v5671_v51 = vshrl.u32 %v11124_v4, 16  ;;  %v5674_v44 = vshll.u32 %v11124_v4, 16  ;;  %v12642_v38 = vld [vmem:[%s15759_s3 + $0x1f8] sm:$0xff]  }
 0x2f5   : > { %5993 = vst [vmem:[#allocation4 + $0x308] sm:$0xf] %v11124_v4  ;;  %v6850_v47 = vld [vmem:[#allocation3 + $0x54] sm:$0xf]  ;;  %v11122_v6 = vpack.c.bf16 %v5398_v8, %v5398_v8  ;;  %v5403_v3 = vsel %vm5339_vm12, %v5279_v42, %v5371_v7  ;;  %v5401_v20 = vsel %vm5337_vm13, %v5271_v62, %v5369_v49  ;;  %v5372_v35 = vmul.f32 0.2, %v5282_v28  ;;  %11945 = vmatprep.subr.bf16.mxu0 %v12642_v38 }
 0x2f6   : > { %v6851_v48 = vld [vmem:[#allocation3 + $0x58] sm:$0xf]  ;;  %6882 = vst [vmem:[#allocation4 + $0x1ec] sm:$0xf] %v6850_v47  ;;  %v6018_v58 = vld [vmem:[#allocation3 + $0x48] sm:$0xf]  ;;  %v5887_v45 = vsel %vm13032_vm10, %v5651_v21, %v5886_v23  ;;  %v11127_v34 = vpack.c.bf16 %v5403_v3, %v5403_v3  ;;  %v11125_v0 = vpack.c.bf16 %v5401_v20, %v5401_v20 }
 0x2f7   : > { %v5673_v39 = vrot.slane %v5671_v51, 7  ;;  %6883 = vst [vmem:[#allocation4 + $0x214] sm:$0xf] %v6851_v48  ;;  %v6019_v46 = vld [vmem:[#allocation3 + $0x4c] sm:$0xf]  ;;  %v5654_v5 = vshrl.u32 %v11122_v6, 16  ;;  %v5404_v1 = vsel %vm5340_vm15, %v5282_v28, %v5372_v35  ;;  %v14770_v35 = vpop.f32.mrf.mxu0 }
 0x2f8   : > { %6050 = vst [vmem:[#allocation4 + $0x1e0] sm:$0xf] %v6018_v58  ;;  %5888 = vst [vmem:[#allocation3 + $0x6c] sm:$0xf] %v5887_v45  ;;  %v5897_v36 = vld [vmem:[#allocation3 + $0x80] sm:$0x1]  ;;  %v11128_v28 = vpack.c.bf16 %v5404_v1, %v5404_v1 }
 0x2f9   : > { %v5657_v12 = vshll.u32 %v11122_v6, 16  ;;  %5991 = vst [vmem:[#allocation4 + $0x2b8] sm:$0xf] %v11122_v6  ;;  %v6671_v22 = vrot.slane %v14733_v30, 5  ;;  %6051 = vst [vmem:[#allocation4 + $0x208] sm:$0xf] %v6019_v46  ;;  %v5676_v9 = vor.u32 %v5674_v44, %v5673_v39  ;;  %v5295_v46 = vadd.f32 %v12211_v11, %v14548_v41 }
 0x2fa   : > { %v5678_v43 = vrot.slane %v5673_v39, 4  ;;  %v5890_v57 = vld [vmem:[#allocation3 + $0x74] sm:$0x1]  ;;  %v5697_v56 = vshrl.u32 %v11127_v34, 16  ;;  %v5700_v52 = vshll.u32 %v11127_v34, 16  ;;  %v5656_v40 = vrot.slane %v5654_v5, 7 }
 0x2fb   : > { %5996 = vst [vmem:[#allocation4 + $0x380] sm:$0xf] %v11127_v34  ;;  %5994 = vst [vmem:[#allocation4 + $0x330] sm:$0xf] %v11125_v0  ;;  %v5907_v53 = vld [vmem:[#allocation3 + $0x90] sm:$0xf]  ;;  %v5677_v63 = vsel %vm13039_vm11, %v5669_v54, %v5676_v9  ;;  %v6672_v4 = vsel %vm13195_vm14, %v10813_v29, %v6671_v22 }
 0x2fc   : > { %v5680_v42 = vshrl.u32 %v11125_v0, 16  ;;  %v5683_v62 = vshll.u32 %v11125_v0, 16  ;;  %v5898_v59 = vsel %vm12932_vm3, %v5678_v43, %v5897_v36  ;;  %v5699_v16 = vrot.slane %v5697_v56, 7  ;;  %v5900_v60 = vld [vmem:[#allocation3 + $0x84] sm:$0xf] }
 0x2fd   : > { %v6571_v26 = vld [vmem:[#allocation3 + $0x14] sm:$0x1]  ;;  %v6073_v7 = vld [vmem:[#allocation3 + $0xc] sm:$0xf]  ;;  %5896 = vst [vmem:[#allocation3 + $0x7c] sm:$0xf] %v5677_v63  ;;  %v5659_v8 = vor.u32 %v5657_v12, %v5656_v40 }
 0x2fe   : > { %5899 = vst [vmem:[#allocation3 + $0x80] sm:$0x1] %v5898_v59  ;;  %v5661_v24 = vrot.slane %v5656_v40, 4  ;;  %v14760_v49 = vrot.slane %v5680_v42, 7  ;;  %v5705_v54 = vshrl.u32 %v11128_v28, 16  ;;  %v5702_v21 = vor.u32 %v5700_v52, %v5699_v16  ;;  %v12212_v52 = vpop.f32.mrf.mxu0 }
 0x2ff   : > { %5997 = vst [vmem:[#allocation4 + $0x3a8] sm:$0xf] %v11128_v28  ;;  %6808 = vst [vmem:[#allocation4 + $0x58] sm:$0xf] %v6672_v4  ;;  %v6852_v30 = vld [vmem:[#allocation3 + $0x60] sm:$0xf]  ;;  %v5660_v29 = vsel %vm13039_vm11, %v5652_v31, %v5659_v8  ;;  %v5274_v31 = vadd.f32 %v14738_v32, %v14538_v2 }
 0x300   : > { %v5703_v51 = vrot.slane %v5699_v16, 4  ;;  %v5708_v44 = vshll.u32 %v11128_v28, 16  ;;  %v6673_v47 = vrot.slane %v6671_v22, 4  ;;  %v6853_v10 = vld [vmem:[#allocation3 + $0x64] sm:$0xf]  ;;  %v5891_v6 = vsel %vm12932_vm3, %v5661_v24, %v5890_v57 }
 0x301   : > { %6884 = vst [vmem:[#allocation4 + $0x23c] sm:$0xf] %v6852_v30  ;;  %v5685_v3 = vor.u32 %v5683_v62, %v14760_v49  ;;  %v5686_v20 = vrot.slane %v14760_v49, 4  ;;  %6885 = vst [vmem:[#allocation4 + $0x264] sm:$0xf] %v6853_v10  ;;  %v5908_v17 = vsel %vm13032_vm10, %v5702_v21, %v5907_v53  ;;  %v5707_v45 = vrot.slane %v5705_v54, 7 }
 0x302   : > { %v6020_v48 = vld [vmem:[#allocation3 + $0x54] sm:$0xf]  ;;  %v6021_v58 = vld [vmem:[#allocation3 + $0x58] sm:$0xf]  ;;  %5889 = vst [vmem:[#allocation3 + $0x70] sm:$0xf] %v5660_v29 }
 0x303   : > { %5892 = vst [vmem:[#allocation3 + $0x74] sm:$0x1] %v5891_v6  ;;  %v6674_v39 = vrot.slane %v6571_v26, 5  ;;  %6052 = vst [vmem:[#allocation4 + $0x230] sm:$0xf] %v6020_v48  ;;  %v5901_v34 = vsel %vm13032_vm10, %v5685_v3, %v5900_v60  ;;  %v6143_v5 = vshrl.u32 %v6073_v7, 16  ;;  %v5710_v1 = vor.u32 %v5708_v44, %v5707_v45  ;;  %v5289_v44 = vpop.f32.mrf.mxu0 }
 0x304   : > { %6053 = vst [vmem:[#allocation4 + $0x258] sm:$0xf] %v6021_v58  ;;  %5909 = vst [vmem:[#allocation3 + $0x90] sm:$0xf] %v5908_v17  ;;  %v5911_v0 = vld [vmem:[#allocation3 + $0x98] sm:$0x1] }
 0x305   : > { %v6074_v36 = vld [vmem:[#allocation3 + $0x10] sm:$0xf]  ;;  %v6146_v12 = vshll.u32 %v6073_v7, 16  ;;  %5902 = vst [vmem:[#allocation3 + $0x84] sm:$0xf] %v5901_v34  ;;  %v5712_v22 = vrot.slane %v5707_v45, 4  ;;  %v6675_v27 = vsel %vm13195_vm14, %v6673_v47, %v6674_v39  ;;  %v5711_v41 = vsel %vm13039_vm11, %v5703_v51, %v5710_v1 }
 0x306   : > { %vm5338_vm0 = vcmp.ge.f32.partialorder %v5274_v31, 0.0  ;;  %v6075_v2 = vld [vmem:[#allocation3 + $0x14] sm:$0x1]  ;;  %v6572_v32 = vld [vmem:[#allocation3 + $0x18] sm:$0xe]  ;;  %vm5343_vm1 = vcmp.ge.f32.partialorder %v5295_v46, 0.0  ;;  %v14799_v1 = vadd.f32 %v12212_v52, %v14561_v33 }
 0x307   : > { %v6573_v9 = vld [vmem:[#allocation3 + $0x1c] sm:$0xf]  ;;  %6809 = vst [vmem:[#allocation4 + $0x80] sm:$0xf] %v6675_v27  ;;  %v5370_v43 = vmul.f32 0.2, %v5274_v31  ;;  %v5912_v38 = vsel %vm12932_vm3, %v5712_v22, %v5911_v0  ;;  %v14802_v22 = vadd.f32 %v5289_v44, %v14554_v50 }
 0x308   : > { %v5375_v57 = vmul.f32 0.2, %v5295_v46  ;;  %v6145_v56 = vrot.slane %v6143_v5, 4  ;;  %v6148_v40 = vrot.slane %v6146_v12, 5  ;;  %v6152_v53 = vshll.u32 %v6074_v36, 16  ;;  %v12646_v62 = vld [vmem:[%s15759_s3 + $0x108] sm:$0xff]  }
 0x309   : > { %v6854_v42 = vld [vmem:[#allocation3 + $0x6c] sm:$0xf]  ;;  %5910 = vst [vmem:[#allocation3 + $0x94] sm:$0xf] %v5711_v41  ;;  %5913 = vst [vmem:[#allocation3 + $0x98] sm:$0x1] %v5912_v38  ;;  %v5402_v28 = vsel %vm5338_vm0, %v5274_v31, %v5370_v43  ;;  %11846 = vmatpush3.bf16.msra.mxu1 %v12646_v62  ;;  %v5287_v5 = vadd.f32 %v14770_v35, %v14551_v25 }
 0x30a   : > { %v5407_v11 = vsel %vm5343_vm1, %v5295_v46, %v5375_v57  ;;  %v6156_v63 = vshrl.u32 %v6074_v36, 16  ;;  %v6162_v59 = vshll.u32 %v6075_v2, 16  ;;  %6886 = vst [vmem:[#allocation4 + $0x28c] sm:$0xf] %v6854_v42  ;;  %v6022_v16 = vld [vmem:[#allocation3 + $0x60] sm:$0xf]  ;;  %v11126_v26 = vpack.c.bf16 %v5402_v28, %v5402_v28 }
 0x30b   : > { %v6023_v60 = vld [vmem:[#allocation3 + $0x64] sm:$0xf]  ;;  %v11131_v4 = vpack.c.bf16 %v5407_v11, %v5407_v11  ;;  %v6149_v7 = vor.u32 %v6148_v40, %v6145_v56  ;;  %v6154_v8 = vrot.slane %v6152_v53, 5  ;;  %6054 = vst [vmem:[#allocation4 + $0x280] sm:$0xf] %v6022_v16  ;;  %v10814_v21 = vrot.slane %v6572_v32, 9 }
 0x30c   : > { %6055 = vst [vmem:[#allocation4 + $0x2a8] sm:$0xf] %v6023_v60  ;;  %v12647_v24 = vld [vmem:[%s15759_s3 + $0x1b8] sm:$0xff]   ;;  %v6158_v54 = vrot.slane %v6156_v63, 4  ;;  %v6164_v30 = vrot.slane %v6162_v59, 5  ;;  %v6678_v51 = vrot.slane %v6573_v9, 5 }
 0x30d   : > { %v6855_v47 = vld [vmem:[#allocation3 + $0x70] sm:$0xf]  ;;  %v5688_v10 = vshrl.u32 %v11126_v26, 16  ;;  %v5691_v29 = vshll.u32 %v11126_v26, 16  ;;  %5995 = vst [vmem:[#allocation4 + $0x358] sm:$0xf] %v11126_v26  ;;  %11946 = vmatpush3.bf16.msra.mxu0 %v12647_v24 }
 0x30e   : > { %v5731_v6 = vshrl.u32 %v11131_v4, 16  ;;  %v5734_v3 = vshll.u32 %v11131_v4, 16  ;;  %6000 = vst [vmem:[#allocation4 + $0x420] sm:$0xf] %v11131_v4  ;;  %v6574_v48 = vld [vmem:[#allocation3 + $0x20] sm:$0x1]  ;;  %v6159_v45 = vor.u32 %v6158_v54, %v6154_v8  ;;  %v6679_v39 = vsel %vm13195_vm14, %v10814_v21, %v6678_v51 }
 0x30f   : > { %6887 = vst [vmem:[#allocation4 + $0x2b4] sm:$0xf] %v6855_v47  ;;  %v5904_v58 = vld [vmem:[#allocation3 + $0x8c] sm:$0x1]  ;;  %v6150_v17 = vrot.slane %v6149_v7, 4  ;;  %v6680_v31 = vrot.slane %v6678_v51, 4 }
 0x310   : > { %v14794_v34 = vld [vmem:[#allocation3 + $0x18] sm:$0xf]  ;;  %v12561_v0 = vld [vmem:[#allocation4 + $0x5c] ss:$40 sps:$4 sm:$0xff]   ;;  %v5690_v46 = vrot.slane %v5688_v10, 7  ;;  %v14804_v2 = vrot.slane %v5731_v6, 7 }
 0x311   : > { %v5921_v36 = vld [vmem:[#allocation3 + $0xa8] sm:$0xf]  ;;  %6810 = vst [vmem:[#allocation4 + $0xa8] sm:$0xf] %v6679_v39  ;;  %v6077_v12 = vld [vmem:[#allocation3 + $0x1c] sm:$0xf]  ;;  %v6155_v9 = vsel %vm13004_vm8, %v6150_v17, %v6154_v8  ;;  %9815 = vmatprep.mubr.bf16.mxu0 %v12561_v0  ;;  %v12215_v8 = vpop.f32.mrf.mxu0 }
 0x312   : > { %v12559_v27 = vld [vmem:[#allocation4 + $0x58] ss:$40 sps:$4 sm:$0xff]   ;;  %v6160_v43 = vrot.slane %v6159_v45, 4  ;;  %v6681_v57 = vrot.slane %v6574_v48, 5  ;;  %v6078_v56 = vld [vmem:[#allocation3 + $0x20] sm:$0x1]  ;;  %v5693_v35 = vor.u32 %v5691_v29, %v5690_v46  ;;  %v5736_v41 = vor.u32 %v5734_v3, %v14804_v2 }
 0x313   : > { %v12651_v25 = vld [vmem:[%s15759_s3 + $0x1f0] sm:$0xff]   ;;  %v5695_v33 = vrot.slane %v5690_v46, 4  ;;  %6536 = vst [vmem:[#allocation4 + $0x54] sm:$0xf] %v6155_v9  ;;  %vm5341_vm2 = vcmp.ge.f32.partialorder %v5287_v5, 0.0  ;;  %v5737_v38 = vrot.slane %v14804_v2, 4  ;;  %9816 = vmatmul.mubr.bf16.gmra.mxu0 %v12559_v27  ;;  %v5302_v0 = vpop.f32.mrf.mxu0 }
 0x314   : > { %v5373_v50 = vmul.f32 0.2, %v5287_v5  ;;  %v6856_v52 = vld [vmem:[#allocation3 + $0x78] sm:$0xf]  ;;  %v6165_v40 = vsel %vm13004_vm8, %v6160_v43, %v6164_v30  ;;  %v6682_v53 = vsel %vm13195_vm14, %v6680_v31, %v6681_v57  ;;  %v6857_v42 = vld [vmem:[#allocation3 + $0x7c] sm:$0xf]  ;;  %11947 = vmatprep.subr.bf16.mxu0 %v12651_v25  ;;  %v5694_v11 = vsel %vm13039_vm11, %v5686_v20, %v5693_v35 }
 0x315   : > { %6888 = vst [vmem:[#allocation4 + $0x2dc] sm:$0xf] %v6856_v52  ;;  %v6024_v62 = vld [vmem:[#allocation3 + $0x6c] sm:$0xf]  ;;  %v12652_v28 = vld [vmem:[%s15759_s3 + $0x1b0] sm:$0xff]   ;;  %v5905_v63 = vsel %vm12932_vm3, %v5695_v33, %v5904_v58  ;;  %v6167_v16 = vshrl.u32 %v14794_v34, 16  ;;  %v5922_v49 = vsel %vm13032_vm10, %v5736_v41, %v5921_v36 }
 0x316   : > { %6537 = vst [vmem:[#allocation4 + $0x7c] sm:$0xf] %v6165_v40  ;;  %6811 = vst [vmem:[#allocation4 + $0xd0] sm:$0xf] %v6682_v53  ;;  %v5405_v59 = vsel %vm5341_vm2, %v5287_v5, %v5373_v50  ;;  %v6025_v60 = vld [vmem:[#allocation3 + $0x70] sm:$0xf]  ;;  %11948 = vmatpush3.bf16.msra.mxu0 %v12652_v28  ;;  %v5303_v53 = vadd.f32 %v5302_v0, %v14564_v15 }
 0x317   : > { %6889 = vst [vmem:[#allocation4 + $0x304] sm:$0xf] %v6857_v42  ;;  %6056 = vst [vmem:[#allocation4 + $0x2d0] sm:$0xf] %v6024_v62  ;;  %v12653_v26 = vld [vmem:[%s15759_s3 + $0x1e8] sm:$0xff]   ;;  %v11129_v20 = vpack.c.bf16 %v5405_v59, %v5405_v59  ;;  %v6170_v4 = vshll.u32 %v14794_v34, 16  ;;  %v14849_v34 = vadd.f32 %v12215_v8, %v14572_v61 }
 0x318   : > { %5903 = vst [vmem:[#allocation3 + $0x88] sm:$0xf] %v5694_v11  ;;  %5906 = vst [vmem:[#allocation3 + $0x8c] sm:$0x1] %v5905_v63  ;;  %v6176_v7 = vshll.u32 %v6077_v12, 16  ;;  %v6169_v54 = vrot.slane %v6167_v16, 4  ;;  %11949 = vmatprep.subr.bf16.mxu0 %v12653_v26 }
 0x319   : > { %v6575_v24 = vld [vmem:[#allocation3 + $0x24] sm:$0xe]  ;;  %6057 = vst [vmem:[#allocation4 + $0x2f8] sm:$0xf] %v6025_v60  ;;  %5923 = vst [vmem:[#allocation3 + $0xa8] sm:$0xf] %v5922_v49 }
 0x31a   : > { %v6180_v30 = vshrl.u32 %v6077_v12, 16  ;;  %v6186_v21 = vshll.u32 %v6078_v56, 16  ;;  %vm5344_vm4 = vcmp.ge.f32.partialorder %v14799_v1, 0.0  ;;  %v14835_v51 = vld [vmem:[#allocation3 + $0x28] sm:$0xf]  ;;  %v5714_v44 = vshrl.u32 %v11129_v20, 16 }
 0x31b   : > { %v5717_v47 = vshll.u32 %v11129_v20, 16  ;;  %5998 = vst [vmem:[#allocation4 + $0x3d0] sm:$0xf] %v11129_v20  ;;  %v6172_v10 = vrot.slane %v6170_v4, 5  ;;  %v6178_v29 = vrot.slane %v6176_v7, 5  ;;  %v12657_v6 = vld [vmem:[%s15759_s3 + $0x1a8] sm:$0xff]  }
 0x31c   : > { %v6182_v3 = vrot.slane %v6180_v30, 4  ;;  %v6188_v48 = vrot.slane %v6186_v21, 5  ;;  %v5376_v58 = vmul.f32 0.2, %v14799_v1  ;;  %vm5342_vm5 = vcmp.ge.f32.partialorder %v14802_v22, 0.0  ;;  %v12661_v17 = vld [vmem:[%s15759_s3 + $0x1e0] sm:$0xff]   ;;  %11950 = vmatpush3.bf16.msra.mxu0 %v12657_v6 }
 0x31d   : > { %v14845_v45 = vrot.slane %v5714_v44, 7  ;;  %v6173_v39 = vor.u32 %v6172_v10, %v6169_v54  ;;  %v5374_v31 = vmul.f32 0.2, %v14802_v22  ;;  %v5914_v46 = vld [vmem:[#allocation3 + $0x9c] sm:$0xf]  ;;  %v10815_v12 = vrot.slane %v6575_v24, 9  ;;  %11951 = vmatprep.subr.bf16.mxu0 %v12661_v17 }
 0x31e   : > { %v6183_v36 = vor.u32 %v6182_v3, %v6178_v29  ;;  %v5408_v5 = vsel %vm5344_vm4, %v14799_v1, %v5376_v58  ;;  %v6685_v27 = vrot.slane %v14835_v51, 5  ;;  %v6858_v9 = vld [vmem:[#allocation3 + $0x84] sm:$0xf]  ;;  %v12562_v43 = vld [vmem:[#allocation4 + $0x50] ss:$40 sps:$4 sm:$0xff]   ;;  %vm5347_vm6 = vcmp.ge.f32.partialorder %v14849_v34, 0.0 }
 0x31f   : > { %v12564_v57 = vld [vmem:[#allocation4 + $0x54] ss:$40 sps:$4 sm:$0xff]   ;;  %v5719_v56 = vor.u32 %v5717_v47, %v14845_v45  ;;  %v5720_v61 = vrot.slane %v14845_v45, 4  ;;  %v11132_v25 = vpack.c.bf16 %v5408_v5, %v5408_v5  ;;  %v5406_v35 = vsel %vm5342_vm5, %v14802_v22, %v5374_v31  ;;  %6890 = vst [vmem:[#allocation4 + $0x32c] sm:$0xf] %v6858_v9  ;;  %v12664_v44 = vld [vmem:[%s15759_s3 + $0x1d8] sm:$0xff]  }
 0x320   : > { %v6577_v33 = vld [vmem:[#allocation3 + $0x2c] sm:$0x1]  ;;  %v12565_v50 = vld [vmem:[#allocation4 + $0xa8] ss:$40 sps:$4 sm:$0xff]   ;;  %v6174_v52 = vrot.slane %v6173_v39, 4  ;;  %v11130_v41 = vpack.c.bf16 %v5406_v35, %v5406_v35  ;;  %v6686_v40 = vsel %vm13195_vm14, %v10815_v12, %v6685_v27  ;;  %9654 = vmatprep.mubr.bf16.mxu1 %v12564_v57  ;;  %v6184_v28 = vrot.slane %v6183_v36, 4 }
 0x321   : > { %v12567_v1 = vld [vmem:[#allocation4 + $0xac] ss:$40 sps:$4 sm:$0xff]   ;;  %v5915_v62 = vsel %vm13032_vm10, %v5719_v56, %v5914_v46  ;;  %v5739_v11 = vshrl.u32 %v11132_v25, 16  ;;  %v5742_v22 = vshll.u32 %v11132_v25, 16  ;;  %6001 = vst [vmem:[#allocation4 + $0x448] sm:$0xf] %v11132_v25  ;;  %9655 = vmatmul.mubr.bf16.gmra.mxu1 %v12562_v43 }
 0x322   : > { %v14863_v42 = vld [vmem:[#allocation3 + $0x24] sm:$0xf]  ;;  %6812 = vst [vmem:[#allocation4 + $0xf8] sm:$0xf] %v6686_v40  ;;  %v6859_v63 = vld [vmem:[#allocation3 + $0x88] sm:$0xf]  ;;  %9823 = vmatprep.mubr.bf16.mxu0 %v12567_v1  ;;  %v6179_v15 = vsel %vm13004_vm8, %v6174_v52, %v6178_v29  ;;  %v6189_v4 = vsel %vm13004_vm8, %v6184_v28, %v6188_v48  ;;  %v12216_v48 = vpop.f32.mrf.mxu0  ;;  %v5145_v28 = vadd.f32 %v14569_v18, %v14409_v55 }
 0x323   : > { %v12662_v59 = vld [vmem:[%s15759_s3 + $0x1a0] sm:$0xff]   ;;  %5916 = vst [vmem:[#allocation3 + $0x9c] sm:$0xf] %v5915_v62  ;;  %v5925_v16 = vld [vmem:[#allocation3 + $0xb0] sm:$0x1]  ;;  %v5722_v60 = vshrl.u32 %v11130_v41, 16  ;;  %9824 = vmatmul.mubr.bf16.gmra.mxu0 %v12565_v50  ;;  %v5314_v62 = vadd.f32 %v12216_v48, %v14576_v19 }
 0x324   : > { %v5725_v26 = vshll.u32 %v11130_v41, 16  ;;  %5999 = vst [vmem:[#allocation4 + $0x3f8] sm:$0xf] %v11130_v41  ;;  %6891 = vst [vmem:[#allocation4 + $0x354] sm:$0xf] %v6859_v63  ;;  %v12663_v20 = vld [vmem:[%s15759_s3 + $0x140] sm:$0xff]   ;;  %11952 = vmatpush3.bf16.msra.mxu0 %v12662_v59  ;;  %v5305_v1 = vpop.f32.mrf.mxu0 }
 0x325   : > { %v6026_v49 = vld [vmem:[#allocation3 + $0x78] sm:$0xf]  ;;  %6538 = vst [vmem:[#allocation4 + $0xa4] sm:$0xf] %v6179_v15  ;;  %v5741_v7 = vrot.slane %v5739_v11, 7  ;;  %v6687_v24 = vrot.slane %v6685_v27, 4  ;;  %11847 = vmatprep.subr.bf16.mxu1 %v12663_v20  ;;  %11953 = vmatprep.subr.bf16.mxu0 %v12664_v44  ;;  %v5306_v55 = vadd.f32 %v5305_v1, %v5145_v28 }
 0x326   : > { %v5379_v8 = vmul.f32 0.2, %v14849_v34  ;;  %v6027_v54 = vld [vmem:[#allocation3 + $0x7c] sm:$0xf]  ;;  %6058 = vst [vmem:[#allocation4 + $0x320] sm:$0xf] %v6026_v49 }
 0x327   : > { %6539 = vst [vmem:[#allocation4 + $0xcc] sm:$0xf] %v6189_v4  ;;  %v5724_v30 = vrot.slane %v5722_v60, 7  ;;  %v6688_v21 = vrot.slane %v6577_v33, 5  ;;  %vm5345_vm7 = vcmp.ge.f32.partialorder %v5303_v53, 0.0  ;;  %v5744_v47 = vor.u32 %v5742_v22, %v5741_v7  ;;  %v12668_v46 = vld [vmem:[%s15759_s3 + $0x100] sm:$0xff]  }
 0x328   : > { %v5377_v51 = vmul.f32 0.2, %v5303_v53  ;;  %6059 = vst [vmem:[#allocation4 + $0x348] sm:$0xf] %v6027_v54  ;;  %v5746_v10 = vrot.slane %v5741_v7, 4  ;;  %v5411_v6 = vsel %vm5347_vm6, %v14849_v34, %v5379_v8  ;;  %v6191_v3 = vshrl.u32 %v14863_v42, 16  ;;  %11848 = vmatpush3.bf16.msra.mxu1 %v12668_v46 }
 0x329   : > { %v5918_v29 = vld [vmem:[#allocation3 + $0xa4] sm:$0x1]  ;;  %v5727_v58 = vor.u32 %v5725_v26, %v5724_v30  ;;  %v5729_v17 = vrot.slane %v5724_v30, 4  ;;  %v11135_v39 = vpack.c.bf16 %v5411_v6, %v5411_v6  ;;  %v6689_v31 = vsel %vm13195_vm14, %v6687_v24, %v6688_v21  ;;  %v6080_v0 = vld [vmem:[#allocation3 + $0x28] sm:$0xf]  ;;  %v12673_v25 = vld [vmem:[%s15759_s3 + $0x1d0] sm:$0xff]  }
 0x32a   : > { %v5745_v34 = vsel %vm13039_vm11, %v5737_v38, %v5744_v47  ;;  %v5926_v36 = vsel %vm12932_vm3, %v5746_v10, %v5925_v16  ;;  %6813 = vst [vmem:[#allocation4 + $0x120] sm:$0xf] %v6689_v31  ;;  %v5409_v5 = vsel %vm5345_vm7, %v5303_v53, %v5377_v51  ;;  %v6081_v12 = vld [vmem:[#allocation3 + $0x2c] sm:$0x1]  ;;  %v14898_v27 = vrot.slane %v6191_v3, 4  ;;  %v12669_v9 = vld [vmem:[%s15759_s3 + $0x198] sm:$0xff]  }
 0x32b   : > { %5924 = vst [vmem:[#allocation3 + $0xac] sm:$0xf] %v5745_v34  ;;  %5927 = vst [vmem:[#allocation3 + $0xb0] sm:$0x1] %v5926_v36  ;;  %v5728_v2 = vsel %vm13039_vm11, %v5720_v61, %v5727_v58  ;;  %v5919_v38 = vsel %vm12932_vm3, %v5729_v17, %v5918_v29  ;;  %v5765_v43 = vshrl.u32 %v11135_v39, 16  ;;  %v5768_v57 = vshll.u32 %v11135_v39, 16  ;;  %11954 = vmatpush3.bf16.msra.mxu0 %v12669_v9 }
 0x32c   : > { %6004 = vst [vmem:[#allocation4 + $0x4c0] sm:$0xf] %v11135_v39  ;;  %v6860_v56 = vld [vmem:[#allocation3 + $0x90] sm:$0xf]  ;;  %5917 = vst [vmem:[#allocation3 + $0xa0] sm:$0xf] %v5728_v2  ;;  %v11133_v33 = vpack.c.bf16 %v5409_v5, %v5409_v5  ;;  %11955 = vmatprep.subr.bf16.mxu0 %v12673_v25 }
 0x32d   : > { %5920 = vst [vmem:[#allocation3 + $0xa4] sm:$0x1] %v5919_v38  ;;  %v5935_v35 = vld [vmem:[#allocation3 + $0xc0] sm:$0xf]  ;;  %v6194_v45 = vshll.u32 %v14863_v42, 16  ;;  %v6200_v50 = vshll.u32 %v6080_v0, 16 }
 0x32e   : > { %v6204_v61 = vshrl.u32 %v6080_v0, 16  ;;  %v6861_v52 = vld [vmem:[#allocation3 + $0x94] sm:$0xf]  ;;  %6892 = vst [vmem:[#allocation4 + $0x37c] sm:$0xf] %v6860_v56  ;;  %v12674_v41 = vld [vmem:[%s15759_s3 + $0x190] sm:$0xff]  }
 0x32f   : > { %v14916_v40 = vrot.slane %v5765_v43, 7  ;;  %v6210_v53 = vshll.u32 %v6081_v12, 16  ;;  %6893 = vst [vmem:[#allocation4 + $0x3a4] sm:$0xf] %v6861_v52  ;;  %v6028_v42 = vld [vmem:[#allocation3 + $0x84] sm:$0xf]  ;;  %11956 = vmatpush3.bf16.msra.mxu0 %v12674_v41 }
 0x330   : > { %v12675_v11 = vld [vmem:[%s15759_s3 + $0x1c8] sm:$0xff]   ;;  %v12570_v22 = vld [vmem:[#allocation4 + $0xa4] ss:$40 sps:$4 sm:$0xff]   ;;  %v5748_v63 = vshrl.u32 %v11133_v33, 16  ;;  %6002 = vst [vmem:[#allocation4 + $0x470] sm:$0xf] %v11133_v33 }
 0x331   : > { %v6578_v59 = vld [vmem:[#allocation3 + $0x30] sm:$0xe]  ;;  %6060 = vst [vmem:[#allocation4 + $0x370] sm:$0xf] %v6028_v42  ;;  %v12568_v15 = vld [vmem:[#allocation4 + $0xa0] ss:$40 sps:$4 sm:$0xff]   ;;  %v5770_v16 = vor.u32 %v5768_v57, %v14916_v40  ;;  %9662 = vmatprep.mubr.bf16.mxu1 %v12570_v22  ;;  %11957 = vmatprep.subr.bf16.mxu0 %v12675_v11 }
 0x332   : > { %v5771_v19 = vrot.slane %v14916_v40, 4  ;;  %v5928_v60 = vld [vmem:[#allocation3 + $0xb4] sm:$0xf]  ;;  %v6196_v26 = vrot.slane %v6194_v45, 5  ;;  %v6029_v49 = vld [vmem:[#allocation3 + $0x88] sm:$0xf]  ;;  %9663 = vmatmul.mubr.bf16.gmra.mxu1 %v12568_v15 }
 0x333   : > { %v6579_v18 = vld [vmem:[#allocation3 + $0x34] sm:$0xf]  ;;  %v14926_v20 = vrot.slane %v5748_v63, 7  ;;  %v5751_v4 = vshll.u32 %v11133_v33, 16  ;;  %v6202_v7 = vrot.slane %v6200_v50, 5  ;;  %v6206_v8 = vrot.slane %v6204_v61, 4 }
 0x334   : > { %v14928_v24 = vld [vmem:[#allocation3 + $0x38] sm:$0x1]  ;;  %6061 = vst [vmem:[#allocation4 + $0x398] sm:$0xf] %v6029_v49  ;;  %v5936_v54 = vsel %vm13032_vm10, %v5770_v16, %v5935_v35  ;;  %v12574_v30 = vld [vmem:[#allocation4 + $0xfc] ss:$40 sps:$4 sm:$0xff]   ;;  %v6197_v21 = vor.u32 %v6196_v26, %v14898_v27 }
 0x335   : > { %v6212_v51 = vrot.slane %v6210_v53, 5  ;;  %vm5348_vm9 = vcmp.ge.f32.partialorder %v5314_v62, 0.0  ;;  %v12676_v44 = vld [vmem:[%s15759_s3 + $0x188] sm:$0xff]   ;;  %5937 = vst [vmem:[#allocation3 + $0xc0] sm:$0xf] %v5936_v54  ;;  %v5753_v10 = vor.u32 %v5751_v4, %v14926_v20  ;;  %v5754_v29 = vrot.slane %v14926_v20, 4  ;;  %9831 = vmatprep.mubr.bf16.mxu0 %v12574_v30 }
 0x336   : > { %v12572_v47 = vld [vmem:[#allocation4 + $0xf8] ss:$40 sps:$4 sm:$0xff]   ;;  %v6207_v6 = vor.u32 %v6206_v8, %v6202_v7  ;;  %v5380_v3 = vmul.f32 0.2, %v5314_v62  ;;  %v12683_v48 = vld [vmem:[%s15759_s3 + $0x1c0] sm:$0xff]   ;;  %v6198_v58 = vrot.slane %v6197_v21, 4  ;;  %11958 = vmatpush3.bf16.msra.mxu0 %v12676_v44 }
 0x337   : > { %vm5346_vm12 = vcmp.ge.f32.partialorder %v5306_v55, 0.0  ;;  %v5378_v17 = vmul.f32 0.2, %v5306_v55  ;;  %v10816_v39 = vrot.slane %v6578_v59, 9  ;;  %v5929_v31 = vsel %vm13032_vm10, %v5753_v10, %v5928_v60  ;;  %9832 = vmatmul.mubr.bf16.gmra.mxu0 %v12572_v47  ;;  %v6082_v36 = vld [vmem:[#allocation3 + $0x30] sm:$0xf]  ;;  %11959 = vmatprep.subr.bf16.mxu0 %v12683_v48 }
 0x338   : > { %v6208_v0 = vrot.slane %v6207_v6, 4  ;;  %v5412_v46 = vsel %vm5348_vm9, %v5314_v62, %v5380_v3  ;;  %v6692_v34 = vrot.slane %v6579_v18, 5  ;;  %v6083_v5 = vld [vmem:[#allocation3 + $0x34] sm:$0xf]  ;;  %5930 = vst [vmem:[#allocation3 + $0xb4] sm:$0xf] %v5929_v31  ;;  %v6203_v12 = vsel %vm13004_vm8, %v6198_v58, %v6202_v7 }
 0x339   : > { %v11136_v27 = vpack.c.bf16 %v5412_v46, %v5412_v46  ;;  %v5410_v9 = vsel %vm5346_vm12, %v5306_v55, %v5378_v17  ;;  %v6695_v2 = vrot.slane %v14928_v24, 5  ;;  %v6084_v38 = vld [vmem:[#allocation3 + $0x38] sm:$0x1]  ;;  %v14947_v43 = vld [vmem:[#allocation3 + $0x3c] sm:$0xe]  ;;  %v12685_v57 = vld [vmem:[%s15759_s3 + $0x278] sm:$0xff]  }
 0x33a   : > { %v6213_v56 = vsel %vm13004_vm8, %v6208_v0, %v6212_v51  ;;  %6540 = vst [vmem:[#allocation4 + $0xf4] sm:$0xf] %v6203_v12  ;;  %v11134_v25 = vpack.c.bf16 %v5410_v9, %v5410_v9  ;;  %v6693_v35 = vsel %vm13195_vm14, %v10816_v39, %v6692_v34  ;;  %v6694_v33 = vrot.slane %v6692_v34, 4  ;;  %v6862_v45 = vld [vmem:[#allocation3 + $0x9c] sm:$0xf]  ;;  %12057 = vmatprep.subr.bf16.mxu1 %v12685_v57 }
 0x33b   : > { %v6863_v50 = vld [vmem:[#allocation3 + $0xa0] sm:$0xf]  ;;  %6541 = vst [vmem:[#allocation4 + $0x11c] sm:$0xf] %v6213_v56  ;;  %v5773_v61 = vshrl.u32 %v11136_v27, 16  ;;  %v5776_v1 = vshll.u32 %v11136_v27, 16  ;;  %11960 = vmatpush3.bf16.msra.mxu0 %v12684_v13 }
 0x33c   : > { %6005 = vst [vmem:[#allocation4 + $0x4e8] sm:$0xf] %v11136_v27  ;;  %6814 = vst [vmem:[#allocation4 + $0x148] sm:$0xf] %v6693_v35  ;;  %v6215_v52 = vshrl.u32 %v6082_v36, 16  ;;  %v6218_v41 = vshll.u32 %v6082_v36, 16  ;;  %v6696_v11 = vsel %vm13195_vm14, %v6694_v33, %v6695_v2 }
 0x33d   : > { %6894 = vst [vmem:[#allocation4 + $0x3cc] sm:$0xf] %v6862_v45  ;;  %6895 = vst [vmem:[#allocation4 + $0x3f4] sm:$0xf] %v6863_v50  ;;  %v6030_v53 = vld [vmem:[#allocation3 + $0x90] sm:$0xf] }
 0x33e   : > { %v5939_v62 = vld [vmem:[#allocation3 + $0xc8] sm:$0x1]  ;;  %v5756_v28 = vshrl.u32 %v11134_v25, 16  ;;  %v5759_v42 = vshll.u32 %v11134_v25, 16  ;;  %6003 = vst [vmem:[#allocation4 + $0x498] sm:$0xf] %v11134_v25 }
 0x33f   : > { %v6224_v22 = vshll.u32 %v6083_v5, 16  ;;  %v6031_v63 = vld [vmem:[#allocation3 + $0x94] sm:$0xf]  ;;  %6062 = vst [vmem:[#allocation4 + $0x3c0] sm:$0xf] %v6030_v53  ;;  %v5775_v59 = vrot.slane %v5773_v61, 7 }
 0x340   : > { %6815 = vst [vmem:[#allocation4 + $0x170] sm:$0xf] %v6696_v11  ;;  %v6217_v15 = vrot.slane %v6215_v52, 4  ;;  %v6220_v16 = vrot.slane %v6218_v41, 5  ;;  %v6228_v60 = vshrl.u32 %v6083_v5, 16  ;;  %v5758_v55 = vrot.slane %v5756_v28, 7 }
 0x341   : > { %v6582_v26 = vld [vmem:[#allocation3 + $0x40] sm:$0xf]  ;;  %6063 = vst [vmem:[#allocation4 + $0x3e8] sm:$0xf] %v6031_v63  ;;  %v5932_v18 = vld [vmem:[#allocation3 + $0xbc] sm:$0x1]  ;;  %v5778_v8 = vor.u32 %v5776_v1, %v5775_v59 }
 0x342   : > { %v6226_v49 = vrot.slane %v6224_v22, 5  ;;  %v6234_v4 = vshll.u32 %v6084_v38, 16  ;;  %v10817_v7 = vrot.slane %v14947_v43, 9  ;;  %v5780_v24 = vrot.slane %v5775_v59, 4  ;;  %v6583_v21 = vld [vmem:[#allocation3 + $0x44] sm:$0x1] }
 0x343   : > { %v6221_v54 = vor.u32 %v6220_v16, %v6217_v15  ;;  %v6230_v30 = vrot.slane %v6228_v60, 4  ;;  %v6085_v51 = vld [vmem:[#allocation3 + $0x3c] sm:$0xf]  ;;  %v5761_v44 = vor.u32 %v5759_v42, %v5758_v55  ;;  %v5763_v47 = vrot.slane %v5758_v55, 4  ;;  %v6086_v3 = vld [vmem:[#allocation3 + $0x40] sm:$0xf] }
 0x344   : > { %v6236_v10 = vrot.slane %v6234_v4, 5  ;;  %v6699_v6 = vrot.slane %v6582_v26, 5  ;;  %v5779_v48 = vsel %vm13039_vm11, %v5771_v19, %v5778_v8  ;;  %v5940_v58 = vsel %vm12932_vm3, %v5780_v24, %v5939_v62  ;;  %v6087_v31 = vld [vmem:[#allocation3 + $0x44] sm:$0x1]  ;;  %v6584_v0 = vld [vmem:[#allocation3 + $0x48] sm:$0xe] }
 0x345   : > { %v6222_v17 = vrot.slane %v6221_v54, 4  ;;  %v6231_v39 = vor.u32 %v6230_v30, %v6226_v49  ;;  %v6864_v46 = vld [vmem:[#allocation3 + $0xa8] sm:$0xf]  ;;  %v12578_v36 = vld [vmem:[#allocation4 + $0xf4] ss:$40 sps:$4 sm:$0xff]   ;;  %v5762_v40 = vsel %vm13039_vm11, %v5754_v29, %v5761_v44  ;;  %v5933_v19 = vsel %vm12932_vm3, %v5763_v47, %v5932_v18 }
 0x346   : > { %v12576_v34 = vld [vmem:[#allocation4 + $0xf0] ss:$40 sps:$4 sm:$0xff]   ;;  %5938 = vst [vmem:[#allocation3 + $0xc4] sm:$0xf] %v5779_v48  ;;  %5941 = vst [vmem:[#allocation3 + $0xc8] sm:$0x1] %v5940_v58  ;;  %v6700_v5 = vsel %vm13195_vm14, %v10817_v7, %v6699_v6  ;;  %9670 = vmatprep.mubr.bf16.mxu1 %v12578_v36 }
 0x347   : > { %v6701_v12 = vrot.slane %v6699_v6, 4  ;;  %v6585_v27 = vld [vmem:[#allocation3 + $0x4c] sm:$0xf]  ;;  %v6586_v9 = vld [vmem:[#allocation3 + $0x50] sm:$0x1]  ;;  %v6227_v38 = vsel %vm13004_vm8, %v6222_v17, %v6226_v49  ;;  %v6232_v20 = vrot.slane %v6231_v39, 4  ;;  %9671 = vmatmul.mubr.bf16.gmra.mxu1 %v12576_v34 }
 0x348   : > { %v6088_v2 = vld [vmem:[#allocation3 + $0x48] sm:$0xf]  ;;  %6896 = vst [vmem:[#allocation4 + $0x41c] sm:$0xf] %v6864_v46  ;;  %5931 = vst [vmem:[#allocation3 + $0xb8] sm:$0xf] %v5762_v40 }
 0x349   : > { %5934 = vst [vmem:[#allocation3 + $0xbc] sm:$0x1] %v5933_v19  ;;  %v6702_v43 = vrot.slane %v6583_v21, 5  ;;  %6816 = vst [vmem:[#allocation4 + $0x198] sm:$0xf] %v6700_v5  ;;  %v6239_v37 = vshrl.u32 %v6085_v51, 16  ;;  %v6237_v56 = vsel %vm13004_vm8, %v6232_v20, %v6236_v10 }
 0x34a   : > { %v6865_v29 = vld [vmem:[#allocation3 + $0xac] sm:$0xf]  ;;  %v12579_v14 = vld [vmem:[#allocation4 + $0x148] ss:$40 sps:$4 sm:$0xff]   ;;  %6542 = vst [vmem:[#allocation4 + $0x144] sm:$0xf] %v6227_v38 }
 0x34b   : > { %v12581_v13 = vld [vmem:[#allocation4 + $0x14c] ss:$40 sps:$4 sm:$0xff]   ;;  %v6242_v57 = vshll.u32 %v6085_v51, 16  ;;  %6897 = vst [vmem:[#allocation4 + $0x444] sm:$0xf] %v6865_v29  ;;  %v6703_v25 = vsel %vm13195_vm14, %v6701_v12, %v6702_v43  ;;  %v6241_v35 = vrot.slane %v6239_v37, 4 }
 0x34c   : > { %v6248_v33 = vshll.u32 %v6086_v3, 16  ;;  %v6032_v45 = vld [vmem:[#allocation3 + $0x9c] sm:$0xf]  ;;  %v6033_v50 = vld [vmem:[#allocation3 + $0xa0] sm:$0xf]  ;;  %9839 = vmatprep.mubr.bf16.mxu0 %v12581_v13  ;;  %v6252_v1 = vshrl.u32 %v6086_v3, 16 }
 0x34d   : > { %6543 = vst [vmem:[#allocation4 + $0x16c] sm:$0xf] %v6237_v56  ;;  %6817 = vst [vmem:[#allocation4 + $0x1c0] sm:$0xf] %v6703_v25  ;;  %v6244_v61 = vrot.slane %v6242_v57, 5  ;;  %v6258_v52 = vshll.u32 %v6087_v31, 16  ;;  %9840 = vmatmul.mubr.bf16.gmra.mxu0 %v12579_v14 }
 0x34e   : > { %v10818_v41 = vrot.slane %v6584_v0, 9  ;;  %v6089_v53 = vld [vmem:[#allocation3 + $0x4c] sm:$0xf]  ;;  %6064 = vst [vmem:[#allocation4 + $0x410] sm:$0xf] %v6032_v45  ;;  %v6250_v62 = vrot.slane %v6248_v33, 5 }
 0x34f   : > { %6065 = vst [vmem:[#allocation4 + $0x438] sm:$0xf] %v6033_v50  ;;  %v6706_v28 = vrot.slane %v6585_v27, 5  ;;  %v6709_v42 = vrot.slane %v6586_v9, 5  ;;  %v6090_v11 = vld [vmem:[#allocation3 + $0x50] sm:$0x1]  ;;  %v6245_v63 = vor.u32 %v6244_v61, %v6241_v35 }
 0x350   : > { %v6263_v22 = vshrl.u32 %v6088_v2, 16  ;;  %v6254_v59 = vrot.slane %v6252_v1, 4  ;;  %v6260_v15 = vrot.slane %v6258_v52, 5  ;;  %v6266_v16 = vshll.u32 %v6088_v2, 16  ;;  %v6587_v60 = vld [vmem:[#allocation3 + $0x54] sm:$0xe] }
 0x351   : > { %v6707_v26 = vsel %vm13195_vm14, %v10818_v41, %v6706_v28  ;;  %v6708_v55 = vrot.slane %v6706_v28, 4  ;;  %v6272_v49 = vshll.u32 %v6089_v53, 16  ;;  %v6246_v4 = vrot.slane %v6245_v63, 4  ;;  %v6588_v54 = vld [vmem:[#allocation3 + $0x58] sm:$0xf] }
 0x352   : > { %v6265_v18 = vrot.slane %v6263_v22, 4  ;;  %v6255_v7 = vor.u32 %v6254_v59, %v6250_v62  ;;  %6818 = vst [vmem:[#allocation4 + $0x1e8] sm:$0xf] %v6707_v26  ;;  %v6268_v8 = vrot.slane %v6266_v16, 5  ;;  %v6276_v24 = vshrl.u32 %v6089_v53, 16 }
 0x353   : > { %v6589_v30 = vld [vmem:[#allocation3 + $0x5c] sm:$0x1]  ;;  %v6091_v21 = vld [vmem:[#allocation3 + $0x54] sm:$0xf]  ;;  %v6710_v51 = vsel %vm13195_vm14, %v6708_v55, %v6709_v42  ;;  %v6274_v44 = vrot.slane %v6272_v49, 5  ;;  %v6282_v47 = vshll.u32 %v6090_v11, 16  ;;  %v6251_v3 = vsel %vm13004_vm8, %v6246_v4, %v6250_v62 }
 0x354   : > { %v10819_v10 = vrot.slane %v6587_v60, 9  ;;  %v6092_v6 = vld [vmem:[#allocation3 + $0x58] sm:$0xf]  ;;  %v6256_v48 = vrot.slane %v6255_v7, 4  ;;  %6819 = vst [vmem:[#allocation4 + $0x210] sm:$0xf] %v6710_v51  ;;  %v6269_v58 = vor.u32 %v6268_v8, %v6265_v18 }
 0x355   : > { %v6278_v17 = vrot.slane %v6276_v24, 4  ;;  %v6866_v39 = vld [vmem:[#allocation3 + $0xb4] sm:$0xf]  ;;  %v6867_v31 = vld [vmem:[#allocation3 + $0xb8] sm:$0xf]  ;;  %v6284_v34 = vrot.slane %v6282_v47, 5 }
 0x356   : > { %v12582_v0 = vld [vmem:[#allocation4 + $0x140] ss:$40 sps:$4 sm:$0xff]   ;;  %v12584_v46 = vld [vmem:[#allocation4 + $0x144] ss:$40 sps:$4 sm:$0xff]   ;;  %6544 = vst [vmem:[#allocation4 + $0x194] sm:$0xf] %v6251_v3  ;;  %v6261_v5 = vsel %vm13004_vm8, %v6256_v48, %v6260_v15 }
 0x357   : > { %v6093_v36 = vld [vmem:[#allocation3 + $0x5c] sm:$0x1]  ;;  %6898 = vst [vmem:[#allocation4 + $0x46c] sm:$0xf] %v6866_v39  ;;  %6899 = vst [vmem:[#allocation4 + $0x494] sm:$0xf] %v6867_v31  ;;  %v6279_v27 = vor.u32 %v6278_v17, %v6274_v44  ;;  %9678 = vmatprep.mubr.bf16.mxu1 %v12584_v46 }
 0x358   : > { %v12586_v40 = vld [vmem:[#allocation4 + $0x198] ss:$40 sps:$4 sm:$0xff]   ;;  %v12588_v19 = vld [vmem:[#allocation4 + $0x19c] ss:$40 sps:$4 sm:$0xff]   ;;  %v6270_v12 = vrot.slane %v6269_v58, 4  ;;  %v6713_v9 = vrot.slane %v6588_v54, 5  ;;  %9679 = vmatmul.mubr.bf16.gmra.mxu1 %v12582_v0 }
 0x359   : > { %6545 = vst [vmem:[#allocation4 + $0x1bc] sm:$0xf] %v6261_v5  ;;  %v6716_v2 = vrot.slane %v6589_v30, 5  ;;  %v6287_v38 = vshrl.u32 %v6091_v21, 16  ;;  %v6290_v20 = vshll.u32 %v6091_v21, 16  ;;  %9847 = vmatprep.mubr.bf16.mxu0 %v12588_v19  ;;  %v6280_v13 = vrot.slane %v6279_v27, 4 }
 0x35a   : > { %v6590_v43 = vld [vmem:[#allocation3 + $0x60] sm:$0xe]  ;;  %v6591_v37 = vld [vmem:[#allocation3 + $0x64] sm:$0xf]  ;;  %v6034_v29 = vld [vmem:[#allocation3 + $0xa8] sm:$0xf]  ;;  %v6275_v14 = vsel %vm13004_vm8, %v6270_v12, %v6274_v44  ;;  %9848 = vmatmul.mubr.bf16.gmra.mxu0 %v12586_v40  ;;  %v6714_v35 = vsel %vm13195_vm14, %v10819_v10, %v6713_v9 }
 0x35b   : > { %v6296_v57 = vshll.u32 %v6092_v6, 16  ;;  %v6300_v56 = vshrl.u32 %v6092_v6, 16  ;;  %v6035_v25 = vld [vmem:[#allocation3 + $0xac] sm:$0xf]  ;;  %6066 = vst [vmem:[#allocation4 + $0x460] sm:$0xf] %v6034_v29  ;;  %v6285_v52 = vsel %vm13004_vm8, %v6280_v13, %v6284_v34 }
 0x35c   : > { %6546 = vst [vmem:[#allocation4 + $0x1e4] sm:$0xf] %v6275_v14  ;;  %v6715_v33 = vrot.slane %v6713_v9, 4  ;;  %v6289_v45 = vrot.slane %v6287_v38, 4  ;;  %v6292_v50 = vrot.slane %v6290_v20, 5  ;;  %v6306_v62 = vshll.u32 %v6093_v36, 16 }
 0x35d   : > { %v6592_v61 = vld [vmem:[#allocation3 + $0x68] sm:$0x1]  ;;  %v6094_v1 = vld [vmem:[#allocation3 + $0x60] sm:$0xf]  ;;  %6067 = vst [vmem:[#allocation4 + $0x488] sm:$0xf] %v6035_v25 }
 0x35e   : > { %6820 = vst [vmem:[#allocation4 + $0x238] sm:$0xf] %v6714_v35  ;;  %v6298_v41 = vrot.slane %v6296_v57, 5  ;;  %v6302_v53 = vrot.slane %v6300_v56, 4  ;;  %v6095_v28 = vld [vmem:[#allocation3 + $0x64] sm:$0xf]  ;;  %v6717_v11 = vsel %vm13195_vm14, %v6715_v33, %v6716_v2  ;;  %v6293_v22 = vor.u32 %v6292_v50, %v6289_v45 }
 0x35f   : > { %v12595_v42 = vld [vmem:[#allocation4 + $0x1ec] ss:$40 sps:$4 sm:$0xff]   ;;  %6547 = vst [vmem:[#allocation4 + $0x20c] sm:$0xf] %v6285_v52  ;;  %v6096_v63 = vld [vmem:[#allocation3 + $0x68] sm:$0x1] }
 0x360   : > { %6821 = vst [vmem:[#allocation4 + $0x260] sm:$0xf] %v6717_v11  ;;  %v6303_v59 = vor.u32 %v6302_v53, %v6298_v41  ;;  %v10820_v15 = vrot.slane %v6590_v43, 9  ;;  %v6720_v16 = vrot.slane %v6591_v37, 5  ;;  %v6593_v60 = vld [vmem:[#allocation3 + $0x6c] sm:$0xe]  ;;  %9855 = vmatprep.mubr.bf16.mxu0 %v12595_v42 }
 0x361   : > { %v6594_v26 = vld [vmem:[#allocation3 + $0x70] sm:$0xf]  ;;  %v12593_v55 = vld [vmem:[#allocation4 + $0x1e8] ss:$40 sps:$4 sm:$0xff]   ;;  %v6294_v18 = vrot.slane %v6293_v22, 4  ;;  %v6311_v49 = vshrl.u32 %v6094_v1, 16 }
 0x362   : > { %v6314_v4 = vshll.u32 %v6094_v1, 16  ;;  %v6320_v7 = vshll.u32 %v6095_v28, 16  ;;  %v12592_v8 = vld [vmem:[#allocation4 + $0x194] ss:$40 sps:$4 sm:$0xff]   ;;  %v6304_v24 = vrot.slane %v6303_v59, 4  ;;  %v6308_v54 = vrot.slane %v6306_v62, 5  ;;  %9856 = vmatmul.mubr.bf16.gmra.mxu0 %v12593_v55 }
 0x363   : > { %v6721_v30 = vsel %vm13195_vm14, %v10820_v15, %v6720_v16  ;;  %v6723_v21 = vrot.slane %v6592_v61, 5  ;;  %v12590_v51 = vld [vmem:[#allocation4 + $0x190] ss:$40 sps:$4 sm:$0xff]   ;;  %v6299_v44 = vsel %vm13004_vm8, %v6294_v18, %v6298_v41  ;;  %v6722_v47 = vrot.slane %v6720_v16, 4  ;;  %v6595_v3 = vld [vmem:[#allocation3 + $0x74] sm:$0x1]  ;;  %9686 = vmatprep.mubr.bf16.mxu1 %v12592_v8 }
 0x364   : > { %6822 = vst [vmem:[#allocation4 + $0x288] sm:$0xf] %v6721_v30  ;;  %v6313_v10 = vrot.slane %v6311_v49, 4  ;;  %v6316_v6 = vrot.slane %v6314_v4, 5  ;;  %v6309_v48 = vsel %vm13004_vm8, %v6304_v24, %v6308_v54  ;;  %6548 = vst [vmem:[#allocation4 + $0x234] sm:$0xf] %v6299_v44  ;;  %9687 = vmatmul.mubr.bf16.gmra.mxu1 %v12590_v51 }
 0x365   : > { %v6322_v58 = vrot.slane %v6320_v7, 5  ;;  %v6324_v17 = vshrl.u32 %v6095_v28, 16  ;;  %v6330_v39 = vshll.u32 %v6096_v63, 16  ;;  %v6097_v31 = vld [vmem:[#allocation3 + $0x6c] sm:$0xf]  ;;  %v6724_v0 = vsel %vm13195_vm14, %v6722_v47, %v6723_v21 }
 0x366   : > { %6549 = vst [vmem:[#allocation4 + $0x25c] sm:$0xf] %v6309_v48  ;;  %v6317_v46 = vor.u32 %v6316_v6, %v6313_v10  ;;  %v10821_v34 = vrot.slane %v6593_v60, 9  ;;  %v6727_v36 = vrot.slane %v6594_v26, 5  ;;  %v6868_v40 = vld [vmem:[#allocation3 + $0xc0] sm:$0xf] }
 0x367   : > { %v12598_v19 = vld [vmem:[#allocation4 + $0x1e4] ss:$40 sps:$4 sm:$0xff]   ;;  %6823 = vst [vmem:[#allocation4 + $0x2b0] sm:$0xf] %v6724_v0  ;;  %v6326_v5 = vrot.slane %v6324_v17, 4  ;;  %v6332_v43 = vrot.slane %v6330_v39, 5 }
 0x368   : > { %v6098_v12 = vld [vmem:[#allocation3 + $0x70] sm:$0xf]  ;;  %6900 = vst [vmem:[#allocation4 + $0x4bc] sm:$0xf] %v6868_v40  ;;  %v12602_v27 = vld [vmem:[#allocation4 + $0x23c] ss:$40 sps:$4 sm:$0xff]   ;;  %v6728_v2 = vsel %vm13195_vm14, %v10821_v34, %v6727_v36  ;;  %9694 = vmatprep.mubr.bf16.mxu1 %v12598_v19 }
 0x369   : > { %v6318_v9 = vrot.slane %v6317_v46, 4  ;;  %v6099_v38 = vld [vmem:[#allocation3 + $0x74] sm:$0x1]  ;;  %v6327_v20 = vor.u32 %v6326_v5, %v6322_v58  ;;  %v6729_v37 = vrot.slane %v6727_v36, 4  ;;  %v6730_v29 = vrot.slane %v6595_v3, 5  ;;  %9863 = vmatprep.mubr.bf16.mxu0 %v12602_v27 }
 0x36a   : > { %6824 = vst [vmem:[#allocation4 + $0x2d8] sm:$0xf] %v6728_v2  ;;  %v6596_v14 = vld [vmem:[#allocation3 + $0x78] sm:$0xe]  ;;  %v6869_v13 = vld [vmem:[#allocation3 + $0xc4] sm:$0xf] }
 0x36b   : > { %v12596_v57 = vld [vmem:[#allocation4 + $0x1e0] ss:$40 sps:$4 sm:$0xff]   ;;  %v6323_v56 = vsel %vm13004_vm8, %v6318_v9, %v6322_v58  ;;  %v6335_v25 = vshrl.u32 %v6097_v31, 16  ;;  %v6338_v35 = vshll.u32 %v6097_v31, 16  ;;  %v6344_v33 = vshll.u32 %v6098_v12, 16 }
 0x36c   : > { %v6597_v45 = vld [vmem:[#allocation3 + $0x7c] sm:$0xf]  ;;  %v6598_v50 = vld [vmem:[#allocation3 + $0x80] sm:$0x1]  ;;  %v6100_v61 = vld [vmem:[#allocation3 + $0x78] sm:$0xf]  ;;  %v6731_v41 = vsel %vm13195_vm14, %v6729_v37, %v6730_v29  ;;  %9695 = vmatmul.mubr.bf16.gmra.mxu1 %v12596_v57 }
 0x36d   : > { %6901 = vst [vmem:[#allocation4 + $0x4e4] sm:$0xf] %v6869_v13  ;;  %v6036_v1 = vld [vmem:[#allocation3 + $0xb4] sm:$0xf]  ;;  %v6328_v52 = vrot.slane %v6327_v20, 4  ;;  %v6348_v53 = vshrl.u32 %v6098_v12, 16 }
 0x36e   : > { %6550 = vst [vmem:[#allocation4 + $0x284] sm:$0xf] %v6323_v56  ;;  %v6354_v62 = vshll.u32 %v6099_v38, 16  ;;  %v6037_v28 = vld [vmem:[#allocation3 + $0xb8] sm:$0xf]  ;;  %v6337_v11 = vrot.slane %v6335_v25, 4 }
 0x36f   : > { %6068 = vst [vmem:[#allocation4 + $0x4b0] sm:$0xf] %v6036_v1  ;;  %v12600_v42 = vld [vmem:[#allocation4 + $0x238] ss:$40 sps:$4 sm:$0xff]   ;;  %6825 = vst [vmem:[#allocation4 + $0x300] sm:$0xf] %v6731_v41  ;;  %v6333_v15 = vsel %vm13004_vm8, %v6328_v52, %v6332_v43 }
 0x370   : > { %v6340_v22 = vrot.slane %v6338_v35, 5  ;;  %v6346_v63 = vrot.slane %v6344_v33, 5  ;;  %6069 = vst [vmem:[#allocation4 + $0x4d8] sm:$0xf] %v6037_v28  ;;  %v12606_v59 = vld [vmem:[#allocation4 + $0x234] ss:$40 sps:$4 sm:$0xff]   ;;  %9864 = vmatmul.mubr.bf16.gmra.mxu0 %v12600_v42 }
 0x371   : > { %v6350_v16 = vrot.slane %v6348_v53, 4  ;;  %v6101_v60 = vld [vmem:[#allocation3 + $0x7c] sm:$0xf]  ;;  %v12609_v26 = vld [vmem:[#allocation4 + $0x28c] ss:$40 sps:$4 sm:$0xff]   ;;  %v6356_v18 = vrot.slane %v6354_v62, 5  ;;  %9702 = vmatprep.mubr.bf16.mxu1 %v12606_v59  ;;  %v11625_v53 = vpop.f32.mrf.mxu1 }
 0x372   : > { %6551 = vst [vmem:[#allocation4 + $0x2ac] sm:$0xf] %v6333_v15  ;;  %v6341_v55 = vor.u32 %v6340_v22, %v6337_v11  ;;  %v10822_v49 = vrot.slane %v6596_v14, 9  ;;  %v6102_v4 = vld [vmem:[#allocation3 + $0x80] sm:$0x1]  ;;  %v6734_v8 = vrot.slane %v6597_v45, 5  ;;  %9871 = vmatprep.mubr.bf16.mxu0 %v12609_v26 }
 0x373   : > { %v6351_v7 = vor.u32 %v6350_v16, %v6346_v63  ;;  %v6737_v24 = vrot.slane %v6598_v50, 5  ;;  %v6359_v54 = vshrl.u32 %v6100_v61, 16  ;;  %v6599_v30 = vld [vmem:[#allocation3 + $0x84] sm:$0xe]  ;;  %v6362_v51 = vshll.u32 %v6100_v61, 16 }
 0x374   : > { %v6342_v21 = vrot.slane %v6341_v55, 4  ;;  %v6368_v44 = vshll.u32 %v6101_v60, 16  ;;  %v6372_v47 = vshrl.u32 %v6101_v60, 16  ;;  %v6735_v6 = vsel %vm13195_vm14, %v10822_v49, %v6734_v8  ;;  %v6600_v58 = vld [vmem:[#allocation3 + $0x88] sm:$0xf] }
 0x375   : > { %v6352_v10 = vrot.slane %v6351_v7, 4  ;;  %v6736_v3 = vrot.slane %v6734_v8, 4  ;;  %v6361_v48 = vrot.slane %v6359_v54, 4  ;;  %6826 = vst [vmem:[#allocation4 + $0x328] sm:$0xf] %v6735_v6  ;;  %v6364_v39 = vrot.slane %v6362_v51, 5  ;;  %v11626_v7 = vpop.f32.mrf.mxu1 }
 0x376   : > { %v6347_v17 = vsel %vm13004_vm8, %v6342_v21, %v6346_v63  ;;  %v6370_v31 = vrot.slane %v6368_v44, 5  ;;  %v6374_v0 = vrot.slane %v6372_v47, 4  ;;  %v6601_v46 = vld [vmem:[#allocation3 + $0x8c] sm:$0x1]  ;;  %v6103_v34 = vld [vmem:[#allocation3 + $0x84] sm:$0xf]  ;;  %v15030_v21 = vadd.f32 %v11626_v7, %v11625_v53 }
 0x377   : > { %v6104_v36 = vld [vmem:[#allocation3 + $0x88] sm:$0xf]  ;;  %v6357_v5 = vsel %vm13004_vm8, %v6352_v10, %v6356_v18  ;;  %6552 = vst [vmem:[#allocation4 + $0x2d4] sm:$0xf] %v6347_v17  ;;  %v6738_v12 = vsel %vm13195_vm14, %v6736_v3, %v6737_v24  ;;  %v6378_v27 = vshll.u32 %v6102_v4, 16  ;;  %v6365_v2 = vor.u32 %v6364_v39, %v6361_v48 }
 0x378   : > { %v12604_v40 = vld [vmem:[#allocation4 + $0x230] ss:$40 sps:$4 sm:$0xff]   ;;  %v6105_v9 = vld [vmem:[#allocation3 + $0x8c] sm:$0x1]  ;;  %6553 = vst [vmem:[#allocation4 + $0x2fc] sm:$0xf] %v6357_v5  ;;  %v6375_v38 = vor.u32 %v6374_v0, %v6370_v31 }
 0x379   : > { %v12607_v19 = vld [vmem:[#allocation4 + $0x288] ss:$40 sps:$4 sm:$0xff]   ;;  %6827 = vst [vmem:[#allocation4 + $0x350] sm:$0xf] %v6738_v12  ;;  %v10823_v20 = vrot.slane %v6599_v30, 9  ;;  %v6741_v43 = vrot.slane %v6600_v58, 5  ;;  %9703 = vmatmul.mubr.bf16.gmra.mxu1 %v12604_v40 }
 0x37a   : > { %v7175_v37 = vld [vmem:[#allocation3 + $0x18] sm:$0xf]  ;;  %v7176_v29 = vld [vmem:[#allocation3 + $0x1c] sm:$0xf]  ;;  %v6380_v57 = vrot.slane %v6378_v27, 5  ;;  %9872 = vmatmul.mubr.bf16.gmra.mxu0 %v12607_v19  ;;  %v6366_v56 = vrot.slane %v6365_v2, 4 }
 0x37b   : > { %v12612_v14 = vld [vmem:[#allocation4 + $0x284] ss:$40 sps:$4 sm:$0xff]   ;;  %7207 = vst [vmem:[#allocation4 + $0x18] sm:$0xf] %v7175_v37  ;;  %7208 = vst [vmem:[#allocation4 + $0x40] sm:$0xf] %v7176_v29  ;;  %v6742_v35 = vsel %vm13195_vm14, %v10823_v20, %v6741_v43 }
 0x37c   : > { %v12616_v13 = vld [vmem:[#allocation4 + $0x2dc] ss:$40 sps:$4 sm:$0xff]   ;;  %v6376_v25 = vrot.slane %v6375_v38, 4  ;;  %v6743_v33 = vrot.slane %v6741_v43, 4  ;;  %v6602_v45 = vld [vmem:[#allocation3 + $0x90] sm:$0xe]  ;;  %9710 = vmatprep.mubr.bf16.mxu1 %v12612_v14  ;;  %v6371_v62 = vsel %vm13004_vm8, %v6366_v56, %v6370_v31 }
 0x37d   : > { %9879 = vmatprep.mubr.bf16.mxu0 %v12616_v13  ;;  %v6744_v50 = vrot.slane %v6601_v46, 5  ;;  %6828 = vst [vmem:[#allocation4 + $0x378] sm:$0xf] %v6742_v35  ;;  %v6383_v61 = vshrl.u32 %v6103_v34, 16  ;;  %v6386_v1 = vshll.u32 %v6103_v34, 16  ;;  %v6392_v52 = vshll.u32 %v6104_v36, 16 }
 0x37e   : > { %v6603_v41 = vld [vmem:[#allocation3 + $0x94] sm:$0xf]  ;;  %v6381_v28 = vsel %vm13004_vm8, %v6376_v25, %v6380_v57  ;;  %v6396_v42 = vshrl.u32 %v6104_v36, 16  ;;  %v6402_v11 = vshll.u32 %v6105_v9, 16  ;;  %v6604_v22 = vld [vmem:[#allocation3 + $0x98] sm:$0x1] }
 0x37f   : > { %v6106_v63 = vld [vmem:[#allocation3 + $0x90] sm:$0xf]  ;;  %6554 = vst [vmem:[#allocation4 + $0x324] sm:$0xf] %v6371_v62  ;;  %6555 = vst [vmem:[#allocation4 + $0x34c] sm:$0xf] %v6381_v28  ;;  %v6745_v59 = vsel %vm13195_vm14, %v6743_v33, %v6744_v50 }
 0x380   : > { %v6385_v15 = vrot.slane %v6383_v61, 4  ;;  %v6388_v16 = vrot.slane %v6386_v1, 5  ;;  %v6394_v60 = vrot.slane %v6392_v52, 5  ;;  %v6107_v26 = vld [vmem:[#allocation3 + $0x94] sm:$0xf]  ;;  %v6398_v55 = vrot.slane %v6396_v42, 4 }
 0x381   : > { %6829 = vst [vmem:[#allocation4 + $0x3a0] sm:$0xf] %v6745_v59  ;;  %v10824_v18 = vrot.slane %v6602_v45, 9  ;;  %v6748_v49 = vrot.slane %v6603_v41, 5  ;;  %v6108_v4 = vld [vmem:[#allocation3 + $0x98] sm:$0x1] }
 0x382   : > { %v12610_v8 = vld [vmem:[#allocation4 + $0x280] ss:$40 sps:$4 sm:$0xff]   ;;  %v6389_v54 = vor.u32 %v6388_v16, %v6385_v15  ;;  %v6404_v30 = vrot.slane %v6402_v11, 5  ;;  %v12620_v51 = vld [vmem:[#allocation4 + $0x2d4] ss:$40 sps:$4 sm:$0xff]   ;;  %v6399_v44 = vor.u32 %v6398_v55, %v6394_v60  ;;  %v6751_v6 = vrot.slane %v6604_v22, 5 }
 0x383   : > { %v12614_v24 = vld [vmem:[#allocation4 + $0x2d8] ss:$40 sps:$4 sm:$0xff]   ;;  %v6749_v47 = vsel %vm13195_vm14, %v10824_v18, %v6748_v49  ;;  %v6750_v10 = vrot.slane %v6748_v49, 4  ;;  %v6605_v3 = vld [vmem:[#allocation3 + $0x9c] sm:$0xe]  ;;  %v6407_v17 = vshrl.u32 %v6106_v63, 16  ;;  %9711 = vmatmul.mubr.bf16.gmra.mxu1 %v12610_v8 }
 0x384   : > { %v12623_v48 = vld [vmem:[#allocation4 + $0x32c] ss:$40 sps:$4 sm:$0xff]   ;;  %v6390_v58 = vrot.slane %v6389_v54, 4  ;;  %6830 = vst [vmem:[#allocation4 + $0x3c8] sm:$0xf] %v6749_v47  ;;  %v6410_v39 = vshll.u32 %v6106_v63, 16  ;;  %9880 = vmatmul.mubr.bf16.gmra.mxu0 %v12614_v24  ;;  %9718 = vmatprep.mubr.bf16.mxu1 %v12620_v51 }
 0x385   : > { %v6416_v31 = vshll.u32 %v6107_v26, 16  ;;  %v6606_v0 = vld [vmem:[#allocation3 + $0xa0] sm:$0xf]  ;;  %v6607_v46 = vld [vmem:[#allocation3 + $0xa4] sm:$0x1]  ;;  %v6400_v36 = vrot.slane %v6399_v44, 4  ;;  %v6752_v40 = vsel %vm13195_vm14, %v6750_v10, %v6751_v6  ;;  %9887 = vmatprep.mubr.bf16.mxu0 %v12623_v48 }
 0x386   : > { %v6109_v34 = vld [vmem:[#allocation3 + $0x9c] sm:$0xf]  ;;  %v6420_v19 = vshrl.u32 %v6107_v26, 16  ;;  %v6426_v5 = vshll.u32 %v6108_v4, 16  ;;  %v7177_v12 = vld [vmem:[#allocation3 + $0x24] sm:$0xf]  ;;  %v6395_v27 = vsel %vm13004_vm8, %v6390_v58, %v6394_v60 }
 0x387   : > { %6831 = vst [vmem:[#allocation4 + $0x3f0] sm:$0xf] %v6752_v40  ;;  %v6409_v9 = vrot.slane %v6407_v17, 4  ;;  %v6412_v2 = vrot.slane %v6410_v39, 5  ;;  %v6418_v38 = vrot.slane %v6416_v31, 5  ;;  %v6405_v43 = vsel %vm13004_vm8, %v6400_v36, %v6404_v30 }
 0x388   : > { %v7178_v20 = vld [vmem:[#allocation3 + $0x28] sm:$0xf]  ;;  %7209 = vst [vmem:[#allocation4 + $0x68] sm:$0xf] %v7177_v12  ;;  %6556 = vst [vmem:[#allocation4 + $0x374] sm:$0xf] %v6395_v27 }
 0x389   : > { %v6422_v37 = vrot.slane %v6420_v19, 4  ;;  %v6110_v29 = vld [vmem:[#allocation3 + $0xa0] sm:$0xf]  ;;  %7210 = vst [vmem:[#allocation4 + $0x90] sm:$0xf] %v7178_v20  ;;  %v6413_v14 = vor.u32 %v6412_v2, %v6409_v9  ;;  %v6428_v13 = vrot.slane %v6426_v5, 5 }
 0x38a   : > { %6557 = vst [vmem:[#allocation4 + $0x39c] sm:$0xf] %v6405_v43  ;;  %v10825_v57 = vrot.slane %v6605_v3, 9  ;;  %v6111_v56 = vld [vmem:[#allocation3 + $0xa4] sm:$0x1]  ;;  %v6755_v33 = vrot.slane %v6606_v0, 5 }
 0x38b   : > { %v12618_v25 = vld [vmem:[#allocation4 + $0x2d0] ss:$40 sps:$4 sm:$0xff]   ;;  %v6423_v35 = vor.u32 %v6422_v37, %v6418_v38  ;;  %v6758_v45 = vrot.slane %v6607_v46, 5  ;;  %v6431_v50 = vshrl.u32 %v6109_v34, 16  ;;  %v6609_v1 = vld [vmem:[#allocation3 + $0xac] sm:$0xf] }
 0x38c   : > { %v6608_v61 = vld [vmem:[#allocation3 + $0xa8] sm:$0xe]  ;;  %v6414_v41 = vrot.slane %v6413_v14, 4  ;;  %v6434_v53 = vshll.u32 %v6109_v34, 16  ;;  %v6440_v62 = vshll.u32 %v6110_v29, 16  ;;  %v6444_v28 = vshrl.u32 %v6110_v29, 16  ;;  %9719 = vmatmul.mubr.bf16.gmra.mxu1 %v12618_v25 }
 0x38d   : > { %v12621_v52 = vld [vmem:[#allocation4 + $0x328] ss:$40 sps:$4 sm:$0xff]   ;;  %v12626_v42 = vld [vmem:[#allocation4 + $0x324] ss:$40 sps:$4 sm:$0xff]   ;;  %v6424_v11 = vrot.slane %v6423_v35, 4  ;;  %v6756_v22 = vsel %vm13195_vm14, %v10825_v57, %v6755_v33  ;;  %v6757_v63 = vrot.slane %v6755_v33, 4 }
 0x38e   : > { %v6433_v59 = vrot.slane %v6431_v50, 4  ;;  %v12630_v15 = vld [vmem:[#allocation4 + $0x37c] ss:$40 sps:$4 sm:$0xff]   ;;  %v6419_v16 = vsel %vm13004_vm8, %v6414_v41, %v6418_v38  ;;  %6832 = vst [vmem:[#allocation4 + $0x418] sm:$0xf] %v6756_v22  ;;  %v6436_v60 = vrot.slane %v6434_v53, 5  ;;  %9888 = vmatmul.mubr.bf16.gmra.mxu0 %v12621_v52  ;;  %9726 = vmatprep.mubr.bf16.mxu1 %v12626_v42 }
 0x38f   : > { %v6442_v26 = vrot.slane %v6440_v62, 5  ;;  %v6446_v55 = vrot.slane %v6444_v28, 4  ;;  %v6429_v18 = vsel %vm13004_vm8, %v6424_v11, %v6428_v13  ;;  %6558 = vst [vmem:[#allocation4 + $0x3c4] sm:$0xf] %v6419_v16  ;;  %v6759_v49 = vsel %vm13195_vm14, %v6757_v63, %v6758_v45  ;;  %v6610_v7 = vld [vmem:[#allocation3 + $0xb0] sm:$0x1]  ;;  %9895 = vmatprep.mubr.bf16.mxu0 %v12630_v15 }
 0x390   : > { %v6450_v4 = vshll.u32 %v6111_v56, 16  ;;  %v6112_v8 = vld [vmem:[#allocation3 + $0xa8] sm:$0xf]  ;;  %6559 = vst [vmem:[#allocation4 + $0x3ec] sm:$0xf] %v6429_v18  ;;  %v6437_v24 = vor.u32 %v6436_v60, %v6433_v59  ;;  %v10826_v30 = vrot.slane %v6608_v61, 9 }
 0x391   : > { %6833 = vst [vmem:[#allocation4 + $0x440] sm:$0xf] %v6759_v49  ;;  %v6447_v54 = vor.u32 %v6446_v55, %v6442_v26  ;;  %v6762_v51 = vrot.slane %v6609_v1, 5  ;;  %v6113_v44 = vld [vmem:[#allocation3 + $0xac] sm:$0xf]  ;;  %v6765_v46 = vrot.slane %v6610_v7, 5 }
 0x392   : > { %v6452_v47 = vrot.slane %v6450_v4, 5  ;;  %v6114_v10 = vld [vmem:[#allocation3 + $0xb0] sm:$0x1]  ;;  %v6611_v6 = vld [vmem:[#allocation3 + $0xb4] sm:$0xe]  ;;  %v6438_v3 = vrot.slane %v6437_v24, 4 }
 0x393   : > { %v6448_v48 = vrot.slane %v6447_v54, 4  ;;  %v6763_v58 = vsel %vm13195_vm14, %v10826_v30, %v6762_v51  ;;  %v6764_v17 = vrot.slane %v6762_v51, 4  ;;  %v6612_v39 = vld [vmem:[#allocation3 + $0xb8] sm:$0xf]  ;;  %v6455_v34 = vshrl.u32 %v6112_v8, 16 }
 0x394   : > { %v12624_v31 = vld [vmem:[#allocation4 + $0x320] ss:$40 sps:$4 sm:$0xff]   ;;  %6834 = vst [vmem:[#allocation4 + $0x468] sm:$0xf] %v6763_v58  ;;  %v6458_v36 = vshll.u32 %v6112_v8, 16  ;;  %v6464_v40 = vshll.u32 %v6113_v44, 16  ;;  %v6443_v5 = vsel %vm13004_vm8, %v6438_v3, %v6442_v26 }
 0x395   : > { %v12628_v0 = vld [vmem:[#allocation4 + $0x378] ss:$40 sps:$4 sm:$0xff]   ;;  %v6613_v19 = vld [vmem:[#allocation3 + $0xbc] sm:$0x1]  ;;  %v6453_v12 = vsel %vm13004_vm8, %v6448_v48, %v6452_v47  ;;  %v6468_v27 = vshrl.u32 %v6113_v44, 16  ;;  %v6474_v9 = vshll.u32 %v6114_v10, 16  ;;  %v6766_v29 = vsel %vm13195_vm14, %v6764_v17, %v6765_v46  ;;  %9727 = vmatmul.mubr.bf16.gmra.mxu1 %v12624_v31 }
 0x396   : > { %v6115_v2 = vld [vmem:[#allocation3 + $0xb4] sm:$0xf]  ;;  %v6116_v38 = vld [vmem:[#allocation3 + $0xb8] sm:$0xf]  ;;  %v7179_v20 = vld [vmem:[#allocation3 + $0x30] sm:$0xf]  ;;  %9896 = vmatmul.mubr.bf16.gmra.mxu0 %v12628_v0 }
 0x397   : > { %v7180_v43 = vld [vmem:[#allocation3 + $0x34] sm:$0xf]  ;;  %v12637_v37 = vld [vmem:[#allocation4 + $0x3cc] ss:$40 sps:$4 sm:$0xff]   ;;  %6560 = vst [vmem:[#allocation4 + $0x414] sm:$0xf] %v6443_v5 }
 0x398   : > { %6561 = vst [vmem:[#allocation4 + $0x43c] sm:$0xf] %v6453_v12  ;;  %v6457_v14 = vrot.slane %v6455_v34, 4  ;;  %v6460_v13 = vrot.slane %v6458_v36, 5  ;;  %v6466_v57 = vrot.slane %v6464_v40, 5  ;;  %v6470_v25 = vrot.slane %v6468_v27, 4  ;;  %9903 = vmatprep.mubr.bf16.mxu0 %v12637_v37 }
 0x399   : > { %7211 = vst [vmem:[#allocation4 + $0xb8] sm:$0xf] %v7179_v20  ;;  %7212 = vst [vmem:[#allocation4 + $0xe0] sm:$0xf] %v7180_v43  ;;  %v12634_v56 = vld [vmem:[#allocation4 + $0x374] ss:$40 sps:$4 sm:$0xff]  }
 0x39a   : > { %6835 = vst [vmem:[#allocation4 + $0x490] sm:$0xf] %v6766_v29  ;;  %v10827_v35 = vrot.slane %v6611_v6, 9  ;;  %v6769_v33 = vrot.slane %v6612_v39, 5  ;;  %v6461_v45 = vor.u32 %v6460_v13, %v6457_v14  ;;  %v6476_v50 = vrot.slane %v6474_v9, 5  ;;  %9734 = vmatprep.mubr.bf16.mxu1 %v12634_v56 }
 0x39b   : > { %v6117_v61 = vld [vmem:[#allocation3 + $0xbc] sm:$0x1]  ;;  %v6471_v1 = vor.u32 %v6470_v25, %v6466_v57  ;;  %v6772_v53 = vrot.slane %v6613_v19, 5  ;;  %v6479_v28 = vshrl.u32 %v6115_v2, 16  ;;  %v6482_v42 = vshll.u32 %v6115_v2, 16 }
 0x39c   : > { %v6770_v52 = vsel %vm13195_vm14, %v10827_v35, %v6769_v33  ;;  %v6771_v41 = vrot.slane %v6769_v33, 4  ;;  %v6462_v62 = vrot.slane %v6461_v45, 4  ;;  %v6488_v11 = vshll.u32 %v6116_v38, 16  ;;  %v7239_v22 = vld [vmem:[#allocation3 + $0x18] sm:$0xf] }
 0x39d   : > { %6836 = vst [vmem:[#allocation4 + $0x4b8] sm:$0xf] %v6770_v52  ;;  %v6472_v63 = vrot.slane %v6471_v1, 4  ;;  %v6492_v15 = vshrl.u32 %v6116_v38, 16  ;;  %v6498_v16 = vshll.u32 %v6117_v61, 16  ;;  %v6481_v55 = vrot.slane %v6479_v28, 4 }
 0x39e   : > { %v6773_v59 = vsel %vm13195_vm14, %v6771_v41, %v6772_v53  ;;  %v7240_v60 = vld [vmem:[#allocation3 + $0x1c] sm:$0xf]  ;;  %v6467_v26 = vsel %vm13004_vm8, %v6462_v62, %v6466_v57  ;;  %v6484_v18 = vrot.slane %v6482_v42, 5  ;;  %v6490_v49 = vrot.slane %v6488_v11, 5  ;;  %v7241_v4 = vld [vmem:[#allocation3 + $0x20] sm:$0x1] }
 0x39f   : > { %6837 = vst [vmem:[#allocation4 + $0x4e0] sm:$0xf] %v6773_v59  ;;  %v12635_v7 = vld [vmem:[#allocation4 + $0x3c8] ss:$40 sps:$4 sm:$0xff]   ;;  %v6477_v8 = vsel %vm13004_vm8, %v6472_v63, %v6476_v50  ;;  %6562 = vst [vmem:[#allocation4 + $0x464] sm:$0xf] %v6467_v26 }
 0x3a0   : > { %v6494_v24 = vrot.slane %v6492_v15, 4  ;;  %v6902_v54 = vld [vmem:[#allocation3 + $0xc] sm:$0xe]  ;;  %v6903_v30 = vld [vmem:[#allocation3 + $0x10] sm:$0xf]  ;;  %v6485_v10 = vor.u32 %v6484_v18, %v6481_v55  ;;  %v7288_v6 = vshrl.u32 %v7239_v22, 16  ;;  %9904 = vmatmul.mubr.bf16.gmra.mxu0 %v12635_v7 }
 0x3a1   : > { %v6904_v51 = vld [vmem:[#allocation3 + $0x14] sm:$0x1]  ;;  %v12632_v44 = vld [vmem:[#allocation4 + $0x370] ss:$40 sps:$4 sm:$0xff]   ;;  %v12640_v47 = vld [vmem:[#allocation4 + $0x3c4] ss:$40 sps:$4 sm:$0xff]  }
 0x3a2   : > { %6563 = vst [vmem:[#allocation4 + $0x48c] sm:$0xf] %v6477_v8  ;;  %v7242_v3 = vld [vmem:[#allocation3 + $0x24] sm:$0xf]  ;;  %v12645_v48 = vld [vmem:[#allocation4 + $0x41c] ss:$40 sps:$4 sm:$0xff]   ;;  %v6495_v58 = vor.u32 %v6494_v24, %v6490_v49  ;;  %9735 = vmatmul.mubr.bf16.gmra.mxu1 %v12632_v44 }
 0x3a3   : > { %v7291_v17 = vshll.u32 %v7239_v22, 16  ;;  %v7297_v39 = vshll.u32 %v7240_v60, 16  ;;  %v7301_v31 = vshrl.u32 %v7240_v60, 16  ;;  %v6486_v0 = vrot.slane %v6485_v10, 4  ;;  %v7243_v40 = vld [vmem:[#allocation3 + $0x28] sm:$0xf]  ;;  %9742 = vmatprep.mubr.bf16.mxu1 %v12640_v47  ;;  %9911 = vmatprep.mubr.bf16.mxu0 %v12645_v48 }
 0x3a4   : > { %v6500_v46 = vrot.slane %v6498_v16, 5  ;;  %v7290_v34 = vrot.slane %v7288_v6, 4  ;;  %v7307_v36 = vshll.u32 %v7241_v4, 16  ;;  %v6496_v19 = vrot.slane %v6495_v58, 4  ;;  %v6905_v13 = vld [vmem:[#allocation3 + $0x18] sm:$0xe] }
 0x3a5   : > { %v7293_v5 = vrot.slane %v7291_v17, 5  ;;  %v7299_v12 = vrot.slane %v7297_v39, 5  ;;  %v7303_v27 = vrot.slane %v7301_v31, 4  ;;  %v6491_v9 = vsel %vm13004_vm8, %v6486_v0, %v6490_v49  ;;  %v6906_v57 = vld [vmem:[#allocation3 + $0x1c] sm:$0xf] }
 0x3a6   : > { %v10828_v2 = vrot.slane %v6902_v54, 9  ;;  %v7000_v38 = vrot.slane %v6903_v30, 5  ;;  %v7003_v20 = vrot.slane %v6904_v51, 5  ;;  %v6501_v43 = vsel %vm13004_vm8, %v6496_v19, %v6500_v46  ;;  %6564 = vst [vmem:[#allocation4 + $0x4b4] sm:$0xf] %v6491_v9 }
 0x3a7   : > { %v7294_v37 = vor.u32 %v7293_v5, %v7290_v34  ;;  %v7304_v29 = vor.u32 %v7303_v27, %v7299_v12  ;;  %v7312_v14 = vshrl.u32 %v7242_v3, 16  ;;  %v12638_v56 = vld [vmem:[#allocation4 + $0x3c0] ss:$40 sps:$4 sm:$0xff]   ;;  %6565 = vst [vmem:[#allocation4 + $0x4dc] sm:$0xf] %v6501_v43  ;;  %v7315_v45 = vshll.u32 %v7242_v3, 16 }
 0x3a8   : > { %v7001_v25 = vsel %vm13195_vm14, %v10828_v2, %v7000_v38  ;;  %v7002_v35 = vrot.slane %v7000_v38, 4  ;;  %v7244_v33 = vld [vmem:[#allocation3 + $0x2c] sm:$0x1]  ;;  %v7321_v50 = vshll.u32 %v7243_v40, 16  ;;  %v6907_v61 = vld [vmem:[#allocation3 + $0x20] sm:$0x1] }
 0x3a9   : > { %v7245_v1 = vld [vmem:[#allocation3 + $0x30] sm:$0xf]  ;;  %v7181_v52 = vld [vmem:[#allocation3 + $0x3c] sm:$0xf]  ;;  %v7295_v53 = vrot.slane %v7294_v37, 4  ;;  %v7309_v62 = vrot.slane %v7307_v36, 5 }
 0x3aa   : > { %v12643_v41 = vld [vmem:[#allocation4 + $0x418] ss:$40 sps:$4 sm:$0xff]   ;;  %7142 = vst [vmem:[#allocation4 + $0x14] sm:$0xf] %v7001_v25  ;;  %7213 = vst [vmem:[#allocation4 + $0x108] sm:$0xf] %v7181_v52  ;;  %v7004_v42 = vsel %vm13195_vm14, %v7002_v35, %v7003_v20  ;;  %9743 = vmatmul.mubr.bf16.gmra.mxu1 %v12638_v56 }
 0x3ab   : > { %v7305_v28 = vrot.slane %v7304_v29, 4  ;;  %v7314_v11 = vrot.slane %v7312_v14, 4  ;;  %v7317_v22 = vrot.slane %v7315_v45, 5  ;;  %v7182_v63 = vld [vmem:[#allocation3 + $0x40] sm:$0xf]  ;;  %v7300_v16 = vsel %vm13004_vm8, %v7295_v53, %v7299_v12  ;;  %9912 = vmatmul.mubr.bf16.gmra.mxu0 %v12643_v41 }
 0x3ac   : > { %v12650_v59 = vld [vmem:[#allocation4 + $0x414] ss:$40 sps:$4 sm:$0xff]   ;;  %7143 = vst [vmem:[#allocation4 + $0x3c] sm:$0xf] %v7004_v42  ;;  %v7323_v60 = vrot.slane %v7321_v50, 5  ;;  %v7325_v26 = vshrl.u32 %v7243_v40, 16 }
 0x3ad   : > { %v12656_v15 = vld [vmem:[#allocation4 + $0x46c] ss:$40 sps:$4 sm:$0xff]   ;;  %7214 = vst [vmem:[#allocation4 + $0x130] sm:$0xf] %v7182_v63  ;;  %v7310_v55 = vsel %vm13004_vm8, %v7305_v28, %v7309_v62  ;;  %7703 = vst [vmem:[#allocation4 + $0x1c] sm:$0xf] %v7300_v16  ;;  %v7318_v18 = vor.u32 %v7317_v22, %v7314_v11  ;;  %9750 = vmatprep.mubr.bf16.mxu1 %v12650_v59 }
 0x3ae   : > { %v10829_v49 = vrot.slane %v6905_v13, 9  ;;  %v7007_v4 = vrot.slane %v6906_v57, 5  ;;  %9919 = vmatprep.mubr.bf16.mxu0 %v12656_v15  ;;  %7704 = vst [vmem:[#allocation4 + $0x44] sm:$0xf] %v7310_v55  ;;  %v7327_v7 = vrot.slane %v7325_v26, 4  ;;  %v7331_v8 = vshll.u32 %v7244_v33, 16 }
 0x3af   : > { %v7010_v24 = vrot.slane %v6907_v61, 5  ;;  %v7246_v54 = vld [vmem:[#allocation3 + $0x34] sm:$0xf]  ;;  %v7336_v30 = vshrl.u32 %v7245_v1, 16  ;;  %v7319_v51 = vrot.slane %v7318_v18, 4  ;;  %v7339_v6 = vshll.u32 %v7245_v1, 16 }
 0x3b0   : > { %v7008_v44 = vsel %vm13195_vm14, %v10829_v49, %v7007_v4  ;;  %v7009_v47 = vrot.slane %v7007_v4, 4  ;;  %v7247_v10 = vld [vmem:[#allocation3 + $0x38] sm:$0x1]  ;;  %v7328_v3 = vor.u32 %v7327_v7, %v7323_v60  ;;  %v6908_v58 = vld [vmem:[#allocation3 + $0x24] sm:$0xe]  ;;  %v7345_v36 = vshll.u32 %v7246_v54, 16 }
 0x3b1   : > { %7144 = vst [vmem:[#allocation4 + $0x64] sm:$0xf] %v7008_v44  ;;  %v7338_v48 = vrot.slane %v7336_v30, 4  ;;  %v6909_v17 = vld [vmem:[#allocation3 + $0x28] sm:$0xf]  ;;  %v7324_v0 = vsel %vm13004_vm8, %v7319_v51, %v7323_v60  ;;  %v7341_v34 = vrot.slane %v7339_v6, 5 }
 0x3b2   : > { %v12648_v39 = vld [vmem:[#allocation4 + $0x410] ss:$40 sps:$4 sm:$0xff]   ;;  %v7011_v46 = vsel %vm13195_vm14, %v7009_v47, %v7010_v24  ;;  %v6910_v40 = vld [vmem:[#allocation3 + $0x2c] sm:$0x1]  ;;  %v12660_v19 = vld [vmem:[#allocation4 + $0x464] ss:$40 sps:$4 sm:$0xff]  }
 0x3b3   : > { %v12654_v31 = vld [vmem:[#allocation4 + $0x468] ss:$40 sps:$4 sm:$0xff]   ;;  %v12667_v5 = vld [vmem:[#allocation4 + $0x4bc] ss:$40 sps:$4 sm:$0xff]   ;;  %v7329_v12 = vrot.slane %v7328_v3, 4  ;;  %v7333_v27 = vrot.slane %v7331_v8, 5  ;;  %v7342_v20 = vor.u32 %v7341_v34, %v7338_v48  ;;  %9751 = vmatmul.mubr.bf16.gmra.mxu1 %v12648_v39 }
 0x3b4   : > { %7705 = vst [vmem:[#allocation4 + $0x6c] sm:$0xf] %v7324_v0  ;;  %7145 = vst [vmem:[#allocation4 + $0x8c] sm:$0xf] %v7011_v46  ;;  %v7349_v9 = vshrl.u32 %v7246_v54, 16  ;;  %v7355_v2 = vshll.u32 %v7247_v10, 16  ;;  %9920 = vmatmul.mubr.bf16.gmra.mxu0 %v12654_v31  ;;  %9758 = vmatprep.mubr.bf16.mxu1 %v12660_v19 }
 0x3b5   : > { %v7183_v38 = vld [vmem:[#allocation3 + $0x48] sm:$0xf]  ;;  %v7347_v43 = vrot.slane %v7345_v36, 5  ;;  %v7248_v37 = vld [vmem:[#allocation3 + $0x3c] sm:$0xf]  ;;  %v7334_v14 = vsel %vm13004_vm8, %v7329_v12, %v7333_v27  ;;  %v10830_v57 = vrot.slane %v6908_v58, 9  ;;  %9927 = vmatprep.mubr.bf16.mxu0 %v12667_v5 }
 0x3b6   : > { %v7249_v29 = vld [vmem:[#allocation3 + $0x40] sm:$0xf]  ;;  %7215 = vst [vmem:[#allocation4 + $0x158] sm:$0xf] %v7183_v38  ;;  %v7351_v13 = vrot.slane %v7349_v9, 4  ;;  %v7014_v56 = vrot.slane %v6909_v17, 5 }
 0x3b7   : > { %v7184_v25 = vld [vmem:[#allocation3 + $0x4c] sm:$0xf]  ;;  %7706 = vst [vmem:[#allocation4 + $0x94] sm:$0xf] %v7334_v14  ;;  %v7343_v35 = vrot.slane %v7342_v20, 4  ;;  %v7357_v33 = vrot.slane %v7355_v2, 5 }
 0x3b8   : > { %v7250_v45 = vld [vmem:[#allocation3 + $0x44] sm:$0x1]  ;;  %7216 = vst [vmem:[#allocation4 + $0x180] sm:$0xf] %v7184_v25  ;;  %v7352_v50 = vor.u32 %v7351_v13, %v7347_v43  ;;  %v7015_v61 = vsel %vm13195_vm14, %v10830_v57, %v7014_v56  ;;  %v7016_v1 = vrot.slane %v7014_v56, 4  ;;  %v7017_v52 = vrot.slane %v6910_v40, 5 }
 0x3b9   : > { %v6911_v41 = vld [vmem:[#allocation3 + $0x30] sm:$0xe]  ;;  %v7348_v53 = vsel %vm13004_vm8, %v7343_v35, %v7347_v43  ;;  %7146 = vst [vmem:[#allocation4 + $0xb4] sm:$0xf] %v7015_v61  ;;  %v7360_v62 = vshrl.u32 %v7248_v37, 16  ;;  %v7363_v28 = vshll.u32 %v7248_v37, 16 }
 0x3ba   : > { %v7369_v42 = vshll.u32 %v7249_v29, 16  ;;  %v6912_v11 = vld [vmem:[#allocation3 + $0x34] sm:$0xf]  ;;  %v7353_v22 = vrot.slane %v7352_v50, 4  ;;  %7707 = vst [vmem:[#allocation4 + $0xbc] sm:$0xf] %v7348_v53  ;;  %v7018_v63 = vsel %vm13195_vm14, %v7016_v1, %v7017_v52 }
 0x3bb   : > { %v7373_v59 = vshrl.u32 %v7249_v29, 16  ;;  %v7379_v15 = vshll.u32 %v7250_v45, 16  ;;  %v6913_v16 = vld [vmem:[#allocation3 + $0x38] sm:$0x1]  ;;  %7147 = vst [vmem:[#allocation4 + $0xdc] sm:$0xf] %v7018_v63 }
 0x3bc   : > { %v12665_v60 = vld [vmem:[#allocation4 + $0x4b8] ss:$40 sps:$4 sm:$0xff]   ;;  %v7362_v26 = vrot.slane %v7360_v62, 4  ;;  %v7365_v55 = vrot.slane %v7363_v28, 5  ;;  %v7251_v18 = vld [vmem:[#allocation3 + $0x48] sm:$0xf]  ;;  %v7358_v7 = vsel %vm13004_vm8, %v7353_v22, %v7357_v33 }
 0x3bd   : > { %v12658_v49 = vld [vmem:[#allocation4 + $0x460] ss:$40 sps:$4 sm:$0xff]   ;;  %v12672_v4 = vld [vmem:[#allocation4 + $0x4b4] ss:$40 sps:$4 sm:$0xff]   ;;  %v7371_v8 = vrot.slane %v7369_v42, 5  ;;  %v7375_v24 = vrot.slane %v7373_v59, 4  ;;  %9928 = vmatmul.mubr.bf16.gmra.mxu0 %v12665_v60 }
 0x3be   : > { %v12679_v54 = vld [vmem:[#allocation4 + $0x1c] ss:$40 sps:$4 sm:$0xff]   ;;  %7708 = vst [vmem:[#allocation4 + $0xe4] sm:$0xf] %v7358_v7  ;;  %v7366_v30 = vor.u32 %v7365_v55, %v7362_v26  ;;  %v10831_v51 = vrot.slane %v6911_v41, 9  ;;  %v7021_v44 = vrot.slane %v6912_v11, 5  ;;  %9759 = vmatmul.mubr.bf16.gmra.mxu1 %v12658_v49 }
 0x3bf   : > { %v7252_v47 = vld [vmem:[#allocation3 + $0x4c] sm:$0xf]  ;;  %v7376_v10 = vor.u32 %v7375_v24, %v7371_v8  ;;  %v7381_v6 = vrot.slane %v7379_v15, 5  ;;  %v7024_v3 = vrot.slane %v6913_v16, 5  ;;  %v7253_v48 = vld [vmem:[#allocation3 + $0x50] sm:$0x1]  ;;  %9766 = vmatprep.mubr.bf16.mxu1 %v12672_v4  ;;  %10129 = vmatprep.mubr.bf16.mxu0 %v12679_v54 }
 0x3c0   : > { %v7384_v58 = vshrl.u32 %v7251_v18, 16  ;;  %v7367_v17 = vrot.slane %v7366_v30, 4  ;;  %v7022_v39 = vsel %vm13195_vm14, %v10831_v51, %v7021_v44  ;;  %v7023_v31 = vrot.slane %v7021_v44, 4  ;;  %v6914_v46 = vld [vmem:[#allocation3 + $0x3c] sm:$0xe]  ;;  %v12689_v54 = vld [vmem:[%s15759_s3 + $0x238] sm:$0xff]  }
 0x3c1   : > { %v7387_v0 = vshll.u32 %v7251_v18, 16  ;;  %v6915_v34 = vld [vmem:[#allocation3 + $0x40] sm:$0xf]  ;;  %v7377_v36 = vrot.slane %v7376_v10, 4  ;;  %7148 = vst [vmem:[#allocation4 + $0x104] sm:$0xf] %v7022_v39 }
 0x3c2   : > { %v7386_v40 = vrot.slane %v7384_v58, 4  ;;  %v7393_v19 = vshll.u32 %v7252_v47, 16  ;;  %v7397_v5 = vshrl.u32 %v7252_v47, 16  ;;  %v7372_v12 = vsel %vm13004_vm8, %v7367_v17, %v7371_v8  ;;  %v7185_v38 = vld [vmem:[#allocation3 + $0x54] sm:$0xf]  ;;  %v12699_v47 = vld [vmem:[%s15759_s3 + $0x270] sm:$0xff]  }
 0x3c3   : > { %v7025_v27 = vsel %vm13195_vm14, %v7023_v31, %v7024_v3  ;;  %v7389_v9 = vrot.slane %v7387_v0, 5  ;;  %v7403_v2 = vshll.u32 %v7253_v48, 16  ;;  %v7382_v20 = vsel %vm13004_vm8, %v7377_v36, %v7381_v6  ;;  %7709 = vst [vmem:[#allocation4 + $0x10c] sm:$0xf] %v7372_v12  ;;  %v6916_v37 = vld [vmem:[#allocation3 + $0x44] sm:$0x1] }
 0x3c4   : > { %7149 = vst [vmem:[#allocation4 + $0x12c] sm:$0xf] %v7025_v27  ;;  %v7395_v43 = vrot.slane %v7393_v19, 5  ;;  %7217 = vst [vmem:[#allocation4 + $0x1a8] sm:$0xf] %v7185_v38  ;;  %v7399_v57 = vrot.slane %v7397_v5, 4 }
 0x3c5   : > { %v12670_v29 = vld [vmem:[#allocation4 + $0x4b0] ss:$40 sps:$4 sm:$0xff]   ;;  %7710 = vst [vmem:[#allocation4 + $0x134] sm:$0xf] %v7382_v20  ;;  %v7390_v13 = vor.u32 %v7389_v9, %v7386_v40  ;;  %v7186_v56 = vld [vmem:[#allocation3 + $0x58] sm:$0xf] }
 0x3c6   : > { %v12677_v14 = vld [vmem:[#allocation4 + $0x18] ss:$40 sps:$4 sm:$0xff]   ;;  %v12682_v25 = vld [vmem:[#allocation4 + $0x14] ss:$40 sps:$4 sm:$0xff]   ;;  %v7405_v33 = vrot.slane %v7403_v2, 5  ;;  %v10832_v45 = vrot.slane %v6914_v46, 9  ;;  %v7400_v1 = vor.u32 %v7399_v57, %v7395_v43  ;;  %9767 = vmatmul.mubr.bf16.gmra.mxu1 %v12670_v29 }
 0x3c7   : > { %v12688_v35 = vld [vmem:[#allocation4 + $0x6c] ss:$40 sps:$4 sm:$0xff]   ;;  %v7028_v50 = vrot.slane %v6915_v34, 5  ;;  %7218 = vst [vmem:[#allocation4 + $0x1d0] sm:$0xf] %v7186_v56  ;;  %v7391_v61 = vrot.slane %v7390_v13, 4  ;;  %10130 = vmatmul.mubr.bf16.vlgmr.msra.gmra.mxu0 %v12677_v14  ;;  %9968 = vmatprep.mubr.bf16.mxu1 %v12682_v25  ;;  %v11737_v25 = vpop.f32.mrf.mxu0 }
 0x3c8   : > { %v7031_v52 = vrot.slane %v6916_v37, 5  ;;  %v7254_v41 = vld [vmem:[#allocation3 + $0x54] sm:$0xf]  ;;  %v7255_v53 = vld [vmem:[#allocation3 + $0x58] sm:$0xf]  ;;  %v7401_v59 = vrot.slane %v7400_v1, 4  ;;  %10137 = vmatprep.mubr.bf16.mxu0 %v12688_v35 }
 0x3c9   : > { %v7029_v62 = vsel %vm13195_vm14, %v10832_v45, %v7028_v50  ;;  %v7030_v28 = vrot.slane %v7028_v50, 4  ;;  %v7256_v42 = vld [vmem:[#allocation3 + $0x5c] sm:$0x1]  ;;  %v7408_v11 = vshrl.u32 %v7254_v41, 16  ;;  %v7411_v22 = vshll.u32 %v7254_v41, 16  ;;  %v12713_v35 = vld [vmem:[%s15759_s3 + $0x268] sm:$0xff]   ;;  %v11738_v1 = vpop.f32.mrf.mxu0 }
 0x3ca   : > { %v7396_v63 = vsel %vm13004_vm8, %v7391_v61, %v7395_v43  ;;  %7150 = vst [vmem:[#allocation4 + $0x154] sm:$0xf] %v7029_v62  ;;  %v7417_v15 = vshll.u32 %v7255_v53, 16  ;;  %v7421_v16 = vshrl.u32 %v7255_v53, 16  ;;  %v6917_v60 = vld [vmem:[#allocation3 + $0x48] sm:$0xe]  ;;  %v7406_v7 = vsel %vm13004_vm8, %v7401_v59, %v7405_v33 }
 0x3cb   : > { %7711 = vst [vmem:[#allocation4 + $0x15c] sm:$0xf] %v7396_v63  ;;  %v7032_v26 = vsel %vm13195_vm14, %v7030_v28, %v7031_v52  ;;  %v7410_v55 = vrot.slane %v7408_v11, 4  ;;  %v7413_v18 = vrot.slane %v7411_v22, 5  ;;  %v7427_v49 = vshll.u32 %v7256_v42, 16  ;;  %v12703_v14 = vld [vmem:[%s15759_s3 + $0x230] sm:$0xff]  }
 0x3cc   : > { %v6918_v4 = vld [vmem:[#allocation3 + $0x4c] sm:$0xf]  ;;  %7151 = vst [vmem:[#allocation4 + $0x17c] sm:$0xf] %v7032_v26  ;;  %v7419_v8 = vrot.slane %v7417_v15, 5  ;;  %v7423_v24 = vrot.slane %v7421_v16, 4  ;;  %v15131_v63 = vadd.f32 %v11738_v1, %v11737_v25 }
 0x3cd   : > { %7712 = vst [vmem:[#allocation4 + $0x184] sm:$0xf] %v7406_v7  ;;  %v7414_v30 = vor.u32 %v7413_v18, %v7410_v55  ;;  %v12680_v51 = vld [vmem:[#allocation4 + $0x10] ss:$40 sps:$4 sm:$0xff]   ;;  %v7429_v6 = vrot.slane %v7427_v49, 5  ;;  %v10833_v48 = vrot.slane %v6917_v60, 9 }
 0x3ce   : > { %v12686_v44 = vld [vmem:[#allocation4 + $0x68] ss:$40 sps:$4 sm:$0xff]   ;;  %v7424_v10 = vor.u32 %v7423_v24, %v7419_v8  ;;  %v6919_v3 = vld [vmem:[#allocation3 + $0x50] sm:$0x1]  ;;  %v7035_v58 = vrot.slane %v6918_v4, 5  ;;  %9969 = vmatmul.mubr.bf16.vlgmr.msra.gmra.mxu1 %v12680_v51 }
 0x3cf   : > { %v12692_v17 = vld [vmem:[#allocation4 + $0x64] ss:$40 sps:$4 sm:$0xff]   ;;  %v7415_v39 = vrot.slane %v7414_v30, 4  ;;  %v7038_v31 = vrot.slane %v6919_v3, 5  ;;  %v7187_v0 = vld [vmem:[#allocation3 + $0x60] sm:$0xf]  ;;  %10138 = vmatmul.mubr.bf16.gmra.mxu0 %v12686_v44  ;;  %12058 = vmatpush3.bf16.msra.mxu1 %v12689_v54 }
 0x3d0   : > { %v7188_v46 = vld [vmem:[#allocation3 + $0x64] sm:$0xf]  ;;  %v7425_v34 = vrot.slane %v7424_v10, 4  ;;  %v7036_v36 = vsel %vm13195_vm14, %v10833_v48, %v7035_v58  ;;  %v7037_v40 = vrot.slane %v7035_v58, 4  ;;  %7219 = vst [vmem:[#allocation4 + $0x1f8] sm:$0xf] %v7187_v0  ;;  %9976 = vmatprep.mubr.bf16.mxu1 %v12692_v17  ;;  %12059 = vmatprep.subr.bf16.mxu1 %v12699_v47 }
 0x3d1   : > { %7220 = vst [vmem:[#allocation4 + $0x220] sm:$0xf] %v7188_v46  ;;  %v7257_v19 = vld [vmem:[#allocation3 + $0x60] sm:$0xf]  ;;  %v7258_v5 = vld [vmem:[#allocation3 + $0x64] sm:$0xf]  ;;  %v7420_v12 = vsel %vm13004_vm8, %v7415_v39, %v7419_v8 }
 0x3d2   : > { %7152 = vst [vmem:[#allocation4 + $0x1a4] sm:$0xf] %v7036_v36  ;;  %v7259_v27 = vld [vmem:[#allocation3 + $0x68] sm:$0x1]  ;;  %v7432_v9 = vshrl.u32 %v7257_v19, 16  ;;  %v7435_v2 = vshll.u32 %v7257_v19, 16  ;;  %v7430_v43 = vsel %vm13004_vm8, %v7425_v34, %v7429_v6  ;;  %v7039_v37 = vsel %vm13195_vm14, %v7037_v40, %v7038_v31  ;;  %v11628_v34 = vpop.f32.mrf.mxu1 }
 0x3d3   : > { %v7441_v38 = vshll.u32 %v7258_v5, 16  ;;  %v12695_v20 = vld [vmem:[#allocation4 + $0xbc] ss:$40 sps:$4 sm:$0xff]   ;;  %7713 = vst [vmem:[#allocation4 + $0x1ac] sm:$0xf] %v7420_v12  ;;  %v7445_v29 = vshrl.u32 %v7258_v5, 16  ;;  %12060 = vmatpush3.bf16.msra.mxu1 %v12703_v14 }
 0x3d4   : > { %7714 = vst [vmem:[#allocation4 + $0x1d4] sm:$0xf] %v7430_v43  ;;  %7153 = vst [vmem:[#allocation4 + $0x1cc] sm:$0xf] %v7039_v37  ;;  %v7434_v13 = vrot.slane %v7432_v9, 4  ;;  %v7451_v57 = vshll.u32 %v7259_v27, 16  ;;  %10145 = vmatprep.mubr.bf16.mxu0 %v12695_v20  ;;  %12061 = vmatprep.subr.bf16.mxu1 %v12713_v35  ;;  %v11740_v43 = vpop.f32.mrf.mxu0 }
 0x3d5   : > { %v6920_v56 = vld [vmem:[#allocation3 + $0x54] sm:$0xe]  ;;  %v7437_v33 = vrot.slane %v7435_v2, 5  ;;  %v7443_v45 = vrot.slane %v7441_v38, 5  ;;  %v7447_v50 = vrot.slane %v7445_v29, 4  ;;  %v12727_v55 = vld [vmem:[%s15759_s3 + $0x260] sm:$0xff]  }
 0x3d6   : > { %v6921_v61 = vld [vmem:[#allocation3 + $0x58] sm:$0xf]  ;;  %v12717_v53 = vld [vmem:[%s15759_s3 + $0x228] sm:$0xff]   ;;  %v6922_v28 = vld [vmem:[#allocation3 + $0x5c] sm:$0x1]  ;;  %v10834_v42 = vrot.slane %v6920_v56, 9 }
 0x3d7   : > { %v12690_v52 = vld [vmem:[#allocation4 + $0x60] ss:$40 sps:$4 sm:$0xff]   ;;  %v7438_v62 = vor.u32 %v7437_v33, %v7434_v13  ;;  %v7042_v11 = vrot.slane %v6921_v61, 5  ;;  %v7189_v22 = vld [vmem:[#allocation3 + $0x6c] sm:$0xf]  ;;  %v7448_v16 = vor.u32 %v7447_v50, %v7443_v45  ;;  %v7453_v60 = vrot.slane %v7451_v57, 5  ;;  %12062 = vmatpush3.bf16.msra.mxu1 %v12717_v53  ;;  %v11629_v50 = vpop.f32.mrf.mxu1 }
 0x3d8   : > { %v12693_v41 = vld [vmem:[#allocation4 + $0xb8] ss:$40 sps:$4 sm:$0xff]   ;;  %v12698_v59 = vld [vmem:[#allocation4 + $0xb4] ss:$40 sps:$4 sm:$0xff]   ;;  %v7045_v26 = vrot.slane %v6922_v28, 5  ;;  %9977 = vmatmul.mubr.bf16.gmra.mxu1 %v12690_v52  ;;  %12063 = vmatprep.subr.bf16.mxu1 %v12727_v55  ;;  %v12741_v5 = vld [vmem:[%s15759_s3 + $0x258] sm:$0xff]  }
 0x3d9   : > { %v12702_v15 = vld [vmem:[#allocation4 + $0x10c] ss:$40 sps:$4 sm:$0xff]   ;;  %v7190_v18 = vld [vmem:[#allocation3 + $0x70] sm:$0xf]  ;;  %7221 = vst [vmem:[#allocation4 + $0x248] sm:$0xf] %v7189_v22  ;;  %v7043_v7 = vsel %vm13195_vm14, %v10834_v42, %v7042_v11  ;;  %10146 = vmatmul.mubr.bf16.gmra.mxu0 %v12693_v41  ;;  %9984 = vmatprep.mubr.bf16.mxu1 %v12698_v59 }
 0x3da   : > { %v7260_v49 = vld [vmem:[#allocation3 + $0x6c] sm:$0xf]  ;;  %v7439_v4 = vrot.slane %v7438_v62, 4  ;;  %v7044_v8 = vrot.slane %v7042_v11, 4  ;;  %7222 = vst [vmem:[#allocation4 + $0x270] sm:$0xf] %v7190_v18  ;;  %10153 = vmatprep.mubr.bf16.mxu0 %v12702_v15  ;;  %v11741_v15 = vpop.f32.mrf.mxu0 }
 0x3db   : > { %v7261_v24 = vld [vmem:[#allocation3 + $0x70] sm:$0xf]  ;;  %v7456_v54 = vshrl.u32 %v7260_v49, 16  ;;  %v7449_v30 = vrot.slane %v7448_v16, 4  ;;  %7154 = vst [vmem:[#allocation4 + $0x1f4] sm:$0xf] %v7043_v7 }
 0x3dc   : > { %v7262_v51 = vld [vmem:[#allocation3 + $0x74] sm:$0x1]  ;;  %v7459_v44 = vshll.u32 %v7260_v49, 16  ;;  %v7465_v47 = vshll.u32 %v7261_v24, 16  ;;  %v7444_v10 = vsel %vm13004_vm8, %v7439_v4, %v7443_v45  ;;  %v7046_v6 = vsel %vm13195_vm14, %v7044_v8, %v7045_v26  ;;  %v12731_v0 = vld [vmem:[%s15759_s3 + $0x220] sm:$0xff]   ;;  %v12745_v61 = vld [vmem:[%s15759_s3 + $0x218] sm:$0xff]  }
 0x3dd   : > { %v7458_v3 = vrot.slane %v7456_v54, 4  ;;  %v7454_v48 = vsel %vm13004_vm8, %v7449_v30, %v7453_v60  ;;  %7715 = vst [vmem:[#allocation4 + $0x1fc] sm:$0xf] %v7444_v10  ;;  %7155 = vst [vmem:[#allocation4 + $0x21c] sm:$0xf] %v7046_v6  ;;  %v7469_v39 = vshrl.u32 %v7261_v24, 16  ;;  %12064 = vmatpush3.bf16.msra.mxu1 %v12731_v0  ;;  %v11630_v26 = vadd.f32 %v11629_v50, %v11628_v34 }
 0x3de   : > { %v7461_v58 = vrot.slane %v7459_v44, 5  ;;  %7716 = vst [vmem:[#allocation4 + $0x224] sm:$0xf] %v7454_v48  ;;  %v7467_v17 = vrot.slane %v7465_v47, 5  ;;  %v7475_v31 = vshll.u32 %v7262_v51, 16  ;;  %12065 = vmatprep.subr.bf16.mxu1 %v12741_v5  ;;  %v12755_v28 = vld [vmem:[%s15759_s3 + $0x250] sm:$0xff]   ;;  %v11742_v30 = vadd.f32 %v11741_v15, %v11740_v43 }
 0x3df   : > { %v6923_v46 = vld [vmem:[#allocation3 + $0x60] sm:$0xe]  ;;  %v6924_v40 = vld [vmem:[#allocation3 + $0x64] sm:$0xf]  ;;  %v6925_v19 = vld [vmem:[#allocation3 + $0x68] sm:$0x1] }
 0x3e0   : > { %v7462_v36 = vor.u32 %v7461_v58, %v7458_v3  ;;  %v12696_v12 = vld [vmem:[#allocation4 + $0xb0] ss:$40 sps:$4 sm:$0xff]   ;;  %v7471_v9 = vrot.slane %v7469_v39, 4  ;;  %v10835_v2 = vrot.slane %v6923_v46, 9  ;;  %v7049_v38 = vrot.slane %v6924_v40, 5  ;;  %v12759_v7 = vld [vmem:[%s15759_s3 + $0x210] sm:$0xff]  }
 0x3e1   : > { %v12700_v27 = vld [vmem:[#allocation4 + $0x108] ss:$40 sps:$4 sm:$0xff]   ;;  %v7191_v20 = vld [vmem:[#allocation3 + $0x78] sm:$0xf]  ;;  %v12706_v37 = vld [vmem:[#allocation4 + $0x104] ss:$40 sps:$4 sm:$0xff]   ;;  %9985 = vmatmul.mubr.bf16.gmra.mxu1 %v12696_v12 }
 0x3e2   : > { %v7463_v29 = vrot.slane %v7462_v36, 4  ;;  %v7477_v14 = vrot.slane %v7475_v31, 5  ;;  %v7192_v13 = vld [vmem:[#allocation3 + $0x7c] sm:$0xf]  ;;  %7223 = vst [vmem:[#allocation4 + $0x298] sm:$0xf] %v7191_v20  ;;  %v7472_v56 = vor.u32 %v7471_v9, %v7467_v17  ;;  %v7050_v25 = vsel %vm13195_vm14, %v10835_v2, %v7049_v38  ;;  %10154 = vmatmul.mubr.bf16.gmra.mxu0 %v12700_v27  ;;  %9992 = vmatprep.mubr.bf16.mxu1 %v12706_v37 }
 0x3e3   : > { %v7263_v57 = vld [vmem:[#allocation3 + $0x78] sm:$0xf]  ;;  %v7051_v35 = vrot.slane %v7049_v38, 4  ;;  %v7052_v33 = vrot.slane %v6925_v19, 5  ;;  %7224 = vst [vmem:[#allocation4 + $0x2c0] sm:$0xf] %v7192_v13  ;;  %12066 = vmatpush3.bf16.msra.mxu1 %v12745_v61 }
 0x3e4   : > { %v7264_v45 = vld [vmem:[#allocation3 + $0x7c] sm:$0xf]  ;;  %v7468_v52 = vsel %vm13004_vm8, %v7463_v29, %v7467_v17  ;;  %7156 = vst [vmem:[#allocation4 + $0x244] sm:$0xf] %v7050_v25  ;;  %v7480_v41 = vshrl.u32 %v7263_v57, 16  ;;  %v7483_v53 = vshll.u32 %v7263_v57, 16  ;;  %12067 = vmatprep.subr.bf16.mxu1 %v12755_v28 }
 0x3e5   : > { %v12709_v1 = vld [vmem:[#allocation4 + $0x15c] ss:$40 sps:$4 sm:$0xff]   ;;  %v7489_v62 = vshll.u32 %v7264_v45, 16  ;;  %v7473_v42 = vrot.slane %v7472_v56, 4  ;;  %7717 = vst [vmem:[#allocation4 + $0x24c] sm:$0xf] %v7468_v52  ;;  %v7053_v11 = vsel %vm13195_vm14, %v7051_v35, %v7052_v33 }
 0x3e6   : > { %v7265_v22 = vld [vmem:[#allocation3 + $0x80] sm:$0x1]  ;;  %v7493_v59 = vshrl.u32 %v7264_v45, 16  ;;  %10161 = vmatprep.mubr.bf16.mxu0 %v12709_v1  ;;  %7157 = vst [vmem:[#allocation4 + $0x26c] sm:$0xf] %v7053_v11  ;;  %v7482_v16 = vrot.slane %v7480_v41, 4 }
 0x3e7   : > { %v6926_v60 = vld [vmem:[#allocation3 + $0x6c] sm:$0xe]  ;;  %v7478_v55 = vsel %vm13004_vm8, %v7473_v42, %v7477_v14  ;;  %v7485_v18 = vrot.slane %v7483_v53, 5  ;;  %v7491_v49 = vrot.slane %v7489_v62, 5  ;;  %v7499_v8 = vshll.u32 %v7265_v22, 16  ;;  %v12769_v51 = vld [vmem:[%s15759_s3 + $0x248] sm:$0xff]   ;;  %12068 = vmatpush3.bf16.msra.mxu1 %v12759_v7 }
 0x3e8   : > { %v7495_v4 = vrot.slane %v7493_v59, 4  ;;  %7718 = vst [vmem:[#allocation4 + $0x274] sm:$0xf] %v7478_v55  ;;  %v6927_v24 = vld [vmem:[#allocation3 + $0x70] sm:$0xf]  ;;  %v10836_v3 = vrot.slane %v6926_v60, 9  ;;  %12069 = vmatprep.subr.bf16.mxu1 %v12769_v51 }
 0x3e9   : > { %v6928_v54 = vld [vmem:[#allocation3 + $0x74] sm:$0x1]  ;;  %v12704_v44 = vld [vmem:[#allocation4 + $0x100] ss:$40 sps:$4 sm:$0xff]   ;;  %v7486_v10 = vor.u32 %v7485_v18, %v7482_v16  ;;  %v7056_v48 = vrot.slane %v6927_v24, 5  ;;  %v7501_v46 = vrot.slane %v7499_v8, 5 }
 0x3ea   : > { %v12707_v47 = vld [vmem:[#allocation4 + $0x158] ss:$40 sps:$4 sm:$0xff]   ;;  %v7496_v6 = vor.u32 %v7495_v4, %v7491_v49  ;;  %v15173_v58 = vld [vmem:[%s15760_s4] ss:$0 sm:$0xff]  ;;  %v7193_v17 = vld [vmem:[#allocation3 + $0x84] sm:$0xf]  ;;  %9993 = vmatmul.mubr.bf16.gmra.mxu1 %v12704_v44 }
 0x3eb   : > { %v12773_v39 = vld [vmem:[%s15759_s3 + $0x208] sm:$0xff]   ;;  %v12716_v0 = vld [vmem:[#allocation4 + $0x1ac] ss:$40 sps:$4 sm:$0xff]   ;;  %v7059_v34 = vrot.slane %v6928_v54, 5  ;;  %v9649_v36 = vadd.f32 %v15030_v21, %v15173_v58  ;;  %v9652_v40 = vadd.f32 %v11630_v26, %v15173_v58  ;;  %v7194_v19 = vld [vmem:[#allocation3 + $0x88] sm:$0xf]  ;;  %v7057_v2 = vsel %vm13195_vm14, %v10836_v3, %v7056_v48  ;;  %10162 = vmatmul.mubr.bf16.gmra.mxu0 %v12707_v47 }
 0x3ec   : > { %v12712_v31 = vld [vmem:[#allocation4 + $0x154] ss:$40 sps:$4 sm:$0xff]   ;;  %7225 = vst [vmem:[#allocation4 + $0x2e8] sm:$0xf] %v7193_v17  ;;  %v7266_v5 = vld [vmem:[#allocation3 + $0x84] sm:$0xf]  ;;  %10169 = vmatprep.mubr.bf16.mxu0 %v12716_v0  ;;  %12070 = vmatpush3.bf16.msra.mxu1 %v12773_v39 }
 0x3ed   : > { %v12783_v12 = vld [vmem:[%s15759_s3 + $0x240] sm:$0xff]   ;;  %v7487_v27 = vrot.slane %v7486_v10, 4  ;;  %v7497_v9 = vrot.slane %v7496_v6, 4  ;;  %v7058_v38 = vrot.slane %v7056_v48, 4  ;;  %7226 = vst [vmem:[#allocation4 + $0x310] sm:$0xf] %v7194_v19  ;;  %v15187_v14 = vadd.f32 %v15131_v63, %v9649_v36  ;;  %10000 = vmatprep.mubr.bf16.mxu1 %v12712_v31 }
 0x3ee   : > { %v7267_v20 = vld [vmem:[#allocation3 + $0x88] sm:$0xf]  ;;  %7158 = vst [vmem:[#allocation4 + $0x294] sm:$0xf] %v7057_v2  ;;  %v7268_v21 = vld [vmem:[#allocation3 + $0x8c] sm:$0x1]  ;;  %v15195_v1 = vadd.f32 %v11742_v30, %v9652_v40  ;;  %12071 = vmatprep.subr.bf16.mxu1 %v12783_v12 }
 0x3ef   : > { %v7504_v43 = vshrl.u32 %v7266_v5, 16  ;;  %v7507_v37 = vshll.u32 %v7266_v5, 16  ;;  %v7513_v29 = vshll.u32 %v7267_v20, 16  ;;  %v7492_v13 = vsel %vm13004_vm8, %v7487_v27, %v7491_v49  ;;  %v6929_v50 = vld [vmem:[#allocation3 + $0x78] sm:$0xe]  ;;  %v12784_v52 = vld [vmem:[%s15759_s3 + $0x200] sm:$0xff]  }
 0x3f0   : > { %v7502_v57 = vsel %vm13004_vm8, %v7497_v9, %v7501_v46  ;;  %v7060_v56 = vsel %vm13195_vm14, %v7058_v38, %v7059_v34  ;;  %v7517_v25 = vshrl.u32 %v7267_v20, 16  ;;  %7719 = vst [vmem:[#allocation4 + $0x29c] sm:$0xf] %v7492_v13  ;;  %v7523_v45 = vshll.u32 %v7268_v21, 16  ;;  %v6930_v62 = vld [vmem:[#allocation3 + $0x7c] sm:$0xf]  ;;  %12072 = vmatpush3.bf16.msra.mxu1 %v12784_v52 }
 0x3f1   : > { %7720 = vst [vmem:[#allocation4 + $0x2c4] sm:$0xf] %v7502_v57  ;;  %7159 = vst [vmem:[#allocation4 + $0x2bc] sm:$0xf] %v7060_v56  ;;  %v7506_v63 = vrot.slane %v7504_v43, 4  ;;  %v7509_v35 = vrot.slane %v7507_v37, 5 }
 0x3f2   : > { %v7515_v33 = vrot.slane %v7513_v29, 5  ;;  %v7519_v61 = vrot.slane %v7517_v25, 4  ;;  %v7525_v53 = vrot.slane %v7523_v45, 5  ;;  %v6931_v28 = vld [vmem:[#allocation3 + $0x80] sm:$0x1]  ;;  %v10837_v59 = vrot.slane %v6929_v50, 9 }
 0x3f3   : > { %v7510_v41 = vor.u32 %v7509_v35, %v7506_v63  ;;  %v12710_v42 = vld [vmem:[#allocation4 + $0x150] ss:$40 sps:$4 sm:$0xff]   ;;  %v7063_v15 = vrot.slane %v6930_v62, 5  ;;  %v7196_v60 = vld [vmem:[#allocation3 + $0x94] sm:$0xf]  ;;  %v7066_v18 = vrot.slane %v6931_v28, 5 }
 0x3f4   : > { %v12714_v11 = vld [vmem:[#allocation4 + $0x1a8] ss:$40 sps:$4 sm:$0xff]   ;;  %v7520_v22 = vor.u32 %v7519_v61, %v7515_v33  ;;  %v7195_v16 = vld [vmem:[#allocation3 + $0x90] sm:$0xf]  ;;  %v12720_v26 = vld [vmem:[#allocation4 + $0x1a4] ss:$40 sps:$4 sm:$0xff]   ;;  %10001 = vmatmul.mubr.bf16.gmra.mxu1 %v12710_v42 }
 0x3f5   : > { %v7511_v55 = vrot.slane %v7510_v41, 4  ;;  %7227 = vst [vmem:[#allocation4 + $0x338] sm:$0xf] %v7195_v16  ;;  %7228 = vst [vmem:[#allocation4 + $0x360] sm:$0xf] %v7196_v60  ;;  %v7064_v8 = vsel %vm13195_vm14, %v10837_v59, %v7063_v15  ;;  %v7065_v24 = vrot.slane %v7063_v15, 4  ;;  %10170 = vmatmul.mubr.bf16.gmra.mxu0 %v12714_v11  ;;  %10008 = vmatprep.mubr.bf16.mxu1 %v12720_v26 }
 0x3f6   : > { %v7269_v49 = vld [vmem:[#allocation3 + $0x90] sm:$0xf]  ;;  %v7270_v4 = vld [vmem:[#allocation3 + $0x94] sm:$0xf]  ;;  %v7521_v7 = vrot.slane %v7520_v22, 4 }
 0x3f7   : > { %v7271_v54 = vld [vmem:[#allocation3 + $0x98] sm:$0x1]  ;;  %v7528_v30 = vshrl.u32 %v7269_v49, 16  ;;  %v12723_v51 = vld [vmem:[#allocation4 + $0x1fc] ss:$40 sps:$4 sm:$0xff]   ;;  %v7516_v44 = vsel %vm13004_vm8, %v7511_v55, %v7515_v33  ;;  %v7531_v47 = vshll.u32 %v7269_v49, 16  ;;  %v7067_v48 = vsel %vm13195_vm14, %v7065_v24, %v7066_v18 }
 0x3f8   : > { %7160 = vst [vmem:[#allocation4 + $0x2e4] sm:$0xf] %v7064_v8  ;;  %v7537_v10 = vshll.u32 %v7270_v4, 16  ;;  %v7541_v6 = vshrl.u32 %v7270_v4, 16  ;;  %v7526_v3 = vsel %vm13004_vm8, %v7521_v7, %v7525_v53  ;;  %7721 = vst [vmem:[#allocation4 + $0x2ec] sm:$0xf] %v7516_v44  ;;  %10177 = vmatprep.mubr.bf16.mxu0 %v12723_v51 }
 0x3f9   : > { %v7530_v17 = vrot.slane %v7528_v30, 4  ;;  %7722 = vst [vmem:[#allocation4 + $0x314] sm:$0xf] %v7526_v3  ;;  %7161 = vst [vmem:[#allocation4 + $0x30c] sm:$0xf] %v7067_v48  ;;  %v7533_v39 = vrot.slane %v7531_v47, 5  ;;  %v11743_v3 = vpop.f32.mrf.mxu0 }
 0x3fa   : > { %v7547_v31 = vshll.u32 %v7271_v54, 16  ;;  %v6932_v0 = vld [vmem:[#allocation3 + $0x84] sm:$0xe]  ;;  %v7539_v46 = vrot.slane %v7537_v10, 5  ;;  %v7543_v34 = vrot.slane %v7541_v6, 4 }
 0x3fb   : > { %v7534_v36 = vor.u32 %v7533_v39, %v7530_v17  ;;  %v6933_v40 = vld [vmem:[#allocation3 + $0x88] sm:$0xf]  ;;  %v6934_v19 = vld [vmem:[#allocation3 + $0x8c] sm:$0x1]  ;;  %v7197_v5 = vld [vmem:[#allocation3 + $0x9c] sm:$0xf] }
 0x3fc   : > { %v12718_v12 = vld [vmem:[#allocation4 + $0x1a0] ss:$40 sps:$4 sm:$0xff]   ;;  %v7544_v9 = vor.u32 %v7543_v34, %v7539_v46  ;;  %v10838_v2 = vrot.slane %v6932_v0, 9  ;;  %v7070_v38 = vrot.slane %v6933_v40, 5  ;;  %7229 = vst [vmem:[#allocation4 + $0x388] sm:$0xf] %v7197_v5  ;;  %v11744_v5 = vpop.f32.mrf.mxu0 }
 0x3fd   : > { %v12721_v27 = vld [vmem:[#allocation4 + $0x1f8] ss:$40 sps:$4 sm:$0xff]   ;;  %v7198_v20 = vld [vmem:[#allocation3 + $0xa0] sm:$0xf]  ;;  %v7272_v21 = vld [vmem:[#allocation3 + $0x9c] sm:$0xf]  ;;  %10009 = vmatmul.mubr.bf16.gmra.mxu1 %v12718_v12 }
 0x3fe   : > { %v12726_v43 = vld [vmem:[#allocation4 + $0x1f4] ss:$40 sps:$4 sm:$0xff]   ;;  %v7535_v29 = vrot.slane %v7534_v36, 4  ;;  %v7549_v13 = vrot.slane %v7547_v31, 5  ;;  %v7073_v57 = vrot.slane %v6934_v19, 5  ;;  %v7552_v25 = vshrl.u32 %v7272_v21, 16  ;;  %10178 = vmatmul.mubr.bf16.gmra.mxu0 %v12721_v27 }
 0x3ff   : > { %v12730_v37 = vld [vmem:[#allocation4 + $0x24c] ss:$40 sps:$4 sm:$0xff]   ;;  %7230 = vst [vmem:[#allocation4 + $0x3b0] sm:$0xf] %v7198_v20  ;;  %v7273_v56 = vld [vmem:[#allocation3 + $0xa0] sm:$0xf]  ;;  %v7071_v35 = vsel %vm13195_vm14, %v10838_v2, %v7070_v38  ;;  %10016 = vmatprep.mubr.bf16.mxu1 %v12726_v43  ;;  %v15222_v20 = vadd.f32 %v11744_v5, %v11743_v3 }
 0x400   : > { %v7545_v63 = vrot.slane %v7544_v9, 4  ;;  %v7072_v33 = vrot.slane %v7070_v38, 4  ;;  %v7274_v45 = vld [vmem:[#allocation3 + $0xa4] sm:$0x1]  ;;  %v7555_v50 = vshll.u32 %v7272_v21, 16  ;;  %v7540_v61 = vsel %vm13004_vm8, %v7535_v29, %v7539_v46  ;;  %10185 = vmatprep.mubr.bf16.mxu0 %v12730_v37  ;;  %v11746_v37 = vpop.f32.mrf.mxu0 }
 0x401   : > { %7162 = vst [vmem:[#allocation4 + $0x334] sm:$0xf] %v7071_v35  ;;  %v7554_v52 = vrot.slane %v7552_v25, 4  ;;  %v7561_v41 = vshll.u32 %v7273_v56, 16  ;;  %v7565_v53 = vshrl.u32 %v7273_v56, 16  ;;  %v7571_v60 = vshll.u32 %v7274_v45, 16 }
 0x402   : > { %v6935_v62 = vld [vmem:[#allocation3 + $0x90] sm:$0xe]  ;;  %v7550_v28 = vsel %vm13004_vm8, %v7545_v63, %v7549_v13  ;;  %7723 = vst [vmem:[#allocation4 + $0x33c] sm:$0xf] %v7540_v61  ;;  %v7074_v42 = vsel %vm13195_vm14, %v7072_v33, %v7073_v57  ;;  %v7557_v11 = vrot.slane %v7555_v50, 5  ;;  %v11747_v63 = vpop.f32.mrf.mxu0 }
 0x403   : > { %v6936_v22 = vld [vmem:[#allocation3 + $0x94] sm:$0xf]  ;;  %7724 = vst [vmem:[#allocation4 + $0x364] sm:$0xf] %v7550_v28  ;;  %7163 = vst [vmem:[#allocation4 + $0x35c] sm:$0xf] %v7074_v42 }
 0x404   : > { %v7563_v59 = vrot.slane %v7561_v41, 5  ;;  %v7558_v15 = vor.u32 %v7557_v11, %v7554_v52  ;;  %v7567_v16 = vrot.slane %v7565_v53, 4  ;;  %v6937_v26 = vld [vmem:[#allocation3 + $0x98] sm:$0x1]  ;;  %v10839_v55 = vrot.slane %v6935_v62, 9 }
 0x405   : > { %v7077_v18 = vrot.slane %v6936_v22, 5  ;;  %v7080_v49 = vrot.slane %v6937_v26, 5  ;;  %v7199_v4 = vld [vmem:[#allocation3 + $0xa8] sm:$0xf]  ;;  %v7200_v7 = vld [vmem:[#allocation3 + $0xac] sm:$0xf]  ;;  %v15226_v53 = vadd.f32 %v11747_v63, %v11746_v37 }
 0x406   : > { %v12724_v8 = vld [vmem:[#allocation4 + $0x1f0] ss:$40 sps:$4 sm:$0xff]   ;;  %v7559_v54 = vrot.slane %v7558_v15, 4  ;;  %v7568_v30 = vor.u32 %v7567_v16, %v7563_v59  ;;  %v7573_v51 = vrot.slane %v7571_v60, 5  ;;  %7231 = vst [vmem:[#allocation4 + $0x3d8] sm:$0xf] %v7199_v4 }
 0x407   : > { %v12728_v24 = vld [vmem:[#allocation4 + $0x248] ss:$40 sps:$4 sm:$0xff]   ;;  %7232 = vst [vmem:[#allocation4 + $0x400] sm:$0xf] %v7200_v7  ;;  %v7276_v47 = vld [vmem:[#allocation3 + $0xac] sm:$0xf]  ;;  %v7078_v48 = vsel %vm13195_vm14, %v10839_v55, %v7077_v18  ;;  %10017 = vmatmul.mubr.bf16.gmra.mxu1 %v12724_v8 }
 0x408   : > { %v7275_v44 = vld [vmem:[#allocation3 + $0xa8] sm:$0xf]  ;;  %v12734_v10 = vld [vmem:[#allocation4 + $0x244] ss:$40 sps:$4 sm:$0xff]   ;;  %v7079_v17 = vrot.slane %v7077_v18, 4  ;;  %v7564_v46 = vsel %vm13004_vm8, %v7559_v54, %v7563_v59  ;;  %v7569_v34 = vrot.slane %v7568_v30, 4  ;;  %10186 = vmatmul.mubr.bf16.gmra.mxu0 %v12728_v24  ;;  %v11631_v30 = vpop.f32.mrf.mxu1 }
 0x409   : > { %v12737_v6 = vld [vmem:[#allocation4 + $0x29c] ss:$40 sps:$4 sm:$0xff]   ;;  %v7277_v39 = vld [vmem:[#allocation3 + $0xb0] sm:$0x1]  ;;  %v7576_v31 = vshrl.u32 %v7275_v44, 16  ;;  %v7579_v0 = vshll.u32 %v7275_v44, 16  ;;  %10024 = vmatprep.mubr.bf16.mxu1 %v12734_v10  ;;  %v11749_v44 = vpop.f32.mrf.mxu0 }
 0x40a   : > { %7164 = vst [vmem:[#allocation4 + $0x384] sm:$0xf] %v7078_v48  ;;  %v7585_v36 = vshll.u32 %v7276_v47, 16  ;;  %v7589_v40 = vshrl.u32 %v7276_v47, 16  ;;  %v6938_v19 = vld [vmem:[#allocation3 + $0x9c] sm:$0xe]  ;;  %v7081_v12 = vsel %vm13195_vm14, %v7079_v17, %v7080_v49  ;;  %v7574_v21 = vsel %vm13004_vm8, %v7569_v34, %v7573_v51  ;;  %10193 = vmatprep.mubr.bf16.mxu0 %v12737_v6  ;;  %v11632_v48 = vpop.f32.mrf.mxu1 }
 0x40b   : > { %7725 = vst [vmem:[#allocation4 + $0x38c] sm:$0xf] %v7564_v46  ;;  %v7578_v27 = vrot.slane %v7576_v31, 4  ;;  %v7581_v9 = vrot.slane %v7579_v0, 5  ;;  %v7595_v2 = vshll.u32 %v7277_v39, 16  ;;  %v10840_v56 = vrot.slane %v6938_v19, 9 }
 0x40c   : > { %v6939_v38 = vld [vmem:[#allocation3 + $0xa0] sm:$0xf]  ;;  %7165 = vst [vmem:[#allocation4 + $0x3ac] sm:$0xf] %v7081_v12  ;;  %v7587_v43 = vrot.slane %v7585_v36, 5  ;;  %v7591_v13 = vrot.slane %v7589_v40, 4  ;;  %v15236_v34 = vadd.f32 %v11632_v48, %v11631_v30  ;;  %v11750_v36 = vpop.f32.mrf.mxu0 }
 0x40d   : > { %7726 = vst [vmem:[#allocation4 + $0x3b4] sm:$0xf] %v7574_v21  ;;  %v7582_v29 = vor.u32 %v7581_v9, %v7578_v27  ;;  %v6940_v57 = vld [vmem:[#allocation3 + $0xa4] sm:$0x1]  ;;  %v7084_v25 = vrot.slane %v6939_v38, 5  ;;  %v7597_v45 = vrot.slane %v7595_v2, 5  ;;  %v11634_v9 = vpop.f32.mrf.mxu1  ;;  %v15238_v2 = vadd.f32 %v11750_v36, %v11749_v44 }
 0x40e   : > { %v7592_v33 = vor.u32 %v7591_v13, %v7587_v43  ;;  %v7201_v50 = vld [vmem:[#allocation3 + $0xb4] sm:$0xf]  ;;  %v7202_v61 = vld [vmem:[#allocation3 + $0xb8] sm:$0xf]  ;;  %v7087_v42 = vrot.slane %v6940_v57, 5 }
 0x40f   : > { %v7583_v35 = vrot.slane %v7582_v29, 4  ;;  %v12732_v52 = vld [vmem:[#allocation4 + $0x240] ss:$40 sps:$4 sm:$0xff]   ;;  %v7085_v62 = vsel %vm13195_vm14, %v10840_v56, %v7084_v25  ;;  %v7086_v28 = vrot.slane %v7084_v25, 4  ;;  %7233 = vst [vmem:[#allocation4 + $0x428] sm:$0xf] %v7201_v50  ;;  %v11752_v29 = vpop.f32.mrf.mxu0 }
 0x410   : > { %v12735_v41 = vld [vmem:[#allocation4 + $0x298] ss:$40 sps:$4 sm:$0xff]   ;;  %7234 = vst [vmem:[#allocation4 + $0x450] sm:$0xf] %v7202_v61  ;;  %v7278_v11 = vld [vmem:[#allocation3 + $0xb4] sm:$0xf]  ;;  %10025 = vmatmul.mubr.bf16.gmra.mxu1 %v12732_v52 }
 0x411   : > { %v7279_v22 = vld [vmem:[#allocation3 + $0xb8] sm:$0xf]  ;;  %v12740_v59 = vld [vmem:[#allocation4 + $0x294] ss:$40 sps:$4 sm:$0xff]   ;;  %v7588_v15 = vsel %vm13004_vm8, %v7583_v35, %v7587_v43  ;;  %v7593_v16 = vrot.slane %v7592_v33, 4  ;;  %v7600_v60 = vshrl.u32 %v7278_v11, 16  ;;  %v7088_v55 = vsel %vm13195_vm14, %v7086_v28, %v7087_v42  ;;  %10194 = vmatmul.mubr.bf16.gmra.mxu0 %v12735_v41  ;;  %v11635_v35 = vpop.f32.mrf.mxu1  ;;  %v11753_v28 = vpop.f32.mrf.mxu0 }
 0x412   : > { %7166 = vst [vmem:[#allocation4 + $0x3d4] sm:$0xf] %v7085_v62  ;;  %v7603_v26 = vshll.u32 %v7278_v11, 16  ;;  %7727 = vst [vmem:[#allocation4 + $0x3dc] sm:$0xf] %v7588_v15  ;;  %v7609_v49 = vshll.u32 %v7279_v22, 16  ;;  %10032 = vmatprep.mubr.bf16.mxu1 %v12740_v59  ;;  %v11636_v62 = vadd.f32 %v11635_v35, %v11634_v9 }
 0x413   : > { %v7280_v18 = vld [vmem:[#allocation3 + $0xbc] sm:$0x1]  ;;  %v7613_v4 = vshrl.u32 %v7279_v22, 16  ;;  %v12744_v7 = vld [vmem:[#allocation4 + $0x2ec] ss:$40 sps:$4 sm:$0xff]   ;;  %v7598_v8 = vsel %vm13004_vm8, %v7593_v16, %v7597_v45  ;;  %v7602_v24 = vrot.slane %v7600_v60, 4  ;;  %v15248_v22 = vadd.f32 %v11753_v28, %v11752_v29  ;;  %v11637_v44 = vpop.f32.mrf.mxu1 }
 0x414   : > { %7167 = vst [vmem:[#allocation4 + $0x3fc] sm:$0xf] %v7088_v55  ;;  %v6941_v54 = vld [vmem:[#allocation3 + $0xa8] sm:$0xe]  ;;  %7728 = vst [vmem:[#allocation4 + $0x404] sm:$0xf] %v7598_v8  ;;  %10201 = vmatprep.mubr.bf16.mxu0 %v12744_v7 }
 0x415   : > { %v7605_v51 = vrot.slane %v7603_v26, 5  ;;  %v7611_v47 = vrot.slane %v7609_v49, 5  ;;  %v7615_v10 = vrot.slane %v7613_v4, 4  ;;  %v7619_v6 = vshll.u32 %v7280_v18, 16  ;;  %v6942_v3 = vld [vmem:[#allocation3 + $0xac] sm:$0xf] }
 0x416   : > { %v6943_v39 = vld [vmem:[#allocation3 + $0xb0] sm:$0x1]  ;;  %v10841_v31 = vrot.slane %v6941_v54, 9  ;;  %v7091_v0 = vrot.slane %v6942_v3, 5  ;;  %v7203_v46 = vld [vmem:[#allocation3 + $0xc0] sm:$0xf] }
 0x417   : > { %v7606_v17 = vor.u32 %v7605_v51, %v7602_v24  ;;  %v7616_v40 = vor.u32 %v7615_v10, %v7611_v47  ;;  %v7094_v19 = vrot.slane %v6943_v39, 5  ;;  %v7204_v5 = vld [vmem:[#allocation3 + $0xc4] sm:$0xf]  ;;  %7235 = vst [vmem:[#allocation4 + $0x478] sm:$0xf] %v7203_v46  ;;  %v7621_v57 = vrot.slane %v7619_v6, 5 }
 0x418   : > { %v7281_v12 = vld [vmem:[#allocation3 + $0xc0] sm:$0xf]  ;;  %v12738_v27 = vld [vmem:[#allocation4 + $0x290] ss:$40 sps:$4 sm:$0xff]   ;;  %v7092_v21 = vsel %vm13195_vm14, %v10841_v31, %v7091_v0  ;;  %v7093_v43 = vrot.slane %v7091_v0, 4  ;;  %v9657_v39 = vadd.f32 %v15236_v34, %v15173_v58 }
 0x419   : > { %v7607_v38 = vrot.slane %v7606_v17, 4  ;;  %7236 = vst [vmem:[#allocation4 + $0x4a0] sm:$0xf] %v7204_v5  ;;  %v7282_v37 = vld [vmem:[#allocation3 + $0xc4] sm:$0xf]  ;;  %v7617_v13 = vrot.slane %v7616_v40, 4  ;;  %10033 = vmatmul.mubr.bf16.gmra.mxu1 %v12738_v27  ;;  %v11638_v40 = vpop.f32.mrf.mxu1 }
 0x41a   : > { %7168 = vst [vmem:[#allocation4 + $0x424] sm:$0xf] %v7092_v21  ;;  %v7624_v56 = vshrl.u32 %v7281_v12, 16  ;;  %v7627_v25 = vshll.u32 %v7281_v12, 16  ;;  %v12742_v63 = vld [vmem:[#allocation4 + $0x2e8] ss:$40 sps:$4 sm:$0xff]   ;;  %v7095_v45 = vsel %vm13195_vm14, %v7093_v43, %v7094_v19  ;;  %v11755_v21 = vpop.f32.mrf.mxu0 }
 0x41b   : > { %v7612_v33 = vsel %vm13004_vm8, %v7607_v38, %v7611_v47  ;;  %v7283_v50 = vld [vmem:[#allocation3 + $0xc8] sm:$0x1]  ;;  %v7633_v61 = vshll.u32 %v7282_v37, 16  ;;  %v12748_v52 = vld [vmem:[#allocation4 + $0x2e4] ss:$40 sps:$4 sm:$0xff]   ;;  %v7622_v42 = vsel %vm13004_vm8, %v7617_v13, %v7621_v57  ;;  %10202 = vmatmul.mubr.bf16.gmra.mxu0 %v12742_v63  ;;  %v7637_v16 = vshrl.u32 %v7282_v37, 16  ;;  %v11640_v29 = vpop.f32.mrf.mxu1 }
 0x41c   : > { %v12751_v41 = vld [vmem:[#allocation4 + $0x33c] ss:$40 sps:$4 sm:$0xff]   ;;  %7729 = vst [vmem:[#allocation4 + $0x42c] sm:$0xf] %v7612_v33  ;;  %7169 = vst [vmem:[#allocation4 + $0x44c] sm:$0xf] %v7095_v45  ;;  %10040 = vmatprep.mubr.bf16.mxu1 %v12748_v52  ;;  %v11639_v38 = vadd.f32 %v11638_v40, %v11637_v44  ;;  %v9660_v63 = vadd.f32 %v11636_v62, %v15173_v58  ;;  %v11756_v35 = vpop.f32.mrf.mxu0  ;;  %v15268_v62 = vadd.f32 %v15222_v20, %v9657_v39 }
 0x41d   : > { %v7626_v11 = vrot.slane %v7624_v56, 4  ;;  %7730 = vst [vmem:[#allocation4 + $0x454] sm:$0xf] %v7622_v42  ;;  %v7629_v59 = vrot.slane %v7627_v25, 5  ;;  %v7635_v15 = vrot.slane %v7633_v61, 5  ;;  %10209 = vmatprep.mubr.bf16.mxu0 %v12751_v41  ;;  %v7643_v26 = vshll.u32 %v7283_v50, 16  ;;  %v11641_v41 = vpop.f32.mrf.mxu1 }
 0x41e   : > { %v6944_v60 = vld [vmem:[#allocation3 + $0xb4] sm:$0xe]  ;;  %v6945_v55 = vld [vmem:[#allocation3 + $0xb8] sm:$0xf]  ;;  %v6946_v18 = vld [vmem:[#allocation3 + $0xbc] sm:$0x1]  ;;  %v15265_v32 = vadd.f32 %v11756_v35, %v11755_v21  ;;  %v9665_v44 = vadd.f32 %v11639_v38, %v15173_v58 }
 0x41f   : > { %v7630_v49 = vor.u32 %v7629_v59, %v7626_v11  ;;  %v7639_v4 = vrot.slane %v7637_v16, 4  ;;  %v10842_v7 = vrot.slane %v6944_v60, 9  ;;  %v7098_v8 = vrot.slane %v6945_v55, 5  ;;  %v6947_v24 = vld [vmem:[#allocation3 + $0xc0] sm:$0xe]  ;;  %v11758_v16 = vpop.f32.mrf.mxu0 }
 0x420   : > { %v7101_v54 = vrot.slane %v6946_v18, 5  ;;  %v6948_v30 = vld [vmem:[#allocation3 + $0xc4] sm:$0xf]  ;;  %v12746_v51 = vld [vmem:[#allocation4 + $0x2e0] ss:$40 sps:$4 sm:$0xff]   ;;  %v10843_v31 = vrot.slane %v6947_v24, 9  ;;  %v15292_v21 = vadd.f32 %v15238_v2, %v9665_v44 }
 0x421   : > { %v7631_v47 = vrot.slane %v7630_v49, 4  ;;  %v7640_v10 = vor.u32 %v7639_v4, %v7635_v15  ;;  %v7099_v6 = vsel %vm13195_vm14, %v10842_v7, %v7098_v8  ;;  %v7100_v3 = vrot.slane %v7098_v8, 4  ;;  %v6949_v48 = vld [vmem:[#allocation3 + $0xc8] sm:$0x1]  ;;  %v12749_v17 = vld [vmem:[#allocation4 + $0x338] ss:$40 sps:$4 sm:$0xff]   ;;  %10041 = vmatmul.mubr.bf16.gmra.mxu1 %v12746_v51 }
 0x422   : > { %7170 = vst [vmem:[#allocation4 + $0x474] sm:$0xf] %v7099_v6  ;;  %v7105_v0 = vrot.slane %v6948_v30, 5  ;;  %v7735_v46 = vld [vmem:[#allocation3 + $0x18] sm:$0xe]  ;;  %v7645_v12 = vrot.slane %v7643_v26, 5 }
 0x423   : > { %v12754_v36 = vld [vmem:[#allocation4 + $0x334] ss:$40 sps:$4 sm:$0xff]   ;;  %v7636_v19 = vsel %vm13004_vm8, %v7631_v47, %v7635_v15  ;;  %v7641_v5 = vrot.slane %v7640_v10, 4  ;;  %v7102_v27 = vsel %vm13195_vm14, %v7100_v3, %v7101_v54  ;;  %v7108_v37 = vrot.slane %v6949_v48, 5  ;;  %10210 = vmatmul.mubr.bf16.gmra.mxu0 %v12749_v17  ;;  %v7736_v57 = vld [vmem:[#allocation3 + $0x1c] sm:$0xf]  ;;  %v11759_v47 = vpop.f32.mrf.mxu0 }
 0x424   : > { %v12758_v9 = vld [vmem:[#allocation4 + $0x38c] ss:$40 sps:$4 sm:$0xff]   ;;  %7731 = vst [vmem:[#allocation4 + $0x47c] sm:$0xf] %v7636_v19  ;;  %7171 = vst [vmem:[#allocation4 + $0x49c] sm:$0xf] %v7102_v27  ;;  %v7106_v34 = vsel %vm13195_vm14, %v10843_v31, %v7105_v0  ;;  %10048 = vmatprep.mubr.bf16.mxu1 %v12754_v36  ;;  %v11642_v15 = vadd.f32 %v11641_v41, %v11640_v29  ;;  %v15277_v48 = vadd.f32 %v11759_v47, %v11758_v16 }
 0x425   : > { %v7107_v43 = vrot.slane %v7105_v0, 4  ;;  %v7646_v13 = vsel %vm13004_vm8, %v7641_v5, %v7645_v12  ;;  %7172 = vst [vmem:[#allocation4 + $0x4c4] sm:$0xf] %v7106_v34  ;;  %v7737_v56 = vld [vmem:[#allocation3 + $0x20] sm:$0x1]  ;;  %v10844_v25 = vrot.slane %v7735_v46, 9  ;;  %10217 = vmatprep.mubr.bf16.mxu0 %v12758_v9  ;;  %v15284_v19 = vadd.f32 %v15226_v53, %v9660_v63 }
 0x426   : > { %7732 = vst [vmem:[#allocation4 + $0x4a4] sm:$0xf] %v7646_v13  ;;  %v7833_v45 = vrot.slane %v7736_v57, 5  ;;  %v7836_v50 = vrot.slane %v7737_v56, 5  ;;  %v7738_v61 = vld [vmem:[#allocation3 + $0x24] sm:$0xe]  ;;  %v9668_v5 = vadd.f32 %v11642_v15, %v15173_v58 }
 0x427   : > { %v7109_v33 = vsel %vm13195_vm14, %v7107_v43, %v7108_v37  ;;  %v7739_v52 = vld [vmem:[#allocation3 + $0x28] sm:$0xf]  ;;  %v7740_v28 = vld [vmem:[#allocation3 + $0x2c] sm:$0x1]  ;;  %v10845_v42 = vrot.slane %v7738_v61, 9 }
 0x428   : > { %7173 = vst [vmem:[#allocation4 + $0x4ec] sm:$0xf] %v7109_v33  ;;  %v7840_v11 = vrot.slane %v7739_v52, 5  ;;  %v7741_v59 = vld [vmem:[#allocation3 + $0x30] sm:$0xe]  ;;  %v7834_v60 = vsel %vm13195_vm14, %v10844_v25, %v7833_v45  ;;  %v7835_v26 = vrot.slane %v7833_v45, 4  ;;  %v11643_v25 = vpop.f32.mrf.mxu1  ;;  %v15299_v52 = vadd.f32 %v15248_v22, %v9668_v5 }
 0x429   : > { %v7843_v55 = vrot.slane %v7740_v28, 5  ;;  %v7742_v18 = vld [vmem:[#allocation3 + $0x34] sm:$0xf]  ;;  %v7743_v49 = vld [vmem:[#allocation3 + $0x38] sm:$0x1]  ;;  %v10846_v24 = vrot.slane %v7741_v59, 9  ;;  %v11761_v28 = vpop.f32.mrf.mxu0 }
 0x42a   : > { %v12752_v4 = vld [vmem:[#allocation4 + $0x330] ss:$40 sps:$4 sm:$0xff]   ;;  %7975 = vst [vmem:[#allocation4 + $0x20] sm:$0xf] %v7834_v60  ;;  %v7841_v7 = vsel %vm13195_vm14, %v10845_v42, %v7840_v11  ;;  %v7842_v8 = vrot.slane %v7840_v11, 4  ;;  %v7847_v54 = vrot.slane %v7742_v18, 5  ;;  %v7837_v10 = vsel %vm13195_vm14, %v7835_v26, %v7836_v50  ;;  %v11644_v41 = vpop.f32.mrf.mxu1 }
 0x42b   : > { %v7744_v30 = vld [vmem:[#allocation3 + $0x3c] sm:$0xe]  ;;  %v12756_v20 = vld [vmem:[#allocation4 + $0x388] ss:$40 sps:$4 sm:$0xff]   ;;  %7977 = vst [vmem:[#allocation4 + $0x70] sm:$0xf] %v7841_v7  ;;  %10049 = vmatmul.mubr.bf16.gmra.mxu1 %v12752_v4  ;;  %v11645_v15 = vadd.f32 %v11644_v41, %v11643_v25  ;;  %v11762_v18 = vpop.f32.mrf.mxu0 }
 0x42c   : > { %v12762_v51 = vld [vmem:[#allocation4 + $0x384] ss:$40 sps:$4 sm:$0xff]   ;;  %v7850_v6 = vrot.slane %v7743_v49, 5  ;;  %v7745_v3 = vld [vmem:[#allocation3 + $0x40] sm:$0xf]  ;;  %v7844_v17 = vsel %vm13195_vm14, %v7842_v8, %v7843_v55  ;;  %v7848_v39 = vsel %vm13195_vm14, %v10846_v24, %v7847_v54  ;;  %v7849_v31 = vrot.slane %v7847_v54, 4  ;;  %10218 = vmatmul.mubr.bf16.gmra.mxu0 %v12756_v20  ;;  %v11646_v55 = vpop.f32.mrf.mxu1 }
 0x42d   : > { %7976 = vst [vmem:[#allocation4 + $0x48] sm:$0xf] %v7837_v10  ;;  %v7746_v0 = vld [vmem:[#allocation3 + $0x44] sm:$0x1]  ;;  %v12765_v46 = vld [vmem:[#allocation4 + $0x3dc] ss:$40 sps:$4 sm:$0xff]   ;;  %10056 = vmatprep.mubr.bf16.mxu1 %v12762_v51  ;;  %v9673_v7 = vadd.f32 %v11645_v15, %v15173_v58  ;;  %v15306_v8 = vadd.f32 %v11762_v18, %v11761_v28  ;;  %v11764_v51 = vpop.f32.mrf.mxu0 }
 0x42e   : > { %7978 = vst [vmem:[#allocation4 + $0x98] sm:$0xf] %v7844_v17  ;;  %7979 = vst [vmem:[#allocation4 + $0xc0] sm:$0xf] %v7848_v39  ;;  %v10847_v36 = vrot.slane %v7744_v30, 9  ;;  %v7854_v40 = vrot.slane %v7745_v3, 5  ;;  %v7851_v12 = vsel %vm13195_vm14, %v7849_v31, %v7850_v6  ;;  %10225 = vmatprep.mubr.bf16.mxu0 %v12765_v46  ;;  %v11647_v20 = vpop.f32.mrf.mxu1 }
 0x42f   : > { %7980 = vst [vmem:[#allocation4 + $0xe8] sm:$0xf] %v7851_v12  ;;  %v7857_v38 = vrot.slane %v7746_v0, 5  ;;  %v7747_v53 = vld [vmem:[#allocation3 + $0x48] sm:$0xe]  ;;  %v11648_v3 = vadd.f32 %v11647_v20, %v11646_v55  ;;  %v15313_v31 = vadd.f32 %v15265_v32, %v9673_v7 }
 0x430   : > { %v7855_v27 = vsel %vm13195_vm14, %v10847_v36, %v7854_v40  ;;  %v7856_v9 = vrot.slane %v7854_v40, 4  ;;  %v7748_v34 = vld [vmem:[#allocation3 + $0x4c] sm:$0xf]  ;;  %v7749_v43 = vld [vmem:[#allocation3 + $0x50] sm:$0x1]  ;;  %v10848_v29 = vrot.slane %v7747_v53, 9  ;;  %v11765_v36 = vpop.f32.mrf.mxu0  ;;  %v11649_v25 = vpop.f32.mrf.mxu1 }
 0x431   : > { %7981 = vst [vmem:[#allocation4 + $0x110] sm:$0xf] %v7855_v27  ;;  %v7861_v13 = vrot.slane %v7748_v34, 5  ;;  %v7750_v57 = vld [vmem:[#allocation3 + $0x54] sm:$0xe]  ;;  %v7864_v50 = vrot.slane %v7749_v43, 5 }
 0x432   : > { %v7858_v37 = vsel %vm13195_vm14, %v7856_v9, %v7857_v38  ;;  %v12760_v56 = vld [vmem:[#allocation4 + $0x380] ss:$40 sps:$4 sm:$0xff]   ;;  %v12768_v33 = vld [vmem:[#allocation4 + $0x3d4] ss:$40 sps:$4 sm:$0xff]   ;;  %v7752_v61 = vld [vmem:[#allocation3 + $0x5c] sm:$0x1]  ;;  %v9676_v9 = vadd.f32 %v11648_v3, %v15173_v58  ;;  %v15316_v38 = vadd.f32 %v11765_v36, %v11764_v51 }
 0x433   : > { %v12763_v63 = vld [vmem:[#allocation4 + $0x3d8] ss:$40 sps:$4 sm:$0xff]   ;;  %7982 = vst [vmem:[#allocation4 + $0x138] sm:$0xf] %v7858_v37  ;;  %v7862_v2 = vsel %vm13195_vm14, %v10848_v29, %v7861_v13  ;;  %v7863_v45 = vrot.slane %v7861_v13, 4  ;;  %v10849_v11 = vrot.slane %v7750_v57, 9  ;;  %10057 = vmatmul.mubr.bf16.gmra.mxu1 %v12760_v56 }
 0x434   : > { %v7751_v35 = vld [vmem:[#allocation3 + $0x58] sm:$0xf]  ;;  %v12772_v42 = vld [vmem:[#allocation4 + $0x42c] ss:$40 sps:$4 sm:$0xff]   ;;  %7983 = vst [vmem:[#allocation4 + $0x160] sm:$0xf] %v7862_v2  ;;  %10226 = vmatmul.mubr.bf16.gmra.mxu0 %v12763_v63  ;;  %10064 = vmatprep.mubr.bf16.mxu1 %v12768_v33  ;;  %v15323_v33 = vadd.f32 %v15277_v48, %v9676_v9  ;;  %v11767_v2 = vpop.f32.mrf.mxu0 }
 0x435   : > { %v7868_v59 = vrot.slane %v7751_v35, 5  ;;  %v7865_v16 = vsel %vm13195_vm14, %v7863_v45, %v7864_v50  ;;  %v7753_v60 = vld [vmem:[#allocation3 + $0x60] sm:$0xe]  ;;  %v7754_v26 = vld [vmem:[#allocation3 + $0x64] sm:$0xf]  ;;  %v7871_v4 = vrot.slane %v7752_v61, 5  ;;  %10233 = vmatprep.mubr.bf16.mxu0 %v12772_v42  ;;  %v11650_v42 = vpop.f32.mrf.mxu1 }
 0x436   : > { %7984 = vst [vmem:[#allocation4 + $0x188] sm:$0xf] %v7865_v16  ;;  %v7755_v24 = vld [vmem:[#allocation3 + $0x68] sm:$0x1]  ;;  %v10850_v54 = vrot.slane %v7753_v60, 9  ;;  %v7875_v30 = vrot.slane %v7754_v26, 5  ;;  %v11651_v15 = vadd.f32 %v11650_v42, %v11649_v25  ;;  %v11768_v16 = vpop.f32.mrf.mxu0 }
 0x437   : > { %v7869_v22 = vsel %vm13195_vm14, %v10849_v11, %v7868_v59  ;;  %v7870_v49 = vrot.slane %v7868_v59, 4  ;;  %v7878_v47 = vrot.slane %v7755_v24, 5  ;;  %v7756_v10 = vld [vmem:[#allocation3 + $0x6c] sm:$0xe]  ;;  %v7757_v6 = vld [vmem:[#allocation3 + $0x70] sm:$0xf]  ;;  %v11652_v55 = vpop.f32.mrf.mxu1  ;;  %v15331_v18 = vadd.f32 %v11768_v16, %v11767_v2 }
 0x438   : > { %7985 = vst [vmem:[#allocation4 + $0x1b0] sm:$0xf] %v7869_v22  ;;  %v7876_v17 = vsel %vm13195_vm14, %v10850_v54, %v7875_v30  ;;  %v7877_v39 = vrot.slane %v7875_v30, 4  ;;  %v12766_v0 = vld [vmem:[#allocation4 + $0x3d0] ss:$40 sps:$4 sm:$0xff]   ;;  %v10851_v5 = vrot.slane %v7756_v10, 9  ;;  %v11770_v51 = vpop.f32.mrf.mxu0 }
 0x439   : > { %v7872_v44 = vsel %vm13195_vm14, %v7870_v49, %v7871_v4  ;;  %v12770_v46 = vld [vmem:[#allocation4 + $0x428] ss:$40 sps:$4 sm:$0xff]   ;;  %7987 = vst [vmem:[#allocation4 + $0x200] sm:$0xf] %v7876_v17  ;;  %v7758_v40 = vld [vmem:[#allocation3 + $0x74] sm:$0x1]  ;;  %v11653_v3 = vpop.f32.mrf.mxu1 }
 0x43a   : > { %7986 = vst [vmem:[#allocation4 + $0x1d8] sm:$0xf] %v7872_v44  ;;  %v7882_v12 = vrot.slane %v7757_v6, 5  ;;  %v7759_v27 = vld [vmem:[#allocation3 + $0x78] sm:$0xe]  ;;  %v7879_v53 = vsel %vm13195_vm14, %v7877_v39, %v7878_v47  ;;  %v7885_v34 = vrot.slane %v7758_v40, 5  ;;  %v11654_v40 = vadd.f32 %v11653_v3, %v11652_v55 }
 0x43b   : > { %v7760_v43 = vld [vmem:[#allocation3 + $0x7c] sm:$0xf]  ;;  %v7761_v37 = vld [vmem:[#allocation3 + $0x80] sm:$0x1]  ;;  %7988 = vst [vmem:[#allocation4 + $0x228] sm:$0xf] %v7879_v53  ;;  %10065 = vmatmul.mubr.bf16.gmra.mxu1 %v12766_v0 }
 0x43c   : > { %v7883_v32 = vsel %vm13195_vm14, %v10851_v5, %v7882_v12  ;;  %v7884_v29 = vrot.slane %v7882_v12, 4  ;;  %v10852_v13 = vrot.slane %v7759_v27, 9  ;;  %v7889_v57 = vrot.slane %v7760_v43, 5  ;;  %v7762_v56 = vld [vmem:[#allocation3 + $0x84] sm:$0xe]  ;;  %10234 = vmatmul.mubr.bf16.gmra.mxu0 %v12770_v46  ;;  %v11771_v5 = vpop.f32.mrf.mxu0 }
 0x43d   : > { %v12776_v63 = vld [vmem:[#allocation4 + $0x424] ss:$40 sps:$4 sm:$0xff]   ;;  %7989 = vst [vmem:[#allocation4 + $0x250] sm:$0xf] %v7883_v32  ;;  %v7892_v58 = vrot.slane %v7761_v37, 5  ;;  %v10853_v11 = vrot.slane %v7762_v56, 9 }
 0x43e   : > { %v12779_v35 = vld [vmem:[#allocation4 + $0x47c] ss:$40 sps:$4 sm:$0xff]   ;;  %v7886_v45 = vsel %vm13195_vm14, %v7884_v29, %v7885_v34  ;;  %v7890_v50 = vsel %vm13195_vm14, %v10852_v13, %v7889_v57  ;;  %v7891_v61 = vrot.slane %v7889_v57, 4  ;;  %v7763_v41 = vld [vmem:[#allocation3 + $0x88] sm:$0xf]  ;;  %10072 = vmatprep.mubr.bf16.mxu1 %v12776_v63  ;;  %v15345_v34 = vadd.f32 %v11771_v5, %v11770_v51  ;;  %v11655_v57 = vpop.f32.mrf.mxu1  ;;  %v11773_v56 = vpop.f32.mrf.mxu0 }
 0x43f   : > { %v7764_v28 = vld [vmem:[#allocation3 + $0x8c] sm:$0x1]  ;;  %10241 = vmatprep.mubr.bf16.mxu0 %v12779_v35  ;;  %7990 = vst [vmem:[#allocation4 + $0x278] sm:$0xf] %v7886_v45  ;;  %7991 = vst [vmem:[#allocation4 + $0x2a0] sm:$0xf] %v7890_v50 }
 0x440   : > { %v7896_v48 = vrot.slane %v7763_v41, 5  ;;  %v7765_v59 = vld [vmem:[#allocation3 + $0x90] sm:$0xe]  ;;  %v7893_v60 = vsel %vm13195_vm14, %v7891_v61, %v7892_v58  ;;  %v7899_v26 = vrot.slane %v7764_v28, 5  ;;  %v12790_v22 = vld [vmem:[#allocation4 + $0x4cc] ss:$40 sps:$4 sm:$0xff]   ;;  %v11656_v45 = vpop.f32.mrf.mxu1  ;;  %v11774_v50 = vpop.f32.mrf.mxu0 }
 0x441   : > { %7992 = vst [vmem:[#allocation4 + $0x2c8] sm:$0xf] %v7893_v60  ;;  %v7766_v7 = vld [vmem:[#allocation3 + $0x94] sm:$0xf]  ;;  %v7767_v24 = vld [vmem:[#allocation3 + $0x98] sm:$0x1] }
 0x442   : > { %v7897_v49 = vsel %vm13195_vm14, %v10853_v11, %v7896_v48  ;;  %v7898_v4 = vrot.slane %v7896_v48, 4  ;;  %v12774_v54 = vld [vmem:[#allocation4 + $0x420] ss:$40 sps:$4 sm:$0xff]   ;;  %v15338_v30 = vld [vmem:[%s15760_s4] ss:$0 sm:$0xff]  ;;  %v10854_v44 = vrot.slane %v7765_v59, 9  ;;  %v11657_v11 = vadd.f32 %v11656_v45, %v11655_v57  ;;  %v11776_v55 = vpop.f32.mrf.mxu0 }
 0x443   : > { %v9681_v20 = vadd.f32 %v15338_v30, %v11651_v15  ;;  %7993 = vst [vmem:[#allocation4 + $0x2f0] sm:$0xf] %v7897_v49  ;;  %v7903_v47 = vrot.slane %v7766_v7, 5  ;;  %v7768_v10 = vld [vmem:[#allocation3 + $0x9c] sm:$0xe]  ;;  %v7906_v46 = vrot.slane %v7767_v24, 5  ;;  %v9684_v13 = vadd.f32 %v15338_v30, %v11654_v40  ;;  %10073 = vmatmul.mubr.bf16.gmra.mxu1 %v12774_v54 }
 0x444   : > { %v7769_v6 = vld [vmem:[#allocation3 + $0xa0] sm:$0xf]  ;;  %v12777_v17 = vld [vmem:[#allocation4 + $0x478] ss:$40 sps:$4 sm:$0xff]   ;;  %v12782_v39 = vld [vmem:[#allocation4 + $0x474] ss:$40 sps:$4 sm:$0xff]   ;;  %v7900_v0 = vsel %vm13195_vm14, %v7898_v4, %v7899_v26  ;;  %v11775_v48 = vadd.f32 %v11774_v50, %v11773_v56  ;;  %v11658_v26 = vpop.f32.mrf.mxu1 }
 0x445   : > { %v10855_v36 = vrot.slane %v7768_v10, 9  ;;  %7994 = vst [vmem:[#allocation4 + $0x318] sm:$0xf] %v7900_v0  ;;  %v7904_v12 = vsel %vm13195_vm14, %v10854_v44, %v7903_v47  ;;  %v7905_v27 = vrot.slane %v7903_v47, 4  ;;  %v7770_v9 = vld [vmem:[#allocation3 + $0xa4] sm:$0x1]  ;;  %v15348_v29 = vadd.f32 %v15306_v8, %v9681_v20  ;;  %10242 = vmatmul.mubr.bf16.gmra.mxu0 %v12777_v17  ;;  %10080 = vmatprep.mubr.bf16.mxu1 %v12782_v39  ;;  %v11777_v44 = vpop.f32.mrf.mxu0 }
 0x446   : > { %v7910_v53 = vrot.slane %v7769_v6, 5  ;;  %7995 = vst [vmem:[#allocation4 + $0x340] sm:$0xf] %v7904_v12  ;;  %v7913_v43 = vrot.slane %v7770_v9, 5  ;;  %v7771_v37 = vld [vmem:[#allocation3 + $0xa8] sm:$0xe]  ;;  %10249 = vmatprep.mubr.bf16.mxu0 %v12790_v22  ;;  %v15358_v42 = vadd.f32 %v15316_v38, %v9684_v13  ;;  %v9689_v38 = vadd.f32 %v15338_v30, %v11657_v11  ;;  %v11659_v51 = vpop.f32.mrf.mxu1 }
 0x447   : > { %v7772_v32 = vld [vmem:[#allocation3 + $0xac] sm:$0xf]  ;;  %v7907_v25 = vsel %vm13195_vm14, %v7905_v27, %v7906_v46  ;;  %v7773_v58 = vld [vmem:[#allocation3 + $0xb0] sm:$0x1]  ;;  %v10856_v8 = vrot.slane %v7771_v37, 9  ;;  %v11660_v17 = vadd.f32 %v11659_v51, %v11658_v26  ;;  %v11778_v0 = vadd.f32 %v11777_v44, %v11776_v55  ;;  %v11779_v5 = vpop.f32.mrf.mxu0 }
 0x448   : > { %v7911_v63 = vsel %vm13195_vm14, %v10855_v36, %v7910_v53  ;;  %v7912_v35 = vrot.slane %v7910_v53, 4  ;;  %7996 = vst [vmem:[#allocation4 + $0x368] sm:$0xf] %v7907_v25  ;;  %v7917_v2 = vrot.slane %v7772_v32, 5  ;;  %v12788_v61 = vld [vmem:[#allocation4 + $0x4c8] ss:$40 sps:$4 sm:$0xff]   ;;  %v11661_v40 = vpop.f32.mrf.mxu1  ;;  %v15370_v27 = vadd.f32 %v15331_v18, %v9689_v38 }
 0x449   : > { %7997 = vst [vmem:[#allocation4 + $0x390] sm:$0xf] %v7911_v63  ;;  %v7920_v28 = vrot.slane %v7773_v58, 5  ;;  %v7774_v16 = vld [vmem:[#allocation3 + $0xb4] sm:$0xe]  ;;  %v9692_v9 = vadd.f32 %v15338_v30, %v11660_v17  ;;  %v11780_v13 = vpop.f32.mrf.mxu0 }
 0x44a   : > { %v7914_v41 = vsel %vm13195_vm14, %v7912_v35, %v7913_v43  ;;  %v7918_v59 = vsel %vm13195_vm14, %v10856_v8, %v7917_v2  ;;  %v7919_v15 = vrot.slane %v7917_v2, 4  ;;  %v7775_v60 = vld [vmem:[#allocation3 + $0xb8] sm:$0xf]  ;;  %v7776_v22 = vld [vmem:[#allocation3 + $0xbc] sm:$0x1]  ;;  %v10857_v49 = vrot.slane %v7774_v16, 9  ;;  %v11662_v32 = vpop.f32.mrf.mxu1 }
 0x44b   : > { %7998 = vst [vmem:[#allocation4 + $0x3b8] sm:$0xf] %v7914_v41  ;;  %7999 = vst [vmem:[#allocation4 + $0x3e0] sm:$0xf] %v7918_v59  ;;  %v7924_v4 = vrot.slane %v7775_v60, 5  ;;  %v7927_v20 = vrot.slane %v7776_v22, 5  ;;  %v11663_v57 = vadd.f32 %v11662_v32, %v11661_v40  ;;  %v11781_v56 = vadd.f32 %v11780_v13, %v11779_v5  ;;  %v11782_v35 = vpop.f32.mrf.mxu0 }
 0x44c   : > { %v7777_v7 = vld [vmem:[#allocation3 + $0xc0] sm:$0xe]  ;;  %v12780_v24 = vld [vmem:[#allocation4 + $0x470] ss:$40 sps:$4 sm:$0xff]   ;;  %v7921_v54 = vsel %vm13195_vm14, %v7919_v15, %v7920_v28  ;;  %v7778_v6 = vld [vmem:[#allocation3 + $0xc4] sm:$0xf]  ;;  %v15378_v18 = vadd.f32 %v15345_v34, %v9692_v9  ;;  %v11664_v63 = vpop.f32.mrf.mxu1 }
 0x44d   : > { %8000 = vst [vmem:[#allocation4 + $0x408] sm:$0xf] %v7921_v54  ;;  %v7925_v47 = vsel %vm13195_vm14, %v10857_v49, %v7924_v4  ;;  %v7926_v10 = vrot.slane %v7924_v4, 4  ;;  %v7779_v3 = vld [vmem:[#allocation3 + $0xc8] sm:$0x1]  ;;  %v10858_v46 = vrot.slane %v7777_v7, 9  ;;  %10081 = vmatmul.mubr.bf16.gmra.mxu1 %v12780_v24  ;;  %10250 = vmatmul.mubr.bf16.gmra.mxu0 %v12788_v61  ;;  %v9697_v58 = vadd.f32 %v15338_v30, %v11663_v57  ;;  %v11783_v45 = vpop.f32.mrf.mxu0 }
 0x44e   : > { %v12787_v39 = vld [vmem:[#allocation4 + $0x4c4] ss:$40 sps:$4 sm:$0xff]   ;;  %8001 = vst [vmem:[#allocation4 + $0x430] sm:$0xf] %v7925_v47  ;;  %v7931_v36 = vrot.slane %v7778_v6, 5  ;;  %v7934_v37 = vrot.slane %v7779_v3, 5  ;;  %v11665_v2 = vpop.f32.mrf.mxu1  ;;  %v11784_v41 = vadd.f32 %v11783_v45, %v11782_v35 }
 0x44f   : > { %v7928_v12 = vsel %vm13195_vm14, %v7926_v10, %v7927_v20  ;;  %10088 = vmatprep.mubr.bf16.mxu1 %v12787_v39  ;;  %v12785_v8 = vld [vmem:[#allocation4 + $0x4c0] ss:$40 sps:$4 sm:$0xff]   ;;  %v11666_v50 = vadd.f32 %v11665_v2, %v11664_v63  ;;  %v12793_v61 = vld [vmem:[#allocation4 + $0x24] ss:$40 sps:$4 sm:$0xff]   ;;  %v15381_v28 = vadd.f32 %v11775_v48, %v9697_v58  ;;  %v11785_v23 = vpop.f32.mrf.mxu0  ;;  %v12796_v38 = vld [vmem:[#allocation4 + $0x74] ss:$40 sps:$4 sm:$0xff]  }
 0x450   : > { %8002 = vst [vmem:[#allocation4 + $0x458] sm:$0xf] %v7928_v12  ;;  %v7932_v53 = vsel %vm13195_vm14, %v10858_v46, %v7931_v36  ;;  %v7933_v43 = vrot.slane %v7931_v36, 4  ;;  %v11667_v11 = vpop.f32.mrf.mxu1  ;;  %v12791_v4 = vld [vmem:[#allocation4 + $0x20] ss:$40 sps:$4 sm:$0xff]  }
 0x451   : > { %8003 = vst [vmem:[#allocation4 + $0x480] sm:$0xf] %v7932_v53  ;;  %v9700_v59 = vadd.f32 %v15338_v30, %v11666_v50  ;;  %v11786_v15 = vpop.f32.mrf.mxu0  ;;  %v12794_v40 = vld [vmem:[#allocation4 + $0x70] ss:$40 sps:$4 sm:$0xff]   ;;  %v12799_v53 = vld [vmem:[#allocation4 + $0xc4] ss:$40 sps:$4 sm:$0xff]  }
 0x452   : > { %v7935_v25 = vsel %vm13195_vm14, %v7933_v43, %v7934_v37  ;;  %v11668_v34 = vpop.f32.mrf.mxu1  ;;  %v11787_v60 = vadd.f32 %v11786_v15, %v11785_v23  ;;  %v12797_v50 = vld [vmem:[#allocation4 + $0xc0] ss:$40 sps:$4 sm:$0xff]   ;;  %v12802_v23 = vld [vmem:[#allocation4 + $0x114] ss:$40 sps:$4 sm:$0xff]  }
 0x453   : > { %8004 = vst [vmem:[#allocation4 + $0x4a8] sm:$0xf] %v7935_v25  ;;  %v11669_v16 = vadd.f32 %v11668_v34, %v11667_v11  ;;  %v15384_v26 = vadd.f32 %v11778_v0, %v9700_v59  ;;  %v11788_v22 = vpop.f32.mrf.mxu0 }
 0x454   : > { %v11670_v55 = vpop.f32.mrf.mxu1 }
 0x455   : > { %10089 = vmatmul.mubr.bf16.gmra.mxu1 %v12785_v8  ;;  %v9705_v49 = vadd.f32 %v15338_v30, %v11669_v16  ;;  %v11789_v48 = vpop.f32.mrf.mxu0 }
 0x456   : > { %10290 = vmatprep.mubr.bf16.mxu1 %v12793_v61  ;;  %v11671_v7 = vpop.f32.mrf.mxu1  ;;  %v11790_v54 = vadd.f32 %v11789_v48, %v11788_v22 }
 0x457   : > { %v11672_v24 = vadd.f32 %v11671_v7, %v11670_v55  ;;  %v15387_v20 = vadd.f32 %v11781_v56, %v9705_v49  ;;  %v11791_v44 = vpop.f32.mrf.mxu0 }
 0x458   : > { %v11673_v51 = vpop.f32.mrf.mxu1 }
 0x459   : > { %v9708_v47 = vadd.f32 %v15338_v30, %v11672_v24  ;;  %v11792_v6 = vpop.f32.mrf.mxu0 }
 0x45a   : > { %v11674_v10 = vpop.f32.mrf.mxu1  ;;  %v11793_v17 = vadd.f32 %v11792_v6, %v11791_v44 }
 0x45b   : > { %v11675_v3 = vadd.f32 %v11674_v10, %v11673_v51  ;;  %v15390_v39 = vadd.f32 %v11784_v41, %v9708_v47  ;;  %v11794_v46 = vpop.f32.mrf.mxu0  ;;  %v12805_v10 = vld [vmem:[#allocation4 + $0x164] ss:$40 sps:$4 sm:$0xff]  }
 0x45c   : > { %v11676_v0 = vpop.f32.mrf.mxu1 }
 0x45d   : > { %10291 = vmatmul.mubr.bf16.vlgmr.msra.gmra.mxu1 %v12791_v4  ;;  %v9713_v36 = vadd.f32 %v15338_v30, %v11675_v3  ;;  %v11795_v12 = vpop.f32.mrf.mxu0 }
 0x45e   : > { %10298 = vmatprep.mubr.bf16.mxu1 %v12796_v38  ;;  %v11677_v5 = vpop.f32.mrf.mxu1  ;;  %v11796_v43 = vadd.f32 %v11795_v12, %v11794_v46 }
 0x45f   : > { %v11678_v9 = vadd.f32 %v11677_v5, %v11676_v0  ;;  %v15393_v37 = vadd.f32 %v11787_v60, %v9713_v36  ;;  %v11797_v13 = vpop.f32.mrf.mxu0 }
 0x460   : > { %v11679_v32 = vpop.f32.mrf.mxu1 }
 0x461   : > { %v9716_v57 = vadd.f32 %v15338_v30, %v11678_v9  ;;  %v11798_v25 = vpop.f32.mrf.mxu0 }
 0x462   : > { %v11680_v56 = vpop.f32.mrf.mxu1  ;;  %v11799_v35 = vadd.f32 %v11798_v25, %v11797_v13  ;;  %v12803_v13 = vld [vmem:[#allocation4 + $0x160] ss:$40 sps:$4 sm:$0xff]  }
 0x463   : > { %v11681_v63 = vadd.f32 %v11680_v56, %v11679_v32  ;;  %v15396_v58 = vadd.f32 %v11790_v54, %v9716_v57  ;;  %v11800_v2 = vpop.f32.mrf.mxu0  ;;  %v12800_v54 = vld [vmem:[#allocation4 + $0x110] ss:$40 sps:$4 sm:$0xff]  }
 0x464   : > { %v11682_v8 = vpop.f32.mrf.mxu1 }
 0x465   : > { %10299 = vmatmul.mubr.bf16.gmra.mxu1 %v12794_v40  ;;  %v9721_v45 = vadd.f32 %v15338_v30, %v11681_v63  ;;  %v11801_v41 = vpop.f32.mrf.mxu0  ;;  %v12808_v63 = vld [vmem:[#allocation4 + $0x1b4] ss:$40 sps:$4 sm:$0xff]  }
 0x466   : > { %10306 = vmatprep.mubr.bf16.mxu1 %v12799_v53  ;;  %v11683_v61 = vpop.f32.mrf.mxu1  ;;  %v11802_v59 = vadd.f32 %v11801_v41, %v11800_v2 }
 0x467   : > { %v11684_v11 = vadd.f32 %v11683_v61, %v11682_v8  ;;  %v15399_v34 = vadd.f32 %v11793_v17, %v9721_v45  ;;  %v11803_v16 = vpop.f32.mrf.mxu0 }
 0x468   : > { %v11685_v15 = vpop.f32.mrf.mxu1 }
 0x469   : > { %v9724_v60 = vadd.f32 %v15338_v30, %v11684_v11  ;;  %v11804_v22 = vpop.f32.mrf.mxu0 }
 0x46a   : > { %v11686_v55 = vpop.f32.mrf.mxu1  ;;  %v11805_v4 = vadd.f32 %v11804_v22, %v11803_v16 }
 0x46b   : > { %v11687_v49 = vadd.f32 %v11686_v55, %v11685_v15  ;;  %v15402_v7 = vadd.f32 %v11796_v43, %v9724_v60  ;;  %v11806_v24 = vpop.f32.mrf.mxu0  ;;  %v12806_v55 = vld [vmem:[#allocation4 + $0x1b0] ss:$40 sps:$4 sm:$0xff]  }
 0x46c   : > { %v11688_v48 = vpop.f32.mrf.mxu1 }
 0x46d   : > { %10307 = vmatmul.mubr.bf16.gmra.mxu1 %v12797_v50  ;;  %v9729_v38 = vadd.f32 %v15338_v30, %v11687_v49  ;;  %v11807_v44 = vpop.f32.mrf.mxu0 }
 0x46e   : > { %10314 = vmatprep.mubr.bf16.mxu1 %v12802_v23  ;;  %v11689_v51 = vpop.f32.mrf.mxu1  ;;  %v11808_v6 = vadd.f32 %v11807_v44, %v11806_v24 }
 0x46f   : > { %v11690_v47 = vadd.f32 %v11689_v51, %v11688_v48  ;;  %v15405_v3 = vadd.f32 %v11799_v35, %v9729_v38  ;;  %v11809_v0 = vpop.f32.mrf.mxu0  ;;  %v12811_v48 = vld [vmem:[#allocation4 + $0x204] ss:$40 sps:$4 sm:$0xff]  }
 0x470   : > { %v11691_v17 = vpop.f32.mrf.mxu1 }
 0x471   : > { %v9732_v46 = vadd.f32 %v15338_v30, %v11690_v47  ;;  %v11810_v40 = vpop.f32.mrf.mxu0 }
 0x472   : > { %v11692_v36 = vpop.f32.mrf.mxu1  ;;  %v11811_v12 = vadd.f32 %v11810_v40, %v11809_v0 }
 0x473   : > { %v11693_v5 = vadd.f32 %v11692_v36, %v11691_v17  ;;  %v15408_v9 = vadd.f32 %v11802_v59, %v9732_v46  ;;  %v11812_v43 = vpop.f32.mrf.mxu0 }
 0x474   : > { %v11694_v53 = vpop.f32.mrf.mxu1 }
 0x475   : > { %10315 = vmatmul.mubr.bf16.gmra.mxu1 %v12800_v54  ;;  %v9737_v32 = vadd.f32 %v15338_v30, %v11693_v5  ;;  %v11813_v56 = vpop.f32.mrf.mxu0  ;;  %v12809_v5 = vld [vmem:[#allocation4 + $0x200] ss:$40 sps:$4 sm:$0xff]  }
 0x476   : > { %10322 = vmatprep.mubr.bf16.mxu1 %v12805_v10  ;;  %v11695_v57 = vpop.f32.mrf.mxu1  ;;  %v11814_v35 = vadd.f32 %v11813_v56, %v11812_v43 }
 0x477   : > { %v11696_v25 = vadd.f32 %v11695_v57, %v11694_v53  ;;  %v15411_v8 = vadd.f32 %v11805_v4, %v9737_v32  ;;  %v11815_v45 = vpop.f32.mrf.mxu0  ;;  %v12814_v32 = vld [vmem:[#allocation4 + $0x254] ss:$40 sps:$4 sm:$0xff]  }
 0x478   : > { %v11697_v2 = vpop.f32.mrf.mxu1 }
 0x479   : > { %v9740_v50 = vadd.f32 %v15338_v30, %v11696_v25  ;;  %v11816_v41 = vpop.f32.mrf.mxu0 }
 0x47a   : > { %v11698_v61 = vpop.f32.mrf.mxu1  ;;  %v11817_v23 = vadd.f32 %v11816_v41, %v11815_v45 }
 0x47b   : > { %v11699_v11 = vadd.f32 %v11698_v61, %v11697_v2  ;;  %v15414_v59 = vadd.f32 %v11808_v6, %v9740_v50  ;;  %v11818_v16 = vpop.f32.mrf.mxu0 }
 0x47c   : > { %v11700_v15 = vpop.f32.mrf.mxu1 }
 0x47d   : > { %10323 = vmatmul.mubr.bf16.gmra.mxu1 %v12803_v13  ;;  %v9745_v60 = vadd.f32 %v15338_v30, %v11699_v11  ;;  %v11819_v49 = vpop.f32.mrf.mxu0 }
 0x47e   : > { %10330 = vmatprep.mubr.bf16.mxu1 %v12808_v63  ;;  %v11701_v22 = vpop.f32.mrf.mxu1  ;;  %v11820_v24 = vadd.f32 %v11819_v49, %v11818_v16  ;;  %v12812_v16 = vld [vmem:[#allocation4 + $0x250] ss:$40 sps:$4 sm:$0xff]  }
 0x47f   : > { %v11702_v4 = vadd.f32 %v11701_v22, %v11700_v15  ;;  %v15417_v38 = vadd.f32 %v11811_v12, %v9745_v60  ;;  %v11821_v51 = vpop.f32.mrf.mxu0  ;;  %v12817_v22 = vld [vmem:[#allocation4 + $0x2a4] ss:$40 sps:$4 sm:$0xff]  }
 0x480   : > { %v11703_v54 = vpop.f32.mrf.mxu1 }
 0x481   : > { %v9748_v44 = vadd.f32 %v15338_v30, %v11702_v4  ;;  %v11822_v10 = vpop.f32.mrf.mxu0 }
 0x482   : > { %v11704_v47 = vpop.f32.mrf.mxu1  ;;  %v11823_v17 = vadd.f32 %v11822_v10, %v11821_v51 }
 0x483   : > { %v11705_v6 = vadd.f32 %v11704_v47, %v11703_v54  ;;  %v15420_v0 = vadd.f32 %v11814_v35, %v9748_v44  ;;  %v11824_v36 = vpop.f32.mrf.mxu0 }
 0x484   : > { %v11706_v46 = vpop.f32.mrf.mxu1 }
 0x485   : > { %10331 = vmatmul.mubr.bf16.gmra.mxu1 %v12806_v55  ;;  %v9753_v40 = vadd.f32 %v15338_v30, %v11705_v6  ;;  %v11825_v12 = vpop.f32.mrf.mxu0  ;;  %v12815_v6 = vld [vmem:[#allocation4 + $0x2a0] ss:$40 sps:$4 sm:$0xff]  }
 0x486   : > { %10338 = vmatprep.mubr.bf16.mxu1 %v12811_v48  ;;  %v11707_v53 = vpop.f32.mrf.mxu1  ;;  %v11826_v13 = vadd.f32 %v11825_v12, %v11824_v36 }
 0x487   : > { %v11708_v43 = vadd.f32 %v11707_v53, %v11706_v46  ;;  %v15423_v57 = vadd.f32 %v11817_v23, %v9753_v40  ;;  %v11827_v25 = vpop.f32.mrf.mxu0 }
 0x488   : > { %v11709_v56 = vpop.f32.mrf.mxu1 }
 0x489   : > { %v9756_v63 = vadd.f32 %v15338_v30, %v11708_v43  ;;  %v11828_v2 = vpop.f32.mrf.mxu0 }
 0x48a   : > { %v11710_v35 = vpop.f32.mrf.mxu1  ;;  %v11829_v50 = vadd.f32 %v11828_v2, %v11827_v25 }
 0x48b   : > { %v11711_v45 = vadd.f32 %v11710_v35, %v11709_v56  ;;  %v15426_v61 = vadd.f32 %v11820_v24, %v9756_v63  ;;  %v11830_v11 = vpop.f32.mrf.mxu0  ;;  %v12818_v35 = vld [vmem:[#allocation4 + $0x2f0] ss:$40 sps:$4 sm:$0xff]  }
 0x48c   : > { %v11712_v41 = vpop.f32.mrf.mxu1 }
 0x48d   : > { %10339 = vmatmul.mubr.bf16.gmra.mxu1 %v12809_v5  ;;  %v9761_v15 = vadd.f32 %v15338_v30, %v11711_v45  ;;  %v11831_v23 = vpop.f32.mrf.mxu0  ;;  %v12820_v5 = vld [vmem:[#allocation4 + $0x2f4] ss:$40 sps:$4 sm:$0xff]  }
 0x48e   : > { %10346 = vmatprep.mubr.bf16.mxu1 %v12814_v32  ;;  %v11713_v60 = vpop.f32.mrf.mxu1  ;;  %v11832_v49 = vadd.f32 %v11831_v23, %v11830_v11 }
 0x48f   : > { %v11714_v55 = vadd.f32 %v11713_v60, %v11712_v41  ;;  %v15429_v4 = vadd.f32 %v11823_v17, %v9761_v15  ;;  %v15435_v36 = vpop.f32.mrf.mxu0  ;;  %v12823_v41 = vld [vmem:[#allocation4 + $0x344] ss:$40 sps:$4 sm:$0xff]  }
 0x490   : > { %v11715_v48 = vpop.f32.mrf.mxu1 }
 0x491   : > { %v9764_v54 = vadd.f32 %v15338_v30, %v11714_v55  ;;  %v15440_v43 = vpop.f32.mrf.mxu0 }
 0x492   : > { %v11716_v51 = vpop.f32.mrf.mxu1 }
 0x493   : > { %v11717_v24 = vadd.f32 %v11716_v51, %v11715_v48  ;;  %v15432_v44 = vadd.f32 %v11826_v13, %v9764_v54  ;;  %v15447_v2 = vpop.f32.mrf.mxu0  ;;  %v12826_v54 = vld [vmem:[#allocation4 + $0x394] ss:$40 sps:$4 sm:$0xff]  }
 0x494   : > { %v11718_v47 = vpop.f32.mrf.mxu1 }
 0x495   : > { %10347 = vmatmul.mubr.bf16.gmra.mxu1 %v12812_v16  ;;  %v9769_v10 = vadd.f32 %v15338_v30, %v11717_v24  ;;  %v15452_v15 = vpop.f32.mrf.mxu0 }
 0x496   : > { %10354 = vmatprep.mubr.bf16.mxu1 %v12817_v22  ;;  %v11719_v46 = vpop.f32.mrf.mxu1  ;;  %v12821_v22 = vld [vmem:[#allocation4 + $0x340] ss:$40 sps:$4 sm:$0xff]  }
 0x497   : > { %v11720_v40 = vadd.f32 %v11719_v46, %v11718_v47  ;;  %v15437_v17 = vadd.f32 %v11829_v50, %v9769_v10  ;;  %v15457_v55 = vpop.f32.mrf.mxu0 }
 0x498   : > { %v11849_v53 = vpop.f32.mrf.mxu1 }
 0x499   : > { %v9772_v12 = vadd.f32 %v15338_v30, %v11720_v40  ;;  %v15462_v24 = vpop.f32.mrf.mxu0  ;;  %v12824_v40 = vld [vmem:[#allocation4 + $0x390] ss:$40 sps:$4 sm:$0xff]  }
 0x49a   : > { %v11850_v32 = vpop.f32.mrf.mxu1 }
 0x49b   : > { %v11851_v13 = vadd.f32 %v11850_v32, %v11849_v53  ;;  %v15442_v56 = vadd.f32 %v11832_v49, %v9772_v12  ;;  %v15467_v46 = vpop.f32.mrf.mxu0  ;;  %v12829_v12 = vld [vmem:[#allocation4 + $0x3e4] ss:$40 sps:$4 sm:$0xff]  }
 0x49c   : > { %v11852_v25 = vpop.f32.mrf.mxu1 }
 0x49d   : > { %10355 = vmatmul.mubr.bf16.gmra.mxu1 %v12815_v6  ;;  %v15445_v63 = vadd.f32 %v11851_v13, %v15187_v14  ;;  %v15472_v13 = vpop.f32.mrf.mxu0 }
 0x49e   : > { %10362 = vmatprep.mubr.bf16.mxu1 %v12820_v5  ;;  %v11853_v45 = vpop.f32.mrf.mxu1 }
 0x49f   : > { %v11854_v50 = vadd.f32 %v11853_v45, %v11852_v25 }
 0x4a0   : > { %v11855_v11 = vpop.f32.mrf.mxu1 }
 0x4a1   : > { %v15450_v30 = vadd.f32 %v11854_v50, %v15195_v1  ;;  %v15477_v50 = vpop.f32.mrf.mxu0 }
 0x4a2   : > { %v11856_v16 = vpop.f32.mrf.mxu1 }
 0x4a3   : > { %v11857_v60 = vadd.f32 %v11856_v16, %v11855_v11 }
 0x4a4   : > { %v11858_v23 = vpop.f32.mrf.mxu1 }
 0x4a5   : > { %10363 = vmatmul.mubr.bf16.gmra.mxu1 %v12818_v35  ;;  %v15455_v14 = vadd.f32 %v11857_v60, %v15268_v62  ;;  %v12832_v60 = vld [vmem:[#allocation4 + $0x434] ss:$40 sps:$4 sm:$0xff]  }
 0x4a6   : > { %10370 = vmatprep.mubr.bf16.mxu1 %v12823_v41  ;;  %v11859_v49 = vpop.f32.mrf.mxu1  ;;  %v12827_v41 = vld [vmem:[#allocation4 + $0x3e0] ss:$40 sps:$4 sm:$0xff]  }
 0x4a7   : > { %v11860_v48 = vadd.f32 %v11859_v49, %v11858_v23 }
 0x4a8   : > { %v11861_v51 = vpop.f32.mrf.mxu1 }
 0x4a9   : > { %v15460_v1 = vadd.f32 %v11860_v48, %v15284_v19 }
 0x4aa   : > { %v11862_v47 = vpop.f32.mrf.mxu1 }
 0x4ab   : > { %v11863_v10 = vadd.f32 %v11862_v47, %v11861_v51  ;;  %v12830_v47 = vld [vmem:[#allocation4 + $0x430] ss:$40 sps:$4 sm:$0xff]  }
 0x4ac   : > { %v11864_v6 = vpop.f32.mrf.mxu1 }
 0x4ad   : > { %10371 = vmatmul.mubr.bf16.gmra.mxu1 %v12821_v22  ;;  %v15465_v62 = vadd.f32 %v11863_v10, %v15292_v21  ;;  %v15482_v22 = vpop.f32.mrf.mxu0 }
 0x4ae   : > { %10378 = vmatprep.mubr.bf16.mxu1 %v12826_v54  ;;  %v11865_v5 = vpop.f32.mrf.mxu1 }
 0x4af   : > { %v11866_v53 = vadd.f32 %v11865_v5, %v11864_v6  ;;  %v15487_v51 = vpop.f32.mrf.mxu0 }
 0x4b0   : > { %v11867_v32 = vpop.f32.mrf.mxu1 }
 0x4b1   : > { %v15470_v19 = vadd.f32 %v11866_v53, %v15299_v52  ;;  %v15492_v53 = vpop.f32.mrf.mxu0 }
 0x4b2   : > { %v11868_v25 = vpop.f32.mrf.mxu1 }
 0x4b3   : > { %v11869_v35 = vadd.f32 %v11868_v25, %v11867_v32 }
 0x4b4   : > { %v11870_v45 = vpop.f32.mrf.mxu1 }
 0x4b5   : > { %10379 = vmatmul.mubr.bf16.gmra.mxu1 %v12824_v40  ;;  %v15475_v21 = vadd.f32 %v11869_v35, %v15313_v31  ;;  %v12835_v40 = vld [vmem:[#allocation4 + $0x484] ss:$40 sps:$4 sm:$0xff]   ;;  %v12838_v35 = vld [vmem:[#allocation4 + $0x4d4] ss:$40 sps:$4 sm:$0xff]  }
 0x4b6   : > { %10386 = vmatprep.mubr.bf16.mxu1 %v12829_v12  ;;  %v11871_v11 = vpop.f32.mrf.mxu1 }
 0x4b7   : > { %v11872_v16 = vadd.f32 %v11871_v11, %v11870_v45  ;;  %v15497_v45 = vpop.f32.mrf.mxu0 }
 0x4b8   : > { %v11873_v23 = vpop.f32.mrf.mxu1 }
 0x4b9   : > { %v15480_v52 = vadd.f32 %v11872_v16, %v15323_v33 }
 0x4ba   : > { %v11874_v49 = vpop.f32.mrf.mxu1 }
 0x4bb   : > { %v11875_v48 = vadd.f32 %v11874_v49, %v11873_v23  ;;  %v15502_v23 = vpop.f32.mrf.mxu0 }
 0x4bc   : > { %v11876_v54 = vpop.f32.mrf.mxu1 }
 0x4bd   : > { %10387 = vmatmul.mubr.bf16.gmra.mxu1 %v12827_v41  ;;  %v15485_v31 = vadd.f32 %v11875_v48, %v15348_v29  ;;  %v12833_v41 = vld [vmem:[#allocation4 + $0x480] ss:$40 sps:$4 sm:$0xff]  }
 0x4be   : > { %10394 = vmatprep.mubr.bf16.mxu1 %v12832_v60  ;;  %v11877_v10 = vpop.f32.mrf.mxu1 }
 0x4bf   : > { %v11878_v6 = vadd.f32 %v11877_v10, %v11876_v54  ;;  %v15507_v10 = vpop.f32.mrf.mxu0 }
 0x4c0   : > { %v11879_v5 = vpop.f32.mrf.mxu1 }
 0x4c1   : > { %v15490_v33 = vadd.f32 %v11878_v6, %v15358_v42 }
 0x4c2   : > { %v11880_v12 = vpop.f32.mrf.mxu1 }
 0x4c3   : > { %v11881_v32 = vadd.f32 %v11880_v12, %v11879_v5 }
 0x4c4   : > { %v11882_v25 = vpop.f32.mrf.mxu1 }
 0x4c5   : > { %10395 = vmatmul.mubr.bf16.gmra.mxu1 %v12830_v47  ;;  %v15495_v29 = vadd.f32 %v11881_v32, %v15370_v27  ;;  %v12836_v47 = vld [vmem:[#allocation4 + $0x4d0] ss:$40 sps:$4 sm:$0xff]  }
 0x4c6   : > { %10402 = vmatprep.mubr.bf16.mxu1 %v12835_v40  ;;  %v11883_v11 = vpop.f32.mrf.mxu1 }
 0x4c7   : > { %v11884_v16 = vadd.f32 %v11883_v11, %v11882_v25 }
 0x4c8   : > { %v11885_v60 = vpop.f32.mrf.mxu1 }
 0x4c9   : > { %v15500_v42 = vadd.f32 %v11884_v16, %v15378_v18  ;;  %v15512_v18 = vpop.f32.mrf.mxu0 }
 0x4ca   : > { %v11886_v49 = vpop.f32.mrf.mxu1 }
 0x4cb   : > { %v11887_v48 = vadd.f32 %v11886_v49, %v11885_v60  ;;  %v15517_v11 = vpop.f32.mrf.mxu0 }
 0x4cc   : > { %v11888_v54 = vpop.f32.mrf.mxu1 }
 0x4cd   : > { %10403 = vmatmul.mubr.bf16.gmra.mxu1 %v12833_v41  ;;  %v15505_v27 = vadd.f32 %v11887_v48, %v15381_v28  ;;  %v15522_v48 = vpop.f32.mrf.mxu0 }
 0x4ce   : > { %10410 = vmatprep.mubr.bf16.mxu1 %v12838_v35  ;;  %v11889_v6 = vpop.f32.mrf.mxu1 }
 0x4cf   : > { %v11890_v40 = vadd.f32 %v11889_v6, %v11888_v54 }
 0x4d0   : > { %v11891_v5 = vpop.f32.mrf.mxu1 }
 0x4d1   : > { %v15510_v12 = vadd.f32 %v11890_v40, %v15384_v26  ;;  %v15527_v40 = vpop.f32.mrf.mxu0 }
 0x4d2   : > { %v11892_v32 = vpop.f32.mrf.mxu1 }
 0x4d3   : > { %v11893_v25 = vadd.f32 %v11892_v32, %v11891_v5 }
 0x4d4   : > { %v11894_v35 = vpop.f32.mrf.mxu1 }
 0x4d5   : > { %10411 = vmatmul.mubr.bf16.gmra.mxu1 %v12836_v47  ;;  %v15515_v41 = vadd.f32 %v11893_v25, %v15387_v20 }
 0x4d6   : > { %v11895_v28 = vpop.f32.mrf.mxu1 }
 0x4d7   : > { %v11896_v16 = vadd.f32 %v11895_v28, %v11894_v35  ;;  %v15532_v35 = vpop.f32.mrf.mxu0 }
 0x4d9   : > { %v11897_v60 = vpop.f32.mrf.mxu1  ;;  %v15520_v49 = vadd.f32 %v11896_v16, %v15390_v39 }
 0x4db   : > { %15874 = vst [vmem:[#allocation27_spill] sm:$0xff] %v15520_v49  ;;  %v11898_v26 = vpop.f32.mrf.mxu1 }
 0x4dc   : > { %v11899_v54 = vadd.f32 %v11898_v26, %v11897_v60  ;;  %v15537_v60 = vpop.f32.mrf.mxu0 }
 0x4dd   : > { %v11900_v47 = vpop.f32.mrf.mxu1 }
 0x4de   : > { %v15525_v6 = vadd.f32 %v11899_v54, %v15393_v37 }
 0x4df   : > { %v11901_v20 = vpop.f32.mrf.mxu1 }
 0x4e0   : > { %15875 = vst [vmem:[#allocation17_spill] sm:$0xff] %v15525_v6  ;;  %v11902_v5 = vadd.f32 %v11901_v20, %v11900_v47  ;;  %v15542_v47 = vpop.f32.mrf.mxu0 }
 0x4e1   : > { %v11903_v32 = vpop.f32.mrf.mxu1 }
 0x4e2   : > { %v15530_v25 = vadd.f32 %v11902_v5, %v15396_v58 }
 0x4e3   : > { %v11904_v39 = vpop.f32.mrf.mxu1 }
 0x4e4   : > { %15876 = vst [vmem:[#allocation28_spill] sm:$0xff] %v15530_v25  ;;  %v11905_v28 = vadd.f32 %v11904_v39, %v11903_v32  ;;  %v15547_v32 = vpop.f32.mrf.mxu0 }
 0x4e5   : > { %v11906_v16 = vpop.f32.mrf.mxu1 }
 0x4e6   : > { %v15535_v49 = vadd.f32 %v11905_v28, %v15399_v34 }
 0x4e7   : > { %v11907_v37 = vpop.f32.mrf.mxu1 }
 0x4e8   : > { %15877 = vst [vmem:[#allocation30_spill] sm:$0xff] %v15535_v49  ;;  %v11908_v26 = vadd.f32 %v11907_v37, %v11906_v16  ;;  %v15552_v16 = vpop.f32.mrf.mxu0 }
 0x4ea   : > { %v15540_v6 = vadd.f32 %v11908_v26, %v15402_v7 }
 0x4eb   : > { %v11909_v54 = vpop.f32.mrf.mxu1 }
 0x4ec   : > { %15878 = vst [vmem:[#allocation19_spill] sm:$0xff] %v15540_v6 }
 0x4ed   : > { %v11910_v58 = vpop.f32.mrf.mxu1 }
 0x4ee   : > { %v11911_v20 = vadd.f32 %v11910_v58, %v11909_v54  ;;  %v15557_v54 = vpop.f32.mrf.mxu0 }
 0x4ef   : > { %v11912_v5 = vpop.f32.mrf.mxu1 }
 0x4f0   : > { %v15545_v25 = vadd.f32 %v11911_v20, %v15405_v3 }
 0x4f1   : > { %v11913_v34 = vpop.f32.mrf.mxu1 }
 0x4f2   : > { %15879 = vst [vmem:[#allocation20_spill] sm:$0xff] %v15545_v25  ;;  %v11914_v39 = vadd.f32 %v11913_v34, %v11912_v5  ;;  %v15562_v5 = vpop.f32.mrf.mxu0 }
 0x4f3   : > { %v11915_v28 = vpop.f32.mrf.mxu1 }
 0x4f4   : > { %v15550_v49 = vadd.f32 %v11914_v39, %v15408_v9 }
 0x4f5   : > { %v11916_v7 = vpop.f32.mrf.mxu1 }
 0x4f6   : > { %15880 = vst [vmem:[#allocation18_spill] sm:$0xff] %v15550_v49  ;;  %v11917_v37 = vadd.f32 %v11916_v7, %v11915_v28  ;;  %v15567_v28 = vpop.f32.mrf.mxu0 }
 0x4f7   : > { %v11918_v26 = vpop.f32.mrf.mxu1 }
 0x4f8   : > { %v15555_v6 = vadd.f32 %v11917_v37, %v15411_v8 }
 0x4f9   : > { %v11919_v3 = vpop.f32.mrf.mxu1 }
 0x4fa   : > { %15881 = vst [vmem:[#allocation21_spill] sm:$0xff] %v15555_v6  ;;  %v11920_v58 = vadd.f32 %v11919_v3, %v11918_v26  ;;  %v15572_v26 = vpop.f32.mrf.mxu0 }
 0x4fb   : > { %v11921_v20 = vpop.f32.mrf.mxu1 }
 0x4fc   : > { %v15560_v25 = vadd.f32 %v11920_v58, %v15414_v59 }
 0x4fd   : > { %v11922_v9 = vpop.f32.mrf.mxu1 }
 0x4fe   : > { %15882 = vst [vmem:[#allocation31_spill] sm:$0xff] %v15560_v25  ;;  %v11923_v34 = vadd.f32 %v11922_v9, %v11921_v20  ;;  %v15577_v20 = vpop.f32.mrf.mxu0 }
 0x4ff   : > { %v11924_v39 = vpop.f32.mrf.mxu1 }
 0x500   : > { %v15565_v49 = vadd.f32 %v11923_v34, %v15417_v38 }
 0x501   : > { %v11925_v8 = vpop.f32.mrf.mxu1 }
 0x502   : > { %15883 = vst [vmem:[#allocation33_spill] sm:$0xff] %v15565_v49  ;;  %v11926_v7 = vadd.f32 %v11925_v8, %v11924_v39  ;;  %v15582_v39 = vpop.f32.mrf.mxu0 }
 0x503   : > { %v11927_v37 = vpop.f32.mrf.mxu1 }
 0x504   : > { %v15570_v6 = vadd.f32 %v11926_v7, %v15420_v0 }
 0x505   : > { %v11928_v59 = vpop.f32.mrf.mxu1 }
 0x506   : > { %15884 = vst [vmem:[#allocation34_spill] sm:$0xff] %v15570_v6  ;;  %v11929_v3 = vadd.f32 %v11928_v59, %v11927_v37  ;;  %v15587_v37 = vpop.f32.mrf.mxu0 }
 0x507   : > { %v11930_v58 = vpop.f32.mrf.mxu1 }
 0x508   : > { %v15575_v25 = vadd.f32 %v11929_v3, %v15423_v57 }
 0x509   : > { %v11931_v38 = vpop.f32.mrf.mxu1 }
 0x50a   : > { %v11932_v9 = vadd.f32 %v11931_v38, %v11930_v58  ;;  %v15592_v38 = vpop.f32.mrf.mxu0 }
 0x50c   : > { %v15580_v49 = vadd.f32 %v11932_v9, %v15426_v61 }
 0x50d   : > { %v11933_v34 = vpop.f32.mrf.mxu1 }
 0x50e   : > { %15885 = vst [vmem:[#allocation35_spill] sm:$0xff] %v15580_v49 }
 0x50f   : > { %v11934_v0 = vpop.f32.mrf.mxu1 }
 0x510   : > { %v11935_v8 = vadd.f32 %v11934_v0, %v11933_v34  ;;  %v15597_v0 = vpop.f32.mrf.mxu0 }
 0x511   : > { %v11936_v7 = vpop.f32.mrf.mxu1 }
 0x512   : > { %v15585_v6 = vadd.f32 %v11935_v8, %v15429_v4 }
 0x513   : > { %v11937_v57 = vpop.f32.mrf.mxu1 }
 0x514   : > { %15886 = vst [vmem:[#allocation15_spill] sm:$0xff] %v15585_v6  ;;  %v11938_v59 = vadd.f32 %v11937_v57, %v11936_v7  ;;  %v11963_v7 = vadd.f32 %v15440_v43, %v15435_v36  ;;  %v11966_v36 = vadd.f32 %v15452_v15, %v15447_v2 }
 0x515   : > { %v11939_v3 = vpop.f32.mrf.mxu1 }
 0x516   : > { %v15590_v58 = vadd.f32 %v11938_v59, %v15432_v44  ;;  %v15605_v44 = vpop.f32.mrf.mxu0 }
 0x517   : > { %v11940_v61 = vpop.f32.mrf.mxu1 }
 0x518   : > { %v11941_v9 = vadd.f32 %v11940_v61, %v11939_v3  ;;  %v10132_v3 = vadd.f32 %v11963_v7, %v15445_v63  ;;  %v10135_v63 = vadd.f32 %v11966_v36, %v15450_v30 }
 0x519   : > { %v11942_v49 = vpop.f32.mrf.mxu1 }
 0x51a   : > { %v15595_v34 = vadd.f32 %v11941_v9, %v15437_v17 }
 0x51b   : > { %v11943_v4 = vpop.f32.mrf.mxu1 }
 0x51c   : > { %v11944_v8 = vadd.f32 %v11943_v4, %v11942_v49  ;;  %v11969_v4 = vadd.f32 %v15462_v24, %v15457_v55 }
 0x51d   : > { %v12073_v6 = vpop.f32.mrf.mxu1 }
 0x51e   : > { %v15602_v57 = vadd.f32 %v11944_v8, %v15442_v56  ;;  %v15615_v56 = vpop.f32.mrf.mxu0  ;;  %v10140_v2 = vadd.f32 %v11969_v4, %v15455_v14  ;;  %v11978_v4 = vadd.f32 %v15492_v53, %v15487_v51 }
 0x51f   : > { %v12074_v59 = vpop.f32.mrf.mxu1 }
 0x520   : > { %v12075_v61 = vadd.f32 %v12074_v59, %v12073_v6  ;;  %v15621_v7 = vpop.f32.mrf.mxu0 }
 0x521   : > { %v12076_v17 = vpop.f32.mrf.mxu1 }
 0x522   : > { %v10293_v43 = vadd.f32 %v12075_v61, %v10132_v3  ;;  %v11972_v61 = vadd.f32 %v15472_v13, %v15467_v46  ;;  %v15627_v30 = vpop.f32.mrf.mxu0 }
 0x523   : > { %v12077_v49 = vpop.f32.mrf.mxu1 }
 0x524   : > { %10419 = vst [vmem:[%s15611_s23] sm:$0xff] %v10293_v43  ;;  %v12078_v6 = vadd.f32 %v12077_v49, %v12076_v17  ;;  %v10143_v55 = vadd.f32 %v11972_v61, %v15460_v1  ;;  %v11975_v49 = vadd.f32 %v15482_v22, %v15477_v50  ;;  %v15633_v14 = vpop.f32.mrf.mxu0  ;;  %v10151_v50 = vadd.f32 %v11978_v4, %v15470_v19 }
 0x525   : > { %v12079_v9 = vpop.f32.mrf.mxu1 }
 0x526   : > { %v10296_v8 = vadd.f32 %v12078_v6, %v10135_v63  ;;  %v10148_v46 = vadd.f32 %v11975_v49, %v15465_v62  ;;  %v15639_v1 = vpop.f32.mrf.mxu0  ;;  %v11987_v49 = vadd.f32 %v15522_v48, %v15517_v11 }
 0x527   : > { %v12080_v59 = vpop.f32.mrf.mxu1 }
 0x528   : > { %10420 = vst [vmem:[%s15611_s23 + $0x8] sm:$0xff] %v10296_v8  ;;  %v12081_v15 = vadd.f32 %v12080_v59, %v12079_v9  ;;  %v15645_v62 = vpop.f32.mrf.mxu0 }
 0x529   : > { %v12082_v3 = vpop.f32.mrf.mxu1 }
 0x52a   : > { %v10301_v43 = vadd.f32 %v12081_v15, %v10140_v2  ;;  %v11981_v15 = vadd.f32 %v15502_v23, %v15497_v45  ;;  %v15651_v19 = vpop.f32.mrf.mxu0 }
 0x52b   : > { %v12083_v17 = vpop.f32.mrf.mxu1 }
 0x52c   : > { %10421 = vst [vmem:[%s15611_s23 + $0x10] sm:$0xff] %v10301_v43  ;;  %v12084_v24 = vadd.f32 %v12083_v17, %v12082_v3  ;;  %v10156_v51 = vadd.f32 %v11981_v15, %v15475_v21  ;;  %v11984_v17 = vadd.f32 %v15512_v18, %v15507_v10  ;;  %v15657_v21 = vpop.f32.mrf.mxu0  ;;  %v10164_v10 = vadd.f32 %v11987_v49, %v15485_v31 }
 0x52d   : > { %v12085_v36 = vpop.f32.mrf.mxu1  ;;  %v11996_v15 = vadd.f32 %v15552_v16, %v15547_v32  ;;  %v12005_v49 = vadd.f32 %v15582_v39, %v15577_v20 }
 0x52e   : > { %v10304_v63 = vadd.f32 %v12084_v24, %v10143_v55  ;;  %v10159_v45 = vadd.f32 %v11984_v17, %v15480_v52  ;;  %v15663_v52 = vpop.f32.mrf.mxu0 }
 0x52f   : > { %v12086_v6 = vpop.f32.mrf.mxu1 }
 0x530   : > { %10422 = vst [vmem:[%s15611_s23 + $0x18] sm:$0xff] %v10304_v63  ;;  %v12087_v13 = vadd.f32 %v12086_v6, %v12085_v36  ;;  %v15669_v31 = vpop.f32.mrf.mxu0 }
 0x531   : > { %v12088_v9 = vpop.f32.mrf.mxu1 }
 0x532   : > { %v10309_v8 = vadd.f32 %v12087_v13, %v10148_v46  ;;  %v11990_v13 = vadd.f32 %v15532_v35, %v15527_v40 }
 0x533   : > { %v12089_v59 = vpop.f32.mrf.mxu1 }
 0x534   : > { %10423 = vst [vmem:[%s15611_s23 + $0x20] sm:$0xff] %v10309_v8  ;;  %v12090_v22 = vadd.f32 %v12089_v59, %v12088_v9  ;;  %v10167_v11 = vadd.f32 %v11990_v13, %v15490_v33  ;;  %v11993_v59 = vadd.f32 %v15542_v47, %v15537_v60  ;;  %v15675_v33 = vpop.f32.mrf.mxu0  ;;  %v10175_v60 = vadd.f32 %v11996_v15, %v15500_v42  ;;  %v15889_v15 = vld [vmem:[#allocation28_spill] sm:$0xff] }
 0x535   : > { %v12091_v2 = vpop.f32.mrf.mxu1 }
 0x536   : > { %v10312_v3 = vadd.f32 %v12090_v22, %v10151_v50  ;;  %v10172_v40 = vadd.f32 %v11993_v59, %v15495_v29  ;;  %v15681_v29 = vpop.f32.mrf.mxu0  ;;  %v15888_v59 = vld [vmem:[#allocation17_spill] sm:$0xff] }
 0x537   : > { %v12092_v61 = vpop.f32.mrf.mxu1 }
 0x538   : > { %10424 = vst [vmem:[%s15611_s23 + $0x28] sm:$0xff] %v10312_v3  ;;  %v12093_v53 = vadd.f32 %v12092_v61, %v12091_v2  ;;  %v15687_v42 = vpop.f32.mrf.mxu0 }
 0x539   : > { %v12094_v43 = vpop.f32.mrf.mxu1 }
 0x53a   : > { %v10317_v55 = vadd.f32 %v12093_v53, %v10156_v51  ;;  %v11999_v53 = vadd.f32 %v15562_v5, %v15557_v54 }
 0x53b   : > { %v12095_v24 = vpop.f32.mrf.mxu1 }
 0x53c   : > { %10425 = vst [vmem:[%s15611_s23 + $0x30] sm:$0xff] %v10317_v55  ;;  %v12096_v23 = vadd.f32 %v12095_v24, %v12094_v43  ;;  %v10180_v32 = vadd.f32 %v11999_v53, %v15505_v27  ;;  %v12002_v24 = vadd.f32 %v15572_v26, %v15567_v28  ;;  %v15693_v27 = vpop.f32.mrf.mxu0  ;;  %v10188_v28 = vadd.f32 %v12005_v49, %v15515_v41  ;;  %v15890_v53 = vld [vmem:[#allocation30_spill] sm:$0xff]  ;;  %v15892_v49 = vld [vmem:[#allocation20_spill] sm:$0xff] }
 0x53d   : > { %v12097_v36 = vpop.f32.mrf.mxu1 }
 0x53e   : > { %v10320_v63 = vadd.f32 %v12096_v23, %v10159_v45  ;;  %v10183_v54 = vadd.f32 %v12002_v24, %v15510_v12  ;;  %v15699_v12 = vpop.f32.mrf.mxu0  ;;  %v15891_v24 = vld [vmem:[#allocation19_spill] sm:$0xff] }
 0x53f   : > { %v12098_v6 = vpop.f32.mrf.mxu1 }
 0x540   : > { %10426 = vst [vmem:[%s15611_s23 + $0x38] sm:$0xff] %v10320_v63  ;;  %v12099_v18 = vadd.f32 %v12098_v6, %v12097_v36  ;;  %v12034_v41 = vpop.f32.mrf.mxu0 }
 0x541   : > { %v12100_v46 = vpop.f32.mrf.mxu1 }
 0x542   : > { %v10325_v9 = vadd.f32 %v12099_v18, %v10164_v10  ;;  %v12008_v18 = vadd.f32 %v15592_v38, %v15587_v37 }
 0x543   : > { %v12101_v4 = vpop.f32.mrf.mxu1 }
 0x544   : > { %10427 = vst [vmem:[%s15611_s23 + $0x40] sm:$0xff] %v10325_v9  ;;  %v12102_v48 = vadd.f32 %v12101_v4, %v12100_v46  ;;  %v15887_v9 = vld [vmem:[#allocation27_spill] sm:$0xff] }
 0x545   : > { %v12103_v8 = vpop.f32.mrf.mxu1  ;;  %v10191_v20 = vadd.f32 %v12008_v18, %v15887_v9  ;;  %v15893_v18 = vld [vmem:[#allocation18_spill] sm:$0xff] }
 0x546   : > { %v10328_v50 = vadd.f32 %v12102_v48, %v10167_v11  ;;  %v12011_v11 = vadd.f32 %v15605_v44, %v15597_v0 }
 0x547   : > { %v12104_v22 = vpop.f32.mrf.mxu1 }
 0x548   : > { %10428 = vst [vmem:[%s15611_s23 + $0x48] sm:$0xff] %v10328_v50  ;;  %v12105_v35 = vadd.f32 %v12104_v22, %v12103_v8  ;;  %v10196_v37 = vadd.f32 %v12011_v11, %v15888_v59  ;;  %v12014_v22 = vadd.f32 %v15621_v7, %v15615_v56 }
 0x549   : > { %v12106_v2 = vpop.f32.mrf.mxu1 }
 0x54a   : > { %v10333_v3 = vadd.f32 %v12105_v35, %v10172_v40  ;;  %v12036_v35 = vpop.f32.mrf.mxu0 }
 0x54b   : > { %v12107_v61 = vpop.f32.mrf.mxu1 }
 0x54c   : > { %10429 = vst [vmem:[%s15611_s23 + $0x50] sm:$0xff] %v10333_v3  ;;  %v12108_v47 = vadd.f32 %v12107_v61, %v12106_v2  ;;  %v10199_v3 = vadd.f32 %v12014_v22, %v15889_v15  ;;  %v12017_v61 = vadd.f32 %v15633_v14, %v15627_v30  ;;  %v12035_v22 = vadd.f32 %v12034_v41, %v15699_v12 }
 0x54d   : > { %v12109_v51 = vpop.f32.mrf.mxu1 }
 0x54e   : > { %v10336_v43 = vadd.f32 %v12108_v47, %v10175_v60  ;;  %v12037_v47 = vpop.f32.mrf.mxu0 }
 0x54f   : > { %v12110_v17 = vpop.f32.mrf.mxu1 }
 0x550   : > { %10430 = vst [vmem:[%s15611_s23 + $0x58] sm:$0xff] %v10336_v43  ;;  %v12111_v16 = vadd.f32 %v12110_v17, %v12109_v51  ;;  %v10204_v43 = vadd.f32 %v12017_v61, %v15890_v53  ;;  %v12020_v17 = vadd.f32 %v15645_v62, %v15639_v1  ;;  %v15897_v53 = vld [vmem:[#allocation34_spill] sm:$0xff] }
 0x551   : > { %v12112_v55 = vpop.f32.mrf.mxu1 }
 0x552   : > { %v10341_v45 = vadd.f32 %v12111_v16, %v10180_v32  ;;  %v12039_v16 = vpop.f32.mrf.mxu0 }
 0x553   : > { %v12113_v23 = vpop.f32.mrf.mxu1 }
 0x554   : > { %10431 = vst [vmem:[%s15611_s23 + $0x60] sm:$0xff] %v10341_v45  ;;  %v12114_v5 = vadd.f32 %v12113_v23, %v12112_v55  ;;  %v10207_v45 = vadd.f32 %v12020_v17, %v15891_v24  ;;  %v12023_v23 = vadd.f32 %v15657_v21, %v15651_v19 }
 0x555   : > { %v12115_v36 = vpop.f32.mrf.mxu1 }
 0x556   : > { %v10344_v63 = vadd.f32 %v12114_v5, %v10183_v54  ;;  %v12040_v5 = vpop.f32.mrf.mxu0 }
 0x557   : > { %v12116_v6 = vpop.f32.mrf.mxu1  ;;  %v12041_v12 = vadd.f32 %v12040_v5, %v12039_v16 }
 0x558   : > { %10432 = vst [vmem:[%s15611_s23 + $0x68] sm:$0xff] %v10344_v63  ;;  %v12117_v26 = vadd.f32 %v12116_v6, %v12115_v36  ;;  %v10212_v63 = vadd.f32 %v12023_v23, %v15892_v49  ;;  %v12026_v6 = vadd.f32 %v15669_v31, %v15663_v52  ;;  %v15898_v23 = vld [vmem:[#allocation35_spill] sm:$0xff] }
 0x559   : > { %v12118_v10 = vpop.f32.mrf.mxu1 }
 0x55a   : > { %v10349_v46 = vadd.f32 %v12117_v26, %v10188_v28  ;;  %v12042_v26 = vpop.f32.mrf.mxu0 }
 0x55b   : > { %v12119_v13 = vpop.f32.mrf.mxu1 }
 0x55c   : > { %10433 = vst [vmem:[%s15611_s23 + $0x70] sm:$0xff] %v10349_v46  ;;  %v12120_v39 = vadd.f32 %v12119_v13, %v12118_v10  ;;  %v10215_v46 = vadd.f32 %v12026_v6, %v15893_v18  ;;  %v12029_v13 = vadd.f32 %v15681_v29, %v15675_v33 }
 0x55d   : > { %v12121_v4 = vpop.f32.mrf.mxu1 }
 0x55e   : > { %v10352_v48 = vadd.f32 %v12120_v39, %v10191_v20  ;;  %v12043_v20 = vpop.f32.mrf.mxu0 }
 0x55f   : > { %v12122_v8 = vpop.f32.mrf.mxu1 }
 0x560   : > { %10434 = vst [vmem:[%s15611_s23 + $0x78] sm:$0xff] %v10352_v48  ;;  %v12123_v38 = vadd.f32 %v12122_v8, %v12121_v4  ;;  %v15894_v4 = vld [vmem:[#allocation21_spill] sm:$0xff]  ;;  %v12032_v48 = vadd.f32 %v15693_v27, %v15687_v42  ;;  %v12045_v59 = vpop.f32.mrf.mxu0  ;;  %v12038_v27 = vadd.f32 %v12037_v47, %v12036_v35  ;;  %v12044_v47 = vadd.f32 %v12043_v20, %v12042_v26 }
 0x561   : > { %v12124_v50 = vpop.f32.mrf.mxu1  ;;  %v10220_v11 = vadd.f32 %v12029_v13, %v15894_v4 }
 0x562   : > { %v10357_v40 = vadd.f32 %v12123_v38, %v10196_v37  ;;  %v15895_v38 = vld [vmem:[#allocation31_spill] sm:$0xff] }
 0x563   : > { %v12125_v2 = vpop.f32.mrf.mxu1 }
 0x564   : > { %10435 = vst [vmem:[%s15611_s23 + $0x80] sm:$0xff] %v10357_v40  ;;  %v12126_v0 = vadd.f32 %v12125_v2, %v12124_v50  ;;  %v10223_v50 = vadd.f32 %v12032_v48, %v15895_v38  ;;  %v12046_v2 = vpop.f32.mrf.mxu0 }
 0x565   : > { %v12127_v44 = vpop.f32.mrf.mxu1  ;;  %v12047_v5 = vadd.f32 %v12046_v2, %v12045_v59 }
 0x566   : > { %v10360_v60 = vadd.f32 %v12126_v0, %v10199_v3  ;;  %v15896_v3 = vld [vmem:[#allocation33_spill] sm:$0xff] }
 0x567   : > { %v12128_v51 = vpop.f32.mrf.mxu1  ;;  %v10228_v0 = vadd.f32 %v12035_v22, %v15896_v3 }
 0x568   : > { %10436 = vst [vmem:[%s15611_s23 + $0x88] sm:$0xff] %v10360_v60  ;;  %v12129_v56 = vadd.f32 %v12128_v51, %v12127_v44  ;;  %v12048_v60 = vpop.f32.mrf.mxu0 }
 0x569   : > { %v12130_v7 = vpop.f32.mrf.mxu1 }
 0x56a   : > { %v10365_v32 = vadd.f32 %v12129_v56, %v10204_v43  ;;  %v10231_v43 = vadd.f32 %v12038_v27, %v15897_v53  ;;  %v12049_v17 = vpop.f32.mrf.mxu0 }
 0x56b   : > { %v12131_v55 = vpop.f32.mrf.mxu1  ;;  %v12050_v26 = vadd.f32 %v12049_v17, %v12048_v60 }
 0x56c   : > { %10437 = vst [vmem:[%s15611_s23 + $0x90] sm:$0xff] %v10365_v32  ;;  %v12132_v30 = vadd.f32 %v12131_v55, %v12130_v7  ;;  %v10236_v55 = vadd.f32 %v12041_v12, %v15575_v25 }
 0x56d   : > { %v12133_v14 = vpop.f32.mrf.mxu1 }
 0x56e   : > { %v10368_v54 = vadd.f32 %v12132_v30, %v10207_v45  ;;  %v12051_v45 = vpop.f32.mrf.mxu0 }
 0x56f   : > { %v12134_v36 = vpop.f32.mrf.mxu1 }
 0x570   : > { %10438 = vst [vmem:[%s15611_s23 + $0x98] sm:$0xff] %v10368_v54  ;;  %v12135_v1 = vadd.f32 %v12134_v36, %v12133_v14  ;;  %v10239_v54 = vadd.f32 %v12044_v47, %v15898_v23  ;;  %v12052_v49 = vpop.f32.mrf.mxu0 }
 0x571   : > { %v12136_v62 = vpop.f32.mrf.mxu1 }
 0x572   : > { %v10373_v28 = vadd.f32 %v12135_v1, %v10212_v63 }
 0x573   : > { %v12137_v10 = vpop.f32.mrf.mxu1 }
 0x574   : > { %10439 = vst [vmem:[%s15611_s23 + $0xa0] sm:$0xff] %v10373_v28  ;;  %v12138_v19 = vadd.f32 %v12137_v10, %v12136_v62  ;;  %v15899_v62 = vld [vmem:[#allocation15_spill] sm:$0xff]  ;;  %v12054_v28 = vpop.f32.mrf.mxu0 }
 0x575   : > { %v12139_v21 = vpop.f32.mrf.mxu1  ;;  %v10244_v6 = vadd.f32 %v12047_v5, %v15899_v62 }
 0x576   : > { %v10376_v9 = vadd.f32 %v12138_v19, %v10215_v46  ;;  %v12053_v19 = vadd.f32 %v12052_v49, %v12051_v45 }
 0x577   : > { %v12140_v39 = vpop.f32.mrf.mxu1 }
 0x578   : > { %10440 = vst [vmem:[%s15611_s23 + $0xa8] sm:$0xff] %v10376_v9  ;;  %v12141_v52 = vadd.f32 %v12140_v39, %v12139_v21  ;;  %v10247_v21 = vadd.f32 %v12050_v26, %v15590_v58  ;;  %v12055_v9 = vpop.f32.mrf.mxu0 }
 0x579   : > { %v12142_v31 = vpop.f32.mrf.mxu1 }
 0x57a   : > { %v10381_v8 = vadd.f32 %v12141_v52, %v10220_v11  ;;  %v10252_v11 = vadd.f32 %v12053_v19, %v15595_v34  ;;  %v12056_v52 = vadd.f32 %v12055_v9, %v12054_v28 }
 0x57b   : > { %v12143_v37 = vpop.f32.mrf.mxu1 }
 0x57c   : > { %10441 = vst [vmem:[%s15611_s23 + $0xb0] sm:$0xff] %v10381_v8  ;;  %v12144_v33 = vadd.f32 %v12143_v37, %v12142_v31  ;;  %v10255_v37 = vadd.f32 %v12056_v52, %v15602_v57 }
 0x57d   : > { %v12145_v29 = vpop.f32.mrf.mxu1 }
 0x57e   : > { %v10384_v40 = vadd.f32 %v12144_v33, %v10223_v50 }
 0x57f   : > { %v12146_v15 = vpop.f32.mrf.mxu1 }
 0x580   : > { %10442 = vst [vmem:[%s15611_s23 + $0xb8] sm:$0xff] %v10384_v40  ;;  %v12147_v44 = vadd.f32 %v12146_v15, %v12145_v29 }
 0x581   : > { %v12148_v42 = vpop.f32.mrf.mxu1 }
 0x582   : > { %v10389_v61 = vadd.f32 %v12147_v44, %v10228_v0 }
 0x583   : > { %v12149_v51 = vpop.f32.mrf.mxu1 }
 0x584   : > { %10443 = vst [vmem:[%s15611_s23 + $0xc0] sm:$0xff] %v10389_v61  ;;  %v12150_v56 = vadd.f32 %v12149_v51, %v12148_v42 }
 0x585   : > { %v12151_v7 = vpop.f32.mrf.mxu1 }
 0x586   : > { %v10392_v41 = vadd.f32 %v12150_v56, %v10231_v43 }
 0x587   : > { %v12152_v32 = vpop.f32.mrf.mxu1 }
 0x588   : > { %10444 = vst [vmem:[%s15611_s23 + $0xc8] sm:$0xff] %v10392_v41  ;;  %v12153_v24 = vadd.f32 %v12152_v32, %v12151_v7 }
 0x589   : > { %v12154_v35 = vpop.f32.mrf.mxu1 }
 0x58a   : > { %v10397_v30 = vadd.f32 %v12153_v24, %v10236_v55 }
 0x58b   : > { %v12155_v14 = vpop.f32.mrf.mxu1 }
 0x58c   : > { %10445 = vst [vmem:[%s15611_s23 + $0xd0] sm:$0xff] %v10397_v30  ;;  %v12156_v36 = vadd.f32 %v12155_v14, %v12154_v35 }
 0x58d   : > { %v12157_v16 = vpop.f32.mrf.mxu1 }
 0x58e   : > { %v10400_v63 = vadd.f32 %v12156_v36, %v10239_v54 }
 0x58f   : > { %v12158_v1 = vpop.f32.mrf.mxu1 }
 0x590   : > { %10446 = vst [vmem:[%s15611_s23 + $0xd8] sm:$0xff] %v10400_v63  ;;  %v12159_v25 = vadd.f32 %v12158_v1, %v12157_v16 }
 0x591   : > { %v12160_v10 = vpop.f32.mrf.mxu1 }
 0x592   : > { %v10405_v18 = vadd.f32 %v12159_v25, %v10244_v6 }
 0x593   : > { %v12161_v46 = vpop.f32.mrf.mxu1 }
 0x594   : > { %10447 = vst [vmem:[%s15611_s23 + $0xe0] sm:$0xff] %v10405_v18  ;;  %v12162_v13 = vadd.f32 %v12161_v46, %v12160_v10 }
 0x595   : > { %v12163_v20 = vpop.f32.mrf.mxu1 }
 0x596   : > { %v10408_v39 = vadd.f32 %v12162_v13, %v10247_v21 }
 0x597   : > { %v12164_v4 = vpop.f32.mrf.mxu1 }
 0x598   : > { %10448 = vst [vmem:[%s15611_s23 + $0xe8] sm:$0xff] %v10408_v39  ;;  %v12165_v31 = vadd.f32 %v12164_v4, %v12163_v20 }
 0x599   : > { %v12166_v48 = vpop.f32.mrf.mxu1 }
 0x59a   : > { %v10413_v8 = vadd.f32 %v12165_v31, %v10252_v11 }
 0x59b   : > { %v12167_v59 = vpop.f32.mrf.mxu1 }
 0x59c   : > { %10449 = vst [vmem:[%s15611_s23 + $0xf0] sm:$0xff] %v10413_v8  ;;  %v12168_v38 = vadd.f32 %v12167_v59, %v12166_v48 }
 0x59e   : > { %v10416_v50 = vadd.f32 %v12168_v38, %v10255_v37 }
 0x5a0   : > { %10450 = vst [vmem:[%s15611_s23 + $0xf8] sm:$0xff] %v10416_v50 }
 0x5a1 PF: > { %s15_s18 = sadd.s32 1, %s12848_s18  }
 0x5a2   : > { %p12_p4 = scmp.ge.s32.totalorder %s15_s18, 4  }
 0x5a4   :  { %14 = sbr.rel (!%p12_p4) target bundleno = 1 (0x1), region = 76 }

</bundles_post_ra>
